<compile_context>
chip_gen: v5e
topology: v5e:2x2
jax: 0.10.0
libtpu: 0.0.40
codegen_flags: <defaults>
</compile_context>

<pallas_src>
import math

import numpy as np

import jax
import jax.numpy as jnp
from jax.experimental import pallas as pl
from jax.experimental.pallas import tpu as pltpu


# ----------------------------- static model config -----------------------------

BEV_CHANNELS = 4
BEV_H = 160
BEV_W = 160
MEAS_DIM = 8
STATES_NEURONS = (8, 16)
FEATURES_DIM = 64
# 'roach' encoder: (Cin, Cout, kernel, stride)  -- static Python ints (never traced)
CNN_SPECS = [(BEV_CHANNELS + 2, 8, 5, 2), (8, 16, 5, 2), (16, 32, 5, 2),
             (32, 64, 3, 2), (64, 128, 3, 2), (128, 256, 3, 1)]

COMPUTE_DTYPE = jnp.bfloat16

# samples per grid step for the three big conv layers and the fused tail
CONV_BBLK_CAP = (2, 4, 8)
TAIL_BBLK_CAP = 2


def _conv_out(size, k, s):
    return (size - k) // s + 1


def _cnn_spatial():
    h, w = BEV_H, BEV_W
    sizes = []
    for (_, _, k, s) in CNN_SPECS:
        h, w = _conv_out(h, k, s), _conv_out(w, k, s)
        sizes.append((h, w))
    return sizes


def _pick_bblk(n, cap):
    """Largest divisor of n that is <= cap while keeping >=2 grid steps (n>=2)."""
    limit = max(1, min(cap, n // 2)) if n >= 2 else 1
    for b in range(limit, 0, -1):
        if n % b == 0:
            return b
    return 1


def _const_index_map(rank):
    def imap(i):
        return (0,) * rank
    return imap


# ----------------------------- conv layers 1-3 (Pallas GEMM) -----------------------------

def _conv_gemm_kernel(w_ref, b_ref, x_ref, o_ref):
    """Block of samples: out[b] = relu(W (Cout,K) @ patches[b] (K,L) + bias)."""
    b_blk = x_ref.shape[0]
    w = w_ref[...]
    bias = b_ref[...]                               # (Cout, 1) broadcasts over lanes
    for bi in range(b_blk):                         # static unroll, b_blk small
        acc = jnp.dot(w, x_ref[bi], preferred_element_type=jnp.float32)
        o_ref[bi] = jnp.maximum(acc + bias, 0.0).astype(o_ref.dtype)


def conv_gemm_relu(w2d, bias_col, patches, b_blk):
    """w2d (Cout,K) bf16; patches (N,K,L) bf16; bias (Cout,1) f32 -> (N,Cout,L) bf16."""
    n, k_dim, l_dim = patches.shape
    c_out = w2d.shape[0]
    return pl.pallas_call(
        _conv_gemm_kernel,
        out_shape=jax.ShapeDtypeStruct((n, c_out, l_dim), COMPUTE_DTYPE),
        grid=(n // b_blk,),
        in_specs=[
            pl.BlockSpec((c_out, k_dim), lambda i: (0, 0)),
            pl.BlockSpec((c_out, 1), lambda i: (0, 0)),
            pl.BlockSpec((b_blk, k_dim, l_dim), lambda i: (i, 0, 0)),
        ],
        out_specs=pl.BlockSpec((b_blk, c_out, l_dim), lambda i: (i, 0, 0)),
        compiler_params=pltpu.CompilerParams(
            dimension_semantics=("parallel",)),
    )(w2d, bias_col, patches)


# ----------------------------- fused tail (layers 4-6 + MLPs) -----------------------------

def _tail_kernel(x3_ref, meas_ref,
                 s4_ref, s5_ref,
                 w4_ref, b4_ref, w5_ref, b5_ref, w6_ref, b6_ref,
                 ws1_ref, bs1_ref, ws2_ref, bs2_ref,
                 wl1a_ref, wl1b_ref, bl1_ref, wl2_ref, bl2_ref,
                 o_ref):
    """Layers 4-6 (im2col done in VMEM via constant selection matmuls), state MLP,
    concat (folded into split-weight dots) and both head linears. All f32 math."""
    f32 = jnp.float32
    bb = x3_ref.shape[0]
    w4 = w4_ref[...]                                # (288, 64)
    w5 = w5_ref[...]                                # (576, 128)

    c6_rows = []
    for bi in range(bb):                            # static unroll (bb small)
        x3 = x3_ref[bi].astype(f32)                 # (289, 32)  spatial-major
        # layer 4: 3x3 stride-2 conv; patches built by 9 selection matmuls
        p4 = jnp.concatenate(
            [jnp.dot(s4_ref[t], x3, preferred_element_type=f32) for t in range(9)],
            axis=1)                                 # (64, 288), cols ordered (tap, cin)
        a4 = jnp.maximum(
            jnp.dot(p4, w4, preferred_element_type=f32) + b4_ref[...], 0.0)   # (64, 64)
        # layer 5
        p5 = jnp.concatenate(
            [jnp.dot(s5_ref[t], a4, preferred_element_type=f32) for t in range(9)],
            axis=1)                                 # (9, 576)
        a5 = jnp.maximum(
            jnp.dot(p5, w5, preferred_element_type=f32) + b5_ref[...], 0.0)   # (9, 128)
        # layer 6: 3x3 conv over a 3x3 map == full contraction (sum of 9 dots)
        c6 = b6_ref[...]                            # (1, 256)
        for j in range(9):
            c6 = c6 + jnp.dot(a5[j:j + 1, :], w6_ref[j],
                              preferred_element_type=f32)
        c6_rows.append(jnp.maximum(c6, 0.0))
    c6_all = jnp.concatenate(c6_rows, axis=0)       # (bb, 256)

    # state MLP: meas -> 8 -> 16
    m = jnp.concatenate([meas_ref[bi] for bi in range(bb)], axis=0)           # (bb, 8)
    h = jnp.maximum(jnp.dot(m, ws1_ref[...], preferred_element_type=f32)
                    + bs1_ref[...], 0.0)
    h = jnp.maximum(jnp.dot(h, ws2_ref[...], preferred_element_type=f32)
                    + bs2_ref[...], 0.0)            # (bb, 16)

    # head linear 1: concat(c6, h) @ W1 == c6 @ W1[:256] + h @ W1[256:]
    z = jnp.dot(c6_all, wl1a_ref[...], preferred_element_type=f32)
    z = z + jnp.dot(h, wl1b_ref[...], preferred_element_type=f32) + bl1_ref[...]
    z = jnp.maximum(z, 0.0)                         # (bb, 512)

    # head linear 2 (+ final ReLU, matching the PyTorch head)
    out = jnp.dot(z, wl2_ref[...], preferred_element_type=f32) + bl2_ref[...]
    out = jnp.maximum(out, 0.0).astype(o_ref.dtype) # (bb, 64)
    for bi in range(bb):
        o_ref[bi] = out[bi:bi + 1, :]


def tail_fused(tp, x3_sc, meas3, b_blk):
    """x3_sc (N,289,32) bf16; meas3 (N,1,8) f32 -> (N,1,FEATURES_DIM) f32."""
    n = x3_sc.shape[0]
    weights = [tp["s4"], tp["s5"], tp["w4"], tp["b4"], tp["w5"], tp["b5"],
               tp["w6"], tp["b6"], tp["ws1"], tp["bs1"], tp["ws2"], tp["bs2"],
               tp["wl1a"], tp["wl1b"], tp["bl1"], tp["wl2"], tp["bl2"]]
    in_specs = [
        pl.BlockSpec((b_blk, x3_sc.shape[1], x3_sc.shape[2]), lambda i: (i, 0, 0)),
        pl.BlockSpec((b_blk, 1, MEAS_DIM), lambda i: (i, 0, 0)),
    ]
    for wgt in weights:
        in_specs.append(pl.BlockSpec(wgt.shape, _const_index_map(wgt.ndim)))
    return pl.pallas_call(
        _tail_kernel,
        out_shape=jax.ShapeDtypeStruct((n, 1, FEATURES_DIM), jnp.float32),
        grid=(n // b_blk,),
        in_specs=in_specs,
        out_specs=pl.BlockSpec((b_blk, 1, FEATURES_DIM), lambda i: (i, 0, 0)),
        compiler_params=pltpu.CompilerParams(
            dimension_semantics=("parallel",)),
    )(x3_sc, meas3, *weights)


# ----------------------------- XLA-side patch extraction -----------------------------

def _im2col(x, k, s):
    """x (N,C,H,W) -> patches (N, k*k*C, Ho*Wo); K ordered (kh, kw, c).

    Uses one space-to-depth reorg so all k*k tap slices are contiguous."""
    n, c, h, w = x.shape
    ho, wo = _conv_out(h, k, s), _conv_out(w, k, s)
    if s == 1:
        xs = x[:, None, None]                         # (N,1,1,C,H,W)
    else:
        hp = -(-h // s) * s
        wp = -(-w // s) * s
        xpad = jnp.pad(x, ((0, 0), (0, 0), (0, hp - h), (0, wp - w)))
        xs = xpad.reshape(n, c, hp // s, s, wp // s, s)
        xs = xs.transpose(0, 3, 5, 1, 2, 4)           # (N, s, s, C, H/s, W/s)
    cols = []
    for kh in range(k):
        for kw in range(k):
            ph, dh = kh % s, kh // s
            pw, dw = kw % s, kw // s
            cols.append(xs[:, ph, pw, :, dh:dh + ho, dw:dw + wo])   # contiguous
    p = jnp.stack(cols, axis=1)                        # (N, k*k, C, Ho, Wo)
    return p.reshape(n, k * k * c, ho * wo), ho, wo


def _sel_matrix(in_hw, out_hw, k, s):
    """Constant 0/1 im2col selection matrices: (k*k, out_hw^2, in_hw^2)."""
    m = np.zeros((k * k, out_hw * out_hw, in_hw * in_hw), np.float32)
    for kh in range(k):
        for kw in range(k):
            t = kh * k + kw
            for i in range(out_hw):
                for j in range(out_hw):
                    m[t, i * out_hw + j, (s * i + kh) * in_hw + (s * j + kw)] = 1.0
    return jnp.asarray(m)


# ----------------------------- parameters -----------------------------

def init_params(key):
    """Deterministic init (xavier-uniform with ReLU gain + bias 0.1 for convs,
    torch-Linear-style uniform for linears). Weights stored pre-reshaped / pre-cast
    in the layouts the kernels consume."""
    spatial = _cnn_spatial()
    assert spatial[2] == (17, 17) and spatial[3] == (8, 8), spatial
    assert spatial[4] == (3, 3) and spatial[5] == (1, 1), spatial

    keys = iter(jax.random.split(key, 16))
    cd = COMPUTE_DTYPE
    f32 = jnp.float32

    conv_w = []
    for (ci, co, k, _s) in CNN_SPECS:
        fan_in, fan_out = ci * k * k, co * k * k
        bound = math.sqrt(2.0) * math.sqrt(6.0 / (fan_in + fan_out))
        w = jax.random.uniform(next(keys), (co, ci, k, k),
                               minval=-bound, maxval=bound, dtype=f32)
        conv_w.append((w, jnp.full((co,), 0.1, f32)))

    params = {"conv": [], "tail": {}}

    # layers 1-3: W2d (Cout, k*k*Cin), rows of K ordered (kh, kw, cin)
    for li in range(3):
        w, b = conv_w[li]
        co, ci, k, _ = w.shape
        w2d = w.transpose(0, 2, 3, 1).reshape(co, k * k * ci)
        params["conv"].append((w2d.astype(cd), b.reshape(co, 1)))

    t = params["tail"]
    # layers 4-6: transposed layouts (rows ordered (kh, kw, cin)), kept in f32
    w4, b4 = conv_w[3]
    w5, b5 = conv_w[4]
    w6, b6 = conv_w[5]
    t["w4"] = w4.transpose(2, 3, 1, 0).reshape(9 * w4.shape[1], w4.shape[0])   # (288, 64)
    t["b4"] = b4.reshape(1, -1)
    t["w5"] = w5.transpose(2, 3, 1, 0).reshape(9 * w5.shape[1], w5.shape[0])   # (576, 128)
    t["b5"] = b5.reshape(1, -1)
    t["w6"] = w6.transpose(2, 3, 1, 0).reshape(9, w6.shape[1], w6.shape[0])    # (9, 128, 256)
    t["b6"] = b6.reshape(1, -1)
    # constant im2col selection matrices for layers 4 and 5
    t["s4"] = _sel_matrix(17, 8, 3, 2)      # (9, 64, 289)
    t["s5"] = _sel_matrix(8, 3, 3, 2)       # (9, 9, 64)

    # state MLP: meas -> 8 -> 16 (torch default Linear init)
    dims = [MEAS_DIM] + list(STATES_NEURONS)
    for i, (wn, bn) in enumerate((("ws1", "bs1"), ("ws2", "bs2"))):
        bound = 1.0 / math.sqrt(dims[i])
        t[wn] = jax.random.uniform(next(keys), (dims[i], dims[i + 1]),
                                   minval=-bound, maxval=bound, dtype=f32)
        t[bn] = jax.random.uniform(next(keys), (dims[i + 1],),
                                   minval=-bound, maxval=bound,
                                   dtype=f32).reshape(1, -1)

    # head linears (concat weight split into the conv part and the state part)
    n_flatten = CNN_SPECS[5][1]             # 256
    in1 = n_flatten + STATES_NEURONS[-1]
    bound = 1.0 / math.sqrt(in1)
    w1 = jax.random.uniform(next(keys), (in1, 512), minval=-bound, maxval=bound, dtype=f32)
    b1 = jax.random.uniform(next(keys), (512,), minval=-bound, maxval=bound, dtype=f32)
    t["wl1a"], t["wl1b"], t["bl1"] = w1[:n_flatten], w1[n_flatten:], b1.reshape(1, 512)
    bound = 1.0 / math.sqrt(512)
    t["wl2"] = jax.random.uniform(next(keys), (512, FEATURES_DIM),
                                  minval=-bound, maxval=bound, dtype=f32)
    t["bl2"] = jax.random.uniform(next(keys), (FEATURES_DIM,),
                                  minval=-bound, maxval=bound, dtype=f32).reshape(1, -1)
    return params


# ----------------------------- forward pass -----------------------------

def xtma_cnn_forward(params, bev_semantics, measurements):
    """bev_semantics: (N, C, H, W) f32; measurements: (N, MEAS_DIM) f32."""
    n, _, h, w = bev_semantics.shape
    cd = COMPUTE_DTYPE

    # positional encoding (batch-invariant), matches torch.meshgrid(..., 'ij')
    hs = jnp.linspace(-1.0, 1.0, h)
    ws = jnp.linspace(-1.0, 1.0, w)
    y_grid, x_grid = jnp.meshgrid(hs, ws, indexing="ij")
    pos = jnp.stack([y_grid, x_grid], axis=0)[None].astype(cd)      # (1, 2, H, W)
    x = jnp.concatenate(
        [bev_semantics.astype(cd), jnp.broadcast_to(pos, (n, 2, h, w))], axis=1)

    # conv layers 1-3: space-to-depth im2col (XLA) + multi-sample Pallas GEMM
    # TODO(synk): moving this im2col fully inside the kernel (VMEM-only patches)
    # would remove the remaining HBM round trip for layers 1-3.
    for li in range(3):
        _, c_out, k, s = CNN_SPECS[li]          # static ints, never traced
        w2d, bias_col = params["conv"][li]
        patches, ho, wo = _im2col(x, k, s)
        y = conv_gemm_relu(w2d, bias_col, patches, _pick_bblk(n, CONV_BBLK_CAP[li]))
        x = y.reshape(n, c_out, ho, wo)

    # layers 4-6 + state MLP + heads fused; tail wants (spatial, channel) layout
    l3 = x.shape[2] * x.shape[3]
    x3_sc = jnp.transpose(x.reshape(n, x.shape[1], l3), (0, 2, 1))  # (N, 289, 32)
    meas3 = measurements.astype(jnp.float32).reshape(n, 1, MEAS_DIM)
    out = tail_fused(params["tail"], x3_sc, meas3, _pick_bblk(n, TAIL_BBLK_CAP))
    return out.reshape(n, FEATURES_DIM)


# TODO(synk): CustomCnn branch (timm backbone) and the LayerNorm variants
# ('roach_ln'/'roach_ln2', use_layer_norm=True) have no in-script equivalent;
# only the 'roach' encoder path without layer norm is implemented.


if __name__ == "__main__":
    key = jax.random.PRNGKey(0)
    k_bev, k_meas, k_params = jax.random.split(key, 3)

    bev = jax.random.uniform(k_bev, (2, BEV_CHANNELS, BEV_H, BEV_W),
                             dtype=jnp.float32)
    meas = jax.random.normal(k_meas, (2, MEAS_DIM), dtype=jnp.float32)
    params = init_params(k_params)

    fwd = jax.jit(xtma_cnn_forward)
    out = fwd(params, bev, meas)
    jax.block_until_ready(out)
    assert out.shape == (2, FEATURES_DIM), out.shape
    assert bool(jnp.all(jnp.isfinite(out))), "non-finite output"
    print("KERNEL_OK")
</pallas_src>

<mosaic_0001>
module attributes {stable_mosaic.version = 11 : i64} {
  func.func @_conv_gemm_kernel(%arg0: i32, %arg1: memref<8x150xbf16, #tpu.memory_space<vmem>>, %arg2: memref<8x1xf32, #tpu.memory_space<vmem>>, %arg3: memref<1x150x6084xbf16, #tpu.memory_space<vmem>>, %arg4: memref<1x8x6084xbf16, #tpu.memory_space<vmem>>) attributes {dimension_semantics = [#tpu.dimension_semantics<parallel>], iteration_bounds = array<i64: 2>, scalar_prefetch = 0 : i64, scratch_operands = 0 : i64, tpu.core_type = #tpu.core_type<tc>, window_params = [{pipeline_mode = #tpu.pipeline_mode<synchronous>, transform_indices = @transform_0, window_bounds = array<i64: 8, 150>}, {pipeline_mode = #tpu.pipeline_mode<synchronous>, transform_indices = @transform_1, window_bounds = array<i64: 8, 1>}, {transform_indices = @transform_2, window_bounds = array<i64: 1, 150, 6084>}, {transform_indices = @transform_3, window_bounds = array<i64: 1, 8, 6084>}]} {
    %c0 = arith.constant 0 : index
    %c0_0 = arith.constant 0 : index
    %0 = vector.load %arg1[%c0, %c0_0] : memref<8x150xbf16, #tpu.memory_space<vmem>>, vector<8x150xbf16>
    %c0_1 = arith.constant 0 : index
    %c0_2 = arith.constant 0 : index
    %1 = vector.load %arg2[%c0_1, %c0_2] : memref<8x1xf32, #tpu.memory_space<vmem>>, vector<8x1xf32>
    %c0_3 = arith.constant 0 : index
    %c0_4 = arith.constant 0 : index
    %c0_5 = arith.constant 0 : index
    %2 = vector.load %arg3[%c0_3, %c0_4, %c0_5] : memref<1x150x6084xbf16, #tpu.memory_space<vmem>>, vector<1x150x6084xbf16>
    %3 = vector.shape_cast %2 : vector<1x150x6084xbf16> to vector<150x6084xbf16>
    %cst = arith.constant dense<0.000000e+00> : vector<8x6084xf32>
    %4 = tpu.matmul %0, %3, %cst {dimension_numbers = #tpu.dot_dimension_numbers<[1], [0], [0], [1], [0, 0, 1, 1], [], []>} : vector<8x150xbf16>, vector<150x6084xbf16>, vector<8x6084xf32> -> vector<8x6084xf32>
    %5 = vector.broadcast %1 : vector<8x1xf32> to vector<8x6084xf32>
    %6 = arith.addf %4, %5 : vector<8x6084xf32>
    %cst_6 = arith.constant 0.000000e+00 : f32
    %7 = vector.broadcast %cst_6 : f32 to vector<8x6084xf32>
    %8 = arith.maximumf %6, %7 : vector<8x6084xf32>
    %9 = arith.truncf %8 : vector<8x6084xf32> to vector<8x6084xbf16>
    %c0_7 = arith.constant 0 : index
    %c0_8 = arith.constant 0 : index
    %c0_9 = arith.constant 0 : index
    %10 = vector.load %arg4[%c0_7, %c0_8, %c0_9] : memref<1x8x6084xbf16, #tpu.memory_space<vmem>>, vector<1x8x6084xbf16>
    %11 = vector.shape_cast %10 : vector<1x8x6084xbf16> to vector<8x6084xbf16>
    %12 = vector.shape_cast %9 : vector<8x6084xbf16> to vector<1x8x6084xbf16>
    tpu.vector_store %arg4[%c0_7, %c0_8, %c0_9], %12 {strides = array<i32>} : memref<1x8x6084xbf16, #tpu.memory_space<vmem>>, vector<1x8x6084xbf16>,
    return
  }
  func.func @transform_0(%arg0: i32) -> (i32, i32) {
    %c0_i32 = arith.constant 0 : i32
    %c0_i32_0 = arith.constant 0 : i32
    %c0_i32_1 = arith.constant 0 : i32
    return %c0_i32, %c0_i32_0 : i32, i32
  }
  func.func @transform_1(%arg0: i32) -> (i32, i32) {
    %c0_i32 = arith.constant 0 : i32
    %c0_i32_0 = arith.constant 0 : i32
    %c0_i32_1 = arith.constant 0 : i32
    return %c0_i32, %c0_i32_0 : i32, i32
  }
  func.func @transform_2(%arg0: i32) -> (i32, i32, i32) {
    %c0_i32 = arith.constant 0 : i32
    %c0_i32_0 = arith.constant 0 : i32
    %c0_i32_1 = arith.constant 0 : i32
    return %arg0, %c0_i32, %c0_i32_0 : i32, i32, i32
  }
  func.func @transform_3(%arg0: i32) -> (i32, i32, i32) {
    %c0_i32 = arith.constant 0 : i32
    %c0_i32_0 = arith.constant 0 : i32
    %c0_i32_1 = arith.constant 0 : i32
    return %arg0, %c0_i32, %c0_i32_0 : i32, i32, i32
  }
}

module attributes {stable_mosaic.version = 11 : i64} {
  func.func @_conv_gemm_kernel(%arg0: i32, %arg1: memref<16x200xbf16, #tpu.memory_space<vmem>>, %arg2: memref<16x1xf32, #tpu.memory_space<vmem>>, %arg3: memref<1x200x1369xbf16, #tpu.memory_space<vmem>>, %arg4: memref<1x16x1369xbf16, #tpu.memory_space<vmem>>) attributes {dimension_semantics = [#tpu.dimension_semantics<parallel>], iteration_bounds = array<i64: 2>, scalar_prefetch = 0 : i64, scratch_operands = 0 : i64, tpu.core_type = #tpu.core_type<tc>, window_params = [{pipeline_mode = #tpu.pipeline_mode<synchronous>, transform_indices = @transform_0, window_bounds = array<i64: 16, 200>}, {pipeline_mode = #tpu.pipeline_mode<synchronous>, transform_indices = @transform_1, window_bounds = array<i64: 16, 1>}, {transform_indices = @transform_2, window_bounds = array<i64: 1, 200, 1369>}, {transform_indices = @transform_3, window_bounds = array<i64: 1, 16, 1369>}]} {
    %c0 = arith.constant 0 : index
    %c0_0 = arith.constant 0 : index
    %0 = vector.load %arg1[%c0, %c0_0] : memref<16x200xbf16, #tpu.memory_space<vmem>>, vector<16x200xbf16>
    %c0_1 = arith.constant 0 : index
    %c0_2 = arith.constant 0 : index
    %1 = vector.load %arg2[%c0_1, %c0_2] : memref<16x1xf32, #tpu.memory_space<vmem>>, vector<16x1xf32>
    %c0_3 = arith.constant 0 : index
    %c0_4 = arith.constant 0 : index
    %c0_5 = arith.constant 0 : index
    %2 = vector.load %arg3[%c0_3, %c0_4, %c0_5] : memref<1x200x1369xbf16, #tpu.memory_space<vmem>>, vector<1x200x1369xbf16>
    %3 = vector.shape_cast %2 : vector<1x200x1369xbf16> to vector<200x1369xbf16>
    %cst = arith.constant dense<0.000000e+00> : vector<16x1369xf32>
    %4 = tpu.matmul %0, %3, %cst {dimension_numbers = #tpu.dot_dimension_numbers<[1], [0], [0], [1], [0, 0, 1, 1], [], []>} : vector<16x200xbf16>, vector<200x1369xbf16>, vector<16x1369xf32> -> vector<16x1369xf32>
    %5 = vector.broadcast %1 : vector<16x1xf32> to vector<16x1369xf32>
    %6 = arith.addf %4, %5 : vector<16x1369xf32>
    %cst_6 = arith.constant 0.000000e+00 : f32
    %7 = vector.broadcast %cst_6 : f32 to vector<16x1369xf32>
    %8 = arith.maximumf %6, %7 : vector<16x1369xf32>
    %9 = arith.truncf %8 : vector<16x1369xf32> to vector<16x1369xbf16>
    %c0_7 = arith.constant 0 : index
    %c0_8 = arith.constant 0 : index
    %c0_9 = arith.constant 0 : index
    %10 = vector.load %arg4[%c0_7, %c0_8, %c0_9] : memref<1x16x1369xbf16, #tpu.memory_space<vmem>>, vector<1x16x1369xbf16>
    %11 = vector.shape_cast %10 : vector<1x16x1369xbf16> to vector<16x1369xbf16>
    %12 = vector.shape_cast %9 : vector<16x1369xbf16> to vector<1x16x1369xbf16>
    tpu.vector_store %arg4[%c0_7, %c0_8, %c0_9], %12 {strides = array<i32>} : memref<1x16x1369xbf16, #tpu.memory_space<vmem>>, vector<1x16x1369xbf16>,
    return
  }
  func.func @transform_0(%arg0: i32) -> (i32, i32) {
    %c0_i32 = arith.constant 0 : i32
    %c0_i32_0 = arith.constant 0 : i32
    %c0_i32_1 = arith.constant 0 : i32
    return %c0_i32, %c0_i32_0 : i32, i32
  }
  func.func @transform_1(%arg0: i32) -> (i32, i32) {
    %c0_i32 = arith.constant 0 : i32
    %c0_i32_0 = arith.constant 0 : i32
    %c0_i32_1 = arith.constant 0 : i32
    return %c0_i32, %c0_i32_0 : i32, i32
  }
  func.func @transform_2(%arg0: i32) -> (i32, i32, i32) {
    %c0_i32 = arith.constant 0 : i32
    %c0_i32_0 = arith.constant 0 : i32
    %c0_i32_1 = arith.constant 0 : i32
    return %arg0, %c0_i32, %c0_i32_0 : i32, i32, i32
  }
  func.func @transform_3(%arg0: i32) -> (i32, i32, i32) {
    %c0_i32 = arith.constant 0 : i32
    %c0_i32_0 = arith.constant 0 : i32
    %c0_i32_1 = arith.constant 0 : i32
    return %arg0, %c0_i32, %c0_i32_0 : i32, i32, i32
  }
}

module attributes {stable_mosaic.version = 11 : i64} {
  func.func @_conv_gemm_kernel(%arg0: i32, %arg1: memref<32x400xbf16, #tpu.memory_space<vmem>>, %arg2: memref<32x1xf32, #tpu.memory_space<vmem>>, %arg3: memref<1x400x289xbf16, #tpu.memory_space<vmem>>, %arg4: memref<1x32x289xbf16, #tpu.memory_space<vmem>>) attributes {dimension_semantics = [#tpu.dimension_semantics<parallel>], iteration_bounds = array<i64: 2>, scalar_prefetch = 0 : i64, scratch_operands = 0 : i64, tpu.core_type = #tpu.core_type<tc>, window_params = [{pipeline_mode = #tpu.pipeline_mode<synchronous>, transform_indices = @transform_0, window_bounds = array<i64: 32, 400>}, {pipeline_mode = #tpu.pipeline_mode<synchronous>, transform_indices = @transform_1, window_bounds = array<i64: 32, 1>}, {transform_indices = @transform_2, window_bounds = array<i64: 1, 400, 289>}, {transform_indices = @transform_3, window_bounds = array<i64: 1, 32, 289>}]} {
    %c0 = arith.constant 0 : index
    %c0_0 = arith.constant 0 : index
    %0 = vector.load %arg1[%c0, %c0_0] : memref<32x400xbf16, #tpu.memory_space<vmem>>, vector<32x400xbf16>
    %c0_1 = arith.constant 0 : index
    %c0_2 = arith.constant 0 : index
    %1 = vector.load %arg2[%c0_1, %c0_2] : memref<32x1xf32, #tpu.memory_space<vmem>>, vector<32x1xf32>
    %c0_3 = arith.constant 0 : index
    %c0_4 = arith.constant 0 : index
    %c0_5 = arith.constant 0 : index
    %2 = vector.load %arg3[%c0_3, %c0_4, %c0_5] : memref<1x400x289xbf16, #tpu.memory_space<vmem>>, vector<1x400x289xbf16>
    %3 = vector.shape_cast %2 : vector<1x400x289xbf16> to vector<400x289xbf16>
    %cst = arith.constant dense<0.000000e+00> : vector<32x289xf32>
    %4 = tpu.matmul %0, %3, %cst {dimension_numbers = #tpu.dot_dimension_numbers<[1], [0], [0], [1], [0, 0, 1, 1], [], []>} : vector<32x400xbf16>, vector<400x289xbf16>, vector<32x289xf32> -> vector<32x289xf32>
    %5 = vector.broadcast %1 : vector<32x1xf32> to vector<32x289xf32>
    %6 = arith.addf %4, %5 : vector<32x289xf32>
    %cst_6 = arith.constant 0.000000e+00 : f32
    %7 = vector.broadcast %cst_6 : f32 to vector<32x289xf32>
    %8 = arith.maximumf %6, %7 : vector<32x289xf32>
    %9 = arith.truncf %8 : vector<32x289xf32> to vector<32x289xbf16>
    %c0_7 = arith.constant 0 : index
    %c0_8 = arith.constant 0 : index
    %c0_9 = arith.constant 0 : index
    %10 = vector.load %arg4[%c0_7, %c0_8, %c0_9] : memref<1x32x289xbf16, #tpu.memory_space<vmem>>, vector<1x32x289xbf16>
    %11 = vector.shape_cast %10 : vector<1x32x289xbf16> to vector<32x289xbf16>
    %12 = vector.shape_cast %9 : vector<32x289xbf16> to vector<1x32x289xbf16>
    tpu.vector_store %arg4[%c0_7, %c0_8, %c0_9], %12 {strides = array<i32>} : memref<1x32x289xbf16, #tpu.memory_space<vmem>>, vector<1x32x289xbf16>,
    return
  }
  func.func @transform_0(%arg0: i32) -> (i32, i32) {
    %c0_i32 = arith.constant 0 : i32
    %c0_i32_0 = arith.constant 0 : i32
    %c0_i32_1 = arith.constant 0 : i32
    return %c0_i32, %c0_i32_0 : i32, i32
  }
  func.func @transform_1(%arg0: i32) -> (i32, i32) {
    %c0_i32 = arith.constant 0 : i32
    %c0_i32_0 = arith.constant 0 : i32
    %c0_i32_1 = arith.constant 0 : i32
    return %c0_i32, %c0_i32_0 : i32, i32
  }
  func.func @transform_2(%arg0: i32) -> (i32, i32, i32) {
    %c0_i32 = arith.constant 0 : i32
    %c0_i32_0 = arith.constant 0 : i32
    %c0_i32_1 = arith.constant 0 : i32
    return %arg0, %c0_i32, %c0_i32_0 : i32, i32, i32
  }
  func.func @transform_3(%arg0: i32) -> (i32, i32, i32) {
    %c0_i32 = arith.constant 0 : i32
    %c0_i32_0 = arith.constant 0 : i32
    %c0_i32_1 = arith.constant 0 : i32
    return %arg0, %c0_i32, %c0_i32_0 : i32, i32, i32
  }
}

module attributes {stable_mosaic.version = 11 : i64} {
  func.func @_tail_kernel(%arg0: i32, %arg1: memref<1x289x32xbf16, #tpu.memory_space<vmem>>, %arg2: memref<1x1x8xf32, #tpu.memory_space<vmem>>, %arg3: memref<9x64x289xf32, #tpu.memory_space<vmem>>, %arg4: memref<9x9x64xf32, #tpu.memory_space<vmem>>, %arg5: memref<288x64xf32, #tpu.memory_space<vmem>>, %arg6: memref<1x64xf32, #tpu.memory_space<vmem>>, %arg7: memref<576x128xf32, #tpu.memory_space<vmem>>, %arg8: memref<1x128xf32, #tpu.memory_space<vmem>>, %arg9: memref<9x128x256xf32, #tpu.memory_space<vmem>>, %arg10: memref<1x256xf32, #tpu.memory_space<vmem>>, %arg11: memref<8x8xf32, #tpu.memory_space<vmem>>, %arg12: memref<1x8xf32, #tpu.memory_space<vmem>>, %arg13: memref<8x16xf32, #tpu.memory_space<vmem>>, %arg14: memref<1x16xf32, #tpu.memory_space<vmem>>, %arg15: memref<256x512xf32, #tpu.memory_space<vmem>>, %arg16: memref<16x512xf32, #tpu.memory_space<vmem>>, %arg17: memref<1x512xf32, #tpu.memory_space<vmem>>, %arg18: memref<512x64xf32, #tpu.memory_space<vmem>>, %arg19: memref<1x64xf32, #tpu.memory_space<vmem>>, %arg20: memref<1x1x64xf32, #tpu.memory_space<vmem>>) attributes {dimension_semantics = [#tpu.dimension_semantics<parallel>], iteration_bounds = array<i64: 2>, scalar_prefetch = 0 : i64, scratch_operands = 0 : i64, tpu.core_type = #tpu.core_type<tc>, window_params = [{transform_indices = @transform_0, window_bounds = array<i64: 1, 289, 32>}, {transform_indices = @transform_1, window_bounds = array<i64: 1, 1, 8>}, {pipeline_mode = #tpu.pipeline_mode<synchronous>, transform_indices = @transform_2, window_bounds = array<i64: 9, 64, 289>}, {pipeline_mode = #tpu.pipeline_mode<synchronous>, transform_indices = @transform_3, window_bounds = array<i64: 9, 9, 64>}, {pipeline_mode = #tpu.pipeline_mode<synchronous>, transform_indices = @transform_4, window_bounds = array<i64: 288, 64>}, {pipeline_mode = #tpu.pipeline_mode<synchronous>, transform_indices = @transform_5, window_bounds = array<i64: 1, 64>}, {pipeline_mode = #tpu.pipeline_mode<synchronous>, transform_indices = @transform_6, window_bounds = array<i64: 576, 128>}, {pipeline_mode = #tpu.pipeline_mode<synchronous>, transform_indices = @transform_7, window_bounds = array<i64: 1, 128>}, {pipeline_mode = #tpu.pipeline_mode<synchronous>, transform_indices = @transform_8, window_bounds = array<i64: 9, 128, 256>}, {pipeline_mode = #tpu.pipeline_mode<synchronous>, transform_indices = @transform_9, window_bounds = array<i64: 1, 256>}, {pipeline_mode = #tpu.pipeline_mode<synchronous>, transform_indices = @transform_10, window_bounds = array<i64: 8, 8>}, {pipeline_mode = #tpu.pipeline_mode<synchronous>, transform_indices = @transform_11, window_bounds = array<i64: 1, 8>}, {pipeline_mode = #tpu.pipeline_mode<synchronous>, transform_indices = @transform_12, window_bounds = array<i64: 8, 16>}, {pipeline_mode = #tpu.pipeline_mode<synchronous>, transform_indices = @transform_13, window_bounds = array<i64: 1, 16>}, {pipeline_mode = #tpu.pipeline_mode<synchronous>, transform_indices = @transform_14, window_bounds = array<i64: 256, 512>}, {pipeline_mode = #tpu.pipeline_mode<synchronous>, transform_indices = @transform_15, window_bounds = array<i64: 16, 512>}, {pipeline_mode = #tpu.pipeline_mode<synchronous>, transform_indices = @transform_16, window_bounds = array<i64: 1, 512>}, {pipeline_mode = #tpu.pipeline_mode<synchronous>, transform_indices = @transform_17, window_bounds = array<i64: 512, 64>}, {pipeline_mode = #tpu.pipeline_mode<synchronous>, transform_indices = @transform_18, window_bounds = array<i64: 1, 64>}, {transform_indices = @transform_19, window_bounds = array<i64: 1, 1, 64>}]} {
    %c0 = arith.constant 0 : index
    %c0_0 = arith.constant 0 : index
    %0 = vector.load %arg5[%c0, %c0_0] : memref<288x64xf32, #tpu.memory_space<vmem>>, vector<288x64xf32>
    %c0_1 = arith.constant 0 : index
    %c0_2 = arith.constant 0 : index
    %1 = vector.load %arg7[%c0_1, %c0_2] : memref<576x128xf32, #tpu.memory_space<vmem>>, vector<576x128xf32>
    %c0_3 = arith.constant 0 : index
    %c0_4 = arith.constant 0 : index
    %c0_5 = arith.constant 0 : index
    %2 = vector.load %arg1[%c0_3, %c0_4, %c0_5] : memref<1x289x32xbf16, #tpu.memory_space<vmem>>, vector<1x289x32xbf16>
    %3 = vector.shape_cast %2 : vector<1x289x32xbf16> to vector<289x32xbf16>
    %4 = arith.extf %3 : vector<289x32xbf16> to vector<289x32xf32>
    %c0_6 = arith.constant 0 : index
    %c0_7 = arith.constant 0 : index
    %c0_8 = arith.constant 0 : index
    %5 = vector.load %arg3[%c0_6, %c0_7, %c0_8] : memref<9x64x289xf32, #tpu.memory_space<vmem>>, vector<1x64x289xf32>
    %6 = vector.shape_cast %5 : vector<1x64x289xf32> to vector<64x289xf32>
    %cst = arith.constant dense<0.000000e+00> : vector<64x32xf32>
    %7 = tpu.matmul %6, %4, %cst {dimension_numbers = #tpu.dot_dimension_numbers<[1], [0], [0], [1], [0, 0, 1, 1], [], []>} : vector<64x289xf32>, vector<289x32xf32>, vector<64x32xf32> -> vector<64x32xf32>
    %c1 = arith.constant 1 : index
    %c0_9 = arith.constant 0 : index
    %c0_10 = arith.constant 0 : index
    %8 = vector.load %arg3[%c1, %c0_9, %c0_10] : memref<9x64x289xf32, #tpu.memory_space<vmem>>, vector<1x64x289xf32>
    %9 = vector.shape_cast %8 : vector<1x64x289xf32> to vector<64x289xf32>
    %cst_11 = arith.constant dense<0.000000e+00> : vector<64x32xf32>
    %10 = tpu.matmul %9, %4, %cst_11 {dimension_numbers = #tpu.dot_dimension_numbers<[1], [0], [0], [1], [0, 0, 1, 1], [], []>} : vector<64x289xf32>, vector<289x32xf32>, vector<64x32xf32> -> vector<64x32xf32>
    %c2 = arith.constant 2 : index
    %c0_12 = arith.constant 0 : index
    %c0_13 = arith.constant 0 : index
    %11 = vector.load %arg3[%c2, %c0_12, %c0_13] : memref<9x64x289xf32, #tpu.memory_space<vmem>>, vector<1x64x289xf32>
    %12 = vector.shape_cast %11 : vector<1x64x289xf32> to vector<64x289xf32>
    %cst_14 = arith.constant dense<0.000000e+00> : vector<64x32xf32>
    %13 = tpu.matmul %12, %4, %cst_14 {dimension_numbers = #tpu.dot_dimension_numbers<[1], [0], [0], [1], [0, 0, 1, 1], [], []>} : vector<64x289xf32>, vector<289x32xf32>, vector<64x32xf32> -> vector<64x32xf32>
    %c3 = arith.constant 3 : index
    %c0_15 = arith.constant 0 : index
    %c0_16 = arith.constant 0 : index
    %14 = vector.load %arg3[%c3, %c0_15, %c0_16] : memref<9x64x289xf32, #tpu.memory_space<vmem>>, vector<1x64x289xf32>
    %15 = vector.shape_cast %14 : vector<1x64x289xf32> to vector<64x289xf32>
    %cst_17 = arith.constant dense<0.000000e+00> : vector<64x32xf32>
    %16 = tpu.matmul %15, %4, %cst_17 {dimension_numbers = #tpu.dot_dimension_numbers<[1], [0], [0], [1], [0, 0, 1, 1], [], []>} : vector<64x289xf32>, vector<289x32xf32>, vector<64x32xf32> -> vector<64x32xf32>
    %c4 = arith.constant 4 : index
    %c0_18 = arith.constant 0 : index
    %c0_19 = arith.constant 0 : index
    %17 = vector.load %arg3[%c4, %c0_18, %c0_19] : memref<9x64x289xf32, #tpu.memory_space<vmem>>, vector<1x64x289xf32>
    %18 = vector.shape_cast %17 : vector<1x64x289xf32> to vector<64x289xf32>
    %cst_20 = arith.constant dense<0.000000e+00> : vector<64x32xf32>
    %19 = tpu.matmul %18, %4, %cst_20 {dimension_numbers = #tpu.dot_dimension_numbers<[1], [0], [0], [1], [0, 0, 1, 1], [], []>} : vector<64x289xf32>, vector<289x32xf32>, vector<64x32xf32> -> vector<64x32xf32>
    %c5 = arith.constant 5 : index
    %c0_21 = arith.constant 0 : index
    %c0_22 = arith.constant 0 : index
    %20 = vector.load %arg3[%c5, %c0_21, %c0_22] : memref<9x64x289xf32, #tpu.memory_space<vmem>>, vector<1x64x289xf32>
    %21 = vector.shape_cast %20 : vector<1x64x289xf32> to vector<64x289xf32>
    %cst_23 = arith.constant dense<0.000000e+00> : vector<64x32xf32>
    %22 = tpu.matmul %21, %4, %cst_23 {dimension_numbers = #tpu.dot_dimension_numbers<[1], [0], [0], [1], [0, 0, 1, 1], [], []>} : vector<64x289xf32>, vector<289x32xf32>, vector<64x32xf32> -> vector<64x32xf32>
    %c6 = arith.constant 6 : index
    %c0_24 = arith.constant 0 : index
    %c0_25 = arith.constant 0 : index
    %23 = vector.load %arg3[%c6, %c0_24, %c0_25] : memref<9x64x289xf32, #tpu.memory_space<vmem>>, vector<1x64x289xf32>
    %24 = vector.shape_cast %23 : vector<1x64x289xf32> to vector<64x289xf32>
    %cst_26 = arith.constant dense<0.000000e+00> : vector<64x32xf32>
    %25 = tpu.matmul %24, %4, %cst_26 {dimension_numbers = #tpu.dot_dimension_numbers<[1], [0], [0], [1], [0, 0, 1, 1], [], []>} : vector<64x289xf32>, vector<289x32xf32>, vector<64x32xf32> -> vector<64x32xf32>
    %c7 = arith.constant 7 : index
    %c0_27 = arith.constant 0 : index
    %c0_28 = arith.constant 0 : index
    %26 = vector.load %arg3[%c7, %c0_27, %c0_28] : memref<9x64x289xf32, #tpu.memory_space<vmem>>, vector<1x64x289xf32>
    %27 = vector.shape_cast %26 : vector<1x64x289xf32> to vector<64x289xf32>
    %cst_29 = arith.constant dense<0.000000e+00> : vector<64x32xf32>
    %28 = tpu.matmul %27, %4, %cst_29 {dimension_numbers = #tpu.dot_dimension_numbers<[1], [0], [0], [1], [0, 0, 1, 1], [], []>} : vector<64x289xf32>, vector<289x32xf32>, vector<64x32xf32> -> vector<64x32xf32>
    %c8 = arith.constant 8 : index
    %c0_30 = arith.constant 0 : index
    %c0_31 = arith.constant 0 : index
    %29 = vector.load %arg3[%c8, %c0_30, %c0_31] : memref<9x64x289xf32, #tpu.memory_space<vmem>>, vector<1x64x289xf32>
    %30 = vector.shape_cast %29 : vector<1x64x289xf32> to vector<64x289xf32>
    %cst_32 = arith.constant dense<0.000000e+00> : vector<64x32xf32>
    %31 = tpu.matmul %30, %4, %cst_32 {dimension_numbers = #tpu.dot_dimension_numbers<[1], [0], [0], [1], [0, 0, 1, 1], [], []>} : vector<64x289xf32>, vector<289x32xf32>, vector<64x32xf32> -> vector<64x32xf32>
    %32 = tpu.concatenate %7, %10, %13, %16, %19, %22, %25, %28, %31 in 1 : vector<64x32xf32>, vector<64x32xf32>, vector<64x32xf32>, vector<64x32xf32>, vector<64x32xf32>, vector<64x32xf32>, vector<64x32xf32>, vector<64x32xf32>, vector<64x32xf32> -> vector<64x288xf32>
    %cst_33 = arith.constant dense<0.000000e+00> : vector<64x64xf32>
    %33 = tpu.matmul %32, %0, %cst_33 {dimension_numbers = #tpu.dot_dimension_numbers<[1], [0], [0], [1], [0, 0, 1, 1], [], []>} : vector<64x288xf32>, vector<288x64xf32>, vector<64x64xf32> -> vector<64x64xf32>
    %c0_34 = arith.constant 0 : index
    %c0_35 = arith.constant 0 : index
    %34 = vector.load %arg6[%c0_34, %c0_35] : memref<1x64xf32, #tpu.memory_space<vmem>>, vector<1x64xf32>
    %35 = vector.broadcast %34 : vector<1x64xf32> to vector<64x64xf32>
    %36 = arith.addf %33, %35 : vector<64x64xf32>
    %cst_36 = arith.constant 0.000000e+00 : f32
    %37 = vector.broadcast %cst_36 : f32 to vector<64x64xf32>
    %38 = arith.maximumf %36, %37 : vector<64x64xf32>
    %c0_37 = arith.constant 0 : index
    %c0_38 = arith.constant 0 : index
    %c0_39 = arith.constant 0 : index
    %39 = vector.load %arg4[%c0_37, %c0_38, %c0_39] : memref<9x9x64xf32, #tpu.memory_space<vmem>>, vector<1x9x64xf32>
    %40 = vector.shape_cast %39 : vector<1x9x64xf32> to vector<9x64xf32>
    %cst_40 = arith.constant dense<0.000000e+00> : vector<9x64xf32>
    %41 = tpu.matmul %40, %38, %cst_40 {dimension_numbers = #tpu.dot_dimension_numbers<[1], [0], [0], [1], [0, 0, 1, 1], [], []>} : vector<9x64xf32>, vector<64x64xf32>, vector<9x64xf32> -> vector<9x64xf32>
    %c1_41 = arith.constant 1 : index
    %c0_42 = arith.constant 0 : index
    %c0_43 = arith.constant 0 : index
    %42 = vector.load %arg4[%c1_41, %c0_42, %c0_43] : memref<9x9x64xf32, #tpu.memory_space<vmem>>, vector<1x9x64xf32>
    %43 = vector.shape_cast %42 : vector<1x9x64xf32> to vector<9x64xf32>
    %cst_44 = arith.constant dense<0.000000e+00> : vector<9x64xf32>
    %44 = tpu.matmul %43, %38, %cst_44 {dimension_numbers = #tpu.dot_dimension_numbers<[1], [0], [0], [1], [0, 0, 1, 1], [], []>} : vector<9x64xf32>, vector<64x64xf32>, vector<9x64xf32> -> vector<9x64xf32>
    %c2_45 = arith.constant 2 : index
    %c0_46 = arith.constant 0 : index
    %c0_47 = arith.constant 0 : index
    %45 = vector.load %arg4[%c2_45, %c0_46, %c0_47] : memref<9x9x64xf32, #tpu.memory_space<vmem>>, vector<1x9x64xf32>
    %46 = vector.shape_cast %45 : vector<1x9x64xf32> to vector<9x64xf32>
    %cst_48 = arith.constant dense<0.000000e+00> : vector<9x64xf32>
    %47 = tpu.matmul %46, %38, %cst_48 {dimension_numbers = #tpu.dot_dimension_numbers<[1], [0], [0], [1], [0, 0, 1, 1], [], []>} : vector<9x64xf32>, vector<64x64xf32>, vector<9x64xf32> -> vector<9x64xf32>
    %c3_49 = arith.constant 3 : index
    %c0_50 = arith.constant 0 : index
    %c0_51 = arith.constant 0 : index
    %48 = vector.load %arg4[%c3_49, %c0_50, %c0_51] : memref<9x9x64xf32, #tpu.memory_space<vmem>>, vector<1x9x64xf32>
    %49 = vector.shape_cast %48 : vector<1x9x64xf32> to vector<9x64xf32>
    %cst_52 = arith.constant dense<0.000000e+00> : vector<9x64xf32>
    %50 = tpu.matmul %49, %38, %cst_52 {dimension_numbers = #tpu.dot_dimension_numbers<[1], [0], [0], [1], [0, 0, 1, 1], [], []>} : vector<9x64xf32>, vector<64x64xf32>, vector<9x64xf32> -> vector<9x64xf32>
    %c4_53 = arith.constant 4 : index
    %c0_54 = arith.constant 0 : index
    %c0_55 = arith.constant 0 : index
    %51 = vector.load %arg4[%c4_53, %c0_54, %c0_55] : memref<9x9x64xf32, #tpu.memory_space<vmem>>, vector<1x9x64xf32>
    %52 = vector.shape_cast %51 : vector<1x9x64xf32> to vector<9x64xf32>
    %cst_56 = arith.constant dense<0.000000e+00> : vector<9x64xf32>
    %53 = tpu.matmul %52, %38, %cst_56 {dimension_numbers = #tpu.dot_dimension_numbers<[1], [0], [0], [1], [0, 0, 1, 1], [], []>} : vector<9x64xf32>, vector<64x64xf32>, vector<9x64xf32> -> vector<9x64xf32>
    %c5_57 = arith.constant 5 : index
    %c0_58 = arith.constant 0 : index
    %c0_59 = arith.constant 0 : index
    %54 = vector.load %arg4[%c5_57, %c0_58, %c0_59] : memref<9x9x64xf32, #tpu.memory_space<vmem>>, vector<1x9x64xf32>
    %55 = vector.shape_cast %54 : vector<1x9x64xf32> to vector<9x64xf32>
    %cst_60 = arith.constant dense<0.000000e+00> : vector<9x64xf32>
    %56 = tpu.matmul %55, %38, %cst_60 {dimension_numbers = #tpu.dot_dimension_numbers<[1], [0], [0], [1], [0, 0, 1, 1], [], []>} : vector<9x64xf32>, vector<64x64xf32>, vector<9x64xf32> -> vector<9x64xf32>
    %c6_61 = arith.constant 6 : index
    %c0_62 = arith.constant 0 : index
    %c0_63 = arith.constant 0 : index
    %57 = vector.load %arg4[%c6_61, %c0_62, %c0_63] : memref<9x9x64xf32, #tpu.memory_space<vmem>>, vector<1x9x64xf32>
    %58 = vector.shape_cast %57 : vector<1x9x64xf32> to vector<9x64xf32>
    %cst_64 = arith.constant dense<0.000000e+00> : vector<9x64xf32>
    %59 = tpu.matmul %58, %38, %cst_64 {dimension_numbers = #tpu.dot_dimension_numbers<[1], [0], [0], [1], [0, 0, 1, 1], [], []>} : vector<9x64xf32>, vector<64x64xf32>, vector<9x64xf32> -> vector<9x64xf32>
    %c7_65 = arith.constant 7 : index
    %c0_66 = arith.constant 0 : index
    %c0_67 = arith.constant 0 : index
    %60 = vector.load %arg4[%c7_65, %c0_66, %c0_67] : memref<9x9x64xf32, #tpu.memory_space<vmem>>, vector<1x9x64xf32>
    %61 = vector.shape_cast %60 : vector<1x9x64xf32> to vector<9x64xf32>
    %cst_68 = arith.constant dense<0.000000e+00> : vector<9x64xf32>
    %62 = tpu.matmul %61, %38, %cst_68 {dimension_numbers = #tpu.dot_dimension_numbers<[1], [0], [0], [1], [0, 0, 1, 1], [], []>} : vector<9x64xf32>, vector<64x64xf32>, vector<9x64xf32> -> vector<9x64xf32>
    %c8_69 = arith.constant 8 : index
    %c0_70 = arith.constant 0 : index
    %c0_71 = arith.constant 0 : index
    %63 = vector.load %arg4[%c8_69, %c0_70, %c0_71] : memref<9x9x64xf32, #tpu.memory_space<vmem>>, vector<1x9x64xf32>
    %64 = vector.shape_cast %63 : vector<1x9x64xf32> to vector<9x64xf32>
    %cst_72 = arith.constant dense<0.000000e+00> : vector<9x64xf32>
    %65 = tpu.matmul %64, %38, %cst_72 {dimension_numbers = #tpu.dot_dimension_numbers<[1], [0], [0], [1], [0, 0, 1, 1], [], []>} : vector<9x64xf32>, vector<64x64xf32>, vector<9x64xf32> -> vector<9x64xf32>
    %66 = tpu.concatenate %41, %44, %47, %50, %53, %56, %59, %62, %65 in 1 : vector<9x64xf32>, vector<9x64xf32>, vector<9x64xf32>, vector<9x64xf32>, vector<9x64xf32>, vector<9x64xf32>, vector<9x64xf32>, vector<9x64xf32>, vector<9x64xf32> -> vector<9x576xf32>
    %cst_73 = arith.constant dense<0.000000e+00> : vector<9x128xf32>
    %67 = tpu.matmul %66, %1, %cst_73 {dimension_numbers = #tpu.dot_dimension_numbers<[1], [0], [0], [1], [0, 0, 1, 1], [], []>} : vector<9x576xf32>, vector<576x128xf32>, vector<9x128xf32> -> vector<9x128xf32>
    %c0_74 = arith.constant 0 : index
    %c0_75 = arith.constant 0 : index
    %68 = vector.load %arg8[%c0_74, %c0_75] : memref<1x128xf32, #tpu.memory_space<vmem>>, vector<1x128xf32>
    %69 = vector.broadcast %68 : vector<1x128xf32> to vector<9x128xf32>
    %70 = arith.addf %67, %69 : vector<9x128xf32>
    %cst_76 = arith.constant 0.000000e+00 : f32
    %71 = vector.broadcast %cst_76 : f32 to vector<9x128xf32>
    %72 = arith.maximumf %70, %71 : vector<9x128xf32>
    %c0_77 = arith.constant 0 : index
    %c0_78 = arith.constant 0 : index
    %73 = vector.load %arg10[%c0_77, %c0_78] : memref<1x256xf32, #tpu.memory_space<vmem>>, vector<1x256xf32>
    %74 = vector.extract_strided_slice %72 {offsets = [0, 0], sizes = [1, 128], strides = [1, 1]} : vector<9x128xf32> to vector<1x128xf32>
    %c0_79 = arith.constant 0 : index
    %c0_80 = arith.constant 0 : index
    %c0_81 = arith.constant 0 : index
    %75 = vector.load %arg9[%c0_79, %c0_80, %c0_81] : memref<9x128x256xf32, #tpu.memory_space<vmem>>, vector<1x128x256xf32>
    %76 = vector.shape_cast %75 : vector<1x128x256xf32> to vector<128x256xf32>
    %cst_82 = arith.constant dense<0.000000e+00> : vector<1x256xf32>
    %77 = tpu.matmul %74, %76, %cst_82 {dimension_numbers = #tpu.dot_dimension_numbers<[1], [0], [0], [1], [0, 0, 1, 1], [], []>} : vector<1x128xf32>, vector<128x256xf32>, vector<1x256xf32> -> vector<1x256xf32>
    %78 = arith.addf %73, %77 : vector<1x256xf32>
    %79 = vector.extract_strided_slice %72 {offsets = [1, 0], sizes = [1, 128], strides = [1, 1]} : vector<9x128xf32> to vector<1x128xf32>
    %c1_83 = arith.constant 1 : index
    %c0_84 = arith.constant 0 : index
    %c0_85 = arith.constant 0 : index
    %80 = vector.load %arg9[%c1_83, %c0_84, %c0_85] : memref<9x128x256xf32, #tpu.memory_space<vmem>>, vector<1x128x256xf32>
    %81 = vector.shape_cast %80 : vector<1x128x256xf32> to vector<128x256xf32>
    %cst_86 = arith.constant dense<0.000000e+00> : vector<1x256xf32>
    %82 = tpu.matmul %79, %81, %cst_86 {dimension_numbers = #tpu.dot_dimension_numbers<[1], [0], [0], [1], [0, 0, 1, 1], [], []>} : vector<1x128xf32>, vector<128x256xf32>, vector<1x256xf32> -> vector<1x256xf32>
    %83 = arith.addf %78, %82 : vector<1x256xf32>
    %84 = vector.extract_strided_slice %72 {offsets = [2, 0], sizes = [1, 128], strides = [1, 1]} : vector<9x128xf32> to vector<1x128xf32>
    %c2_87 = arith.constant 2 : index
    %c0_88 = arith.constant 0 : index
    %c0_89 = arith.constant 0 : index
    %85 = vector.load %arg9[%c2_87, %c0_88, %c0_89] : memref<9x128x256xf32, #tpu.memory_space<vmem>>, vector<1x128x256xf32>
    %86 = vector.shape_cast %85 : vector<1x128x256xf32> to vector<128x256xf32>
    %cst_90 = arith.constant dense<0.000000e+00> : vector<1x256xf32>
    %87 = tpu.matmul %84, %86, %cst_90 {dimension_numbers = #tpu.dot_dimension_numbers<[1], [0], [0], [1], [0, 0, 1, 1], [], []>} : vector<1x128xf32>, vector<128x256xf32>, vector<1x256xf32> -> vector<1x256xf32>
    %88 = arith.addf %83, %87 : vector<1x256xf32>
    %89 = vector.extract_strided_slice %72 {offsets = [3, 0], sizes = [1, 128], strides = [1, 1]} : vector<9x128xf32> to vector<1x128xf32>
    %c3_91 = arith.constant 3 : index
    %c0_92 = arith.constant 0 : index
    %c0_93 = arith.constant 0 : index
    %90 = vector.load %arg9[%c3_91, %c0_92, %c0_93] : memref<9x128x256xf32, #tpu.memory_space<vmem>>, vector<1x128x256xf32>
    %91 = vector.shape_cast %90 : vector<1x128x256xf32> to vector<128x256xf32>
    %cst_94 = arith.constant dense<0.000000e+00> : vector<1x256xf32>
    %92 = tpu.matmul %89, %91, %cst_94 {dimension_numbers = #tpu.dot_dimension_numbers<[1], [0], [0], [1], [0, 0, 1, 1], [], []>} : vector<1x128xf32>, vector<128x256xf32>, vector<1x256xf32> -> vector<1x256xf32>
    %93 = arith.addf %88, %92 : vector<1x256xf32>
    %94 = vector.extract_strided_slice %72 {offsets = [4, 0], sizes = [1, 128], strides = [1, 1]} : vector<9x128xf32> to vector<1x128xf32>
    %c4_95 = arith.constant 4 : index
    %c0_96 = arith.constant 0 : index
    %c0_97 = arith.constant 0 : index
    %95 = vector.load %arg9[%c4_95, %c0_96, %c0_97] : memref<9x128x256xf32, #tpu.memory_space<vmem>>, vector<1x128x256xf32>
    %96 = vector.shape_cast %95 : vector<1x128x256xf32> to vector<128x256xf32>
    %cst_98 = arith.constant dense<0.000000e+00> : vector<1x256xf32>
    %97 = tpu.matmul %94, %96, %cst_98 {dimension_numbers = #tpu.dot_dimension_numbers<[1], [0], [0], [1], [0, 0, 1, 1], [], []>} : vector<1x128xf32>, vector<128x256xf32>, vector<1x256xf32> -> vector<1x256xf32>
    %98 = arith.addf %93, %97 : vector<1x256xf32>
    %99 = vector.extract_strided_slice %72 {offsets = [5, 0], sizes = [1, 128], strides = [1, 1]} : vector<9x128xf32> to vector<1x128xf32>
    %c5_99 = arith.constant 5 : index
    %c0_100 = arith.constant 0 : index
    %c0_101 = arith.constant 0 : index
    %100 = vector.load %arg9[%c5_99, %c0_100, %c0_101] : memref<9x128x256xf32, #tpu.memory_space<vmem>>, vector<1x128x256xf32>
    %101 = vector.shape_cast %100 : vector<1x128x256xf32> to vector<128x256xf32>
    %cst_102 = arith.constant dense<0.000000e+00> : vector<1x256xf32>
    %102 = tpu.matmul %99, %101, %cst_102 {dimension_numbers = #tpu.dot_dimension_numbers<[1], [0], [0], [1], [0, 0, 1, 1], [], []>} : vector<1x128xf32>, vector<128x256xf32>, vector<1x256xf32> -> vector<1x256xf32>
    %103 = arith.addf %98, %102 : vector<1x256xf32>
    %104 = vector.extract_strided_slice %72 {offsets = [6, 0], sizes = [1, 128], strides = [1, 1]} : vector<9x128xf32> to vector<1x128xf32>
    %c6_103 = arith.constant 6 : index
    %c0_104 = arith.constant 0 : index
    %c0_105 = arith.constant 0 : index
    %105 = vector.load %arg9[%c6_103, %c0_104, %c0_105] : memref<9x128x256xf32, #tpu.memory_space<vmem>>, vector<1x128x256xf32>
    %106 = vector.shape_cast %105 : vector<1x128x256xf32> to vector<128x256xf32>
    %cst_106 = arith.constant dense<0.000000e+00> : vector<1x256xf32>
    %107 = tpu.matmul %104, %106, %cst_106 {dimension_numbers = #tpu.dot_dimension_numbers<[1], [0], [0], [1], [0, 0, 1, 1], [], []>} : vector<1x128xf32>, vector<128x256xf32>, vector<1x256xf32> -> vector<1x256xf32>
    %108 = arith.addf %103, %107 : vector<1x256xf32>
    %109 = vector.extract_strided_slice %72 {offsets = [7, 0], sizes = [1, 128], strides = [1, 1]} : vector<9x128xf32> to vector<1x128xf32>
    %c7_107 = arith.constant 7 : index
    %c0_108 = arith.constant 0 : index
    %c0_109 = arith.constant 0 : index
    %110 = vector.load %arg9[%c7_107, %c0_108, %c0_109] : memref<9x128x256xf32, #tpu.memory_space<vmem>>, vector<1x128x256xf32>
    %111 = vector.shape_cast %110 : vector<1x128x256xf32> to vector<128x256xf32>
    %cst_110 = arith.constant dense<0.000000e+00> : vector<1x256xf32>
    %112 = tpu.matmul %109, %111, %cst_110 {dimension_numbers = #tpu.dot_dimension_numbers<[1], [0], [0], [1], [0, 0, 1, 1], [], []>} : vector<1x128xf32>, vector<128x256xf32>, vector<1x256xf32> -> vector<1x256xf32>
    %113 = arith.addf %108, %112 : vector<1x256xf32>
    %114 = vector.extract_strided_slice %72 {offsets = [8, 0], sizes = [1, 128], strides = [1, 1]} : vector<9x128xf32> to vector<1x128xf32>
    %c8_111 = arith.constant 8 : index
    %c0_112 = arith.constant 0 : index
    %c0_113 = arith.constant 0 : index
    %115 = vector.load %arg9[%c8_111, %c0_112, %c0_113] : memref<9x128x256xf32, #tpu.memory_space<vmem>>, vector<1x128x256xf32>
    %116 = vector.shape_cast %115 : vector<1x128x256xf32> to vector<128x256xf32>
    %cst_114 = arith.constant dense<0.000000e+00> : vector<1x256xf32>
    %117 = tpu.matmul %114, %116, %cst_114 {dimension_numbers = #tpu.dot_dimension_numbers<[1], [0], [0], [1], [0, 0, 1, 1], [], []>} : vector<1x128xf32>, vector<128x256xf32>, vector<1x256xf32> -> vector<1x256xf32>
    %118 = arith.addf %113, %117 : vector<1x256xf32>
    %cst_115 = arith.constant 0.000000e+00 : f32
    %119 = vector.broadcast %cst_115 : f32 to vector<1x256xf32>
    %120 = arith.maximumf %118, %119 : vector<1x256xf32>
    %c0_116 = arith.constant 0 : index
    %c0_117 = arith.constant 0 : index
    %c0_118 = arith.constant 0 : index
    %121 = vector.load %arg2[%c0_116, %c0_117, %c0_118] : memref<1x1x8xf32, #tpu.memory_space<vmem>>, vector<1x1x8xf32>
    %122 = vector.shape_cast %121 : vector<1x1x8xf32> to vector<1x8xf32>
    %c0_119 = arith.constant 0 : index
    %c0_120 = arith.constant 0 : index
    %123 = vector.load %arg11[%c0_119, %c0_120] : memref<8x8xf32, #tpu.memory_space<vmem>>, vector<8x8xf32>
    %cst_121 = arith.constant dense<0.000000e+00> : vector<1x8xf32>
    %124 = tpu.matmul %122, %123, %cst_121 {dimension_numbers = #tpu.dot_dimension_numbers<[1], [0], [0], [1], [0, 0, 1, 1], [], []>} : vector<1x8xf32>, vector<8x8xf32>, vector<1x8xf32> -> vector<1x8xf32>
    %c0_122 = arith.constant 0 : index
    %c0_123 = arith.constant 0 : index
    %125 = vector.load %arg12[%c0_122, %c0_123] : memref<1x8xf32, #tpu.memory_space<vmem>>, vector<1x8xf32>
    %126 = arith.addf %124, %125 : vector<1x8xf32>
    %cst_124 = arith.constant 0.000000e+00 : f32
    %127 = vector.broadcast %cst_124 : f32 to vector<1x8xf32>
    %128 = arith.maximumf %126, %127 : vector<1x8xf32>
    %c0_125 = arith.constant 0 : index
    %c0_126 = arith.constant 0 : index
    %129 = vector.load %arg13[%c0_125, %c0_126] : memref<8x16xf32, #tpu.memory_space<vmem>>, vector<8x16xf32>
    %cst_127 = arith.constant dense<0.000000e+00> : vector<1x16xf32>
    %130 = tpu.matmul %128, %129, %cst_127 {dimension_numbers = #tpu.dot_dimension_numbers<[1], [0], [0], [1], [0, 0, 1, 1], [], []>} : vector<1x8xf32>, vector<8x16xf32>, vector<1x16xf32> -> vector<1x16xf32>
    %c0_128 = arith.constant 0 : index
    %c0_129 = arith.constant 0 : index
    %131 = vector.load %arg14[%c0_128, %c0_129] : memref<1x16xf32, #tpu.memory_space<vmem>>, vector<1x16xf32>
    %132 = arith.addf %130, %131 : vector<1x16xf32>
    %cst_130 = arith.constant 0.000000e+00 : f32
    %133 = vector.broadcast %cst_130 : f32 to vector<1x16xf32>
    %134 = arith.maximumf %132, %133 : vector<1x16xf32>
    %c0_131 = arith.constant 0 : index
    %c0_132 = arith.constant 0 : index
    %135 = vector.load %arg15[%c0_131, %c0_132] : memref<256x512xf32, #tpu.memory_space<vmem>>, vector<256x512xf32>
    %cst_133 = arith.constant dense<0.000000e+00> : vector<1x512xf32>
    %136 = tpu.matmul %120, %135, %cst_133 {dimension_numbers = #tpu.dot_dimension_numbers<[1], [0], [0], [1], [0, 0, 1, 1], [], []>} : vector<1x256xf32>, vector<256x512xf32>, vector<1x512xf32> -> vector<1x512xf32>
    %c0_134 = arith.constant 0 : index
    %c0_135 = arith.constant 0 : index
    %137 = vector.load %arg16[%c0_134, %c0_135] : memref<16x512xf32, #tpu.memory_space<vmem>>, vector<16x512xf32>
    %cst_136 = arith.constant dense<0.000000e+00> : vector<1x512xf32>
    %138 = tpu.matmul %134, %137, %cst_136 {dimension_numbers = #tpu.dot_dimension_numbers<[1], [0], [0], [1], [0, 0, 1, 1], [], []>} : vector<1x16xf32>, vector<16x512xf32>, vector<1x512xf32> -> vector<1x512xf32>
    %139 = arith.addf %136, %138 : vector<1x512xf32>
    %c0_137 = arith.constant 0 : index
    %c0_138 = arith.constant 0 : index
    %140 = vector.load %arg17[%c0_137, %c0_138] : memref<1x512xf32, #tpu.memory_space<vmem>>, vector<1x512xf32>
    %141 = arith.addf %139, %140 : vector<1x512xf32>
    %cst_139 = arith.constant 0.000000e+00 : f32
    %142 = vector.broadcast %cst_139 : f32 to vector<1x512xf32>
    %143 = arith.maximumf %141, %142 : vector<1x512xf32>
    %c0_140 = arith.constant 0 : index
    %c0_141 = arith.constant 0 : index
    %144 = vector.load %arg18[%c0_140, %c0_141] : memref<512x64xf32, #tpu.memory_space<vmem>>, vector<512x64xf32>
    %cst_142 = arith.constant dense<0.000000e+00> : vector<1x64xf32>
    %145 = tpu.matmul %143, %144, %cst_142 {dimension_numbers = #tpu.dot_dimension_numbers<[1], [0], [0], [1], [0, 0, 1, 1], [], []>} : vector<1x512xf32>, vector<512x64xf32>, vector<1x64xf32> -> vector<1x64xf32>
    %c0_143 = arith.constant 0 : index
    %c0_144 = arith.constant 0 : index
    %146 = vector.load %arg19[%c0_143, %c0_144] : memref<1x64xf32, #tpu.memory_space<vmem>>, vector<1x64xf32>
    %147 = arith.addf %145, %146 : vector<1x64xf32>
    %cst_145 = arith.constant 0.000000e+00 : f32
    %148 = vector.broadcast %cst_145 : f32 to vector<1x64xf32>
    %149 = arith.maximumf %147, %148 : vector<1x64xf32>
    %c0_146 = arith.constant 0 : index
    %c0_147 = arith.constant 0 : index
    %c0_148 = arith.constant 0 : index
    %150 = vector.load %arg20[%c0_146, %c0_147, %c0_148] : memref<1x1x64xf32, #tpu.memory_space<vmem>>, vector<1x1x64xf32>
    %151 = vector.shape_cast %150 : vector<1x1x64xf32> to vector<1x64xf32>
    %152 = vector.shape_cast %149 : vector<1x64xf32> to vector<1x1x64xf32>
    tpu.vector_store %arg20[%c0_146, %c0_147, %c0_148], %152 {strides = array<i32>} : memref<1x1x64xf32, #tpu.memory_space<vmem>>, vector<1x1x64xf32>,
    return
  }
  func.func @transform_0(%arg0: i32) -> (i32, i32, i32) {
    %c0_i32 = arith.constant 0 : i32
    %c0_i32_0 = arith.constant 0 : i32
    %c0_i32_1 = arith.constant 0 : i32
    return %arg0, %c0_i32, %c0_i32_0 : i32, i32, i32
  }
  func.func @transform_1(%arg0: i32) -> (i32, i32, i32) {
    %c0_i32 = arith.constant 0 : i32
    %c0_i32_0 = arith.constant 0 : i32
    %c0_i32_1 = arith.constant 0 : i32
    return %arg0, %c0_i32, %c0_i32_0 : i32, i32, i32
  }
  func.func @transform_2(%arg0: i32) -> (i32, i32, i32) {
    %c0_i32 = arith.constant 0 : i32
    %c0_i32_0 = arith.constant 0 : i32
    %c0_i32_1 = arith.constant 0 : i32
    %c0_i32_2 = arith.constant 0 : i32
    return %c0_i32, %c0_i32_0, %c0_i32_1 : i32, i32, i32
  }
  func.func @transform_3(%arg0: i32) -> (i32, i32, i32) {
    %c0_i32 = arith.constant 0 : i32
    %c0_i32_0 = arith.constant 0 : i32
    %c0_i32_1 = arith.constant 0 : i32
    %c0_i32_2 = arith.constant 0 : i32
    return %c0_i32, %c0_i32_0, %c0_i32_1 : i32, i32, i32
  }
  func.func @transform_4(%arg0: i32) -> (i32, i32) {
    %c0_i32 = arith.constant 0 : i32
    %c0_i32_0 = arith.constant 0 : i32
    %c0_i32_1 = arith.constant 0 : i32
    return %c0_i32, %c0_i32_0 : i32, i32
  }
  func.func @transform_5(%arg0: i32) -> (i32, i32) {
    %c0_i32 = arith.constant 0 : i32
    %c0_i32_0 = arith.constant 0 : i32
    %c0_i32_1 = arith.constant 0 : i32
    return %c0_i32, %c0_i32_0 : i32, i32
  }
  func.func @transform_6(%arg0: i32) -> (i32, i32) {
    %c0_i32 = arith.constant 0 : i32
    %c0_i32_0 = arith.constant 0 : i32
    %c0_i32_1 = arith.constant 0 : i32
    return %c0_i32, %c0_i32_0 : i32, i32
  }
  func.func @transform_7(%arg0: i32) -> (i32, i32) {
    %c0_i32 = arith.constant 0 : i32
    %c0_i32_0 = arith.constant 0 : i32
    %c0_i32_1 = arith.constant 0 : i32
    return %c0_i32, %c0_i32_0 : i32, i32
  }
  func.func @transform_8(%arg0: i32) -> (i32, i32, i32) {
    %c0_i32 = arith.constant 0 : i32
    %c0_i32_0 = arith.constant 0 : i32
    %c0_i32_1 = arith.constant 0 : i32
    %c0_i32_2 = arith.constant 0 : i32
    return %c0_i32, %c0_i32_0, %c0_i32_1 : i32, i32, i32
  }
  func.func @transform_9(%arg0: i32) -> (i32, i32) {
    %c0_i32 = arith.constant 0 : i32
    %c0_i32_0 = arith.constant 0 : i32
    %c0_i32_1 = arith.constant 0 : i32
    return %c0_i32, %c0_i32_0 : i32, i32
  }
  func.func @transform_10(%arg0: i32) -> (i32, i32) {
    %c0_i32 = arith.constant 0 : i32
    %c0_i32_0 = arith.constant 0 : i32
    %c0_i32_1 = arith.constant 0 : i32
    return %c0_i32, %c0_i32_0 : i32, i32
  }
  func.func @transform_11(%arg0: i32) -> (i32, i32) {
    %c0_i32 = arith.constant 0 : i32
    %c0_i32_0 = arith.constant 0 : i32
    %c0_i32_1 = arith.constant 0 : i32
    return %c0_i32, %c0_i32_0 : i32, i32
  }
  func.func @transform_12(%arg0: i32) -> (i32, i32) {
    %c0_i32 = arith.constant 0 : i32
    %c0_i32_0 = arith.constant 0 : i32
    %c0_i32_1 = arith.constant 0 : i32
    return %c0_i32, %c0_i32_0 : i32, i32
  }
  func.func @transform_13(%arg0: i32) -> (i32, i32) {
    %c0_i32 = arith.constant 0 : i32
    %c0_i32_0 = arith.constant 0 : i32
    %c0_i32_1 = arith.constant 0 : i32
    return %c0_i32, %c0_i32_0 : i32, i32
  }
  func.func @transform_14(%arg0: i32) -> (i32, i32) {
    %c0_i32 = arith.constant 0 : i32
    %c0_i32_0 = arith.constant 0 : i32
    %c0_i32_1 = arith.constant 0 : i32
    return %c0_i32, %c0_i32_0 : i32, i32
  }
  func.func @transform_15(%arg0: i32) -> (i32, i32) {
    %c0_i32 = arith.constant 0 : i32
    %c0_i32_0 = arith.constant 0 : i32
    %c0_i32_1 = arith.constant 0 : i32
    return %c0_i32, %c0_i32_0 : i32, i32
  }
  func.func @transform_16(%arg0: i32) -> (i32, i32) {
    %c0_i32 = arith.constant 0 : i32
    %c0_i32_0 = arith.constant 0 : i32
    %c0_i32_1 = arith.constant 0 : i32
    return %c0_i32, %c0_i32_0 : i32, i32
  }
  func.func @transform_17(%arg0: i32) -> (i32, i32) {
    %c0_i32 = arith.constant 0 : i32
    %c0_i32_0 = arith.constant 0 : i32
    %c0_i32_1 = arith.constant 0 : i32
    return %c0_i32, %c0_i32_0 : i32, i32
  }
  func.func @transform_18(%arg0: i32) -> (i32, i32) {
    %c0_i32 = arith.constant 0 : i32
    %c0_i32_0 = arith.constant 0 : i32
    %c0_i32_1 = arith.constant 0 : i32
    return %c0_i32, %c0_i32_0 : i32, i32
  }
  func.func @transform_19(%arg0: i32) -> (i32, i32, i32) {
    %c0_i32 = arith.constant 0 : i32
    %c0_i32_0 = arith.constant 0 : i32
    %c0_i32_1 = arith.constant 0 : i32
    return %arg0, %c0_i32, %c0_i32_0 : i32, i32, i32
  }
}

</mosaic_0001>

<bundles_post_ra>
// kernel: xtma_cnn_forward.4
= control target key start
LH: loop header
LB: loop body
LE: loop exit
PB: predicated region body
PF: predicated region fallthrough
CT: control target
= control target key end

     0   :  { %s6730_s12 = smov 0   ;;  %s8000_s0 = inlined_call_operand.vmem [shape: bf16[8,150], index: 0, kind: input, shape index: {}]   ;;  %s8001_s1 = inlined_call_operand.vmem [shape: f32[8,1], index: 1, kind: input, shape index: {}]   ;;  %s8002_s2 = inlined_call_operand.vmem [shape: bf16[2,150,6084], index: 2, kind: input, shape index: {}]   ;;  %s8003_s3 = inlined_call_operand.vmem [shape: bf16[2,8,6084], index: 3, kind: output, shape index: {}]  }
   0x1 LB: > { %s4472_s13 = sadd.s32 4294967295, %s6707_s12   ;;  %p4476_p0 = scmp.ge.s32.totalorder %s6707_s12, 1  ;;  %s6707_s12 = sphi %s6730_s12, %s13_s12  }
   0x2   : > { %p137_p1 = scmp.lt.s32.totalorder %s6707_s12, 3 }
   0x4   : > { %p138_p2 = pnand %p4476_p0, %p137_p1 }
   0x5   : > { %p161_p3 = scmp.lt.s32.totalorder (!%p138_p2), %s4472_s13, 1 }
   0x6   : > { %141 = sbr.rel (%p138_p2) target bundleno = 650 (0x28a), region = 32 }
   0xb   : > { %s8005_s13 = smov (!%p161_p3, %s4472_s13), 1  ;;  %vm2925_vm0 = vcmask 1042432   ;;  %v6752_v3 = vld [vmem:[%s8000_s0] sm:$0xff]  ;;  %vm2921_vm1 = vcmask 179200   ;;  %vm4413_vm2 = vcmask 1043456   ;;  %vm4414_vm3 = vcmask 556036  }
   0xc   : > { %s6689_s14 = smul.u32 3648, %s8005_s13  ;;  %v637_v28 = vunpack.c.h.b16 %v6752_v3  ;;  %vm4415_vm4 = vmor %vm4414_vm3, %vm4413_vm2 }
   0xd   : > { %s6690_s22 = smul.u32 192, %s8005_s13 }
   0xe   : > { %s6744_s17 = scalar_lea.vmem %s8002_s2, %s6689_s14  ;;  %v6782_v44 = vpack.c.b16 %v637_v28, %v637_v28 }
   0xf   : > { %v5825_v0 = vld [vmem:[%s6744_s17 + $0xa80] sm:$0xf]  ;;  %v5833_v7 = vld [vmem:[%s6744_s17 + $0xa88] sm:$0xf]  ;;  %v6641_v17 = vld [vmem:[%s6744_s17 + $0xc04] sm:$0xf]  ;;  %s7264_s25 = scalar_lea.vmem %s8003_s3, %s6690_s22 }
  0x10   : > { %v6617_v1 = vld [vmem:[%s6744_s17 + $0xb3c] sm:$0xf0]  ;;  %v6618_v8 = vld [vmem:[%s6744_s17 + $0xb44] sm:$0xf0]  ;;  %v6019_v18 = vld [vmem:[%s6744_s17 + $0xcc0] sm:$0xf0] }
  0x11   : > { %v606_v2 = vld [vmem:[%s6744_s17 + $0xd80] sm:$0x77]  ;;  %v5826_v4 = vor.u32 %v6617_v1, %v5825_v0  ;;  %v5834_v10 = vor.u32 %v6618_v8, %v5833_v7  ;;  %v5641_v19 = vld [vmem:[%s6744_s17 + $0x908] sm:$0xf]  ;;  %v6022_v30 = vor.u32 %v6641_v17, %v6019_v18  ;;  %v6594_v46 = vld [vmem:[%s6744_s17 + $0xa8c] sm:$0xf] }
  0x12   : > { %v1961_v5 = vunpack.c.l.b16 %v606_v2  ;;  %v1962_v6 = vunpack.c.h.b16 %v606_v2  ;;  %v5633_v9 = vld [vmem:[%s6744_s17 + $0x900] sm:$0xf]  ;;  %v6570_v20 = vld [vmem:[%s6744_s17 + $0x9c4] sm:$0xf0]  ;;  %v6593_v21 = vld [vmem:[%s6744_s17 + $0xa84] sm:$0xf] }
  0x13   : > { %v6569_v11 = vld [vmem:[%s6744_s17 + $0x9bc] sm:$0xf0]  ;;  %3070 = vmatpush.bf16.msra.mxu0 %v5826_v4  ;;  %3122 = vmatpush.bf16.msra.mxu1 %v5834_v10  ;;  %v5827_v22 = vld [vmem:[%s6744_s17 + $0xb40] sm:$0xf0]  ;;  %v5642_v25 = vor.u32 %v6570_v20, %v5641_v19  ;;  %v6769_v26 = vld [vmem:[%s6744_s17 + $0xd88] sm:$0x77] }
  0x14   : > { %v6017_v12 = vld [vmem:[%s6744_s17 + $0xc00] sm:$0xf]  ;;  %v2441_v14 = vpack.c.b16 %v1961_v5, %v1961_v5  ;;  %v2442_v15 = vpack.c.b16 %v1962_v6, %v1962_v6  ;;  %v5634_v16 = vor.u32 %v6569_v11, %v5633_v9  ;;  %v1963_v31 = vunpack.c.l.b16 %v6769_v26  ;;  %v5449_v33 = vld [vmem:[%s6744_s17 + $0x788] sm:$0xf]  ;;  %v6545_v36 = vld [vmem:[%s6744_s17 + $0x904] sm:$0xf] }
  0x15   : > { %v6665_v13 = vld [vmem:[%s6744_s17 + $0xcbc] sm:$0xf0]  ;;  %v6522_v34 = vld [vmem:[%s6744_s17 + $0x844] sm:$0xf0]  ;;  %v5830_v35 = vor.u32 %v6593_v21, %v5827_v22  ;;  %v5635_v37 = vld [vmem:[%s6744_s17 + $0x9c0] sm:$0xf0]  ;;  %v1964_v19 = vunpack.c.h.b16 %v6769_v26 }
  0x16   : > { %v2927_v23 = vsel %vm2925_vm0, %v2441_v14, 0  ;;  %v2930_v24 = vsel %vm2925_vm0, %v2442_v15, 0  ;;  %v5441_v27 = vld [vmem:[%s6744_s17 + $0x780] sm:$0xf]  ;;  %v6018_v29 = vor.u32 %v6665_v13, %v6017_v12  ;;  %v2443_v38 = vpack.c.b16 %v1963_v31, %v1963_v31  ;;  %v6025_v41 = vld [vmem:[%s6744_s17 + $0xc08] sm:$0xf] }
  0x17   : > { %3089 = vmatpush.bf16.msra.mxu2 %v2927_v23  ;;  %3115 = vmatpush.bf16.msra.mxu3 %v2930_v24  ;;  %v6521_v32 = vld [vmem:[%s6744_s17 + $0x83c] sm:$0xf0]  ;;  %v5450_v40 = vor.u32 %v6522_v34, %v5449_v33  ;;  %v6666_v42 = vld [vmem:[%s6744_s17 + $0xcc4] sm:$0xf0]  ;;  %v5835_v47 = vld [vmem:[%s6744_s17 + $0xb48] sm:$0xf0]  ;;  %v5638_v51 = vor.u32 %v6545_v36, %v5635_v37 }
  0x18   : > { %3071 = vmatpush.bf16.msra.mxu0 %v5634_v16  ;;  %3123 = vmatpush.bf16.msra.mxu1 %v5642_v25  ;;  %v5442_v39 = vor.u32 %v6521_v32, %v5441_v27  ;;  %v5249_v43 = vld [vmem:[%s6744_s17 + $0x600] sm:$0xf]  ;;  %v2933_v48 = vsel %vm2925_vm0, %v2443_v38, 0  ;;  %v5257_v49 = vld [vmem:[%s6744_s17 + $0x608] sm:$0xf]  ;;  %v6026_v52 = vor.u32 %v6666_v42, %v6025_v41  ;;  %v5838_v54 = vor.u32 %v6594_v46, %v5835_v47 }
  0x19   : > { %v6473_v45 = vld [vmem:[%s6744_s17 + $0x6bc] sm:$0xf0]  ;;  %v6474_v50 = vld [vmem:[%s6744_s17 + $0x6c4] sm:$0xf0]  ;;  %v6497_v55 = vld [vmem:[%s6744_s17 + $0x784] sm:$0xf]  ;;  %v2444_v32 = vpack.c.b16 %v1964_v19, %v1964_v19  ;;  %v636_v41 = vunpack.c.l.b16 %v6752_v3 }
  0x1a   : > { %v5250_v53 = vor.u32 %v6473_v45, %v5249_v43  ;;  %v5443_v56 = vld [vmem:[%s6744_s17 + $0x840] sm:$0xf0]  ;;  %v5057_v57 = vld [vmem:[%s6744_s17 + $0x480] sm:$0xf]  ;;  %v5258_v58 = vor.u32 %v6474_v50, %v5257_v49  ;;  %v6546_v60 = vld [vmem:[%s6744_s17 + $0x90c] sm:$0xf] }
  0x1b   : > { %3090 = vmatpush.bf16.msra.mxu2 %v6018_v29  ;;  %3116 = vmatpush.bf16.msra.mxu3 %v6022_v30  ;;  %v6425_v59 = vld [vmem:[%s6744_s17 + $0x53c] sm:$0xf0]  ;;  %v5643_v61 = vld [vmem:[%s6744_s17 + $0x9c8] sm:$0xf0]  ;;  %v5065_v62 = vld [vmem:[%s6744_s17 + $0x488] sm:$0xf]  ;;  %v5446_v0 = vor.u32 %v6497_v55, %v5443_v56 }
  0x1c   : > { %3072 = vmatpush.bf16.msra.mxu0 %v5442_v39  ;;  %3124 = vmatpush.bf16.msra.mxu1 %v5450_v40  ;;  %v6426_v63 = vld [vmem:[%s6744_s17 + $0x544] sm:$0xf0]  ;;  %v5058_v1 = vor.u32 %v6425_v59, %v5057_v57  ;;  %v5646_v2 = vor.u32 %v6546_v60, %v5643_v61  ;;  %v6449_v4 = vld [vmem:[%s6744_s17 + $0x604] sm:$0xf]  ;;  %v4865_v6 = vld [vmem:[%s6744_s17 + $0x300] sm:$0xf] }
  0x1d   : > { %v5251_v5 = vld [vmem:[%s6744_s17 + $0x6c0] sm:$0xf0]  ;;  %v5066_v7 = vor.u32 %v6426_v63, %v5065_v62  ;;  %v6377_v8 = vld [vmem:[%s6744_s17 + $0x3bc] sm:$0xf0]  ;;  %v6498_v9 = vld [vmem:[%s6744_s17 + $0x78c] sm:$0xf] }
  0x1e   : > { %6208 = vmatmul.msk.bf16.vlgmr.msra.gmra.mxu3 %vm2921_vm1, %v6782_v44  ;;  %6207 = vmatmul.msk.bf16.vlgmr.msra.gmra.mxu2 %vm2921_vm1, %v6782_v44  ;;  %v5451_v10 = vld [vmem:[%s6744_s17 + $0x848] sm:$0xf0]  ;;  %v4873_v11 = vld [vmem:[%s6744_s17 + $0x308] sm:$0xf]  ;;  %v5254_v13 = vor.u32 %v6449_v4, %v5251_v5  ;;  %v4866_v14 = vor.u32 %v6377_v8, %v4865_v6  ;;  %v6401_v16 = vld [vmem:[%s6744_s17 + $0x484] sm:$0xf] }
  0x1f   : > { %3096 = vmatpush.bf16.msrb.mxu2 %v5830_v35  ;;  %3141 = vmatpush.bf16.msrb.mxu3 %v2933_v48  ;;  %v6378_v12 = vld [vmem:[%s6744_s17 + $0x3c4] sm:$0xf0]  ;;  %v5454_v15 = vor.u32 %v6498_v9, %v5451_v10  ;;  %v5059_v17 = vld [vmem:[%s6744_s17 + $0x540] sm:$0xf0]  ;;  %v4673_v18 = vld [vmem:[%s6744_s17 + $0x180] sm:$0xf] }
  0x20   : > { %3073 = vmatpush.bf16.msra.mxu0 %v5250_v53  ;;  %3125 = vmatpush.bf16.msra.mxu1 %v5258_v58  ;;  %v4874_v20 = vor.u32 %v6378_v12, %v4873_v11  ;;  %v6329_v21 = vld [vmem:[%s6744_s17 + $0x23c] sm:$0xf0]  ;;  %v6450_v22 = vld [vmem:[%s6744_s17 + $0x60c] sm:$0xf]  ;;  %v4681_v24 = vld [vmem:[%s6744_s17 + $0x188] sm:$0xf]  ;;  %v5062_v27 = vor.u32 %v6401_v16, %v5059_v17  ;;  %v6840_v58 = vpack.c.b16 %v636_v41, %v636_v41 }
  0x21   : > { %v5259_v23 = vld [vmem:[%s6744_s17 + $0x6c8] sm:$0xf0]  ;;  %v6330_v25 = vld [vmem:[%s6744_s17 + $0x244] sm:$0xf0]  ;;  %v4674_v28 = vor.u32 %v6329_v21, %v4673_v18  ;;  %v6353_v29 = vld [vmem:[%s6744_s17 + $0x304] sm:$0xf] }
  0x22   : > { %v5262_v26 = vor.u32 %v6450_v22, %v5259_v23  ;;  %v4867_v30 = vld [vmem:[%s6744_s17 + $0x3c0] sm:$0xf0]  ;;  %v4481_v31 = vld [vmem:[%s6744_s17] sm:$0xf]  ;;  %v4682_v33 = vor.u32 %v6330_v25, %v4681_v24  ;;  %v6402_v35 = vld [vmem:[%s6744_s17 + $0x48c] sm:$0xf] }
  0x23   : > { %3097 = vmatpush.bf16.msrb.mxu2 %v5638_v51  ;;  %3142 = vmatpush.bf16.msrb.mxu3 %v6026_v52  ;;  %v6281_v34 = vld [vmem:[%s6744_s17 + $0xbc] sm:$0xf0]  ;;  %v5067_v36 = vld [vmem:[%s6744_s17 + $0x548] sm:$0xf0]  ;;  %v4489_v37 = vld [vmem:[%s6744_s17 + $0x8] sm:$0xf]  ;;  %v4870_v40 = vor.u32 %v6353_v29, %v4867_v30 }
  0x24   : > { %3074 = vmatpush.bf16.msra.mxu0 %v5058_v1  ;;  %3126 = vmatpush.bf16.msra.mxu1 %v5066_v7  ;;  %v6282_v38 = vld [vmem:[%s6744_s17 + $0xc4] sm:$0xf0]  ;;  %v608_v39 = vld [vmem:[%s6744_s17 + $0xd90] sm:$0x77]  ;;  %v4482_v43 = vor.u32 %v6281_v34, %v4481_v31  ;;  %v5070_v45 = vor.u32 %v6402_v35, %v5067_v36  ;;  %v2936_v46 = vsel %vm2925_vm0, %v2444_v32, 0  ;;  %v6709_v10 = vmov 0  }
  0x25   : > { %v1965_v42 = vunpack.c.l.b16 %v608_v39  ;;  %v6305_v47 = vld [vmem:[%s6744_s17 + $0x184] sm:$0xf]  ;;  %v1966_v49 = vunpack.c.h.b16 %v608_v39  ;;  %v4490_v3 = vor.u32 %v6282_v38, %v4489_v37  ;;  %v6354_v50 = vld [vmem:[%s6744_s17 + $0x30c] sm:$0xf]  ;;  %v6595_v55 = vld [vmem:[%s6744_s17 + $0xa94] sm:$0xf]  ;;  %6700 = vset.pattern.permute.xlu0 %v6709_v10 }
  0x26   : > { %v4675_v48 = vld [vmem:[%s6744_s17 + $0x240] sm:$0xf0]  ;;  %v4875_v51 = vld [vmem:[%s6744_s17 + $0x3c8] sm:$0xf0]  ;;  %v5843_v56 = vld [vmem:[%s6744_s17 + $0xb50] sm:$0xf0] }
  0x27   : > { %3148 = vmatpush.bf16.msra.mxu3 %v5838_v54  ;;  %3098 = vmatpush.bf16.msrb.mxu2 %v5446_v0  ;;  %v6642_v52 = vld [vmem:[%s6744_s17 + $0xc0c] sm:$0xf]  ;;  %v2445_v53 = vpack.c.b16 %v1965_v42, %v1965_v42  ;;  %v4678_v57 = vor.u32 %v6305_v47, %v4675_v48  ;;  %v6033_v60 = vld [vmem:[%s6744_s17 + $0xc10] sm:$0xf]  ;;  %v4878_v62 = vor.u32 %v6354_v50, %v4875_v51  ;;  %v6257_v63 = vld [vmem:[%s6744_s17 + $0x4] sm:$0xf] }
  0x28   : > { %3075 = vmatpush.bf16.msra.mxu0 %v4866_v14  ;;  %3127 = vmatpush.bf16.msra.mxu1 %v4874_v20  ;;  %v6027_v54 = vld [vmem:[%s6744_s17 + $0xcc8] sm:$0xf0]  ;;  %v6667_v61 = vld [vmem:[%s6744_s17 + $0xccc] sm:$0xf0]  ;;  %v4483_v0 = vld [vmem:[%s6744_s17 + $0xc0] sm:$0xf0]  ;;  %v5846_v8 = vor.u32 %v6595_v55, %v5843_v56 }
  0x29   : > { %v2939_v59 = vsel %vm2925_vm0, %v2445_v53, 0  ;;  %v6306_v1 = vld [vmem:[%s6744_s17 + $0x18c] sm:$0xf]  ;;  %v6030_v4 = vor.u32 %v6642_v52, %v6027_v54  ;;  %v5841_v6 = vld [vmem:[%s6744_s17 + $0xa90] sm:$0xf]  ;;  %v6034_v9 = vor.u32 %v6667_v61, %v6033_v60  ;;  %v173_v11 = vld [vmem:[%s8001_s1] sm:$0xff]  ;;  %v4486_v12 = vor.u32 %v6257_v63, %v4483_v0 }
  0x2a   : > { %v4683_v5 = vld [vmem:[%s6744_s17 + $0x248] sm:$0xf0]  ;;  %v6619_v7 = vld [vmem:[%s6744_s17 + $0xb4c] sm:$0xf0]  ;;  %v5651_v14 = vld [vmem:[%s6744_s17 + $0x9d0] sm:$0xf0]  ;;  %632 = vperm.xlu0 %6700, %v173_v11  }
  0x2b   : > { %3149 = vmatpush.bf16.msra.mxu3 %v5646_v2  ;;  %3099 = vmatpush.bf16.msrb.mxu2 %v5254_v13  ;;  %v2446_v2 = vpack.c.b16 %v1966_v49, %v1966_v49  ;;  %v6547_v13 = vld [vmem:[%s6744_s17 + $0x914] sm:$0xf]  ;;  %v4686_v16 = vor.u32 %v6306_v1, %v4683_v5  ;;  %v5842_v17 = vor.u32 %v6619_v7, %v5841_v6  ;;  %v4491_v21 = vld [vmem:[%s6744_s17 + $0xc8] sm:$0xf0]  ;;  %v5649_v22 = vld [vmem:[%s6744_s17 + $0x910] sm:$0xf] }
  0x2c   : > { %3076 = vmatpush.bf16.msra.mxu0 %v4674_v28  ;;  %3128 = vmatpush.bf16.msra.mxu1 %v4682_v33  ;;  %v6643_v19 = vld [vmem:[%s6744_s17 + $0xc14] sm:$0xf]  ;;  %v6571_v23 = vld [vmem:[%s6744_s17 + $0x9cc] sm:$0xf0]  ;;  %v5654_v24 = vor.u32 %v6547_v13, %v5651_v14  ;;  %v5849_v25 = vld [vmem:[%s6744_s17 + $0xa98] sm:$0xf] }
  0x2d   : > { %v2942_v18 = vsel %vm2925_vm0, %v2446_v2, 0  ;;  %v6035_v20 = vld [vmem:[%s6744_s17 + $0xcd0] sm:$0xf0]  ;;  %v5650_v31 = vor.u32 %v6571_v23, %v5649_v22  ;;  %v5457_v33 = vld [vmem:[%s6744_s17 + $0x790] sm:$0xf] }
  0x2e   : > { %6209 = vmatmul.msk.bf16.vlgmr.msrb.gmra.mxu3 %vm2921_vm1, %v6782_v44  ;;  %v6499_v28 = vld [vmem:[%s6744_s17 + $0x794] sm:$0xf]  ;;  %v6038_v29 = vor.u32 %v6643_v19, %v6035_v20  ;;  %v6523_v34 = vld [vmem:[%s6744_s17 + $0x84c] sm:$0xf0]  ;;  %v5657_v36 = vld [vmem:[%s6744_s17 + $0x918] sm:$0xf] }
  0x2f   : > { %3150 = vmatpush.bf16.msra.mxu3 %v5454_v15  ;;  %3100 = vmatpush.bf16.msrb.mxu2 %v5062_v27  ;;  %v6258_v15 = vld [vmem:[%s6744_s17 + $0xc] sm:$0xf]  ;;  %v6620_v27 = vld [vmem:[%s6744_s17 + $0xb54] sm:$0xf0]  ;;  %v6451_v38 = vld [vmem:[%s6744_s17 + $0x614] sm:$0xf] }
  0x30   : > { %3077 = vmatpush.bf16.msra.mxu0 %v4482_v43  ;;  %3129 = vmatpush.bf16.msra.mxu1 %v4490_v3  ;;  %v4494_v30 = vor.u32 %v6258_v15, %v4491_v21  ;;  %v5850_v32 = vor.u32 %v6620_v27, %v5849_v25  ;;  %v6572_v37 = vld [vmem:[%s6744_s17 + $0x9d4] sm:$0xf0]  ;;  %v5267_v39 = vld [vmem:[%s6744_s17 + $0x6d0] sm:$0xf0]  ;;  %v5265_v42 = vld [vmem:[%s6744_s17 + $0x610] sm:$0xf] }
  0x31   : > { %v5658_v41 = vor.u32 %v6572_v37, %v5657_v36  ;;  %v6475_v43 = vld [vmem:[%s6744_s17 + $0x6cc] sm:$0xf0]  ;;  %v5851_v47 = vld [vmem:[%s6744_s17 + $0xb58] sm:$0xf0]  ;;  %v5465_v48 = vld [vmem:[%s6744_s17 + $0x798] sm:$0xf] }
  0x32   : > { %v6524_v49 = vld [vmem:[%s6744_s17 + $0x854] sm:$0xf0]  ;;  %v6403_v3 = vld [vmem:[%s6744_s17 + $0x494] sm:$0xf]  ;;  %v5266_v51 = vor.u32 %v6475_v43, %v5265_v42  ;;  %v5073_v54 = vld [vmem:[%s6744_s17 + $0x490] sm:$0xf] }
  0x33   : > { %3151 = vmatpush.bf16.msra.mxu3 %v5262_v26  ;;  %3101 = vmatpush.bf16.msrb.mxu2 %v4870_v40  ;;  %v5459_v26 = vld [vmem:[%s6744_s17 + $0x850] sm:$0xf0]  ;;  %v5458_v40 = vor.u32 %v6523_v34, %v5457_v33  ;;  %v5466_v53 = vor.u32 %v6524_v49, %v5465_v48  ;;  %v6427_v55 = vld [vmem:[%s6744_s17 + $0x54c] sm:$0xf0]  ;;  %v6548_v56 = vld [vmem:[%s6744_s17 + $0x91c] sm:$0xf] }
  0x34   : > { %3167 = vmatpush.bf16.msrb.mxu0 %v2936_v46  ;;  %3193 = vmatpush.bf16.msrb.mxu1 %v2939_v59  ;;  %v5462_v35 = vor.u32 %v6499_v28, %v5459_v26  ;;  %v5270_v46 = vor.u32 %v6451_v38, %v5267_v39  ;;  %v5075_v50 = vld [vmem:[%s6744_s17 + $0x550] sm:$0xf0]  ;;  %v5659_v59 = vld [vmem:[%s6744_s17 + $0x9d8] sm:$0xf0]  ;;  %v5273_v60 = vld [vmem:[%s6744_s17 + $0x618] sm:$0xf]  ;;  %v5074_v0 = vor.u32 %v6427_v55, %v5073_v54 }
  0x35   : > { %3078 = vmatmul.bf16.vlgmr.msra.gmra.mxu0 %v6840_v58  ;;  %3130 = vmatmul.bf16.vlgmr.msra.gmra.mxu1 %v6840_v58  ;;  %v6476_v61 = vld [vmem:[%s6744_s17 + $0x6d4] sm:$0xf0]  ;;  %v4883_v63 = vld [vmem:[%s6744_s17 + $0x3d0] sm:$0xf0]  ;;  %v4881_v1 = vld [vmem:[%s6744_s17 + $0x310] sm:$0xf]  ;;  %v5662_v2 = vor.u32 %v6548_v56, %v5659_v59 }
  0x36   : > { %v6379_v5 = vld [vmem:[%s6744_s17 + $0x3cc] sm:$0xf0]  ;;  %v6500_v6 = vld [vmem:[%s6744_s17 + $0x79c] sm:$0xf]  ;;  %v5081_v10 = vld [vmem:[%s6744_s17 + $0x498] sm:$0xf] }
  0x37   : > { %3152 = vmatpush.bf16.msra.mxu3 %v5070_v45  ;;  %3102 = vmatpush.bf16.msrb.mxu2 %v4678_v57  ;;  %v6596_v45 = vld [vmem:[%s6744_s17 + $0xa9c] sm:$0xf]  ;;  %v5078_v57 = vor.u32 %v6403_v3, %v5075_v50  ;;  %v6428_v11 = vld [vmem:[%s6744_s17 + $0x554] sm:$0xf0]  ;;  %v4691_v13 = vld [vmem:[%s6744_s17 + $0x250] sm:$0xf0]  ;;  %v4882_v14 = vor.u32 %v6379_v5, %v4881_v1 }
  0x38   : > { %3168 = vmatpush.bf16.msrb.mxu0 %v6030_v4  ;;  %3194 = vmatpush.bf16.msrb.mxu1 %v6034_v9  ;;  %v5854_v52 = vor.u32 %v6596_v45, %v5851_v47  ;;  %v5274_v4 = vor.u32 %v6476_v61, %v5273_v60  ;;  %v609_v7 = vld [vmem:[%s6744_s17 + $0xd98] sm:$0x77]  ;;  %v6331_v19 = vld [vmem:[%s6744_s17 + $0x24c] sm:$0xf0]  ;;  %v6259_v27 = vld [vmem:[%s6744_s17 + $0x14] sm:$0xf] }
  0x39   : > { %v5467_v9 = vld [vmem:[%s6744_s17 + $0x858] sm:$0xf0]  ;;  %v1968_v15 = vunpack.c.h.b16 %v609_v7  ;;  %v4889_v23 = vld [vmem:[%s6744_s17 + $0x318] sm:$0xf]  ;;  %v1967_v25 = vunpack.c.l.b16 %v609_v7  ;;  %v4499_v28 = vld [vmem:[%s6744_s17 + $0xd0] sm:$0xf0] }
  0x3a   : > { %v6452_v20 = vld [vmem:[%s6744_s17 + $0x61c] sm:$0xf]  ;;  %v6283_v33 = vld [vmem:[%s6744_s17 + $0xcc] sm:$0xf0]  ;;  %v6917_v34 = vld [vmem:[%s6744_s17 + $0xda0] sm:$0x77] }
  0x3b   : > { %3153 = vmatpush.bf16.msra.mxu3 %v4878_v62  ;;  %3103 = vmatpush.bf16.msrb.mxu2 %v4486_v12  ;;  %v6355_v62 = vld [vmem:[%s6744_s17 + $0x314] sm:$0xf]  ;;  %v5275_v22 = vld [vmem:[%s6744_s17 + $0x6d8] sm:$0xf0]  ;;  %v2447_v36 = vpack.c.b16 %v1967_v25, %v1967_v25  ;;  %v4697_v39 = vld [vmem:[%s6744_s17 + $0x198] sm:$0xf]  ;;  %v1969_v48 = vunpack.c.l.b16 %v6917_v34 }
  0x3c   : > { %3200 = vmatpush.bf16.msra.mxu0 %v5846_v8  ;;  %3219 = vmatpush.bf16.msra.mxu1 %v2942_v18  ;;  %v4886_v8 = vor.u32 %v6355_v62, %v4883_v63  ;;  %v6307_v12 = vld [vmem:[%s6744_s17 + $0x194] sm:$0xf]  ;;  %v4689_v18 = vld [vmem:[%s6744_s17 + $0x190] sm:$0xf]  ;;  %v6404_v37 = vld [vmem:[%s6744_s17 + $0x49c] sm:$0xf] }
  0x3d   : > { %v4694_v21 = vor.u32 %v6307_v12, %v4691_v13  ;;  %v4690_v26 = vor.u32 %v6331_v19, %v4689_v18  ;;  %v5083_v38 = vld [vmem:[%s6744_s17 + $0x558] sm:$0xf0]  ;;  %v5859_v47 = vld [vmem:[%s6744_s17 + $0xb60] sm:$0xf0]  ;;  %v6041_v3 = vld [vmem:[%s6744_s17 + $0xc18] sm:$0xf]  ;;  %v2449_v62 = vpack.c.b16 %v1969_v48, %v1969_v48 }
  0x3e   : > { %3104 = vmatmul.bf16.vlgmr.msrb.gmra.mxu2 %v6840_v58  ;;  %v6043_v42 = vld [vmem:[%s6744_s17 + $0xcd8] sm:$0xf0]  ;;  %v5086_v49 = vor.u32 %v6404_v37, %v5083_v38  ;;  %v6668_v50 = vld [vmem:[%s6744_s17 + $0xcd4] sm:$0xf0]  ;;  %v5857_v55 = vld [vmem:[%s6744_s17 + $0xaa0] sm:$0xf] }
  0x3f   : > { %3154 = vmatpush.bf16.msra.mxu3 %v4686_v16  ;;  %3174 = vmatpush.bf16.msra.mxu2 %v5842_v17  ;;  %v5470_v16 = vor.u32 %v6500_v6, %v5467_v9  ;;  %v5082_v17 = vor.u32 %v6428_v11, %v5081_v10  ;;  %v4891_v54 = vld [vmem:[%s6744_s17 + $0x3d8] sm:$0xf0]  ;;  %v4505_v59 = vld [vmem:[%s6744_s17 + $0x18] sm:$0xf]  ;;  %v6042_v63 = vor.u32 %v6668_v50, %v6041_v3  ;;  %v6549_v1 = vld [vmem:[%s6744_s17 + $0x924] sm:$0xf] }
  0x40   : > { %3201 = vmatpush.bf16.msra.mxu0 %v5654_v24  ;;  %3220 = vmatpush.bf16.msra.mxu1 %v6038_v29  ;;  %v6380_v24 = vld [vmem:[%s6744_s17 + $0x3d4] sm:$0xf0]  ;;  %v2448_v29 = vpack.c.b16 %v1968_v15, %v1968_v15  ;;  %v6308_v6 = vld [vmem:[%s6744_s17 + $0x19c] sm:$0xf]  ;;  %v5665_v9 = vld [vmem:[%s6744_s17 + $0x920] sm:$0xf] }
  0x41   : > { %v6284_v60 = vld [vmem:[%s6744_s17 + $0xd4] sm:$0xf0]  ;;  %v4699_v7 = vld [vmem:[%s6744_s17 + $0x258] sm:$0xf0]  ;;  %v6573_v10 = vld [vmem:[%s6744_s17 + $0x9dc] sm:$0xf0] }
  0x42   : > { %v2948_v43 = vsel %vm2925_vm0, %v2448_v29, 0  ;;  %v4506_v5 = vor.u32 %v6284_v60, %v4505_v59  ;;  %v6049_v11 = vld [vmem:[%s6744_s17 + $0xc20] sm:$0xf]  ;;  %v2951_v12 = vsel %vm2925_vm0, %v2449_v62, 0  ;;  %v6501_v15 = vld [vmem:[%s6744_s17 + $0x7a4] sm:$0xf] }
  0x43   : > { %3155 = vmatpush.bf16.msra.mxu3 %v4494_v30  ;;  %3175 = vmatpush.bf16.msra.mxu2 %v5650_v31  ;;  %v5278_v30 = vor.u32 %v6452_v20, %v5275_v22  ;;  %v4890_v31 = vor.u32 %v6380_v24, %v4889_v23  ;;  %v5865_v18 = vld [vmem:[%s6744_s17 + $0xaa8] sm:$0xf]  ;;  %v5666_v20 = vor.u32 %v6573_v10, %v5665_v9  ;;  %v4507_v22 = vld [vmem:[%s6744_s17 + $0xd8] sm:$0xf0]  ;;  %v5473_v25 = vld [vmem:[%s6744_s17 + $0x7a0] sm:$0xf] }
  0x44   : > { %3202 = vmatpush.bf16.msra.mxu0 %v5462_v35  ;;  %v4502_v35 = vor.u32 %v6259_v27, %v4499_v28  ;;  %v6622_v19 = vld [vmem:[%s6744_s17 + $0xb64] sm:$0xf0]  ;;  %v6525_v27 = vld [vmem:[%s6744_s17 + $0x85c] sm:$0xf0]  ;;  %v6453_v29 = vld [vmem:[%s6744_s17 + $0x624] sm:$0xf] }
  0x45   : > { %6210 = vmatmul.msk.bf16.vlgmr.msrb.gmra.mxu0 %vm2921_vm1, %v6782_v44  ;;  %6211 = vmatmul.msk.bf16.vlgmr.msrb.gmra.mxu1 %vm2921_vm1, %v6782_v44  ;;  %v6477_v37 = vld [vmem:[%s6744_s17 + $0x6dc] sm:$0xf0]  ;;  %v6645_v38 = vld [vmem:[%s6744_s17 + $0xc24] sm:$0xf]  ;;  %v6526_v48 = vld [vmem:[%s6744_s17 + $0x864] sm:$0xf0] }
  0x46   : > { %3156 = vmatmul.bf16.vlgmr.msra.gmra.mxu3 %v6840_v58  ;;  %3252 = vmatpush.bf16.msrb.mxu1 %v5854_v52  ;;  %v2945_v52 = vsel %vm2925_vm0, %v2447_v36, 0  ;;  %v5281_v36 = vld [vmem:[%s6744_s17 + $0x620] sm:$0xf]  ;;  %v4899_v59 = vld [vmem:[%s6744_s17 + $0x3e0] sm:$0xf0] }
  0x47   : > { %3226 = vmatpush.bf16.msrb.mxu3 %v5850_v32  ;;  %3176 = vmatpush.bf16.msra.mxu2 %v5458_v40  ;;  %v4497_v32 = vld [vmem:[%s6744_s17 + $0x10] sm:$0xf]  ;;  %v6332_v40 = vld [vmem:[%s6744_s17 + $0x254] sm:$0xf0]  ;;  %v5289_v60 = vld [vmem:[%s6744_s17 + $0x628] sm:$0xf] }
  0x48   : > { %3203 = vmatpush.bf16.msra.mxu0 %v5270_v46  ;;  %v4498_v45 = vor.u32 %v6283_v33, %v4497_v32  ;;  %v6597_v46 = vld [vmem:[%s6744_s17 + $0xaa4] sm:$0xf]  ;;  %v5673_v32 = vld [vmem:[%s6744_s17 + $0x928] sm:$0xf] }
  0x49   : > { %v5862_v61 = vor.u32 %v6597_v46, %v5859_v47  ;;  %v6574_v33 = vld [vmem:[%s6744_s17 + $0x9e4] sm:$0xf0]  ;;  %v5091_v46 = vld [vmem:[%s6744_s17 + $0x560] sm:$0xf0] }
  0x4a   : > { %3253 = vmatpush.bf16.msrb.mxu1 %v5662_v2  ;;  %v5667_v2 = vld [vmem:[%s6744_s17 + $0x9e0] sm:$0xf0]  ;;  %v5481_v47 = vld [vmem:[%s6744_s17 + $0x7a8] sm:$0xf] }
  0x4b   : > { %3227 = vmatpush.bf16.msrb.mxu3 %v5658_v41  ;;  %3177 = vmatpush.bf16.msra.mxu2 %v5266_v51  ;;  %v6644_v41 = vld [vmem:[%s6744_s17 + $0xc1c] sm:$0xf]  ;;  %v5670_v13 = vor.u32 %v6549_v1, %v5667_v2  ;;  %v6381_v1 = vld [vmem:[%s6744_s17 + $0x3dc] sm:$0xf0]  ;;  %v611_v2 = vld [vmem:[%s6744_s17 + $0xda8] sm:$0x77] }
  0x4c   : > { %3204 = vmatpush.bf16.msra.mxu0 %v5078_v57  ;;  %v6356_v51 = vld [vmem:[%s6744_s17 + $0x31c] sm:$0xf]  ;;  %v6046_v56 = vor.u32 %v6644_v41, %v6043_v42  ;;  %v6621_v57 = vld [vmem:[%s6744_s17 + $0xb5c] sm:$0xf0]  ;;  %v5674_v41 = vor.u32 %v6574_v33, %v5673_v32  ;;  %v6598_v42 = vld [vmem:[%s6744_s17 + $0xaac] sm:$0xf] }
  0x4d   : > { %v4707_v9 = vld [vmem:[%s6744_s17 + $0x260] sm:$0xf0]  ;;  %v5097_v10 = vld [vmem:[%s6744_s17 + $0x4a8] sm:$0xf] }
  0x4e   : > { %3254 = vmatpush.bf16.msrb.mxu1 %v5470_v16  ;;  %v4702_v16 = vor.u32 %v6308_v6, %v4699_v7  ;;  %v6502_v6 = vld [vmem:[%s6744_s17 + $0x7ac] sm:$0xf] }
  0x4f   : > { %3228 = vmatpush.bf16.msrb.mxu3 %v5466_v53  ;;  %3178 = vmatpush.bf16.msra.mxu2 %v5074_v0  ;;  %v4698_v53 = vor.u32 %v6332_v40, %v4697_v39  ;;  %v4894_v0 = vor.u32 %v6356_v51, %v4891_v54  ;;  %v6051_v39 = vld [vmem:[%s6744_s17 + $0xce0] sm:$0xf0]  ;;  %v5089_v51 = vld [vmem:[%s6744_s17 + $0x4a0] sm:$0xf]  ;;  %v5482_v54 = vor.u32 %v6526_v48, %v5481_v47  ;;  %v5483_v7 = vld [vmem:[%s6744_s17 + $0x868] sm:$0xf0] }
  0x50   : > { %3205 = vmatpush.bf16.msra.mxu0 %v4886_v8  ;;  %v1970_v8 = vunpack.c.h.b16 %v6917_v34  ;;  %v5474_v34 = vor.u32 %v6525_v27, %v5473_v25  ;;  %v6054_v3 = vor.u32 %v6645_v38, %v6051_v39  ;;  %v6382_v25 = vld [vmem:[%s6744_s17 + $0x3e4] sm:$0xf0] }
  0x51   : > { %v6334_v38 = vld [vmem:[%s6744_s17 + $0x264] sm:$0xf0] }
  0x52   : > { %3255 = vmatpush.bf16.msrb.mxu1 %v5278_v30  ;;  %v2450_v23 = vpack.c.b16 %v1970_v8, %v1970_v8  ;;  %v6309_v8 = vld [vmem:[%s6744_s17 + $0x1a4] sm:$0xf]  ;;  %v6057_v47 = vld [vmem:[%s6744_s17 + $0xc28] sm:$0xf] }
  0x53   : > { %3229 = vmatpush.bf16.msrb.mxu3 %v5274_v4  ;;  %3179 = vmatpush.bf16.msra.mxu2 %v4882_v14  ;;  %v5858_v4 = vor.u32 %v6621_v57, %v5857_v55  ;;  %v6669_v14 = vld [vmem:[%s6744_s17 + $0xcdc] sm:$0xf0]  ;;  %v6550_v55 = vld [vmem:[%s6744_s17 + $0x92c] sm:$0xf]  ;;  %v6357_v57 = vld [vmem:[%s6744_s17 + $0x324] sm:$0xf] }
  0x54   : > { %3206 = vmatpush.bf16.msra.mxu0 %v4694_v21  ;;  %v6260_v21 = vld [vmem:[%s6744_s17 + $0x1c] sm:$0xf]  ;;  %v6050_v24 = vor.u32 %v6669_v14, %v6049_v11  ;;  %v6430_v11 = vld [vmem:[%s6744_s17 + $0x564] sm:$0xf0]  ;;  %v5486_v14 = vor.u32 %v6502_v6, %v5483_v7  ;;  %v5681_v6 = vld [vmem:[%s6744_s17 + $0x930] sm:$0xf] }
  0x55   : > { %6212 = vmatmul.msk.bf16.vlgmr.msra.gmra.mxu1 %vm2921_vm1, %v6782_v44  ;;  %v4510_v30 = vor.u32 %v6260_v21, %v4507_v22  ;;  %v6261_v21 = vld [vmem:[%s6744_s17 + $0x24] sm:$0xf]  ;;  %v1971_v22 = vunpack.c.l.b16 %v611_v2  ;;  %v6575_v7 = vld [vmem:[%s6744_s17 + $0x9ec] sm:$0xf0] }
  0x56   : > { %3256 = vmatpush.bf16.msrb.mxu1 %v5086_v49  ;;  %v5282_v49 = vor.u32 %v6477_v37, %v5281_v36  ;;  %v7013_v36 = vld [vmem:[%s6744_s17 + $0xdb0] sm:$0x77]  ;;  %v4713_v37 = vld [vmem:[%s6744_s17 + $0x1a8] sm:$0xf] }
  0x57   : > { %3230 = vmatpush.bf16.msrb.mxu3 %v5082_v17  ;;  %3180 = vmatpush.bf16.msra.mxu2 %v4690_v26  ;;  %v5475_v17 = vld [vmem:[%s6744_s17 + $0x860] sm:$0xf0]  ;;  %v5866_v26 = vor.u32 %v6622_v19, %v5865_v18  ;;  %v5098_v18 = vor.u32 %v6430_v11, %v5097_v10  ;;  %v6454_v19 = vld [vmem:[%s6744_s17 + $0x62c] sm:$0xf]  ;;  %v2451_v33 = vpack.c.b16 %v1971_v22, %v1971_v22  ;;  %v1973_v48 = vunpack.c.l.b16 %v7013_v36  ;;  %v6527_v22 = vld [vmem:[%s6744_s17 + $0x86c] sm:$0xf0] }
  0x58   : > { %3207 = vmatpush.bf16.msra.mxu0 %v4502_v35  ;;  %v5478_v28 = vor.u32 %v6501_v15, %v5475_v17  ;;  %v2954_v35 = vsel %vm2925_vm0, %v2450_v23, 0  ;;  %v4705_v15 = vld [vmem:[%s6744_s17 + $0x1a0] sm:$0xf]  ;;  %v4710_v17 = vor.u32 %v6309_v8, %v4707_v9  ;;  %v4515_v23 = vld [vmem:[%s6744_s17 + $0xe0] sm:$0xf0]  ;;  %v1974_v10 = vunpack.c.h.b16 %v7013_v36 }
  0x59   : > { %v6065_v8 = vld [vmem:[%s6744_s17 + $0xc30] sm:$0xf]  ;;  %v6647_v36 = vld [vmem:[%s6744_s17 + $0xc34] sm:$0xf] }
  0x5a   : > { %3257 = vmatpush.bf16.msrb.mxu1 %v4894_v0  ;;  %v4897_v0 = vld [vmem:[%s6744_s17 + $0x320] sm:$0xf]  ;;  %v6671_v9 = vld [vmem:[%s6744_s17 + $0xcec] sm:$0xf0] }
  0x5b   : > { %3231 = vmatpush.bf16.msrb.mxu3 %v4890_v31  ;;  %3181 = vmatpush.bf16.msra.mxu2 %v4498_v45  ;;  %v5283_v31 = vld [vmem:[%s6744_s17 + $0x6e0] sm:$0xf0] }
  0x5c   : > { %3271 = vmatpush.bf16.msrb.mxu0 %v2948_v43  ;;  %v5286_v40 = vor.u32 %v6453_v29, %v5283_v31  ;;  %v5867_v43 = vld [vmem:[%s6744_s17 + $0xb68] sm:$0xf0]  ;;  %v6405_v45 = vld [vmem:[%s6744_s17 + $0x4a4] sm:$0xf]  ;;  %v4513_v29 = vld [vmem:[%s6744_s17 + $0x20] sm:$0xf]  ;;  %v4518_v31 = vor.u32 %v6261_v21, %v4515_v23  ;;  %v6066_v23 = vor.u32 %v6671_v9, %v6065_v8 }
  0x5d   : > { %3208 = vmatmul.bf16.vlgmr.msra.gmra.mxu0 %v6840_v58  ;;  %v5870_v50 = vor.u32 %v6598_v42, %v5867_v43  ;;  %v6059_v42 = vld [vmem:[%s6744_s17 + $0xce8] sm:$0xf0]  ;;  %v5489_v21 = vld [vmem:[%s6744_s17 + $0x7b0] sm:$0xf] }
  0x5e   : > { %3182 = vmatmul.bf16.vlgmr.msra.gmra.mxu2 %v6840_v58  ;;  %3258 = vmatpush.bf16.msrb.mxu1 %v4702_v16  ;;  %v6333_v16 = vld [vmem:[%s6744_s17 + $0x25c] sm:$0xf0] }
  0x5f   : > { %3245 = vmatpush.bf16.msrb.mxu2 %v2945_v52  ;;  %3232 = vmatpush.bf16.msrb.mxu3 %v4698_v53  ;;  %v6429_v52 = vld [vmem:[%s6744_s17 + $0x55c] sm:$0xf0]  ;;  %v5094_v53 = vor.u32 %v6405_v45, %v5091_v46  ;;  %v4706_v27 = vor.u32 %v6333_v16, %v4705_v15  ;;  %v6599_v45 = vld [vmem:[%s6744_s17 + $0xab4] sm:$0xf]  ;;  %v5682_v16 = vor.u32 %v6575_v7, %v5681_v6 }
  0x60   : > { %3272 = vmatpush.bf16.msrb.mxu0 %v6046_v56  ;;  %v5675_v56 = vld [vmem:[%s6744_s17 + $0x9e8] sm:$0xf0]  ;;  %v5090_v62 = vor.u32 %v6429_v52, %v5089_v51  ;;  %v5875_v46 = vld [vmem:[%s6744_s17 + $0xb70] sm:$0xf0] }
  0x61   : > { %v6358_v51 = vld [vmem:[%s6744_s17 + $0x32c] sm:$0xf]  ;;  %v6311_v6 = vld [vmem:[%s6744_s17 + $0x1b4] sm:$0xf] }
  0x62   : > { %3259 = vmatpush.bf16.msrb.mxu1 %v4510_v30  ;;  %v6285_v30 = vld [vmem:[%s6744_s17 + $0xdc] sm:$0xf0]  ;;  %v4723_v7 = vld [vmem:[%s6744_s17 + $0x270] sm:$0xf0] }
  0x63   : > { %3246 = vmatpush.bf16.msrb.mxu2 %v6042_v63  ;;  %3233 = vmatpush.bf16.msrb.mxu3 %v4506_v5  ;;  %v5678_v63 = vor.u32 %v6550_v55, %v5675_v56  ;;  %v6623_v55 = vld [vmem:[%s6744_s17 + $0xb6c] sm:$0xf0]  ;;  %v4521_v56 = vld [vmem:[%s6744_s17 + $0x28] sm:$0xf] }
  0x64   : > { %3304 = vmatpush.bf16.msra.mxu0 %v5862_v61  ;;  %v6478_v61 = vld [vmem:[%s6744_s17 + $0x6e4] sm:$0xf0] }
  0x65   : > { %3260 = vmatmul.bf16.vlgmr.msrb.gmra.mxu1 %v6840_v58  ;;  %v5290_v5 = vor.u32 %v6478_v61, %v5289_v60  ;;  %v2453_v61 = vpack.c.b16 %v1973_v48, %v1973_v48 }
  0x66   : > { %3234 = vmatmul.bf16.vlgmr.msrb.gmra.mxu3 %v6840_v58  ;;  %3323 = vmatpush.bf16.msra.mxu1 %v2954_v35  ;;  %v5099_v35 = vld [vmem:[%s6744_s17 + $0x568] sm:$0xf0] }
  0x67   : > { %3278 = vmatpush.bf16.msra.mxu2 %v5858_v4  ;;  %3297 = vmatpush.bf16.msra.mxu3 %v2951_v12  ;;  %v4902_v4 = vor.u32 %v6357_v57, %v4899_v59  ;;  %v4898_v12 = vor.u32 %v6381_v1, %v4897_v0  ;;  %v6286_v57 = vld [vmem:[%s6744_s17 + $0xe4] sm:$0xf0]  ;;  %v5878_v59 = vor.u32 %v6599_v45, %v5875_v46  ;;  %v6551_v0 = vld [vmem:[%s6744_s17 + $0x934] sm:$0xf]  ;;  %v2963_v11 = vsel %vm2925_vm0, %v2453_v61, 0 }
  0x68   : > { %3305 = vmatpush.bf16.msra.mxu0 %v5670_v13  ;;  %v1972_v13 = vunpack.c.h.b16 %v611_v2  ;;  %v5683_v1 = vld [vmem:[%s6744_s17 + $0x9f0] sm:$0xf0]  ;;  %v6310_v2 = vld [vmem:[%s6744_s17 + $0x1ac] sm:$0xf]  ;;  %v5497_v46 = vld [vmem:[%s6744_s17 + $0x7b8] sm:$0xf] }
  0x69   : > { %v5107_v45 = vld [vmem:[%s6744_s17 + $0x570] sm:$0xf0]  ;;  %v613_v61 = vld [vmem:[%s6744_s17 + $0xdb8] sm:$0x77] }
  0x6a   : > { %3324 = vmatpush.bf16.msra.mxu1 %v6054_v3  ;;  %v4714_v3 = vor.u32 %v6334_v38, %v4713_v37  ;;  %v6067_v37 = vld [vmem:[%s6744_s17 + $0xcf0] sm:$0xf0]  ;;  %v1976_v8 = vunpack.c.h.b16 %v613_v61  ;;  %v1975_v9 = vunpack.c.l.b16 %v613_v61 }
  0x6b   : > { %3279 = vmatpush.bf16.msra.mxu2 %v5666_v20  ;;  %3298 = vmatpush.bf16.msra.mxu3 %v6050_v24  ;;  %v5291_v20 = vld [vmem:[%s6744_s17 + $0x6e8] sm:$0xf0]  ;;  %v4905_v24 = vld [vmem:[%s6744_s17 + $0x328] sm:$0xf]  ;;  %v6070_v48 = vor.u32 %v6647_v36, %v6067_v37  ;;  %v5115_v36 = vld [vmem:[%s6744_s17 + $0x578] sm:$0xf0] }
  0x6c   : > { %3306 = vmatpush.bf16.msra.mxu0 %v5478_v28  ;;  %v2452_v28 = vpack.c.b16 %v1972_v13, %v1972_v13  ;;  %v4906_v32 = vor.u32 %v6382_v25, %v4905_v24  ;;  %v6503_v13 = vld [vmem:[%s6744_s17 + $0x7b4] sm:$0xf]  ;;  %v2454_v24 = vpack.c.b16 %v1974_v10, %v1974_v10 }
  0x6d   : > { %6214 = vmatmul.msk.bf16.vlgmr.msrb.gmra.mxu0 %vm2921_vm1, %v6782_v44 }
  0x6e   : > { %6213 = vmatmul.msk.bf16.vlgmr.msrb.gmra.mxu2 %vm2921_vm1, %v6782_v44  ;;  %3356 = vmatpush.bf16.msrb.mxu1 %v5870_v50  ;;  %v2960_v39 = vsel %vm2925_vm0, %v2452_v28, 0  ;;  %v6670_v50 = vld [vmem:[%s6744_s17 + $0xce4] sm:$0xf0]  ;;  %v6455_v28 = vld [vmem:[%s6744_s17 + $0x634] sm:$0xf] }
  0x6f   : > { %3330 = vmatpush.bf16.msrb.mxu3 %v5866_v26  ;;  %3280 = vmatpush.bf16.msra.mxu2 %v5474_v34  ;;  %v5294_v26 = vor.u32 %v6454_v19, %v5291_v20  ;;  %v6406_v34 = vld [vmem:[%s6744_s17 + $0x4ac] sm:$0xf]  ;;  %v6058_v60 = vor.u32 %v6670_v50, %v6057_v47  ;;  %v6624_v19 = vld [vmem:[%s6744_s17 + $0xb74] sm:$0xf0] }
  0x70   : > { %3307 = vmatpush.bf16.msra.mxu0 %v5286_v40  ;;  %v4514_v40 = vor.u32 %v6285_v30, %v4513_v29  ;;  %v5102_v43 = vor.u32 %v6406_v34, %v5099_v35  ;;  %v4523_v20 = vld [vmem:[%s6744_s17 + $0xe8] sm:$0xf0]  ;;  %v5490_v29 = vor.u32 %v6527_v22, %v5489_v21  ;;  %v5299_v30 = vld [vmem:[%s6744_s17 + $0x6f0] sm:$0xf0]  ;;  %v6479_v34 = vld [vmem:[%s6744_s17 + $0x6ec] sm:$0xf0]  ;;  %v2456_v21 = vpack.c.b16 %v1976_v8, %v1976_v8 }
  0x71   : > { %v2966_v35 = vsel %vm2925_vm0, %v2454_v24, 0  ;;  %v5302_v38 = vor.u32 %v6455_v28, %v5299_v30  ;;  %v6528_v47 = vld [vmem:[%s6744_s17 + $0x874] sm:$0xf0]  ;;  %v2455_v22 = vpack.c.b16 %v1975_v9, %v1975_v9  ;;  %v4531_v24 = vld [vmem:[%s6744_s17 + $0xf0] sm:$0xf0] }
  0x72   : > { %3357 = vmatpush.bf16.msrb.mxu1 %v5678_v63  ;;  %v4529_v28 = vld [vmem:[%s6744_s17 + $0x30] sm:$0xf]  ;;  %v7105_v30 = vld [vmem:[%s6744_s17 + $0xdc0] sm:$0x77] }
  0x73   : > { %3331 = vmatpush.bf16.msrb.mxu3 %v5674_v41  ;;  %3281 = vmatpush.bf16.msra.mxu2 %v5282_v49  ;;  %v6646_v41 = vld [vmem:[%s6744_s17 + $0xc2c] sm:$0xf]  ;;  %v2957_v49 = vsel %vm2925_vm0, %v2451_v33, 0  ;;  %v5297_v33 = vld [vmem:[%s6744_s17 + $0x630] sm:$0xf]  ;;  %v1978_v8 = vunpack.c.h.b16 %v7105_v30 }
  0x74   : > { %3308 = vmatpush.bf16.msra.mxu0 %v5094_v53  ;;  %v6062_v52 = vor.u32 %v6646_v41, %v6059_v42  ;;  %v4907_v53 = vld [vmem:[%s6744_s17 + $0x3e8] sm:$0xf0]  ;;  %v5883_v41 = vld [vmem:[%s6744_s17 + $0xb78] sm:$0xf0]  ;;  %v6407_v42 = vld [vmem:[%s6744_s17 + $0x4b4] sm:$0xf] }
  0x75   : > { %6216 = vmatmul.msk.bf16.vlgmr.msra.gmra.mxu1 %vm2921_vm1, %v6782_v44 }
  0x76   : > { %6215 = vmatmul.msk.bf16.vlgmr.msra.gmra.mxu3 %vm2921_vm1, %v6782_v44  ;;  %3358 = vmatpush.bf16.msrb.mxu1 %v5486_v14  ;;  %v5491_v14 = vld [vmem:[%s6744_s17 + $0x870] sm:$0xf0] }
  0x77   : > { %3332 = vmatpush.bf16.msrb.mxu3 %v5482_v54  ;;  %3282 = vmatpush.bf16.msra.mxu2 %v5090_v62  ;;  %v5873_v54 = vld [vmem:[%s6744_s17 + $0xab0] sm:$0xf]  ;;  %v4910_v62 = vor.u32 %v6358_v51, %v4907_v53  ;;  %v5494_v25 = vor.u32 %v6503_v13, %v5491_v14  ;;  %v6552_v51 = vld [vmem:[%s6744_s17 + $0x93c] sm:$0xf]  ;;  %v5498_v53 = vor.u32 %v6528_v47, %v5497_v46  ;;  %v6073_v47 = vld [vmem:[%s6744_s17 + $0xc38] sm:$0xf] }
  0x78   : > { %3309 = vmatpush.bf16.msra.mxu0 %v4902_v4  ;;  %v5874_v63 = vor.u32 %v6623_v55, %v5873_v54  ;;  %v4522_v4 = vor.u32 %v6286_v57, %v4521_v56  ;;  %v5691_v54 = vld [vmem:[%s6744_s17 + $0x9f8] sm:$0xf0]  ;;  %v6359_v55 = vld [vmem:[%s6744_s17 + $0x334] sm:$0xf]  ;;  %v4721_v13 = vld [vmem:[%s6744_s17 + $0x1b0] sm:$0xf] }
  0x79   : > { %v4915_v56 = vld [vmem:[%s6744_s17 + $0x3f0] sm:$0xf0]  ;;  %v6335_v14 = vld [vmem:[%s6744_s17 + $0x26c] sm:$0xf0] }
  0x7a   : > { %3359 = vmatpush.bf16.msrb.mxu1 %v5294_v26 }
  0x7b   : > { %3333 = vmatpush.bf16.msrb.mxu3 %v5290_v5  ;;  %3283 = vmatpush.bf16.msra.mxu2 %v4898_v12  ;;  %v4715_v5 = vld [vmem:[%s6744_s17 + $0x268] sm:$0xf0]  ;;  %v5686_v12 = vor.u32 %v6551_v0, %v5683_v1  ;;  %v5694_v0 = vor.u32 %v6552_v51, %v5691_v54  ;;  %v6504_v1 = vld [vmem:[%s6744_s17 + $0x7bc] sm:$0xf]  ;;  %v5889_v51 = vld [vmem:[%s6744_s17 + $0xac0] sm:$0xf] }
  0x7c   : > { %3310 = vmatpush.bf16.msra.mxu0 %v4710_v17  ;;  %v4718_v15 = vor.u32 %v6310_v2, %v4715_v5  ;;  %v6262_v17 = vld [vmem:[%s6744_s17 + $0x2c] sm:$0xf]  ;;  %v4918_v2 = vor.u32 %v6359_v55, %v4915_v56  ;;  %v5499_v5 = vld [vmem:[%s6744_s17 + $0x878] sm:$0xf0]  ;;  %v4537_v54 = vld [vmem:[%s6744_s17 + $0x38] sm:$0xf] }
  0x7d   : > { %v4526_v26 = vor.u32 %v6262_v17, %v4523_v20  ;;  %v6263_v20 = vld [vmem:[%s6744_s17 + $0x34] sm:$0xf]  ;;  %v6288_v55 = vld [vmem:[%s6744_s17 + $0xf4] sm:$0xf0] }
  0x7e   : > { %3360 = vmatpush.bf16.msrb.mxu1 %v5102_v43  ;;  %v5298_v43 = vor.u32 %v6479_v34, %v5297_v33  ;;  %v2972_v33 = vsel %vm2925_vm0, %v2456_v21, 0  ;;  %v2969_v34 = vsel %vm2925_vm0, %v2455_v22, 0 }
  0x7f   : > { %3334 = vmatpush.bf16.msrb.mxu3 %v5098_v18  ;;  %3284 = vmatpush.bf16.msra.mxu2 %v4706_v27  ;;  %v5881_v18 = vld [vmem:[%s6744_s17 + $0xab8] sm:$0xf] }
  0x80   : > { %3311 = vmatpush.bf16.msra.mxu0 %v4518_v31  ;;  %v5882_v27 = vor.u32 %v6624_v19, %v5881_v18  ;;  %v5689_v31 = vld [vmem:[%s6744_s17 + $0x938] sm:$0xf]  ;;  %v6456_v18 = vld [vmem:[%s6744_s17 + $0x63c] sm:$0xf] }
  0x81   : > { %v5307_v19 = vld [vmem:[%s6744_s17 + $0x6f8] sm:$0xf0] }
  0x82   : > { %3361 = vmatpush.bf16.msrb.mxu1 %v4910_v62  ;;  %v4913_v62 = vld [vmem:[%s6744_s17 + $0x330] sm:$0xf] }
  0x83   : > { %3335 = vmatpush.bf16.msrb.mxu3 %v4906_v32  ;;  %3285 = vmatpush.bf16.msra.mxu2 %v4514_v40  ;;  %v6576_v32 = vld [vmem:[%s6744_s17 + $0x9f4] sm:$0xf0]  ;;  %v6600_v40 = vld [vmem:[%s6744_s17 + $0xabc] sm:$0xf] }
  0x84   : > { %3375 = vmatpush.bf16.msrb.mxu0 %v2960_v39  ;;  %v5690_v39 = vor.u32 %v6576_v32, %v5689_v31  ;;  %v5886_v50 = vor.u32 %v6600_v40, %v5883_v41  ;;  %v4534_v31 = vor.u32 %v6263_v20, %v4531_v24  ;;  %v6648_v40 = vld [vmem:[%s6744_s17 + $0xc3c] sm:$0xf]  ;;  %v6529_v20 = vld [vmem:[%s6744_s17 + $0x87c] sm:$0xf0] }
  0x85   : > { %3312 = vmatmul.bf16.vlgmr.msra.gmra.mxu0 %v6840_v58  ;;  %v6075_v41 = vld [vmem:[%s6744_s17 + $0xcf8] sm:$0xf0] }
  0x86   : > { %3286 = vmatmul.bf16.vlgmr.msra.gmra.mxu2 %v6840_v58  ;;  %3362 = vmatpush.bf16.msrb.mxu1 %v4718_v15  ;;  %v5502_v15 = vor.u32 %v6504_v1, %v5499_v5  ;;  %v4538_v1 = vor.u32 %v6288_v55, %v4537_v54  ;;  %v6577_v5 = vld [vmem:[%s6744_s17 + $0x9fc] sm:$0xf0] }
  0x87   : > { %3349 = vmatpush.bf16.msrb.mxu2 %v2957_v49  ;;  %3336 = vmatpush.bf16.msrb.mxu3 %v4714_v3  ;;  %v5105_v49 = vld [vmem:[%s6744_s17 + $0x4b0] sm:$0xf] }
  0x88   : > { %3376 = vmatpush.bf16.msrb.mxu0 %v6062_v52  ;;  %v6431_v3 = vld [vmem:[%s6744_s17 + $0x56c] sm:$0xf0]  ;;  %v5110_v52 = vor.u32 %v6407_v42, %v5107_v45  ;;  %v6601_v42 = vld [vmem:[%s6744_s17 + $0xac4] sm:$0xf]  ;;  %v1977_v45 = vunpack.c.l.b16 %v7105_v30 }
  0x89   : > { %v5106_v57 = vor.u32 %v6431_v3, %v5105_v49  ;;  %v6360_v49 = vld [vmem:[%s6744_s17 + $0x33c] sm:$0xf]  ;;  %v5315_v30 = vld [vmem:[%s6744_s17 + $0x700] sm:$0xf0] }
  0x8a   : > { %3363 = vmatpush.bf16.msrb.mxu1 %v4526_v26  ;;  %v6287_v26 = vld [vmem:[%s6744_s17 + $0xec] sm:$0xf0] }
  0x8b   : > { %3350 = vmatpush.bf16.msrb.mxu2 %v6058_v60  ;;  %3337 = vmatpush.bf16.msrb.mxu3 %v4522_v4  ;;  %v6480_v60 = vld [vmem:[%s6744_s17 + $0x6f4] sm:$0xf0]  ;;  %v4530_v37 = vor.u32 %v6287_v26, %v4529_v28  ;;  %v6457_v28 = vld [vmem:[%s6744_s17 + $0x644] sm:$0xf] }
  0x8c   : > { %3408 = vmatpush.bf16.msra.mxu0 %v5878_v59  ;;  %v5305_v59 = vld [vmem:[%s6744_s17 + $0x638] sm:$0xf] }
  0x8d   : > { %3364 = vmatmul.bf16.vlgmr.msrb.gmra.mxu1 %v6840_v58  ;;  %v5306_v4 = vor.u32 %v6480_v60, %v5305_v59  ;;  %v2457_v59 = vpack.c.b16 %v1977_v45, %v1977_v45  ;;  %v5123_v45 = vld [vmem:[%s6744_s17 + $0x580] sm:$0xf0] }
  0x8e   : > { %3338 = vmatmul.bf16.vlgmr.msrb.gmra.mxu3 %v6840_v58  ;;  %3427 = vmatpush.bf16.msra.mxu1 %v2966_v35  ;;  %v6408_v35 = vld [vmem:[%s6744_s17 + $0x4bc] sm:$0xf] }
  0x8f   : > { %3382 = vmatpush.bf16.msra.mxu2 %v5874_v63  ;;  %3401 = vmatpush.bf16.msra.mxu3 %v2963_v11  ;;  %v6383_v63 = vld [vmem:[%s6744_s17 + $0x3ec] sm:$0xf0]  ;;  %v5113_v11 = vld [vmem:[%s6744_s17 + $0x4b8] sm:$0xf]  ;;  %v5118_v46 = vor.u32 %v6408_v35, %v5115_v36  ;;  %v2975_v9 = vsel %vm2925_vm0, %v2457_v59, 0 }
  0x90   : > { %3409 = vmatpush.bf16.msra.mxu0 %v5686_v12  ;;  %v4914_v10 = vor.u32 %v6383_v63, %v4913_v62  ;;  %v6432_v12 = vld [vmem:[%s6744_s17 + $0x574] sm:$0xf0]  ;;  %v6553_v62 = vld [vmem:[%s6744_s17 + $0x944] sm:$0xf] }
  0x91   : > { %v5114_v17 = vor.u32 %v6432_v12, %v5113_v11  ;;  %v5699_v63 = vld [vmem:[%s6744_s17 + $0xa00] sm:$0xf0] }
  0x92   : > { %3428 = vmatpush.bf16.msra.mxu1 %v6070_v48  ;;  %v6672_v48 = vld [vmem:[%s6744_s17 + $0xcf4] sm:$0xf0]  ;;  %v6505_v11 = vld [vmem:[%s6744_s17 + $0x7c4] sm:$0xf] }
  0x93   : > { %3383 = vmatpush.bf16.msra.mxu2 %v5682_v16  ;;  %3402 = vmatpush.bf16.msra.mxu3 %v6066_v23  ;;  %v4726_v16 = vor.u32 %v6311_v6, %v4723_v7  ;;  %v4722_v23 = vor.u32 %v6335_v14, %v4721_v13  ;;  %v6081_v6 = vld [vmem:[%s6744_s17 + $0xc40] sm:$0xf]  ;;  %v5507_v12 = vld [vmem:[%s6744_s17 + $0x880] sm:$0xf0] }
  0x94   : > { %3410 = vmatpush.bf16.msra.mxu0 %v5494_v25  ;;  %v4921_v25 = vld [vmem:[%s6744_s17 + $0x338] sm:$0xf]  ;;  %v6673_v7 = vld [vmem:[%s6744_s17 + $0xcfc] sm:$0xf0]  ;;  %v6649_v36 = vld [vmem:[%s6744_s17 + $0xc44] sm:$0xf] }
  0x95   : > { %6218 = vmatmul.msk.bf16.vlgmr.msrb.gmra.mxu0 %vm2921_vm1, %v6782_v44  ;;  %v6082_v22 = vor.u32 %v6673_v7, %v6081_v6  ;;  %v4931_v59 = vld [vmem:[%s6744_s17 + $0x400] sm:$0xf0]  ;;  %v5515_v7 = vld [vmem:[%s6744_s17 + $0x888] sm:$0xf0] }
  0x96   : > { %6217 = vmatmul.msk.bf16.vlgmr.msrb.gmra.mxu2 %vm2921_vm1, %v6782_v44  ;;  %3460 = vmatpush.bf16.msrb.mxu1 %v5886_v50  ;;  %v4923_v50 = vld [vmem:[%s6744_s17 + $0x3f8] sm:$0xf0] }
  0x97   : > { %3434 = vmatpush.bf16.msrb.mxu3 %v5882_v27  ;;  %3384 = vmatpush.bf16.msra.mxu2 %v5490_v29  ;;  %v6384_v27 = vld [vmem:[%s6744_s17 + $0x3f4] sm:$0xf0]  ;;  %v5310_v29 = vor.u32 %v6456_v18, %v5307_v19  ;;  %v4926_v60 = vor.u32 %v6360_v49, %v4923_v50  ;;  %v4539_v18 = vld [vmem:[%s6744_s17 + $0xf8] sm:$0xf0]  ;;  %v5505_v19 = vld [vmem:[%s6744_s17 + $0x7c0] sm:$0xf] }
  0x98   : > { %3411 = vmatpush.bf16.msra.mxu0 %v5302_v38  ;;  %v4922_v32 = vor.u32 %v6384_v27, %v4921_v25  ;;  %v4729_v38 = vld [vmem:[%s6744_s17 + $0x1b8] sm:$0xf]  ;;  %v5510_v25 = vor.u32 %v6505_v11, %v5507_v12  ;;  %v5121_v49 = vld [vmem:[%s6744_s17 + $0x4c0] sm:$0xf] }
  0x9a   : > { %3461 = vmatpush.bf16.msrb.mxu1 %v5694_v0  ;;  %v6312_v0 = vld [vmem:[%s6744_s17 + $0x1bc] sm:$0xf] }
  0x9b   : > { %3435 = vmatpush.bf16.msrb.mxu3 %v5690_v39  ;;  %3385 = vmatpush.bf16.msra.mxu2 %v5298_v43  ;;  %v6336_v39 = vld [vmem:[%s6744_s17 + $0x274] sm:$0xf0]  ;;  %v5891_v43 = vld [vmem:[%s6744_s17 + $0xb80] sm:$0xf0] }
  0x9c   : > { %3412 = vmatpush.bf16.msra.mxu0 %v5110_v52  ;;  %v4730_v3 = vor.u32 %v6336_v39, %v4729_v38  ;;  %v6625_v52 = vld [vmem:[%s6744_s17 + $0xb7c] sm:$0xf0]  ;;  %v5894_v56 = vor.u32 %v6601_v42, %v5891_v43  ;;  %v5318_v38 = vor.u32 %v6457_v28, %v5315_v30  ;;  %v6409_v42 = vld [vmem:[%s6744_s17 + $0x4c4] sm:$0xf] }
  0x9d   : > { %6220 = vmatmul.msk.bf16.vlgmr.msra.gmra.mxu1 %vm2921_vm1, %v6782_v44  ;;  %v5890_v61 = vor.u32 %v6625_v52, %v5889_v51  ;;  %v6554_v52 = vld [vmem:[%s6744_s17 + $0x94c] sm:$0xf]  ;;  %v5126_v54 = vor.u32 %v6409_v42, %v5123_v45  ;;  %v6265_v28 = vld [vmem:[%s6744_s17 + $0x44] sm:$0xf] }
  0x9e   : > { %6219 = vmatmul.msk.bf16.vlgmr.msra.gmra.mxu3 %vm2921_vm1, %v6782_v44  ;;  %3462 = vmatpush.bf16.msrb.mxu1 %v5502_v15  ;;  %v6264_v15 = vld [vmem:[%s6744_s17 + $0x3c] sm:$0xf]  ;;  %v6410_v42 = vld [vmem:[%s6744_s17 + $0x4cc] sm:$0xf] }
  0x9f   : > { %3436 = vmatpush.bf16.msrb.mxu3 %v5498_v53  ;;  %3386 = vmatpush.bf16.msra.mxu2 %v5106_v57  ;;  %v6078_v53 = vor.u32 %v6648_v40, %v6075_v41  ;;  %v6074_v57 = vor.u32 %v6672_v48, %v6073_v47  ;;  %v4542_v26 = vor.u32 %v6264_v15, %v4539_v18  ;;  %v6602_v40 = vld [vmem:[%s6744_s17 + $0xacc] sm:$0xf]  ;;  %v6530_v47 = vld [vmem:[%s6744_s17 + $0x884] sm:$0xf0]  ;;  %v4737_v15 = vld [vmem:[%s6744_s17 + $0x1c0] sm:$0xf] }
  0xa0   : > { %3413 = vmatpush.bf16.msra.mxu0 %v4918_v2  ;;  %v4731_v2 = vld [vmem:[%s6744_s17 + $0x278] sm:$0xf0]  ;;  %v5899_v41 = vld [vmem:[%s6744_s17 + $0xb88] sm:$0xf0] }
  0xa1   : > { %v4734_v13 = vor.u32 %v6312_v0, %v4731_v2  ;;  %v7148_v21 = vpop.f32.mrf.mxu3  ;;  %v7150_v24 = vpop.f32.mrf.mxu2  ;;  %v5902_v51 = vor.u32 %v6602_v40, %v5899_v41  ;;  %v4929_v0 = vld [vmem:[%s6744_s17 + $0x340] sm:$0xf] }
  0xa2   : > { %3463 = vmatpush.bf16.msrb.mxu1 %v5310_v29  ;;  %v5506_v29 = vor.u32 %v6529_v20, %v5505_v19 }
  0xa3   : > { %3437 = vmatpush.bf16.msrb.mxu3 %v5306_v4  ;;  %3387 = vmatpush.bf16.msra.mxu2 %v4914_v10  ;;  %v5697_v4 = vld [vmem:[%s6744_s17 + $0x940] sm:$0xf]  ;;  %v5702_v10 = vor.u32 %v6553_v62, %v5699_v63  ;;  %v6482_v62 = vld [vmem:[%s6744_s17 + $0x704] sm:$0xf0] }
  0xa4   : > { %3414 = vmatpush.bf16.msra.mxu0 %v4726_v16  ;;  %v5698_v14 = vor.u32 %v6577_v5, %v5697_v4  ;;  %v5897_v16 = vld [vmem:[%s6744_s17 + $0xac8] sm:$0xf]  ;;  %v6506_v4 = vld [vmem:[%s6744_s17 + $0x7cc] sm:$0xf] }
  0xa5   : > { %v615_v63 = vld [vmem:[%s6744_s17 + $0xdc8] sm:$0x77]  ;;  %v5518_v19 = vor.u32 %v6506_v4, %v5515_v7 }
  0xa6   : > { %3464 = vmatpush.bf16.msrb.mxu1 %v5118_v46  ;;  %v5513_v46 = vld [vmem:[%s6744_s17 + $0x7c8] sm:$0xf]  ;;  %v1979_v11 = vunpack.c.l.b16 %v615_v63 }
  0xa7   : > { %3438 = vmatpush.bf16.msrb.mxu3 %v5114_v17  ;;  %3388 = vmatpush.bf16.msra.mxu2 %v4722_v23  ;;  %v6626_v17 = vld [vmem:[%s6744_s17 + $0xb84] sm:$0xf0]  ;;  %v2458_v23 = vpack.c.b16 %v1978_v8, %v1978_v8  ;;  %v5514_v55 = vor.u32 %v6530_v47, %v5513_v46  ;;  %v6313_v8 = vld [vmem:[%s6744_s17 + $0x1c4] sm:$0xf] }
  0xa8   : > { %3415 = vmatpush.bf16.msra.mxu0 %v4534_v31  ;;  %v5898_v27 = vor.u32 %v6626_v17, %v5897_v16  ;;  %v5705_v31 = vld [vmem:[%s6744_s17 + $0x948] sm:$0xf]  ;;  %v6337_v16 = vld [vmem:[%s6744_s17 + $0x27c] sm:$0xf0] }
  0xa9   : > { %v2978_v35 = vsel %vm2925_vm0, %v2458_v23, 0  ;;  %v3120_v50 = vpop.f32.mrf.mxu3  ;;  %v4738_v30 = vor.u32 %v6337_v16, %v4737_v15  ;;  %v4745_v46 = vld [vmem:[%s6744_s17 + $0x1c8] sm:$0xf]  ;;  %v4747_v16 = vld [vmem:[%s6744_s17 + $0x288] sm:$0xf0] }
  0xaa   : > { %3465 = vmatpush.bf16.msrb.mxu1 %v4926_v60  ;;  %v6338_v47 = vld [vmem:[%s6744_s17 + $0x284] sm:$0xf0]  ;;  %v6603_v50 = vld [vmem:[%s6744_s17 + $0xad4] sm:$0xf] }
  0xab   : > { %3439 = vmatpush.bf16.msrb.mxu3 %v4922_v32  ;;  %3389 = vmatpush.bf16.msra.mxu2 %v4530_v37  ;;  %v6578_v32 = vld [vmem:[%s6744_s17 + $0xa04] sm:$0xf0]  ;;  %v6083_v37 = vld [vmem:[%s6744_s17 + $0xd00] sm:$0xf0] }
  0xac   : > { %3479 = vmatpush.bf16.msrb.mxu0 %v2972_v33  ;;  %v5313_v33 = vld [vmem:[%s6744_s17 + $0x640] sm:$0xf]  ;;  %v5706_v39 = vor.u32 %v6578_v32, %v5705_v31  ;;  %v6086_v48 = vor.u32 %v6649_v36, %v6083_v37  ;;  %v4547_v31 = vld [vmem:[%s6744_s17 + $0x100] sm:$0xf0]  ;;  %v4937_v32 = vld [vmem:[%s6744_s17 + $0x348] sm:$0xf] }
  0xad   : > { %3416 = vmatmul.bf16.vlgmr.msra.gmra.mxu0 %v6840_v58  ;;  %v7207_v37 = vld [vmem:[%s6744_s17 + $0xdd0] sm:$0x77]  ;;  %v4553_v4 = vld [vmem:[%s6744_s17 + $0x48] sm:$0xf] }
  0xae   : > { %3390 = vmatmul.bf16.vlgmr.msra.gmra.mxu2 %v6840_v58  ;;  %3466 = vmatpush.bf16.msrb.mxu1 %v4734_v13  ;;  %v5129_v13 = vld [vmem:[%s6744_s17 + $0x4c8] sm:$0xf] }
  0xaf   : > { %3453 = vmatpush.bf16.msrb.mxu2 %v2969_v34  ;;  %3440 = vmatpush.bf16.msrb.mxu3 %v4730_v3  ;;  %v6481_v34 = vld [vmem:[%s6744_s17 + $0x6fc] sm:$0xf0] }
  0xb0   : > { %3480 = vmatpush.bf16.msrb.mxu0 %v6078_v53  ;;  %v5314_v43 = vor.u32 %v6481_v34, %v5313_v33  ;;  %v6433_v3 = vld [vmem:[%s6744_s17 + $0x57c] sm:$0xf0]  ;;  %v3094_v53 = vpop.f32.mrf.mxu2  ;;  %v6386_v33 = vld [vmem:[%s6744_s17 + $0x404] sm:$0xf0] }
  0xb1   : > { %v5122_v60 = vor.u32 %v6433_v3, %v5121_v49  ;;  %v7192_v17 = vpop.f32.mrf.mxu3  ;;  %v4545_v34 = vld [vmem:[%s6744_s17 + $0x40] sm:$0xf]  ;;  %v7216_v49 = vpop.permute.xlu0 %632  ;;  %v6091_v3 = vld [vmem:[%s6744_s17 + $0xd08] sm:$0xf0] }
  0xb2   : > { %3467 = vmatpush.bf16.msrb.mxu1 %v4542_v26  ;;  %v3079_v18 = vpop.f32.mrf.mxu0 }
  0xb3   : > { %3454 = vmatpush.bf16.msrb.mxu2 %v6074_v57  ;;  %3441 = vmatpush.bf16.msrb.mxu3 %v4538_v1  ;;  %v6361_v57 = vld [vmem:[%s6744_s17 + $0x344] sm:$0xf]  ;;  %v6385_v1 = vld [vmem:[%s6744_s17 + $0x3fc] sm:$0xf0] }
  0xb4   : > { %3512 = vmatpush.bf16.msra.mxu0 %v5894_v56  ;;  %v5707_v56 = vld [vmem:[%s6744_s17 + $0xa08] sm:$0xf0]  ;;  %v4934_v5 = vor.u32 %v6361_v57, %v4931_v59  ;;  %v4930_v12 = vor.u32 %v6385_v1, %v4929_v0  ;;  %v6674_v57 = vld [vmem:[%s6744_s17 + $0xd04] sm:$0xf0]  ;;  %v6627_v0 = vld [vmem:[%s6744_s17 + $0xb8c] sm:$0xf0]  ;;  %v3080_v1 = vadd.f32 %v3079_v18, %v7216_v49 }
  0xb5   : > { %3468 = vmatmul.bf16.vlgmr.msrb.gmra.mxu1 %v6840_v58  ;;  %v5710_v2 = vor.u32 %v6554_v52, %v5707_v56  ;;  %v1981_v52 = vunpack.c.l.b16 %v7207_v37  ;;  %v6089_v56 = vld [vmem:[%s6744_s17 + $0xc48] sm:$0xf]  ;;  %v6362_v59 = vld [vmem:[%s6744_s17 + $0x34c] sm:$0xf]  ;;  %v5713_v18 = vld [vmem:[%s6744_s17 + $0x950] sm:$0xf] }
  0xb6   : > { %3442 = vmatmul.bf16.vlgmr.msrb.gmra.mxu3 %v6840_v58  ;;  %3531 = vmatpush.bf16.msra.mxu1 %v2978_v35  ;;  %v6289_v35 = vld [vmem:[%s6744_s17 + $0xfc] sm:$0xf0]  ;;  %v6090_v7 = vor.u32 %v6674_v57, %v6089_v56  ;;  %v5721_v56 = vld [vmem:[%s6744_s17 + $0x958] sm:$0xf] }
  0xb7   : > { %3486 = vmatpush.bf16.msra.mxu2 %v5890_v61  ;;  %3505 = vmatpush.bf16.msra.mxu3 %v2975_v9  ;;  %v5321_v61 = vld [vmem:[%s6744_s17 + $0x648] sm:$0xf]  ;;  %v4739_v9 = vld [vmem:[%s6744_s17 + $0x280] sm:$0xf0]  ;;  %v4546_v45 = vor.u32 %v6289_v35, %v4545_v34  ;;  %v6580_v57 = vld [vmem:[%s6744_s17 + $0xa14] sm:$0xf0] }
  0xb8   : > { %3513 = vmatpush.bf16.msra.mxu0 %v5702_v10  ;;  %v5322_v6 = vor.u32 %v6482_v62, %v5321_v61  ;;  %v1980_v10 = vunpack.c.h.b16 %v615_v63  ;;  %v4742_v20 = vor.u32 %v6313_v8, %v4739_v9  ;;  %v4746_v61 = vor.u32 %v6338_v47, %v4745_v46  ;;  %v4939_v62 = vld [vmem:[%s6744_s17 + $0x408] sm:$0xf0]  ;;  %v5905_v63 = vld [vmem:[%s6744_s17 + $0xad0] sm:$0xf] }
  0xb9   : > { %v3146_v53 = vpop.f32.mrf.mxu3  ;;  %v2461_v8 = vpack.c.b16 %v1981_v52, %v1981_v52  ;;  %v4942_v9 = vor.u32 %v6362_v59, %v4939_v62 }
  0xba   : > { %3532 = vmatpush.bf16.msra.mxu1 %v6086_v48  ;;  %v2460_v26 = vpack.c.b16 %v1980_v10, %v1980_v10  ;;  %v6650_v48 = vld [vmem:[%s6744_s17 + $0xc4c] sm:$0xf]  ;;  %v5906_v10 = vor.u32 %v6627_v0, %v5905_v63  ;;  %v6651_v63 = vld [vmem:[%s6744_s17 + $0xc54] sm:$0xf] }
  0xbb   : > { %3487 = vmatpush.bf16.msra.mxu2 %v5698_v14  ;;  %3506 = vmatpush.bf16.msra.mxu3 %v6082_v22  ;;  %v6434_v14 = vld [vmem:[%s6744_s17 + $0x584] sm:$0xf0]  ;;  %v7194_v22 = vpop.f32.mrf.mxu1  ;;  %v6099_v0 = vld [vmem:[%s6744_s17 + $0xd10] sm:$0xf0] }
  0xbc   : > { %3514 = vmatpush.bf16.msra.mxu0 %v5510_v25  ;;  %v5130_v23 = vor.u32 %v6434_v14, %v5129_v13  ;;  %v6458_v25 = vld [vmem:[%s6744_s17 + $0x64c] sm:$0xf]  ;;  %v2984_v40 = vsel %vm2925_vm0, %v2460_v26, 0  ;;  %v2987_v26 = vsel %vm2925_vm0, %v2461_v8, 0  ;;  %v6411_v8 = vld [vmem:[%s6744_s17 + $0x4d4] sm:$0xf] }
  0xbd   : > { %6222 = vmatmul.msk.bf16.vlgmr.msrb.gmra.mxu0 %vm2921_vm1, %v6782_v44  ;;  %v6314_v13 = vld [vmem:[%s6744_s17 + $0x1cc] sm:$0xf] }
  0xbe   : > { %6221 = vmatmul.msk.bf16.vlgmr.msrb.gmra.mxu2 %vm2921_vm1, %v6782_v44  ;;  %3564 = vmatpush.bf16.msrb.mxu1 %v5902_v51  ;;  %v5907_v51 = vld [vmem:[%s6744_s17 + $0xb90] sm:$0xf0] }
  0xbf   : > { %3538 = vmatpush.bf16.msrb.mxu3 %v5898_v27  ;;  %3488 = vmatpush.bf16.msra.mxu2 %v5506_v29  ;;  %v5323_v27 = vld [vmem:[%s6744_s17 + $0x708] sm:$0xf0]  ;;  %v2459_v29 = vpack.c.b16 %v1979_v11, %v1979_v11  ;;  %v6555_v11 = vld [vmem:[%s6744_s17 + $0x954] sm:$0xf] }
  0xc0   : > { %3515 = vmatpush.bf16.msra.mxu0 %v5318_v38  ;;  %v5326_v36 = vor.u32 %v6458_v25, %v5323_v27  ;;  %v4550_v38 = vor.u32 %v6265_v28, %v4547_v31  ;;  %v6097_v27 = vld [vmem:[%s6744_s17 + $0xc50] sm:$0xf]  ;;  %v5523_v31 = vld [vmem:[%s6744_s17 + $0x890] sm:$0xf0] }
  0xc1   : > { %v2981_v41 = vsel %vm2925_vm0, %v2459_v29, 0  ;;  %v3105_v14 = vpop.f32.mrf.mxu2  ;;  %v6675_v28 = vld [vmem:[%s6744_s17 + $0xd0c] sm:$0xf0] }
  0xc2   : > { %3565 = vmatpush.bf16.msrb.mxu1 %v5710_v2  ;;  %v6094_v2 = vor.u32 %v6650_v48, %v6091_v3  ;;  %v3106_v25 = vadd.f32 %v3105_v14, %v7216_v49  ;;  %v6098_v46 = vor.u32 %v6675_v28, %v6097_v27 }
  0xc3   : > { %3539 = vmatpush.bf16.msrb.mxu3 %v5706_v39  ;;  %3489 = vmatpush.bf16.msra.mxu2 %v5314_v43  ;;  %v4938_v39 = vor.u32 %v6386_v33, %v4937_v32  ;;  %v5131_v43 = vld [vmem:[%s6744_s17 + $0x588] sm:$0xf0]  ;;  %v4750_v33 = vor.u32 %v6314_v13, %v4747_v16  ;;  %v6532_v13 = vld [vmem:[%s6744_s17 + $0x894] sm:$0xf0]  ;;  %v6102_v16 = vor.u32 %v6651_v63, %v6099_v0 }
  0xc4   : > { %3516 = vmatpush.bf16.msra.mxu0 %v5126_v54  ;;  %v3081_v54 = vpop.f32.mrf.mxu0  ;;  %v3119_v32 = vadd.f32 %v7148_v21, %v3106_v25  ;;  %v5723_v25 = vld [vmem:[%s6744_s17 + $0xa18] sm:$0xf0]  ;;  %v6388_v63 = vld [vmem:[%s6744_s17 + $0x414] sm:$0xf0] }
  0xc5   : > { %6224 = vmatmul.msk.bf16.vlgmr.msra.gmra.mxu1 %vm2921_vm1, %v6782_v44 }
  0xc6   : > { %6223 = vmatmul.msk.bf16.vlgmr.msra.gmra.mxu3 %vm2921_vm1, %v6782_v44  ;;  %3566 = vmatpush.bf16.msrb.mxu1 %v5518_v19  ;;  %v6579_v19 = vld [vmem:[%s6744_s17 + $0xa0c] sm:$0xf0] }
  0xc7   : > { %3540 = vmatpush.bf16.msrb.mxu3 %v5514_v55  ;;  %3490 = vmatpush.bf16.msra.mxu2 %v5122_v60  ;;  %v5134_v55 = vor.u32 %v6410_v42, %v5131_v43  ;;  %v3133_v60 = vpop.f32.mrf.mxu1  ;;  %v5714_v35 = vor.u32 %v6579_v19, %v5713_v18  ;;  %v5137_v18 = vld [vmem:[%s6744_s17 + $0x4d0] sm:$0xf] }
  0xc8   : > { %3517 = vmatpush.bf16.msra.mxu0 %v4934_v5  ;;  %v6290_v5 = vld [vmem:[%s6744_s17 + $0x104] sm:$0xf0]  ;;  %v5329_v60 = vld [vmem:[%s6744_s17 + $0x650] sm:$0xf] }
  0xc9   : > { %v4554_v15 = vor.u32 %v6290_v5, %v4553_v4  ;;  %v3157_v21 = vpop.f32.mrf.mxu3  ;;  %v3107_v62 = vpop.f32.mrf.mxu2  ;;  %v6435_v19 = vld [vmem:[%s6744_s17 + $0x58c] sm:$0xf0] }
  0xca   : > { %3567 = vmatpush.bf16.msrb.mxu1 %v5326_v36  ;;  %v6266_v36 = vld [vmem:[%s6744_s17 + $0x4c] sm:$0xf]  ;;  %v3158_v47 = vadd.f32 %v3157_v21, %v7216_v49  ;;  %v4953_v62 = vld [vmem:[%s6744_s17 + $0x358] sm:$0xf] }
  0xcb   : > { %3541 = vmatpush.bf16.msrb.mxu3 %v5322_v6  ;;  %3491 = vmatpush.bf16.msra.mxu2 %v4930_v12  ;;  %v5910_v6 = vor.u32 %v6603_v50, %v5907_v51  ;;  %v5715_v12 = vld [vmem:[%s6744_s17 + $0xa10] sm:$0xf0] }
  0xcc   : > { %3518 = vmatpush.bf16.msra.mxu0 %v4742_v20  ;;  %v1982_v20 = vunpack.c.h.b16 %v7207_v37  ;;  %v5718_v29 = vor.u32 %v6555_v11, %v5715_v12  ;;  %v3170_v34 = vpop.f32.mrf.mxu0  ;;  %v5913_v37 = vld [vmem:[%s6744_s17 + $0xad8] sm:$0xf]  ;;  %v6459_v51 = vld [vmem:[%s6744_s17 + $0x654] sm:$0xf] }
  0xcd   : > { %v3171_v59 = vadd.f32 %v3170_v34, %v3158_v47  ;;  %v5139_v11 = vld [vmem:[%s6744_s17 + $0x590] sm:$0xf0]  ;;  %v5529_v12 = vld [vmem:[%s6744_s17 + $0x7d8] sm:$0xf]  ;;  %v4945_v34 = vld [vmem:[%s6744_s17 + $0x350] sm:$0xf] }
  0xce   : > { %3568 = vmatpush.bf16.msrb.mxu1 %v5134_v55  ;;  %v2462_v42 = vpack.c.b16 %v1982_v20, %v1982_v20  ;;  %v5331_v55 = vld [vmem:[%s6744_s17 + $0x710] sm:$0xf0]  ;;  %v5142_v28 = vor.u32 %v6411_v8, %v5139_v11  ;;  %v6436_v47 = vld [vmem:[%s6744_s17 + $0x594] sm:$0xf0]  ;;  %v5147_v11 = vld [vmem:[%s6744_s17 + $0x598] sm:$0xf0] }
  0xcf   : > { %3542 = vmatpush.bf16.msrb.mxu3 %v5130_v23  ;;  %3492 = vmatpush.bf16.msra.mxu2 %v4738_v30  ;;  %v3093_v23 = vadd.f32 %v7150_v24, %v3080_v1  ;;  %v3132_v30 = vadd.f32 %v7194_v22, %v7216_v49  ;;  %v6507_v24 = vld [vmem:[%s6744_s17 + $0x7d4] sm:$0xf]  ;;  %v6531_v22 = vld [vmem:[%s6744_s17 + $0x88c] sm:$0xf0]  ;;  %v6604_v1 = vld [vmem:[%s6744_s17 + $0xadc] sm:$0xf]  ;;  %v5334_v5 = vor.u32 %v6459_v51, %v5331_v55 }
  0xd0   : > { %3519 = vmatpush.bf16.msra.mxu0 %v4550_v38  ;;  %v6628_v38 = vld [vmem:[%s6744_s17 + $0xb94] sm:$0xf0]  ;;  %v5526_v3 = vor.u32 %v6507_v24, %v5523_v31  ;;  %v4321_v4 = vmax.f32 %v3171_v59, 0.0  ;;  %v5138_v24 = vor.u32 %v6435_v19, %v5137_v18  ;;  %v6460_v55 = vld [vmem:[%s6744_s17 + $0x65c] sm:$0xf] }
  0xd1   : > { %v4318_v43 = vmax.f32 %v3093_v23, 0.0  ;;  %v3145_v48 = vadd.f32 %v7192_v17, %v3132_v30  ;;  %v5914_v50 = vor.u32 %v6628_v38, %v5913_v37  ;;  %v2990_v17 = vsel %vm2925_vm0, %v2462_v42, 0  ;;  %v6556_v23 = vld [vmem:[%s6744_s17 + $0x95c] sm:$0xf]  ;;  %v3159_v27 = vpop.f32.mrf.mxu3  ;;  %v4947_v30 = vld [vmem:[%s6744_s17 + $0x410] sm:$0xf0] }
  0xd2   : > { %3569 = vmatpush.bf16.msrb.mxu1 %v4942_v9  ;;  %v5337_v31 = vld [vmem:[%s6744_s17 + $0x658] sm:$0xf]  ;;  %v6508_v37 = vld [vmem:[%s6744_s17 + $0x7dc] sm:$0xf]  ;;  %v4755_v42 = vld [vmem:[%s6744_s17 + $0x290] sm:$0xf0] }
  0xd3   : > { %3543 = vmatpush.bf16.msrb.mxu3 %v4938_v39  ;;  %3493 = vmatpush.bf16.msra.mxu2 %v4546_v45  ;;  %v7256_v39 = vpop.f32.mrf.mxu1  ;;  %v4319_v45 = vmax.f32 %v3119_v32, 0.0  ;;  %v6484_v32 = vld [vmem:[%s6744_s17 + $0x714] sm:$0xf0]  ;;  %v6107_v19 = vld [vmem:[%s6744_s17 + $0xd18] sm:$0xf0] }
  0xd4   : > { %3583 = vmatpush.bf16.msrb.mxu0 %v2984_v40  ;;  %v4555_v40 = vld [vmem:[%s6744_s17 + $0x108] sm:$0xf0] }
  0xd5   : > { %3520 = vmatmul.bf16.vlgmr.msra.gmra.mxu0 %v6840_v58  ;;  %v4366_v52 = vpack.c.bf16 %v4319_v45, %v4318_v43  ;;  %v4558_v53 = vor.u32 %v6266_v36, %v4555_v40  ;;  %v5726_v36 = vor.u32 %v6556_v23, %v5723_v25  ;;  %v5338_v40 = vor.u32 %v6484_v32, %v5337_v31  ;;  %v5923_v23 = vld [vmem:[%s6744_s17 + $0xba0] sm:$0xf0] }
  0xd6   : > { %3494 = vmatmul.bf16.vlgmr.msra.gmra.mxu2 %v6840_v58  ;;  %3570 = vmatpush.bf16.msrb.mxu1 %v4750_v33  ;;  %v617_v33 = vld [vmem:[%s6744_s17 + $0xdd8] sm:$0x77] }
  0xd7   : > { %3557 = vmatpush.bf16.msrb.mxu2 %v2981_v41  ;;  %3544 = vmatpush.bf16.msrb.mxu3 %v4746_v61  ;;  %v5521_v41 = vld [vmem:[%s6744_s17 + $0x7d0] sm:$0xf]  ;;  %4390 = vst [vmem:[%s7264_s25] sm:$0xff] %v4366_v52  ;;  %v1984_v43 = vunpack.c.h.b16 %v617_v33  ;;  %v1983_v45 = vunpack.c.l.b16 %v617_v33  ;;  %v4955_v33 = vld [vmem:[%s6744_s17 + $0x418] sm:$0xf0] }
  0xd8   : > { %3584 = vmatpush.bf16.msrb.mxu0 %v6094_v2  ;;  %v5522_v54 = vor.u32 %v6531_v22, %v5521_v41  ;;  %v6483_v61 = vld [vmem:[%s6744_s17 + $0x70c] sm:$0xf0]  ;;  %v4320_v2 = vmax.f32 %v3145_v48, 0.0  ;;  %v5531_v41 = vld [vmem:[%s6744_s17 + $0x898] sm:$0xf0] }
  0xd9   : > { %v5330_v9 = vor.u32 %v6483_v61, %v5329_v60  ;;  %v6315_v22 = vld [vmem:[%s6744_s17 + $0x1d4] sm:$0xf]  ;;  %v5534_v51 = vor.u32 %v6508_v37, %v5531_v41  ;;  %v2464_v59 = vpack.c.b16 %v1984_v43, %v1984_v43 }
  0xda   : > { %3571 = vmatpush.bf16.msrb.mxu1 %v4558_v53  ;;  %v4367_v14 = vpack.c.bf16 %v4321_v4, %v4320_v2  ;;  %v4758_v52 = vor.u32 %v6315_v22, %v4755_v42  ;;  %v4563_v61 = vld [vmem:[%s6744_s17 + $0x110] sm:$0xf0]  ;;  %v6291_v2 = vld [vmem:[%s6744_s17 + $0x10c] sm:$0xf0] }
  0xdb   : > { %3558 = vmatpush.bf16.msrb.mxu2 %v6090_v7  ;;  %3545 = vmatpush.bf16.msrb.mxu3 %v4554_v15  ;;  %v5915_v7 = vld [vmem:[%s6744_s17 + $0xb98] sm:$0xf0]  ;;  %v3198_v15 = vpop.f32.mrf.mxu1  ;;  %v2996_v8 = vsel %vm2925_vm0, %v2464_v59, 0 }
  0xdc   : > { %3616 = vmatpush.bf16.msra.mxu0 %v5910_v6  ;;  %v5722_v6 = vor.u32 %v6580_v57, %v5721_v56  ;;  %v5918_v20 = vor.u32 %v6604_v1, %v5915_v7  ;;  %4391 = vst [vmem:[%s7264_s25 + $0x8] sm:$0xff] %v4367_v14  ;;  %v5339_v56 = vld [vmem:[%s6744_s17 + $0x718] sm:$0xf0]  ;;  %v6267_v57 = vld [vmem:[%s6744_s17 + $0x54] sm:$0xf]  ;;  %v4954_v7 = vor.u32 %v6388_v63, %v4953_v62 }
  0xdd   : > { %3572 = vmatmul.bf16.vlgmr.msrb.gmra.mxu1 %v6840_v58  ;;  %v4561_v1 = vld [vmem:[%s6744_s17 + $0x50] sm:$0xf]  ;;  %v5342_v4 = vor.u32 %v6460_v55, %v5339_v56  ;;  %v6340_v14 = vld [vmem:[%s6744_s17 + $0x294] sm:$0xf0]  ;;  %v6652_v15 = vld [vmem:[%s6744_s17 + $0xc5c] sm:$0xf] }
  0xde   : > { %3546 = vmatmul.bf16.vlgmr.msrb.gmra.mxu3 %v6840_v58  ;;  %3635 = vmatpush.bf16.msra.mxu1 %v2990_v17  ;;  %v2463_v17 = vpack.c.b16 %v1983_v45, %v1983_v45  ;;  %v6557_v45 = vld [vmem:[%s6744_s17 + $0x964] sm:$0xf]  ;;  %v6677_v55 = vld [vmem:[%s6744_s17 + $0xd1c] sm:$0xf0]  ;;  %v6268_v62 = vld [vmem:[%s6744_s17 + $0x5c] sm:$0xf] }
  0xdf   : > { %3590 = vmatpush.bf16.msra.mxu2 %v5906_v10  ;;  %3609 = vmatpush.bf16.msra.mxu3 %v2987_v26  ;;  %v3172_v10 = vpop.f32.mrf.mxu0  ;;  %v5530_v26 = vor.u32 %v6532_v13, %v5529_v12  ;;  %v4562_v12 = vor.u32 %v6291_v2, %v4561_v1  ;;  %v4761_v13 = vld [vmem:[%s6744_s17 + $0x1d8] sm:$0xf]  ;;  %v6509_v56 = vld [vmem:[%s6744_s17 + $0x7e4] sm:$0xf] }
  0xe0   : > { %3617 = vmatpush.bf16.msra.mxu0 %v5718_v29  ;;  %v6363_v29 = vld [vmem:[%s6744_s17 + $0x354] sm:$0xf]  ;;  %v6412_v10 = vld [vmem:[%s6744_s17 + $0x4dc] sm:$0xf]  ;;  %v4762_v32 = vor.u32 %v6340_v14, %v4761_v13  ;;  %v6461_v14 = vld [vmem:[%s6744_s17 + $0x664] sm:$0xf] }
  0xe1   : > { %v4950_v38 = vor.u32 %v6363_v29, %v4947_v30  ;;  %v3183_v27 = vpop.f32.mrf.mxu2  ;;  %v6676_v29 = vld [vmem:[%s6744_s17 + $0xd14] sm:$0xf0]  ;;  %v6364_v30 = vld [vmem:[%s6744_s17 + $0x35c] sm:$0xf] }
  0xe2   : > { %3636 = vmatpush.bf16.msra.mxu1 %v6102_v16 }
  0xe3   : > { %3591 = vmatpush.bf16.msra.mxu2 %v5714_v35  ;;  %3610 = vmatpush.bf16.msra.mxu3 %v6098_v46  ;;  %v6387_v35 = vld [vmem:[%s6744_s17 + $0x40c] sm:$0xf0]  ;;  %v5145_v46 = vld [vmem:[%s6744_s17 + $0x4d8] sm:$0xf]  ;;  %v3222_v48 = vpop.f32.mrf.mxu1 }
  0xe4   : > { %3618 = vmatpush.bf16.msra.mxu0 %v5526_v3  ;;  %v4946_v21 = vor.u32 %v6387_v35, %v4945_v34  ;;  %v4753_v3 = vld [vmem:[%s6744_s17 + $0x1d0] sm:$0xf]  ;;  %v5921_v34 = vld [vmem:[%s6744_s17 + $0xae0] sm:$0xf] }
  0xe5   : > { %6226 = vmatmul.msk.bf16.vlgmr.msrb.gmra.mxu0 %vm2921_vm1, %v6782_v44  ;;  %v6629_v35 = vld [vmem:[%s6744_s17 + $0xb9c] sm:$0xf0] }
  0xe6   : > { %6225 = vmatmul.msk.bf16.vlgmr.msrb.gmra.mxu2 %vm2921_vm1, %v6782_v44  ;;  %3668 = vmatpush.bf16.msrb.mxu1 %v5918_v20  ;;  %v6605_v20 = vld [vmem:[%s6744_s17 + $0xae4] sm:$0xf] }
  0xe7   : > { %3642 = vmatpush.bf16.msrb.mxu3 %v5914_v50  ;;  %3592 = vmatpush.bf16.msra.mxu2 %v5522_v54  ;;  %v6339_v50 = vld [vmem:[%s6744_s17 + $0x28c] sm:$0xf0]  ;;  %v3209_v53 = vpop.f32.mrf.mxu0  ;;  %v5146_v54 = vor.u32 %v6436_v47, %v5145_v46  ;;  %v5926_v37 = vor.u32 %v6605_v20, %v5923_v23  ;;  %v5922_v46 = vor.u32 %v6629_v35, %v5921_v34  ;;  %v5731_v47 = vld [vmem:[%s6744_s17 + $0xa20] sm:$0xf0]  ;;  %v5737_v20 = vld [vmem:[%s6744_s17 + $0x968] sm:$0xf] }
  0xe8   : > { %3619 = vmatpush.bf16.msra.mxu0 %v5334_v5  ;;  %v4754_v60 = vor.u32 %v6339_v50, %v4753_v3  ;;  %v3210_v0 = vadd.f32 %v3209_v53, %v7216_v49  ;;  %v7322_v5 = vld [vmem:[%s6744_s17 + $0xde0] sm:$0x77]  ;;  %v6582_v23 = vld [vmem:[%s6744_s17 + $0xa24] sm:$0xf0]  ;;  %v6606_v34 = vld [vmem:[%s6744_s17 + $0xaec] sm:$0xf] }
  0xe9   : > { %v1985_v25 = vunpack.c.l.b16 %v7322_v5  ;;  %v3235_v53 = vpop.f32.mrf.mxu3  ;;  %v3185_v63 = vpop.f32.mrf.mxu2  ;;  %v5931_v35 = vld [vmem:[%s6744_s17 + $0xba8] sm:$0xf0] }
  0xea   : > { %3669 = vmatpush.bf16.msrb.mxu1 %v5726_v36  ;;  %v3223_v16 = vadd.f32 %v3222_v48, %v3210_v0  ;;  %v6110_v36 = vor.u32 %v6652_v15, %v6107_v19  ;;  %v6316_v48 = vld [vmem:[%s6744_s17 + $0x1dc] sm:$0xf]  ;;  %v5347_v19 = vld [vmem:[%s6744_s17 + $0x720] sm:$0xf0] }
  0xeb   : > { %3643 = vmatpush.bf16.msrb.mxu3 %v5722_v6  ;;  %3593 = vmatpush.bf16.msra.mxu2 %v5330_v9  ;;  %v4566_v6 = vor.u32 %v6267_v57, %v4563_v61  ;;  %v2993_v9 = vsel %vm2925_vm0, %v2463_v17, 0  ;;  %v3224_v18 = vpop.f32.mrf.mxu1  ;;  %v2465_v43 = vpack.c.b16 %v1985_v25, %v1985_v25  ;;  %v1986_v57 = vunpack.c.h.b16 %v7322_v5  ;;  %v5539_v61 = vld [vmem:[%s6744_s17 + $0x8a0] sm:$0xf0]  ;;  %v5929_v5 = vld [vmem:[%s6744_s17 + $0xae8] sm:$0xf] }
  0xec   : > { %3620 = vmatpush.bf16.msra.mxu0 %v5142_v28  ;;  %v5150_v28 = vor.u32 %v6412_v10, %v5147_v11  ;;  %v4323_v41 = vmax.f32 %v3223_v16, 0.0  ;;  %v3236_v25 = vadd.f32 %v3235_v53, %v7216_v49  ;;  %v6365_v53 = vld [vmem:[%s6744_s17 + $0x364] sm:$0xf] }
  0xed   : > { %6228 = vmatmul.msk.bf16.vlgmr.msra.gmra.mxu1 %vm2921_vm1, %v6782_v44  ;;  %v2999_v17 = vsel %vm2925_vm0, %v2465_v43, 0  ;;  %v2466_v11 = vpack.c.b16 %v1986_v57, %v1986_v57  ;;  %v5353_v57 = vld [vmem:[%s6744_s17 + $0x668] sm:$0xf] }
  0xee   : > { %6227 = vmatmul.msk.bf16.vlgmr.msra.gmra.mxu3 %vm2921_vm1, %v6782_v44  ;;  %3670 = vmatpush.bf16.msrb.mxu1 %v5534_v51  ;;  %v5729_v51 = vld [vmem:[%s6744_s17 + $0x960] sm:$0xf] }
  0xef   : > { %3644 = vmatpush.bf16.msrb.mxu3 %v5530_v26  ;;  %3594 = vmatpush.bf16.msra.mxu2 %v5138_v24  ;;  %v6105_v26 = vld [vmem:[%s6744_s17 + $0xc58] sm:$0xf]  ;;  %v3184_v24 = vadd.f32 %v3183_v27, %v7216_v49  ;;  %v3211_v31 = vpop.f32.mrf.mxu0 }
  0xf0   : > { %3621 = vmatpush.bf16.msra.mxu0 %v4950_v38  ;;  %v4569_v38 = vld [vmem:[%s6744_s17 + $0x58] sm:$0xf]  ;;  %v6106_v42 = vor.u32 %v6676_v29, %v6105_v26  ;;  %v6485_v26 = vld [vmem:[%s6744_s17 + $0x71c] sm:$0xf0]  ;;  %v3002_v29 = vsel %vm2925_vm0, %v2466_v11, 0 }
  0xf1   : > { %v3197_v22 = vadd.f32 %v7256_v39, %v3184_v24  ;;  %v4763_v39 = vld [vmem:[%s6744_s17 + $0x298] sm:$0xf0]  ;;  %v6653_v24 = vld [vmem:[%s6744_s17 + $0xc64] sm:$0xf] }
  0xf2   : > { %3671 = vmatpush.bf16.msrb.mxu1 %v5342_v4  ;;  %v4766_v1 = vor.u32 %v6316_v48, %v4763_v39  ;;  %v4571_v4 = vld [vmem:[%s6744_s17 + $0x118] sm:$0xf0]  ;;  %v6115_v31 = vld [vmem:[%s6744_s17 + $0xd20] sm:$0xf0]  ;;  %v5934_v48 = vor.u32 %v6606_v34, %v5931_v35  ;;  %v6558_v39 = vld [vmem:[%s6744_s17 + $0x96c] sm:$0xf] }
  0xf3   : > { %3645 = vmatpush.bf16.msrb.mxu3 %v5338_v40  ;;  %3595 = vmatpush.bf16.msra.mxu2 %v4946_v21  ;;  %v6292_v40 = vld [vmem:[%s6744_s17 + $0x114] sm:$0xf0]  ;;  %v4958_v21 = vor.u32 %v6364_v30, %v4955_v33  ;;  %v4322_v3 = vmax.f32 %v3197_v22, 0.0  ;;  %v3261_v0 = vpop.f32.mrf.mxu1  ;;  %v4574_v16 = vor.u32 %v6268_v62, %v4571_v4  ;;  %v3237_v30 = vpop.f32.mrf.mxu3  ;;  %v5738_v33 = vor.u32 %v6582_v23, %v5737_v20  ;;  %v5545_v22 = vld [vmem:[%s6744_s17 + $0x7e8] sm:$0xf] }
  0xf4   : > { %3622 = vmatpush.bf16.msra.mxu0 %v4758_v52  ;;  %v4570_v50 = vor.u32 %v6292_v40, %v4569_v38  ;;  %v6581_v52 = vld [vmem:[%s6744_s17 + $0xa1c] sm:$0xf0]  ;;  %v6462_v23 = vld [vmem:[%s6744_s17 + $0x66c] sm:$0xf]  ;;  %v4579_v30 = vld [vmem:[%s6744_s17 + $0x120] sm:$0xf0] }
  0xf5   : > { %v4368_v59 = vpack.c.bf16 %v4323_v41, %v4322_v3  ;;  %v5730_v2 = vor.u32 %v6581_v52, %v5729_v51  ;;  %v5155_v41 = vld [vmem:[%s6744_s17 + $0x5a0] sm:$0xf0]  ;;  %v5739_v3 = vld [vmem:[%s6744_s17 + $0xa28] sm:$0xf0]  ;;  %v6389_v62 = vld [vmem:[%s6744_s17 + $0x41c] sm:$0xf0] }
  0xf6   : > { %3672 = vmatpush.bf16.msrb.mxu1 %v5150_v28  ;;  %v5345_v28 = vld [vmem:[%s6744_s17 + $0x660] sm:$0xf]  ;;  %v5742_v63 = vor.u32 %v6558_v39, %v5739_v3  ;;  %v6654_v39 = vld [vmem:[%s6744_s17 + $0xc6c] sm:$0xf] }
  0xf7   : > { %3646 = vmatpush.bf16.msrb.mxu3 %v5146_v54  ;;  %3596 = vmatpush.bf16.msra.mxu2 %v4754_v60  ;;  %v6113_v54 = vld [vmem:[%s6744_s17 + $0xc60] sm:$0xf]  ;;  %v5734_v60 = vor.u32 %v6557_v45, %v5731_v47  ;;  %4392 = vst [vmem:[%s7264_s25 + $0x10] sm:$0xff] %v4368_v59  ;;  %v3274_v15 = vpop.f32.mrf.mxu0  ;;  %v5346_v40 = vor.u32 %v6485_v26, %v5345_v28  ;;  %v6486_v59 = vld [vmem:[%s6744_s17 + $0x724] sm:$0xf0] }
  0xf8   : > { %3623 = vmatpush.bf16.msra.mxu0 %v4566_v6  ;;  %v6630_v6 = vld [vmem:[%s6744_s17 + $0xba4] sm:$0xf0]  ;;  %v6114_v10 = vor.u32 %v6677_v55, %v6113_v54  ;;  %v6437_v47 = vld [vmem:[%s6744_s17 + $0x59c] sm:$0xf0]  ;;  %v4963_v54 = vld [vmem:[%s6744_s17 + $0x420] sm:$0xf0] }
  0xf9   : > { %v5930_v13 = vor.u32 %v6630_v6, %v5929_v5  ;;  %v4966_v4 = vor.u32 %v6365_v53, %v4963_v54  ;;  %v5354_v5 = vor.u32 %v6486_v59, %v5353_v57  ;;  %v6317_v6 = vld [vmem:[%s6744_s17 + $0x1e4] sm:$0xf]  ;;  %v6293_v34 = vld [vmem:[%s6744_s17 + $0x11c] sm:$0xf0]  ;;  %v6678_v57 = vld [vmem:[%s6744_s17 + $0xd24] sm:$0xf0] }
  0xfa   : > { %3673 = vmatpush.bf16.msrb.mxu1 %v4958_v21  ;;  %v6118_v21 = vor.u32 %v6653_v24, %v6115_v31  ;;  %v4969_v24 = vld [vmem:[%s6744_s17 + $0x368] sm:$0xf]  ;;  %v6366_v59 = vld [vmem:[%s6744_s17 + $0x36c] sm:$0xf] }
  0xfb   : > { %3647 = vmatpush.bf16.msrb.mxu3 %v4954_v7  ;;  %3597 = vmatpush.bf16.msra.mxu2 %v4562_v12  ;;  %v3262_v7 = vadd.f32 %v3261_v0, %v7216_v49  ;;  %v5542_v12 = vor.u32 %v6509_v56, %v5539_v61  ;;  %v3263_v38 = vpop.f32.mrf.mxu1  ;;  %v4961_v61 = vld [vmem:[%s6744_s17 + $0x360] sm:$0xf]  ;;  %v7402_v0 = vpop.f32.mrf.mxu3  ;;  %v6390_v31 = vld [vmem:[%s6744_s17 + $0x424] sm:$0xf0] }
  0xfc   : > { %3687 = vmatpush.bf16.msrb.mxu0 %v2996_v8  ;;  %v5537_v8 = vld [vmem:[%s6744_s17 + $0x7e0] sm:$0xf]  ;;  %v7425_v38 = vld [vmem:[%s6744_s17 + $0xdf0] sm:$0x77] }
  0xfd   : > { %3624 = vmatmul.bf16.vlgmr.msra.gmra.mxu0 %v6840_v58  ;;  %v3275_v27 = vadd.f32 %v3274_v15, %v3262_v7  ;;  %v4771_v7 = vld [vmem:[%s6744_s17 + $0x2a0] sm:$0xf0]  ;;  %v4769_v15 = vld [vmem:[%s6744_s17 + $0x1e0] sm:$0xf]  ;;  %v1989_v53 = vunpack.c.l.b16 %v7425_v38 }
  0xfe   : > { %3598 = vmatmul.bf16.vlgmr.msra.gmra.mxu2 %v6840_v58  ;;  %3674 = vmatpush.bf16.msrb.mxu1 %v4766_v1  ;;  %v6510_v1 = vld [vmem:[%s6744_s17 + $0x7ec] sm:$0xf] }
  0xff   : > { %3661 = vmatpush.bf16.msrb.mxu2 %v2993_v9  ;;  %3648 = vmatpush.bf16.msrb.mxu3 %v4762_v32  ;;  %v6533_v9 = vld [vmem:[%s6744_s17 + $0x89c] sm:$0xf0]  ;;  %v5350_v32 = vor.u32 %v6461_v14, %v5347_v19  ;;  %v4325_v43 = vmax.f32 %v3275_v27, 0.0  ;;  %v3276_v55 = vpop.f32.mrf.mxu0  ;;  %v6438_v14 = vld [vmem:[%s6744_s17 + $0x5a4] sm:$0xf0]  ;;  %v4774_v19 = vor.u32 %v6317_v6, %v4771_v7 }
 0x100   : > { %3688 = vmatpush.bf16.msrb.mxu0 %v6110_v36  ;;  %v5538_v18 = vor.u32 %v6533_v9, %v5537_v8  ;;  %v6413_v36 = vld [vmem:[%s6744_s17 + $0x4e4] sm:$0xf] }
 0x101   : > { %v5158_v51 = vor.u32 %v6413_v36, %v5155_v41  ;;  %v6269_v27 = vld [vmem:[%s6744_s17 + $0x64] sm:$0xf]  ;;  %v4970_v41 = vor.u32 %v6390_v31, %v4969_v24  ;;  %v5555_v24 = vld [vmem:[%s6744_s17 + $0x8b0] sm:$0xf0]  ;;  %v6270_v31 = vld [vmem:[%s6744_s17 + $0x6c] sm:$0xf] }
 0x102   : > { %3675 = vmatpush.bf16.msrb.mxu1 %v4574_v16  ;;  %v6341_v16 = vld [vmem:[%s6744_s17 + $0x29c] sm:$0xf0] }
 0x103   : > { %3662 = vmatpush.bf16.msrb.mxu2 %v6106_v42  ;;  %3649 = vmatpush.bf16.msrb.mxu3 %v4570_v50  ;;  %v6534_v42 = vld [vmem:[%s6744_s17 + $0x8a4] sm:$0xf0]  ;;  %v3326_v11 = vpop.f32.mrf.mxu1 }
 0x104   : > { %3720 = vmatpush.bf16.msra.mxu0 %v5926_v37  ;;  %v3248_v37 = vpop.f32.mrf.mxu2  ;;  %v5546_v52 = vor.u32 %v6534_v42, %v5545_v22 }
 0x105   : > { %v3249_v45 = vadd.f32 %v3248_v37, %v3236_v25  ;;  %3676 = vmatmul.bf16.vlgmr.msrb.gmra.mxu1 %v6840_v58  ;;  %v5355_v25 = vld [vmem:[%s6744_s17 + $0x728] sm:$0xf0]  ;;  %v3302_v37 = vpop.f32.mrf.mxu3 }
 0x106   : > { %3650 = vmatmul.bf16.vlgmr.msrb.gmra.mxu3 %v6840_v58  ;;  %3739 = vmatpush.bf16.msra.mxu1 %v3002_v29  ;;  %v4770_v29 = vor.u32 %v6341_v16, %v4769_v15  ;;  %v5358_v36 = vor.u32 %v6462_v23, %v5355_v25  ;;  %v4779_v15 = vld [vmem:[%s6744_s17 + $0x2a8] sm:$0xf0]  ;;  %v6129_v23 = vld [vmem:[%s6744_s17 + $0xc70] sm:$0xf]  ;;  %v5945_v37 = vld [vmem:[%s6744_s17 + $0xaf8] sm:$0xf] }
 0x107   : > { %3694 = vmatpush.bf16.msra.mxu2 %v5922_v46  ;;  %3713 = vmatpush.bf16.msra.mxu3 %v2999_v17  ;;  %v5153_v46 = vld [vmem:[%s6744_s17 + $0x4e0] sm:$0xf]  ;;  %v4324_v50 = vmax.f32 %v3249_v45, 0.0  ;;  %v619_v17 = vld [vmem:[%s6744_s17 + $0xde8] sm:$0x77] }
 0x108   : > { %3721 = vmatpush.bf16.msra.mxu0 %v5734_v60  ;;  %v5154_v56 = vor.u32 %v6437_v47, %v5153_v46  ;;  %v1988_v8 = vunpack.c.h.b16 %v619_v17  ;;  %v1987_v9 = vunpack.c.l.b16 %v619_v17  ;;  %v5163_v45 = vld [vmem:[%s6744_s17 + $0x5a8] sm:$0xf0]  ;;  %v4777_v47 = vld [vmem:[%s6744_s17 + $0x1e8] sm:$0xf]  ;;  %v6679_v25 = vld [vmem:[%s6744_s17 + $0xd2c] sm:$0xf0] }
 0x109   : > { %v4369_v60 = vpack.c.bf16 %v4325_v43, %v4324_v50  ;;  %v6414_v43 = vld [vmem:[%s6744_s17 + $0x4ec] sm:$0xf] }
 0x10a   : > { %3740 = vmatpush.bf16.msra.mxu1 %v6118_v21  ;;  %v2468_v28 = vpack.c.b16 %v1988_v8, %v1988_v8  ;;  %v2467_v26 = vpack.c.b16 %v1987_v9, %v1987_v9  ;;  %v6123_v50 = vld [vmem:[%s6744_s17 + $0xd28] sm:$0xf0]  ;;  %v5166_v55 = vor.u32 %v6414_v43, %v5163_v45  ;;  %v6130_v43 = vor.u32 %v6679_v25, %v6129_v23  ;;  %v6367_v25 = vld [vmem:[%s6744_s17 + $0x374] sm:$0xf] }
 0x10b   : > { %3695 = vmatpush.bf16.msra.mxu2 %v5730_v2  ;;  %3714 = vmatpush.bf16.msra.mxu3 %v6114_v10  ;;  %v5547_v2 = vld [vmem:[%s6744_s17 + $0x8a8] sm:$0xf0]  ;;  %4393 = vst [vmem:[%s7264_s25 + $0x18] sm:$0xff] %v4369_v60  ;;  %v3328_v21 = vpop.f32.mrf.mxu1 }
 0x10c   : > { %3722 = vmatpush.bf16.msra.mxu0 %v5542_v12  ;;  %v3250_v10 = vpop.f32.mrf.mxu2  ;;  %v4962_v12 = vor.u32 %v6389_v62, %v4961_v61  ;;  %v3008_v22 = vsel %vm2925_vm0, %v2468_v28, 0  ;;  %v3005_v42 = vsel %vm2925_vm0, %v2467_v26, 0  ;;  %v4971_v61 = vld [vmem:[%s6744_s17 + $0x428] sm:$0xf0]  ;;  %v5937_v62 = vld [vmem:[%s6744_s17 + $0xaf0] sm:$0xf]  ;;  %v1990_v28 = vunpack.c.h.b16 %v7425_v38 }
 0x10d   : > { %6230 = vmatmul.msk.bf16.vlgmr.msrb.gmra.mxu0 %vm2921_vm1, %v6782_v44  ;;  %v2469_v10 = vpack.c.b16 %v1989_v53, %v1989_v53  ;;  %v6632_v38 = vld [vmem:[%s6744_s17 + $0xbb4] sm:$0xf0] }
 0x10e   : > { %6229 = vmatmul.msk.bf16.vlgmr.msrb.gmra.mxu2 %vm2921_vm1, %v6782_v44  ;;  %3772 = vmatpush.bf16.msrb.mxu1 %v5934_v48  ;;  %v6342_v48 = vld [vmem:[%s6744_s17 + $0x2a4] sm:$0xf0]  ;;  %v2470_v45 = vpack.c.b16 %v1990_v28, %v1990_v28 }
 0x10f   : > { %3746 = vmatpush.bf16.msrb.mxu3 %v5930_v13  ;;  %3696 = vmatpush.bf16.msra.mxu2 %v5538_v18  ;;  %v5161_v13 = vld [vmem:[%s6744_s17 + $0x4e8] sm:$0xf]  ;;  %v5550_v18 = vor.u32 %v6510_v1, %v5547_v2  ;;  %v4778_v60 = vor.u32 %v6342_v48, %v4777_v47  ;;  %v6126_v1 = vor.u32 %v6654_v39, %v6123_v50  ;;  %v6463_v48 = vld [vmem:[%s6744_s17 + $0x674] sm:$0xf] }
 0x110   : > { %3723 = vmatpush.bf16.msra.mxu0 %v5350_v32  ;;  %v5162_v20 = vor.u32 %v6438_v14, %v5161_v13  ;;  %v3313_v32 = vpop.f32.mrf.mxu0  ;;  %v5747_v14 = vld [vmem:[%s6744_s17 + $0xa30] sm:$0xf0]  ;;  %v5946_v47 = vor.u32 %v6632_v38, %v5945_v37 }
 0x111   : > { %v3314_v35 = vadd.f32 %v3313_v32, %v7216_v49  ;;  %v5363_v50 = vld [vmem:[%s6744_s17 + $0x730] sm:$0xf0] }
 0x112   : > { %3773 = vmatpush.bf16.msrb.mxu1 %v5742_v63  ;;  %v6631_v63 = vld [vmem:[%s6744_s17 + $0xbac] sm:$0xf0]  ;;  %v6319_v38 = vld [vmem:[%s6744_s17 + $0x1f4] sm:$0xf] }
 0x113   : > { %3747 = vmatpush.bf16.msrb.mxu3 %v5738_v33  ;;  %3697 = vmatpush.bf16.msra.mxu2 %v5346_v40  ;;  %v4577_v33 = vld [vmem:[%s6744_s17 + $0x60] sm:$0xf]  ;;  %v4582_v40 = vor.u32 %v6269_v27, %v4579_v30  ;;  %v3327_v3 = vadd.f32 %v3326_v11, %v3314_v35  ;;  %v6559_v11 = vld [vmem:[%s6744_s17 + $0x974] sm:$0xf]  ;;  %v5938_v13 = vor.u32 %v6631_v63, %v5937_v62  ;;  %v6608_v62 = vld [vmem:[%s6744_s17 + $0xafc] sm:$0xf] }
 0x114   : > { %3724 = vmatpush.bf16.msra.mxu0 %v5158_v51  ;;  %v4578_v46 = vor.u32 %v6293_v34, %v4577_v33  ;;  %v6607_v51 = vld [vmem:[%s6744_s17 + $0xaf4] sm:$0xf]  ;;  %v3287_v54 = vpop.f32.mrf.mxu2  ;;  %v5750_v30 = vor.u32 %v6559_v11, %v5747_v14  ;;  %v3339_v33 = vpop.f32.mrf.mxu3  ;;  %v5947_v63 = vld [vmem:[%s6744_s17 + $0xbb8] sm:$0xf0]  ;;  %v6439_v14 = vld [vmem:[%s6744_s17 + $0x5ac] sm:$0xf0] }
 0x115   : > { %v3288_v17 = vadd.f32 %v3287_v54, %v7216_v49  ;;  %v4327_v6 = vmax.f32 %v3327_v3, 0.0  ;;  %6232 = vmatmul.msk.bf16.vlgmr.msra.gmra.mxu1 %vm2921_vm1, %v6782_v44  ;;  %v6511_v27 = vld [vmem:[%s6744_s17 + $0x7f4] sm:$0xf]  ;;  %v3340_v53 = vadd.f32 %v3339_v33, %v7216_v49 }
 0x116   : > { %6231 = vmatmul.msk.bf16.vlgmr.msra.gmra.mxu3 %vm2921_vm1, %v6782_v44  ;;  %3774 = vmatpush.bf16.msrb.mxu1 %v5550_v18 }
 0x117   : > { %3748 = vmatpush.bf16.msrb.mxu3 %v5546_v52  ;;  %3698 = vmatpush.bf16.msra.mxu2 %v5154_v56  ;;  %v5939_v52 = vld [vmem:[%s6744_s17 + $0xbb0] sm:$0xf0]  ;;  %v6121_v56 = vld [vmem:[%s6744_s17 + $0xc68] sm:$0xf]  ;;  %v3301_v7 = vadd.f32 %v7402_v0, %v3288_v17  ;;  %v6318_v0 = vld [vmem:[%s6744_s17 + $0x1ec] sm:$0xf] }
 0x118   : > { %3725 = vmatpush.bf16.msra.mxu0 %v4966_v4  ;;  %v5942_v2 = vor.u32 %v6607_v51, %v5939_v52  ;;  %v4585_v4 = vld [vmem:[%s6744_s17 + $0x68] sm:$0xf]  ;;  %v3315_v8 = vpop.f32.mrf.mxu0  ;;  %v6122_v9 = vor.u32 %v6678_v57, %v6121_v56  ;;  %v4782_v34 = vor.u32 %v6318_v0, %v4779_v15  ;;  %v5753_v51 = vld [vmem:[%s6744_s17 + $0x978] sm:$0xf]  ;;  %v6487_v56 = vld [vmem:[%s6744_s17 + $0x72c] sm:$0xf0]  ;;  %v5950_v0 = vor.u32 %v6608_v62, %v5947_v63 }
 0x119   : > { %v4326_v16 = vmax.f32 %v3301_v7, 0.0  ;;  %v6584_v52 = vld [vmem:[%s6744_s17 + $0xa34] sm:$0xf0]  ;;  %v3014_v57 = vsel %vm2925_vm0, %v2470_v45, 0  ;;  %v6131_v17 = vld [vmem:[%s6744_s17 + $0xd30] sm:$0xf0] }
 0x11a   : > { %3775 = vmatpush.bf16.msrb.mxu1 %v5358_v36  ;;  %v4587_v36 = vld [vmem:[%s6744_s17 + $0x128] sm:$0xf0]  ;;  %v5561_v7 = vld [vmem:[%s6744_s17 + $0x7f8] sm:$0xf]  ;;  %v6560_v15 = vld [vmem:[%s6744_s17 + $0x97c] sm:$0xf] }
 0x11b   : > { %3749 = vmatpush.bf16.msrb.mxu3 %v5354_v5  ;;  %3699 = vmatpush.bf16.msra.mxu2 %v4962_v12  ;;  %v6294_v5 = vld [vmem:[%s6744_s17 + $0x124] sm:$0xf0]  ;;  %v4974_v12 = vor.u32 %v6366_v59, %v4971_v61  ;;  %v4370_v26 = vpack.c.bf16 %v4327_v6, %v4326_v16  ;;  %v4590_v39 = vor.u32 %v6270_v31, %v4587_v36  ;;  %v6655_v59 = vld [vmem:[%s6744_s17 + $0xc74] sm:$0xf]  ;;  %v6536_v8 = vld [vmem:[%s6744_s17 + $0x8b4] sm:$0xf0] }
 0x11c   : > { %3726 = vmatpush.bf16.msra.mxu0 %v4774_v19  ;;  %v4586_v18 = vor.u32 %v6294_v5, %v4585_v4  ;;  %v5745_v19 = vld [vmem:[%s6744_s17 + $0x970] sm:$0xf]  ;;  %v3289_v32 = vpop.f32.mrf.mxu2  ;;  %v5754_v61 = vor.u32 %v6584_v52, %v5753_v51  ;;  %v3341_v4 = vpop.f32.mrf.mxu3  ;;  %v5171_v6 = vld [vmem:[%s6744_s17 + $0x5b0] sm:$0xf0]  ;;  %v5755_v16 = vld [vmem:[%s6744_s17 + $0xa38] sm:$0xf0]  ;;  %v5562_v23 = vor.u32 %v6536_v8, %v5561_v7 }
 0x11d   : > { %4394 = vst [vmem:[%s7264_s25 + $0x20] sm:$0xff] %v4370_v26  ;;  %v5369_v26 = vld [vmem:[%s6744_s17 + $0x678] sm:$0xf]  ;;  %v4977_v31 = vld [vmem:[%s6744_s17 + $0x370] sm:$0xf]  ;;  %v5758_v33 = vor.u32 %v6560_v15, %v5755_v16 }
 0x11e   : > { %3776 = vmatpush.bf16.msrb.mxu1 %v5166_v55  ;;  %v5361_v55 = vld [vmem:[%s6744_s17 + $0x670] sm:$0xf] }
 0x11f   : > { %3750 = vmatpush.bf16.msrb.mxu3 %v5162_v20  ;;  %3700 = vmatpush.bf16.msra.mxu2 %v4770_v29  ;;  %v6583_v20 = vld [vmem:[%s6744_s17 + $0xa2c] sm:$0xf0]  ;;  %v3011_v29 = vsel %vm2925_vm0, %v2469_v10, 0  ;;  %v5362_v5 = vor.u32 %v6487_v56, %v5361_v55  ;;  %v6271_v55 = vld [vmem:[%s6744_s17 + $0x74] sm:$0xf] }
 0x120   : > { %3727 = vmatpush.bf16.msra.mxu0 %v4582_v40  ;;  %v5746_v35 = vor.u32 %v6583_v20, %v5745_v19  ;;  %v3365_v40 = vpop.f32.mrf.mxu1  ;;  %v3378_v21 = vpop.f32.mrf.mxu0  ;;  %v6391_v32 = vld [vmem:[%s6744_s17 + $0x42c] sm:$0xf0] }
 0x121   : > { %v4978_v45 = vor.u32 %v6391_v32, %v4977_v31  ;;  %v4593_v63 = vld [vmem:[%s6744_s17 + $0x70] sm:$0xf]  ;;  %v4987_v32 = vld [vmem:[%s6744_s17 + $0x438] sm:$0xf0] }
 0x122   : > { %3777 = vmatpush.bf16.msrb.mxu1 %v4974_v12  ;;  %v6134_v12 = vor.u32 %v6655_v59, %v6131_v17  ;;  %v4595_v17 = vld [vmem:[%s6744_s17 + $0x130] sm:$0xf0] }
 0x123   : > { %3751 = vmatpush.bf16.msrb.mxu3 %v4970_v41  ;;  %3701 = vmatpush.bf16.msra.mxu2 %v4578_v46  ;;  %v5553_v41 = vld [vmem:[%s6744_s17 + $0x7f0] sm:$0xf]  ;;  %v5558_v46 = vor.u32 %v6511_v27, %v5555_v24  ;;  %v4979_v27 = vld [vmem:[%s6744_s17 + $0x430] sm:$0xf0] }
 0x124   : > { %3791 = vmatpush.bf16.msrb.mxu0 %v3008_v22  ;;  %v6535_v22 = vld [vmem:[%s6744_s17 + $0x8ac] sm:$0xf0]  ;;  %v4982_v36 = vor.u32 %v6367_v25, %v4979_v27 }
 0x125   : > { %3728 = vmatmul.bf16.vlgmr.msra.gmra.mxu0 %v6840_v58  ;;  %v5554_v3 = vor.u32 %v6535_v22, %v5553_v41 }
 0x126   : > { %3702 = vmatmul.bf16.vlgmr.msra.gmra.mxu2 %v6840_v58  ;;  %3778 = vmatpush.bf16.msrb.mxu1 %v4782_v34  ;;  %v6512_v34 = vld [vmem:[%s6744_s17 + $0x7fc] sm:$0xf] }
 0x127   : > { %3765 = vmatpush.bf16.msrb.mxu2 %v3005_v42  ;;  %3752 = vmatpush.bf16.msrb.mxu3 %v4778_v60  ;;  %v3366_v42 = vadd.f32 %v3365_v40, %v7216_v49  ;;  %v5366_v60 = vor.u32 %v6463_v48, %v5363_v50  ;;  %v4787_v40 = vld [vmem:[%s6744_s17 + $0x2b0] sm:$0xf0]  ;;  %v6343_v48 = vld [vmem:[%s6744_s17 + $0x2ac] sm:$0xf0] }
 0x128   : > { %3792 = vmatpush.bf16.msrb.mxu0 %v6126_v1  ;;  %v6415_v1 = vld [vmem:[%s6744_s17 + $0x4f4] sm:$0xf]  ;;  %v3367_v11 = vpop.f32.mrf.mxu1  ;;  %v3380_v19 = vpop.f32.mrf.mxu0  ;;  %v4790_v50 = vor.u32 %v6319_v38, %v4787_v40 }
 0x129   : > { %v3379_v54 = vadd.f32 %v3378_v21, %v3366_v42  ;;  %v5174_v20 = vor.u32 %v6415_v1, %v5171_v6  ;;  %v5177_v21 = vld [vmem:[%s6744_s17 + $0x4f8] sm:$0xf]  ;;  %v6295_v1 = vld [vmem:[%s6744_s17 + $0x12c] sm:$0xf0]  ;;  %v6609_v19 = vld [vmem:[%s6744_s17 + $0xb04] sm:$0xf] }
 0x12a   : > { %3779 = vmatpush.bf16.msrb.mxu1 %v4590_v39 }
 0x12b   : > { %3766 = vmatpush.bf16.msrb.mxu2 %v6122_v9  ;;  %3753 = vmatpush.bf16.msrb.mxu3 %v4586_v18  ;;  %v4329_v9 = vmax.f32 %v3379_v54, 0.0  ;;  %v5371_v54 = vld [vmem:[%s6744_s17 + $0x738] sm:$0xf0] }
 0x12c   : > { %3824 = vmatpush.bf16.msra.mxu0 %v5942_v2  ;;  %v3352_v2 = vpop.f32.mrf.mxu2 }
 0x12d   : > { %v3353_v10 = vadd.f32 %v3352_v2, %v3340_v53  ;;  %3780 = vmatmul.bf16.vlgmr.msrb.gmra.mxu1 %v6840_v58  ;;  %v6464_v53 = vld [vmem:[%s6744_s17 + $0x67c] sm:$0xf]  ;;  %v7528_v2 = vld [vmem:[%s6744_s17 + $0xe00] sm:$0x77] }
 0x12e   : > { %3754 = vmatmul.bf16.vlgmr.msrb.gmra.mxu3 %v6840_v58  ;;  %3843 = vmatpush.bf16.msra.mxu1 %v3014_v57  ;;  %v5374_v4 = vor.u32 %v6464_v53, %v5371_v54  ;;  %v1993_v15 = vunpack.c.l.b16 %v7528_v2  ;;  %v6145_v53 = vld [vmem:[%s6744_s17 + $0xc80] sm:$0xf] }
 0x12f   : > { %3798 = vmatpush.bf16.msra.mxu2 %v5938_v13  ;;  %3817 = vmatpush.bf16.msra.mxu3 %v3011_v29  ;;  %v5169_v13 = vld [vmem:[%s6744_s17 + $0x4f0] sm:$0xf]  ;;  %v4328_v18 = vmax.f32 %v3353_v10, 0.0  ;;  %v6488_v29 = vld [vmem:[%s6744_s17 + $0x734] sm:$0xf0] }
 0x130   : > { %3825 = vmatpush.bf16.msra.mxu0 %v5750_v30  ;;  %v5170_v28 = vor.u32 %v6439_v14, %v5169_v13  ;;  %v621_v30 = vld [vmem:[%s6744_s17 + $0xdf8] sm:$0x77]  ;;  %v5370_v37 = vor.u32 %v6488_v29, %v5369_v26  ;;  %v3430_v39 = vpop.f32.mrf.mxu1  ;;  %v3417_v51 = vpop.f32.mrf.mxu0  ;;  %v2473_v38 = vpack.c.b16 %v1993_v15, %v1993_v15  ;;  %v6681_v54 = vld [vmem:[%s6744_s17 + $0xd3c] sm:$0xf0] }
 0x131   : > { %v4371_v24 = vpack.c.bf16 %v4329_v9, %v4328_v18  ;;  %v1992_v41 = vunpack.c.h.b16 %v621_v30  ;;  %v1991_v22 = vunpack.c.l.b16 %v621_v30  ;;  %v3418_v62 = vadd.f32 %v3417_v51, %v7216_v49  ;;  %v6416_v9 = vld [vmem:[%s6744_s17 + $0x4fc] sm:$0xf]  ;;  %v4793_v13 = vld [vmem:[%s6744_s17 + $0x1f8] sm:$0xf]  ;;  %v6585_v51 = vld [vmem:[%s6744_s17 + $0xa3c] sm:$0xf0] }
 0x132   : > { %3844 = vmatpush.bf16.msra.mxu1 %v6134_v12  ;;  %v5179_v10 = vld [vmem:[%s6744_s17 + $0x5b8] sm:$0xf0]  ;;  %v4594_v12 = vor.u32 %v6295_v1, %v4593_v63  ;;  %v6344_v14 = vld [vmem:[%s6744_s17 + $0x2b4] sm:$0xf0] }
 0x133   : > { %3799 = vmatpush.bf16.msra.mxu2 %v5746_v35  ;;  %3818 = vmatpush.bf16.msra.mxu3 %v6130_v43  ;;  %v5563_v35 = vld [vmem:[%s6744_s17 + $0x8b8] sm:$0xf0]  ;;  %4395 = vst [vmem:[%s7264_s25 + $0x28] sm:$0xff] %v4371_v24  ;;  %v7510_v43 = vpop.f32.mrf.mxu3  ;;  %v2472_v56 = vpack.c.b16 %v1992_v41, %v1992_v41  ;;  %v2471_v57 = vpack.c.b16 %v1991_v22, %v1991_v22  ;;  %v6680_v26 = vld [vmem:[%s6744_s17 + $0xd34] sm:$0xf0] }
 0x134   : > { %3826 = vmatpush.bf16.msra.mxu0 %v5558_v46  ;;  %v3354_v42 = vpop.f32.mrf.mxu2  ;;  %v6440_v46 = vld [vmem:[%s6744_s17 + $0x5b4] sm:$0xf0]  ;;  %v3431_v16 = vadd.f32 %v3430_v39, %v3418_v62  ;;  %v6139_v18 = vld [vmem:[%s6744_s17 + $0xd38] sm:$0xf0]  ;;  %v5182_v27 = vor.u32 %v6416_v9, %v5179_v10  ;;  %v4794_v31 = vor.u32 %v6344_v14, %v4793_v13  ;;  %v6146_v10 = vor.u32 %v6681_v54, %v6145_v53  ;;  %v6369_v53 = vld [vmem:[%s6744_s17 + $0x384] sm:$0xf] }
 0x135   : > { %6234 = vmatmul.msk.bf16.vlgmr.msrb.gmra.mxu0 %vm2921_vm1, %v6782_v44  ;;  %v5178_v52 = vor.u32 %v6440_v46, %v5177_v21  ;;  %v3020_v7 = vsel %vm2925_vm0, %v2472_v56, 0  ;;  %v3017_v8 = vsel %vm2925_vm0, %v2471_v57, 0  ;;  %v6368_v29 = vld [vmem:[%s6744_s17 + $0x37c] sm:$0xf]  ;;  %v4995_v54 = vld [vmem:[%s6744_s17 + $0x440] sm:$0xf0] }
 0x136   : > { %6233 = vmatmul.msk.bf16.vlgmr.msrb.gmra.mxu2 %vm2921_vm1, %v6782_v44  ;;  %3876 = vmatpush.bf16.msrb.mxu1 %v5950_v0  ;;  %v6656_v0 = vld [vmem:[%s6744_s17 + $0xc7c] sm:$0xf]  ;;  %v4331_v40 = vmax.f32 %v3431_v16, 0.0  ;;  %v4990_v21 = vor.u32 %v6368_v29, %v4987_v32  ;;  %v6657_v29 = vld [vmem:[%s6744_s17 + $0xc84] sm:$0xf] }
 0x137   : > { %3850 = vmatpush.bf16.msrb.mxu3 %v5946_v47  ;;  %3800 = vmatpush.bf16.msra.mxu2 %v5554_v3  ;;  %v4785_v47 = vld [vmem:[%s6744_s17 + $0x1f0] sm:$0xf]  ;;  %v5566_v3 = vor.u32 %v6512_v34, %v5563_v35  ;;  %v6633_v34 = vld [vmem:[%s6744_s17 + $0xbbc] sm:$0xf0]  ;;  %v6142_v35 = vor.u32 %v6656_v0, %v6139_v18  ;;  %v4795_v39 = vld [vmem:[%s6744_s17 + $0x2b8] sm:$0xf0] }
 0x138   : > { %3827 = vmatpush.bf16.msra.mxu0 %v5366_v60  ;;  %v4786_v59 = vor.u32 %v6343_v48, %v4785_v47  ;;  %v4985_v60 = vld [vmem:[%s6744_s17 + $0x378] sm:$0xf]  ;;  %v3432_v25 = vpop.f32.mrf.mxu1  ;;  %v3419_v24 = vpop.f32.mrf.mxu0  ;;  %v5763_v47 = vld [vmem:[%s6744_s17 + $0xa40] sm:$0xf0]  ;;  %v6320_v48 = vld [vmem:[%s6744_s17 + $0x1fc] sm:$0xf] }
 0x139   : > { %v4798_v63 = vor.u32 %v6320_v48, %v4795_v39  ;;  %v6465_v0 = vld [vmem:[%s6744_s17 + $0x684] sm:$0xf]  ;;  %v6610_v32 = vld [vmem:[%s6744_s17 + $0xb0c] sm:$0xf] }
 0x13a   : > { %3877 = vmatpush.bf16.msrb.mxu1 %v5758_v33  ;;  %v5953_v33 = vld [vmem:[%s6744_s17 + $0xb00] sm:$0xf]  ;;  %v5379_v18 = vld [vmem:[%s6744_s17 + $0x740] sm:$0xf0]  ;;  %v6562_v39 = vld [vmem:[%s6744_s17 + $0x98c] sm:$0xf] }
 0x13b   : > { %3851 = vmatpush.bf16.msrb.mxu3 %v5754_v61  ;;  %3801 = vmatpush.bf16.msra.mxu2 %v5362_v5  ;;  %v6392_v61 = vld [vmem:[%s6744_s17 + $0x434] sm:$0xf0]  ;;  %v4598_v5 = vor.u32 %v6271_v55, %v4595_v17  ;;  %v3406_v11 = vpop.f32.mrf.mxu3  ;;  %v5954_v46 = vor.u32 %v6633_v34, %v5953_v33  ;;  %v1994_v55 = vunpack.c.h.b16 %v7528_v2  ;;  %v5571_v17 = vld [vmem:[%s6744_s17 + $0x8c0] sm:$0xf0]  ;;  %v5961_v2 = vld [vmem:[%s6744_s17 + $0xb08] sm:$0xf]  ;;  %v5382_v24 = vor.u32 %v6465_v0, %v5379_v18 }
 0x13c   : > { %3828 = vmatpush.bf16.msra.mxu0 %v5174_v20  ;;  %v4986_v6 = vor.u32 %v6392_v61, %v4985_v60  ;;  %v5955_v20 = vld [vmem:[%s6744_s17 + $0xbc0] sm:$0xf0]  ;;  %v6272_v60 = vld [vmem:[%s6744_s17 + $0x7c] sm:$0xf]  ;;  %v5963_v33 = vld [vmem:[%s6744_s17 + $0xbc8] sm:$0xf0] }
 0x13d   : > { %6236 = vmatmul.msk.bf16.vlgmr.msra.gmra.mxu1 %vm2921_vm1, %v6782_v44  ;;  %v5958_v22 = vor.u32 %v6609_v19, %v5955_v20  ;;  %v2474_v11 = vpack.c.b16 %v1994_v55, %v1994_v55  ;;  %v5769_v19 = vld [vmem:[%s6744_s17 + $0x988] sm:$0xf]  ;;  %v6417_v34 = vld [vmem:[%s6744_s17 + $0x504] sm:$0xf]  ;;  %v5966_v48 = vor.u32 %v6610_v32, %v5963_v33  ;;  %v6345_v0 = vld [vmem:[%s6744_s17 + $0x2bc] sm:$0xf0] }
 0x13e   : > { %6235 = vmatmul.msk.bf16.vlgmr.msra.gmra.mxu3 %vm2921_vm1, %v6782_v44  ;;  %3878 = vmatpush.bf16.msrb.mxu1 %v5566_v3  ;;  %v6586_v20 = vld [vmem:[%s6744_s17 + $0xa44] sm:$0xf0]  ;;  %v4609_v33 = vld [vmem:[%s6744_s17 + $0x80] sm:$0xf] }
 0x13f   : > { %3852 = vmatpush.bf16.msrb.mxu3 %v5562_v23  ;;  %3802 = vmatpush.bf16.msra.mxu2 %v5170_v28  ;;  %v3391_v23 = vpop.f32.mrf.mxu2  ;;  %v6137_v28 = vld [vmem:[%s6744_s17 + $0xc78] sm:$0xf] }
 0x140   : > { %3829 = vmatpush.bf16.msra.mxu0 %v4982_v36  ;;  %v3392_v30 = vadd.f32 %v3391_v23, %v7216_v49  ;;  %v4601_v36 = vld [vmem:[%s6744_s17 + $0x78] sm:$0xf]  ;;  %v6138_v42 = vor.u32 %v6680_v26, %v6137_v28  ;;  %v6489_v28 = vld [vmem:[%s6744_s17 + $0x73c] sm:$0xf0]  ;;  %v3026_v26 = vsel %vm2925_vm0, %v2474_v11, 0 }
 0x142   : > { %3879 = vmatpush.bf16.msrb.mxu1 %v5374_v4  ;;  %v3405_v41 = vadd.f32 %v7510_v43, %v3392_v30  ;;  %v4603_v4 = vld [vmem:[%s6744_s17 + $0x138] sm:$0xf0]  ;;  %v6147_v30 = vld [vmem:[%s6744_s17 + $0xd40] sm:$0xf0] }
 0x143   : > { %3853 = vmatpush.bf16.msrb.mxu3 %v5370_v37  ;;  %3803 = vmatpush.bf16.msra.mxu2 %v4978_v45  ;;  %v6296_v37 = vld [vmem:[%s6744_s17 + $0x134] sm:$0xf0]  ;;  %v6561_v45 = vld [vmem:[%s6744_s17 + $0x984] sm:$0xf]  ;;  %v3443_v62 = vpop.f32.mrf.mxu3  ;;  %v4606_v15 = vor.u32 %v6272_v60, %v4603_v4  ;;  %v4993_v60 = vld [vmem:[%s6744_s17 + $0x380] sm:$0xf]  ;;  %v4998_v4 = vor.u32 %v6369_v53, %v4995_v54 }
 0x144   : > { %3830 = vmatpush.bf16.msra.mxu0 %v4790_v50  ;;  %v4330_v43 = vmax.f32 %v3405_v41, 0.0  ;;  %v4602_v3 = vor.u32 %v6296_v37, %v4601_v36  ;;  %v5761_v50 = vld [vmem:[%s6744_s17 + $0x980] sm:$0xf]  ;;  %v5766_v57 = vor.u32 %v6561_v45, %v5763_v47  ;;  %v3444_v23 = vadd.f32 %v3443_v62, %v7216_v49  ;;  %v6538_v41 = vld [vmem:[%s6744_s17 + $0x8c4] sm:$0xf0] }
 0x145   : > { %v5762_v1 = vor.u32 %v6585_v51, %v5761_v50  ;;  %v6441_v47 = vld [vmem:[%s6744_s17 + $0x5bc] sm:$0xf0] }
 0x146   : > { %3880 = vmatpush.bf16.msrb.mxu1 %v5182_v27  ;;  %v4372_v56 = vpack.c.bf16 %v4331_v40, %v4330_v43  ;;  %v5377_v27 = vld [vmem:[%s6744_s17 + $0x680] sm:$0xf]  ;;  %v5577_v40 = vld [vmem:[%s6744_s17 + $0x808] sm:$0xf]  ;;  %v5771_v43 = vld [vmem:[%s6744_s17 + $0xa48] sm:$0xf0] }
 0x147   : > { %3854 = vmatpush.bf16.msrb.mxu3 %v5178_v52  ;;  %3804 = vmatpush.bf16.msra.mxu2 %v4786_v59  ;;  %v3023_v52 = vsel %vm2925_vm0, %v2473_v38, 0  ;;  %v6513_v59 = vld [vmem:[%s6744_s17 + $0x804] sm:$0xf]  ;;  %v3393_v61 = vpop.f32.mrf.mxu2  ;;  %v5378_v37 = vor.u32 %v6489_v28, %v5377_v27  ;;  %v5774_v62 = vor.u32 %v6562_v39, %v5771_v43 }
 0x148   : > { %3831 = vmatpush.bf16.msra.mxu0 %v4598_v5  ;;  %v6634_v5 = vld [vmem:[%s6744_s17 + $0xbc4] sm:$0xf0]  ;;  %4396 = vst [vmem:[%s7264_s25 + $0x30] sm:$0xff] %v4372_v56  ;;  %v5574_v13 = vor.u32 %v6513_v59, %v5571_v17  ;;  %v5187_v38 = vld [vmem:[%s6744_s17 + $0x5c0] sm:$0xf0] }
 0x149   : > { %v5962_v14 = vor.u32 %v6634_v5, %v5961_v2  ;;  %v5190_v51 = vor.u32 %v6417_v34, %v5187_v38  ;;  %v5385_v56 = vld [vmem:[%s6744_s17 + $0x688] sm:$0xf]  ;;  %v6393_v61 = vld [vmem:[%s6744_s17 + $0x43c] sm:$0xf0]  ;;  %v6321_v5 = vld [vmem:[%s6744_s17 + $0x204] sm:$0xf] }
 0x14a   : > { %3881 = vmatpush.bf16.msrb.mxu1 %v4990_v21  ;;  %v6150_v21 = vor.u32 %v6657_v29, %v6147_v30  ;;  %v623_v59 = vld [vmem:[%s6744_s17 + $0xe08] sm:$0x77]  ;;  %v4994_v11 = vor.u32 %v6393_v61, %v4993_v60  ;;  %v6273_v27 = vld [vmem:[%s6744_s17 + $0x84] sm:$0xf]  ;;  %v6297_v34 = vld [vmem:[%s6744_s17 + $0x13c] sm:$0xf0] }
 0x14b   : > { %3855 = vmatpush.bf16.msrb.mxu3 %v4986_v6  ;;  %3805 = vmatpush.bf16.msra.mxu2 %v4594_v12  ;;  %v3469_v6 = vpop.f32.mrf.mxu1  ;;  %v3482_v12 = vpop.f32.mrf.mxu0  ;;  %v4611_v30 = vld [vmem:[%s6744_s17 + $0x140] sm:$0xf0]  ;;  %v5003_v61 = vld [vmem:[%s6744_s17 + $0x448] sm:$0xf0] }
 0x14c   : > { %3895 = vmatpush.bf16.msrb.mxu0 %v3020_v7  ;;  %v5569_v7 = vld [vmem:[%s6744_s17 + $0x800] sm:$0xf]  ;;  %v3470_v9 = vadd.f32 %v3469_v6, %v7216_v49  ;;  %v3445_v36 = vpop.f32.mrf.mxu3  ;;  %v4803_v6 = vld [vmem:[%s6744_s17 + $0x2c0] sm:$0xf0] }
 0x14d   : > { %3832 = vmatmul.bf16.vlgmr.msra.gmra.mxu0 %v6840_v58  ;;  %v4806_v18 = vor.u32 %v6321_v5, %v4803_v6 }
 0x14e   : > { %3806 = vmatmul.bf16.vlgmr.msra.gmra.mxu2 %v6840_v58  ;;  %3882 = vmatpush.bf16.msrb.mxu1 %v4798_v63  ;;  %v3483_v25 = vadd.f32 %v3482_v12, %v3470_v9  ;;  %v6514_v63 = vld [vmem:[%s6744_s17 + $0x80c] sm:$0xf]  ;;  %v5193_v12 = vld [vmem:[%s6744_s17 + $0x508] sm:$0xf] }
 0x14f   : > { %3869 = vmatpush.bf16.msrb.mxu2 %v3017_v8  ;;  %3856 = vmatpush.bf16.msrb.mxu3 %v4794_v31  ;;  %v6537_v8 = vld [vmem:[%s6744_s17 + $0x8bc] sm:$0xf0]  ;;  %v5770_v31 = vor.u32 %v6586_v20, %v5769_v19 }
 0x150   : > { %3896 = vmatpush.bf16.msrb.mxu0 %v6142_v35  ;;  %v5570_v16 = vor.u32 %v6537_v8, %v5569_v7  ;;  %v3456_v35 = vpop.f32.mrf.mxu2  ;;  %v1996_v7 = vunpack.c.h.b16 %v623_v59  ;;  %v1995_v8 = vunpack.c.l.b16 %v623_v59 }
 0x152   : > { %3883 = vmatpush.bf16.msrb.mxu1 %v4606_v15  ;;  %v2476_v28 = vpack.c.b16 %v1996_v7, %v1996_v7 }
 0x153   : > { %3870 = vmatpush.bf16.msrb.mxu2 %v6138_v42  ;;  %3857 = vmatpush.bf16.msrb.mxu3 %v4602_v3  ;;  %v3457_v42 = vadd.f32 %v3456_v35, %v3444_v23  ;;  %v3471_v45 = vpop.f32.mrf.mxu1  ;;  %v3484_v50 = vpop.f32.mrf.mxu0  ;;  %v6466_v23 = vld [vmem:[%s6744_s17 + $0x68c] sm:$0xf]  ;;  %v7631_v35 = vld [vmem:[%s6744_s17 + $0xe10] sm:$0x77] }
 0x154   : > { %3928 = vmatpush.bf16.msra.mxu0 %v5958_v22  ;;  %v4333_v22 = vmax.f32 %v3483_v25, 0.0  ;;  %v5387_v25 = vld [vmem:[%s6744_s17 + $0x748] sm:$0xf0]  ;;  %v1997_v39 = vunpack.c.l.b16 %v7631_v35  ;;  %v6611_v50 = vld [vmem:[%s6744_s17 + $0xb14] sm:$0xf] }
 0x155   : > { %v4332_v3 = vmax.f32 %v3457_v42, 0.0  ;;  %3884 = vmatmul.bf16.vlgmr.msrb.gmra.mxu1 %v6840_v58  ;;  %v5390_v36 = vor.u32 %v6466_v23, %v5387_v25  ;;  %v5195_v42 = vld [vmem:[%s6744_s17 + $0x5c8] sm:$0xf0]  ;;  %v6161_v23 = vld [vmem:[%s6744_s17 + $0xc90] sm:$0xf] }
 0x156   : > { %3858 = vmatmul.bf16.vlgmr.msrb.gmra.mxu3 %v6840_v58  ;;  %3947 = vmatpush.bf16.msra.mxu1 %v3026_v26  ;;  %v2475_v26 = vpack.c.b16 %v1995_v8, %v1995_v8  ;;  %v2477_v5 = vpack.c.b16 %v1997_v39, %v1997_v39  ;;  %v6683_v25 = vld [vmem:[%s6744_s17 + $0xd4c] sm:$0xf0] }
 0x157   : > { %3902 = vmatpush.bf16.msra.mxu2 %v5954_v46  ;;  %3921 = vmatpush.bf16.msra.mxu3 %v3023_v52  ;;  %v5185_v46 = vld [vmem:[%s6744_s17 + $0x500] sm:$0xf]  ;;  %v5578_v52 = vor.u32 %v6538_v41, %v5577_v40  ;;  %v4373_v17 = vpack.c.bf16 %v4333_v22, %v4332_v3  ;;  %v3032_v40 = vsel %vm2925_vm0, %v2476_v28, 0  ;;  %v6418_v22 = vld [vmem:[%s6744_s17 + $0x50c] sm:$0xf] }
 0x158   : > { %3929 = vmatpush.bf16.msra.mxu0 %v5766_v57  ;;  %v5186_v55 = vor.u32 %v6441_v47, %v5185_v46  ;;  %v6490_v57 = vld [vmem:[%s6744_s17 + $0x744] sm:$0xf0]  ;;  %v3458_v9 = vpop.f32.mrf.mxu2  ;;  %v3029_v41 = vsel %vm2925_vm0, %v2475_v26, 0  ;;  %v6155_v3 = vld [vmem:[%s6744_s17 + $0xd48] sm:$0xf0]  ;;  %v5198_v54 = vor.u32 %v6418_v22, %v5195_v42  ;;  %v6162_v42 = vor.u32 %v6683_v25, %v6161_v23 }
 0x159   : > { %4397 = vst [vmem:[%s7264_s25 + $0x38] sm:$0xff] %v4373_v17  ;;  %v5386_v2 = vor.u32 %v6490_v57, %v5385_v56  ;;  %v4809_v46 = vld [vmem:[%s6744_s17 + $0x208] sm:$0xf]  ;;  %v6370_v57 = vld [vmem:[%s6744_s17 + $0x38c] sm:$0xf] }
 0x15a   : > { %3948 = vmatpush.bf16.msra.mxu1 %v6150_v21  ;;  %v4610_v21 = vor.u32 %v6297_v34, %v4609_v33  ;;  %v6346_v47 = vld [vmem:[%s6744_s17 + $0x2c4] sm:$0xf0]  ;;  %v6371_v23 = vld [vmem:[%s6744_s17 + $0x394] sm:$0xf] }
 0x15b   : > { %3903 = vmatpush.bf16.msra.mxu2 %v5762_v1  ;;  %3922 = vmatpush.bf16.msra.mxu3 %v6146_v10  ;;  %v5579_v1 = vld [vmem:[%s6744_s17 + $0x8c8] sm:$0xf0]  ;;  %v7613_v10 = vpop.f32.mrf.mxu3  ;;  %v3534_v15 = vpop.f32.mrf.mxu1  ;;  %v6682_v56 = vld [vmem:[%s6744_s17 + $0xd44] sm:$0xf0]  ;;  %v4810_v60 = vor.u32 %v6346_v47, %v4809_v46  ;;  %v5011_v25 = vld [vmem:[%s6744_s17 + $0x450] sm:$0xf0] }
 0x15c   : > { %3930 = vmatpush.bf16.msra.mxu0 %v5574_v13  ;;  %v6442_v13 = vld [vmem:[%s6744_s17 + $0x5c4] sm:$0xf0]  ;;  %v3521_v19 = vpop.f32.mrf.mxu0 }
 0x15d   : > { %6238 = vmatmul.msk.bf16.vlgmr.msrb.gmra.mxu0 %vm2921_vm1, %v6782_v44  ;;  %v5194_v20 = vor.u32 %v6442_v13, %v5193_v12  ;;  %v3522_v32 = vadd.f32 %v3521_v19, %v7216_v49  ;;  %v5006_v12 = vor.u32 %v6370_v57, %v5003_v61  ;;  %v6587_v19 = vld [vmem:[%s6744_s17 + $0xa4c] sm:$0xf0]  ;;  %v6659_v57 = vld [vmem:[%s6744_s17 + $0xc94] sm:$0xf]  ;;  %v6612_v61 = vld [vmem:[%s6744_s17 + $0xb1c] sm:$0xf] }
 0x15e   : > { %6237 = vmatmul.msk.bf16.vlgmr.msrb.gmra.mxu2 %vm2921_vm1, %v6782_v44  ;;  %3980 = vmatpush.bf16.msrb.mxu1 %v5966_v48  ;;  %v6658_v48 = vld [vmem:[%s6744_s17 + $0xc8c] sm:$0xf] }
 0x15f   : > { %3954 = vmatpush.bf16.msrb.mxu3 %v5962_v14  ;;  %3904 = vmatpush.bf16.msra.mxu2 %v5570_v16  ;;  %v4801_v14 = vld [vmem:[%s6744_s17 + $0x200] sm:$0xf]  ;;  %v5582_v16 = vor.u32 %v6514_v63, %v5579_v1  ;;  %v3535_v43 = vadd.f32 %v3534_v15, %v3522_v32  ;;  %v6635_v63 = vld [vmem:[%s6744_s17 + $0xbcc] sm:$0xf0]  ;;  %v6158_v1 = vor.u32 %v6658_v48, %v6155_v3  ;;  %v4811_v15 = vld [vmem:[%s6744_s17 + $0x2c8] sm:$0xf0] }
 0x160   : > { %3931 = vmatpush.bf16.msra.mxu0 %v5382_v24  ;;  %v4802_v29 = vor.u32 %v6345_v0, %v4801_v14  ;;  %v5001_v24 = vld [vmem:[%s6744_s17 + $0x388] sm:$0xf]  ;;  %v5779_v14 = vld [vmem:[%s6744_s17 + $0xa50] sm:$0xf0]  ;;  %v6322_v0 = vld [vmem:[%s6744_s17 + $0x20c] sm:$0xf] }
 0x161   : > { %v4335_v6 = vmax.f32 %v3535_v43, 0.0  ;;  %v4814_v33 = vor.u32 %v6322_v0, %v4811_v15  ;;  %v6467_v48 = vld [vmem:[%s6744_s17 + $0x694] sm:$0xf]  ;;  %v6564_v15 = vld [vmem:[%s6744_s17 + $0x99c] sm:$0xf] }
 0x162   : > { %3981 = vmatpush.bf16.msrb.mxu1 %v5774_v62  ;;  %v5969_v62 = vld [vmem:[%s6744_s17 + $0xb10] sm:$0xf]  ;;  %v5395_v3 = vld [vmem:[%s6744_s17 + $0x750] sm:$0xf0] }
 0x163   : > { %3955 = vmatpush.bf16.msrb.mxu3 %v5770_v31  ;;  %3905 = vmatpush.bf16.msra.mxu2 %v5378_v37  ;;  %v6394_v31 = vld [vmem:[%s6744_s17 + $0x444] sm:$0xf0]  ;;  %v4614_v37 = vor.u32 %v6273_v27, %v4611_v30  ;;  %v3510_v45 = vpop.f32.mrf.mxu3  ;;  %v3536_v53 = vpop.f32.mrf.mxu1  ;;  %v5970_v13 = vor.u32 %v6635_v63, %v5969_v62  ;;  %v1998_v27 = vunpack.c.h.b16 %v7631_v35  ;;  %v5587_v30 = vld [vmem:[%s6744_s17 + $0x8d0] sm:$0xf0]  ;;  %v5977_v35 = vld [vmem:[%s6744_s17 + $0xb18] sm:$0xf] }
 0x164   : > { %3932 = vmatpush.bf16.msra.mxu0 %v5190_v51  ;;  %v5002_v38 = vor.u32 %v6394_v31, %v5001_v24  ;;  %v5971_v51 = vld [vmem:[%s6744_s17 + $0xbd0] sm:$0xf0]  ;;  %v3523_v17 = vpop.f32.mrf.mxu0  ;;  %v6274_v24 = vld [vmem:[%s6744_s17 + $0x8c] sm:$0xf]  ;;  %v5979_v62 = vld [vmem:[%s6744_s17 + $0xbd8] sm:$0xf0] }
 0x165   : > { %6240 = vmatmul.msk.bf16.vlgmr.msra.gmra.mxu1 %vm2921_vm1, %v6782_v44  ;;  %v5974_v8 = vor.u32 %v6611_v50, %v5971_v51  ;;  %v2478_v45 = vpack.c.b16 %v1998_v27, %v1998_v27  ;;  %v5785_v50 = vld [vmem:[%s6744_s17 + $0x998] sm:$0xf]  ;;  %v5398_v17 = vor.u32 %v6467_v48, %v5395_v3  ;;  %v6419_v63 = vld [vmem:[%s6744_s17 + $0x514] sm:$0xf]  ;;  %v5982_v0 = vor.u32 %v6612_v61, %v5979_v62  ;;  %v6347_v48 = vld [vmem:[%s6744_s17 + $0x2cc] sm:$0xf0] }
 0x166   : > { %6239 = vmatmul.msk.bf16.vlgmr.msra.gmra.mxu3 %vm2921_vm1, %v6782_v44  ;;  %3982 = vmatpush.bf16.msrb.mxu1 %v5582_v16  ;;  %v6588_v51 = vld [vmem:[%s6744_s17 + $0xa54] sm:$0xf0]  ;;  %v4625_v62 = vld [vmem:[%s6744_s17 + $0x90] sm:$0xf] }
 0x167   : > { %3956 = vmatpush.bf16.msrb.mxu3 %v5578_v52  ;;  %3906 = vmatpush.bf16.msra.mxu2 %v5186_v55  ;;  %v3495_v52 = vpop.f32.mrf.mxu2  ;;  %v6153_v55 = vld [vmem:[%s6744_s17 + $0xc88] sm:$0xf] }
 0x168   : > { %3933 = vmatpush.bf16.msra.mxu0 %v4998_v4  ;;  %v3496_v59 = vadd.f32 %v3495_v52, %v7216_v49  ;;  %v4617_v4 = vld [vmem:[%s6744_s17 + $0x88] sm:$0xf]  ;;  %v6154_v9 = vor.u32 %v6682_v56, %v6153_v55  ;;  %v6491_v55 = vld [vmem:[%s6744_s17 + $0x74c] sm:$0xf0]  ;;  %v3038_v56 = vsel %vm2925_vm0, %v2478_v45, 0 }
 0x16a   : > { %3983 = vmatpush.bf16.msrb.mxu1 %v5390_v36  ;;  %v3509_v7 = vadd.f32 %v7613_v10, %v3496_v59  ;;  %v4619_v36 = vld [vmem:[%s6744_s17 + $0x148] sm:$0xf0]  ;;  %v6163_v59 = vld [vmem:[%s6744_s17 + $0xd50] sm:$0xf0] }
 0x16b   : > { %3957 = vmatpush.bf16.msrb.mxu3 %v5386_v2  ;;  %3907 = vmatpush.bf16.msra.mxu2 %v4994_v11  ;;  %v6298_v2 = vld [vmem:[%s6744_s17 + $0x144] sm:$0xf0]  ;;  %v6563_v11 = vld [vmem:[%s6744_s17 + $0x994] sm:$0xf]  ;;  %v3547_v32 = vpop.f32.mrf.mxu3  ;;  %v4622_v39 = vor.u32 %v6274_v24, %v4619_v36  ;;  %v5009_v24 = vld [vmem:[%s6744_s17 + $0x390] sm:$0xf]  ;;  %v5014_v36 = vor.u32 %v6371_v23, %v5011_v25 }
 0x16c   : > { %3934 = vmatpush.bf16.msra.mxu0 %v4806_v18  ;;  %v4334_v10 = vmax.f32 %v3509_v7, 0.0  ;;  %v4618_v16 = vor.u32 %v6298_v2, %v4617_v4  ;;  %v5777_v18 = vld [vmem:[%s6744_s17 + $0x990] sm:$0xf]  ;;  %v5782_v26 = vor.u32 %v6563_v11, %v5779_v14  ;;  %v3548_v52 = vadd.f32 %v3547_v32, %v7216_v49  ;;  %v6540_v7 = vld [vmem:[%s6744_s17 + $0x8d4] sm:$0xf0] }
 0x16d   : > { %v5778_v34 = vor.u32 %v6587_v19, %v5777_v18  ;;  %v6443_v14 = vld [vmem:[%s6744_s17 + $0x5cc] sm:$0xf0] }
 0x16e   : > { %3984 = vmatpush.bf16.msrb.mxu1 %v5198_v54  ;;  %v4374_v28 = vpack.c.bf16 %v4335_v6, %v4334_v10  ;;  %v5393_v54 = vld [vmem:[%s6744_s17 + $0x690] sm:$0xf]  ;;  %v5593_v6 = vld [vmem:[%s6744_s17 + $0x818] sm:$0xf]  ;;  %v5787_v10 = vld [vmem:[%s6744_s17 + $0xa58] sm:$0xf0] }
 0x16f   : > { %3958 = vmatpush.bf16.msrb.mxu3 %v5194_v20  ;;  %3908 = vmatpush.bf16.msra.mxu2 %v4802_v29  ;;  %v3035_v20 = vsel %vm2925_vm0, %v2477_v5, 0  ;;  %v6515_v29 = vld [vmem:[%s6744_s17 + $0x814] sm:$0xf]  ;;  %v3497_v31 = vpop.f32.mrf.mxu2  ;;  %v5394_v2 = vor.u32 %v6491_v55, %v5393_v54  ;;  %v5790_v32 = vor.u32 %v6564_v15, %v5787_v10 }
 0x170   : > { %3935 = vmatpush.bf16.msra.mxu0 %v4614_v37  ;;  %v6636_v37 = vld [vmem:[%s6744_s17 + $0xbd4] sm:$0xf0]  ;;  %4398 = vst [vmem:[%s7264_s25 + $0x40] sm:$0xff] %v4374_v28  ;;  %v5590_v46 = vor.u32 %v6515_v29, %v5587_v30  ;;  %v5203_v5 = vld [vmem:[%s6744_s17 + $0x5d0] sm:$0xf0] }
 0x171   : > { %v5978_v47 = vor.u32 %v6636_v37, %v5977_v35  ;;  %v5206_v19 = vor.u32 %v6419_v63, %v5203_v5  ;;  %v5401_v28 = vld [vmem:[%s6744_s17 + $0x698] sm:$0xf]  ;;  %v6395_v31 = vld [vmem:[%s6744_s17 + $0x44c] sm:$0xf0]  ;;  %v6323_v37 = vld [vmem:[%s6744_s17 + $0x214] sm:$0xf] }
 0x172   : > { %3985 = vmatpush.bf16.msrb.mxu1 %v5006_v12  ;;  %v6166_v12 = vor.u32 %v6659_v57, %v6163_v59  ;;  %v625_v29 = vld [vmem:[%s6744_s17 + $0xe18] sm:$0x77]  ;;  %v5010_v45 = vor.u32 %v6395_v31, %v5009_v24  ;;  %v6275_v54 = vld [vmem:[%s6744_s17 + $0x94] sm:$0xf]  ;;  %v6299_v63 = vld [vmem:[%s6744_s17 + $0x14c] sm:$0xf0] }
 0x173   : > { %3959 = vmatpush.bf16.msrb.mxu3 %v5002_v38  ;;  %3909 = vmatpush.bf16.msra.mxu2 %v4610_v21  ;;  %v3573_v38 = vpop.f32.mrf.mxu1  ;;  %v3586_v21 = vpop.f32.mrf.mxu0  ;;  %v4627_v59 = vld [vmem:[%s6744_s17 + $0x150] sm:$0xf0]  ;;  %v5019_v31 = vld [vmem:[%s6744_s17 + $0x458] sm:$0xf0] }
 0x174   : > { %3999 = vmatpush.bf16.msrb.mxu0 %v3032_v40  ;;  %v5585_v40 = vld [vmem:[%s6744_s17 + $0x810] sm:$0xf]  ;;  %v3574_v22 = vadd.f32 %v3573_v38, %v7216_v49  ;;  %v3549_v4 = vpop.f32.mrf.mxu3  ;;  %v4819_v38 = vld [vmem:[%s6744_s17 + $0x2d0] sm:$0xf0] }
 0x175   : > { %3936 = vmatmul.bf16.vlgmr.msra.gmra.mxu0 %v6840_v58  ;;  %v4822_v3 = vor.u32 %v6323_v37, %v4819_v38 }
 0x176   : > { %3910 = vmatmul.bf16.vlgmr.msra.gmra.mxu2 %v6840_v58  ;;  %3986 = vmatpush.bf16.msrb.mxu1 %v4814_v33  ;;  %v3587_v53 = vadd.f32 %v3586_v21, %v3574_v22  ;;  %v6516_v33 = vld [vmem:[%s6744_s17 + $0x81c] sm:$0xf]  ;;  %v5209_v21 = vld [vmem:[%s6744_s17 + $0x518] sm:$0xf] }
 0x177   : > { %3973 = vmatpush.bf16.msrb.mxu2 %v3029_v41  ;;  %3960 = vmatpush.bf16.msrb.mxu3 %v4810_v60  ;;  %v6539_v41 = vld [vmem:[%s6744_s17 + $0x8cc] sm:$0xf0]  ;;  %v5786_v60 = vor.u32 %v6588_v51, %v5785_v50 }
 0x178   : > { %4000 = vmatpush.bf16.msrb.mxu0 %v6158_v1  ;;  %v5586_v43 = vor.u32 %v6539_v41, %v5585_v40  ;;  %v3560_v1 = vpop.f32.mrf.mxu2  ;;  %v2000_v40 = vunpack.c.h.b16 %v625_v29  ;;  %v1999_v41 = vunpack.c.l.b16 %v625_v29 }
 0x17a   : > { %3987 = vmatpush.bf16.msrb.mxu1 %v4622_v39  ;;  %v2480_v55 = vpack.c.b16 %v2000_v40, %v2000_v40 }
 0x17b   : > { %3974 = vmatpush.bf16.msrb.mxu2 %v6154_v9  ;;  %3961 = vmatpush.bf16.msrb.mxu3 %v4618_v16  ;;  %v3561_v9 = vadd.f32 %v3560_v1, %v3548_v52  ;;  %v3575_v11 = vpop.f32.mrf.mxu1  ;;  %v3588_v18 = vpop.f32.mrf.mxu0  ;;  %v6468_v52 = vld [vmem:[%s6744_s17 + $0x69c] sm:$0xf]  ;;  %v7734_v1 = vld [vmem:[%s6744_s17 + $0xe20] sm:$0x77] }
 0x17c   : > { %4032 = vmatpush.bf16.msra.mxu0 %v5974_v8  ;;  %v4337_v8 = vmax.f32 %v3587_v53, 0.0  ;;  %v5403_v53 = vld [vmem:[%s6744_s17 + $0x758] sm:$0xf0]  ;;  %v2001_v15 = vunpack.c.l.b16 %v7734_v1  ;;  %v6613_v18 = vld [vmem:[%s6744_s17 + $0xb24] sm:$0xf] }
 0x17d   : > { %v4336_v16 = vmax.f32 %v3561_v9, 0.0  ;;  %3988 = vmatmul.bf16.vlgmr.msrb.gmra.mxu1 %v6840_v58  ;;  %v5406_v4 = vor.u32 %v6468_v52, %v5403_v53  ;;  %v5211_v9 = vld [vmem:[%s6744_s17 + $0x5d8] sm:$0xf0]  ;;  %v6177_v52 = vld [vmem:[%s6744_s17 + $0xca0] sm:$0xf] }
 0x17e   : > { %3962 = vmatmul.bf16.vlgmr.msrb.gmra.mxu3 %v6840_v58  ;;  %4051 = vmatpush.bf16.msra.mxu1 %v3038_v56  ;;  %v2479_v56 = vpack.c.b16 %v1999_v41, %v1999_v41  ;;  %v2481_v37 = vpack.c.b16 %v2001_v15, %v2001_v15  ;;  %v6685_v53 = vld [vmem:[%s6744_s17 + $0xd5c] sm:$0xf0] }
 0x17f   : > { %4006 = vmatpush.bf16.msra.mxu2 %v5970_v13  ;;  %4025 = vmatpush.bf16.msra.mxu3 %v3035_v20  ;;  %v5201_v13 = vld [vmem:[%s6744_s17 + $0x510] sm:$0xf]  ;;  %v5594_v20 = vor.u32 %v6540_v7, %v5593_v6  ;;  %v4375_v30 = vpack.c.bf16 %v4337_v8, %v4336_v16  ;;  %v3044_v6 = vsel %vm2925_vm0, %v2480_v55, 0  ;;  %v6420_v8 = vld [vmem:[%s6744_s17 + $0x51c] sm:$0xf] }
 0x180   : > { %4033 = vmatpush.bf16.msra.mxu0 %v5782_v26  ;;  %v5202_v27 = vor.u32 %v6443_v14, %v5201_v13  ;;  %v6492_v26 = vld [vmem:[%s6744_s17 + $0x754] sm:$0xf0]  ;;  %v3562_v22 = vpop.f32.mrf.mxu2  ;;  %v3041_v7 = vsel %vm2925_vm0, %v2479_v56, 0  ;;  %v6171_v16 = vld [vmem:[%s6744_s17 + $0xd58] sm:$0xf0]  ;;  %v5214_v25 = vor.u32 %v6420_v8, %v5211_v9  ;;  %v6178_v9 = vor.u32 %v6685_v53, %v6177_v52 }
 0x181   : > { %4399 = vst [vmem:[%s7264_s25 + $0x48] sm:$0xff] %v4375_v30  ;;  %v5402_v35 = vor.u32 %v6492_v26, %v5401_v28  ;;  %v4825_v13 = vld [vmem:[%s6744_s17 + $0x218] sm:$0xf]  ;;  %v6372_v26 = vld [vmem:[%s6744_s17 + $0x39c] sm:$0xf] }
 0x182   : > { %4052 = vmatpush.bf16.msra.mxu1 %v6166_v12  ;;  %v4626_v12 = vor.u32 %v6299_v63, %v4625_v62  ;;  %v6348_v14 = vld [vmem:[%s6744_s17 + $0x2d4] sm:$0xf0]  ;;  %v6373_v52 = vld [vmem:[%s6744_s17 + $0x3a4] sm:$0xf] }
 0x183   : > { %4007 = vmatpush.bf16.msra.mxu2 %v5778_v34  ;;  %4026 = vmatpush.bf16.msra.mxu3 %v6162_v42  ;;  %v5595_v34 = vld [vmem:[%s6744_s17 + $0x8d8] sm:$0xf0]  ;;  %v7716_v42 = vpop.f32.mrf.mxu3  ;;  %v3638_v39 = vpop.f32.mrf.mxu1  ;;  %v6684_v28 = vld [vmem:[%s6744_s17 + $0xd54] sm:$0xf0]  ;;  %v4826_v24 = vor.u32 %v6348_v14, %v4825_v13  ;;  %v5027_v53 = vld [vmem:[%s6744_s17 + $0x460] sm:$0xf0] }
 0x184   : > { %4034 = vmatpush.bf16.msra.mxu0 %v5590_v46  ;;  %v6444_v46 = vld [vmem:[%s6744_s17 + $0x5d4] sm:$0xf0]  ;;  %v3625_v50 = vpop.f32.mrf.mxu0 }
 0x185   : > { %6242 = vmatmul.msk.bf16.vlgmr.msrb.gmra.mxu0 %vm2921_vm1, %v6782_v44  ;;  %v5210_v51 = vor.u32 %v6444_v46, %v5209_v21  ;;  %v3626_v61 = vadd.f32 %v3625_v50, %v7216_v49  ;;  %v5022_v21 = vor.u32 %v6372_v26, %v5019_v31  ;;  %v6589_v50 = vld [vmem:[%s6744_s17 + $0xa5c] sm:$0xf0]  ;;  %v6661_v26 = vld [vmem:[%s6744_s17 + $0xca4] sm:$0xf]  ;;  %v6614_v31 = vld [vmem:[%s6744_s17 + $0xb2c] sm:$0xf] }
 0x186   : > { %6241 = vmatmul.msk.bf16.vlgmr.msrb.gmra.mxu2 %vm2921_vm1, %v6782_v44  ;;  %4084 = vmatpush.bf16.msrb.mxu1 %v5982_v0  ;;  %v6660_v0 = vld [vmem:[%s6744_s17 + $0xc9c] sm:$0xf] }
 0x187   : > { %4058 = vmatpush.bf16.msrb.mxu3 %v5978_v47  ;;  %4008 = vmatpush.bf16.msra.mxu2 %v5586_v43  ;;  %v4817_v47 = vld [vmem:[%s6744_s17 + $0x210] sm:$0xf]  ;;  %v5598_v43 = vor.u32 %v6516_v33, %v5595_v34  ;;  %v3639_v10 = vadd.f32 %v3638_v39, %v3626_v61  ;;  %v6637_v33 = vld [vmem:[%s6744_s17 + $0xbdc] sm:$0xf0]  ;;  %v6174_v34 = vor.u32 %v6660_v0, %v6171_v16  ;;  %v4827_v39 = vld [vmem:[%s6744_s17 + $0x2d8] sm:$0xf0] }
 0x188   : > { %4035 = vmatpush.bf16.msra.mxu0 %v5398_v17  ;;  %v4818_v57 = vor.u32 %v6347_v48, %v4817_v47  ;;  %v5017_v17 = vld [vmem:[%s6744_s17 + $0x398] sm:$0xf]  ;;  %v5795_v47 = vld [vmem:[%s6744_s17 + $0xa60] sm:$0xf0]  ;;  %v6324_v48 = vld [vmem:[%s6744_s17 + $0x21c] sm:$0xf] }
 0x189   : > { %v4339_v38 = vmax.f32 %v3639_v10, 0.0  ;;  %v4830_v62 = vor.u32 %v6324_v48, %v4827_v39  ;;  %v6469_v0 = vld [vmem:[%s6744_s17 + $0x6a4] sm:$0xf]  ;;  %v6566_v39 = vld [vmem:[%s6744_s17 + $0x9ac] sm:$0xf] }
 0x18a   : > { %4085 = vmatpush.bf16.msrb.mxu1 %v5790_v32  ;;  %v5985_v32 = vld [vmem:[%s6744_s17 + $0xb20] sm:$0xf]  ;;  %v5411_v16 = vld [vmem:[%s6744_s17 + $0x760] sm:$0xf0] }
 0x18b   : > { %4059 = vmatpush.bf16.msrb.mxu3 %v5786_v60  ;;  %4009 = vmatpush.bf16.msra.mxu2 %v5394_v2  ;;  %v6396_v60 = vld [vmem:[%s6744_s17 + $0x454] sm:$0xf0]  ;;  %v4630_v2 = vor.u32 %v6275_v54, %v4627_v59  ;;  %v3614_v11 = vpop.f32.mrf.mxu3  ;;  %v3640_v23 = vpop.f32.mrf.mxu1  ;;  %v5986_v46 = vor.u32 %v6637_v33, %v5985_v32  ;;  %v2002_v54 = vunpack.c.h.b16 %v7734_v1  ;;  %v5603_v59 = vld [vmem:[%s6744_s17 + $0x8e0] sm:$0xf0]  ;;  %v5993_v1 = vld [vmem:[%s6744_s17 + $0xb28] sm:$0xf] }
 0x18c   : > { %4036 = vmatpush.bf16.msra.mxu0 %v5206_v19  ;;  %v5018_v5 = vor.u32 %v6396_v60, %v5017_v17  ;;  %v5987_v19 = vld [vmem:[%s6744_s17 + $0xbe0] sm:$0xf0]  ;;  %v3627_v30 = vpop.f32.mrf.mxu0  ;;  %v6276_v17 = vld [vmem:[%s6744_s17 + $0x9c] sm:$0xf]  ;;  %v5995_v32 = vld [vmem:[%s6744_s17 + $0xbe8] sm:$0xf0] }
 0x18d   : > { %6244 = vmatmul.msk.bf16.vlgmr.msra.gmra.mxu1 %vm2921_vm1, %v6782_v44  ;;  %v5990_v41 = vor.u32 %v6613_v18, %v5987_v19  ;;  %v2482_v11 = vpack.c.b16 %v2002_v54, %v2002_v54  ;;  %v5801_v18 = vld [vmem:[%s6744_s17 + $0x9a8] sm:$0xf]  ;;  %v5414_v30 = vor.u32 %v6469_v0, %v5411_v16  ;;  %v6421_v33 = vld [vmem:[%s6744_s17 + $0x524] sm:$0xf]  ;;  %v5998_v48 = vor.u32 %v6614_v31, %v5995_v32  ;;  %v6349_v0 = vld [vmem:[%s6744_s17 + $0x2dc] sm:$0xf0] }
 0x18e   : > { %6243 = vmatmul.msk.bf16.vlgmr.msra.gmra.mxu3 %vm2921_vm1, %v6782_v44  ;;  %4086 = vmatpush.bf16.msrb.mxu1 %v5598_v43  ;;  %v6590_v19 = vld [vmem:[%s6744_s17 + $0xa64] sm:$0xf0]  ;;  %v4641_v32 = vld [vmem:[%s6744_s17 + $0xa0] sm:$0xf] }
 0x18f   : > { %4060 = vmatpush.bf16.msrb.mxu3 %v5594_v20  ;;  %4010 = vmatpush.bf16.msra.mxu2 %v5202_v27  ;;  %v3599_v20 = vpop.f32.mrf.mxu2  ;;  %v6169_v27 = vld [vmem:[%s6744_s17 + $0xc98] sm:$0xf] }
 0x190   : > { %4037 = vmatpush.bf16.msra.mxu0 %v5014_v36  ;;  %v3600_v29 = vadd.f32 %v3599_v20, %v7216_v49  ;;  %v4633_v36 = vld [vmem:[%s6744_s17 + $0x98] sm:$0xf]  ;;  %v6170_v22 = vor.u32 %v6684_v28, %v6169_v27  ;;  %v6493_v27 = vld [vmem:[%s6744_s17 + $0x75c] sm:$0xf0]  ;;  %v3050_v28 = vsel %vm2925_vm0, %v2482_v11, 0 }
 0x192   : > { %4087 = vmatpush.bf16.msrb.mxu1 %v5406_v4  ;;  %v3613_v40 = vadd.f32 %v7716_v42, %v3600_v29  ;;  %v4635_v4 = vld [vmem:[%s6744_s17 + $0x158] sm:$0xf0]  ;;  %v6179_v29 = vld [vmem:[%s6744_s17 + $0xd60] sm:$0xf0] }
 0x193   : > { %4061 = vmatpush.bf16.msrb.mxu3 %v5402_v35  ;;  %4011 = vmatpush.bf16.msra.mxu2 %v5010_v45  ;;  %v6300_v35 = vld [vmem:[%s6744_s17 + $0x154] sm:$0xf0]  ;;  %v6565_v45 = vld [vmem:[%s6744_s17 + $0x9a4] sm:$0xf]  ;;  %v3651_v61 = vpop.f32.mrf.mxu3  ;;  %v4638_v15 = vor.u32 %v6276_v17, %v4635_v4  ;;  %v5025_v17 = vld [vmem:[%s6744_s17 + $0x3a0] sm:$0xf]  ;;  %v5030_v4 = vor.u32 %v6373_v52, %v5027_v53 }
 0x194   : > { %4038 = vmatpush.bf16.msra.mxu0 %v4822_v3  ;;  %v4338_v42 = vmax.f32 %v3613_v40, 0.0  ;;  %v4634_v43 = vor.u32 %v6300_v35, %v4633_v36  ;;  %v5793_v3 = vld [vmem:[%s6744_s17 + $0x9a0] sm:$0xf]  ;;  %v5798_v56 = vor.u32 %v6565_v45, %v5795_v47  ;;  %v3652_v20 = vadd.f32 %v3651_v61, %v7216_v49  ;;  %v6542_v40 = vld [vmem:[%s6744_s17 + $0x8e4] sm:$0xf0] }
 0x195   : > { %v5794_v63 = vor.u32 %v6589_v50, %v5793_v3  ;;  %v6445_v47 = vld [vmem:[%s6744_s17 + $0x5dc] sm:$0xf0] }
 0x196   : > { %4088 = vmatpush.bf16.msrb.mxu1 %v5214_v25  ;;  %v4376_v55 = vpack.c.bf16 %v4339_v38, %v4338_v42  ;;  %v5409_v25 = vld [vmem:[%s6744_s17 + $0x6a0] sm:$0xf]  ;;  %v5609_v38 = vld [vmem:[%s6744_s17 + $0x828] sm:$0xf]  ;;  %v5803_v42 = vld [vmem:[%s6744_s17 + $0xa68] sm:$0xf0] }
 0x197   : > { %4062 = vmatpush.bf16.msrb.mxu3 %v5210_v51  ;;  %4012 = vmatpush.bf16.msra.mxu2 %v4818_v57  ;;  %v3047_v51 = vsel %vm2925_vm0, %v2481_v37, 0  ;;  %v6517_v57 = vld [vmem:[%s6744_s17 + $0x824] sm:$0xf]  ;;  %v3601_v60 = vpop.f32.mrf.mxu2  ;;  %v5410_v35 = vor.u32 %v6493_v27, %v5409_v25  ;;  %v5806_v61 = vor.u32 %v6566_v39, %v5803_v42 }
 0x198   : > { %4039 = vmatpush.bf16.msra.mxu0 %v4630_v2  ;;  %v6638_v2 = vld [vmem:[%s6744_s17 + $0xbe4] sm:$0xf0]  ;;  %4400 = vst [vmem:[%s7264_s25 + $0x50] sm:$0xff] %v4376_v55  ;;  %v5606_v13 = vor.u32 %v6517_v57, %v5603_v59  ;;  %v5219_v37 = vld [vmem:[%s6744_s17 + $0x5e0] sm:$0xf0] }
 0x199   : > { %v5994_v14 = vor.u32 %v6638_v2, %v5993_v1  ;;  %v5222_v50 = vor.u32 %v6421_v33, %v5219_v37  ;;  %v5417_v55 = vld [vmem:[%s6744_s17 + $0x6a8] sm:$0xf]  ;;  %v6397_v60 = vld [vmem:[%s6744_s17 + $0x45c] sm:$0xf0]  ;;  %v6325_v2 = vld [vmem:[%s6744_s17 + $0x224] sm:$0xf] }
 0x19a   : > { %4089 = vmatpush.bf16.msrb.mxu1 %v5022_v21  ;;  %v6182_v21 = vor.u32 %v6661_v26, %v6179_v29  ;;  %v627_v57 = vld [vmem:[%s6744_s17 + $0xe28] sm:$0x77]  ;;  %v5026_v11 = vor.u32 %v6397_v60, %v5025_v17  ;;  %v6277_v25 = vld [vmem:[%s6744_s17 + $0xa4] sm:$0xf]  ;;  %v6301_v33 = vld [vmem:[%s6744_s17 + $0x15c] sm:$0xf0] }
 0x19b   : > { %4063 = vmatpush.bf16.msrb.mxu3 %v5018_v5  ;;  %4013 = vmatpush.bf16.msra.mxu2 %v4626_v12  ;;  %v3677_v5 = vpop.f32.mrf.mxu1  ;;  %v3690_v12 = vpop.f32.mrf.mxu0  ;;  %v4643_v29 = vld [vmem:[%s6744_s17 + $0x160] sm:$0xf0]  ;;  %v5035_v60 = vld [vmem:[%s6744_s17 + $0x468] sm:$0xf0] }
 0x19c   : > { %4103 = vmatpush.bf16.msrb.mxu0 %v3044_v6  ;;  %v5601_v6 = vld [vmem:[%s6744_s17 + $0x820] sm:$0xf]  ;;  %v3678_v8 = vadd.f32 %v3677_v5, %v7216_v49  ;;  %v3653_v36 = vpop.f32.mrf.mxu3  ;;  %v4835_v5 = vld [vmem:[%s6744_s17 + $0x2e0] sm:$0xf0] }
 0x19d   : > { %4040 = vmatmul.bf16.vlgmr.msra.gmra.mxu0 %v6840_v58  ;;  %v4838_v16 = vor.u32 %v6325_v2, %v4835_v5 }
 0x19e   : > { %4014 = vmatmul.bf16.vlgmr.msra.gmra.mxu2 %v6840_v58  ;;  %4090 = vmatpush.bf16.msrb.mxu1 %v4830_v62  ;;  %v3691_v23 = vadd.f32 %v3690_v12, %v3678_v8  ;;  %v6518_v62 = vld [vmem:[%s6744_s17 + $0x82c] sm:$0xf]  ;;  %v5225_v12 = vld [vmem:[%s6744_s17 + $0x528] sm:$0xf] }
 0x19f   : > { %4077 = vmatpush.bf16.msrb.mxu2 %v3041_v7  ;;  %4064 = vmatpush.bf16.msrb.mxu3 %v4826_v24  ;;  %v6541_v7 = vld [vmem:[%s6744_s17 + $0x8dc] sm:$0xf0]  ;;  %v5802_v24 = vor.u32 %v6590_v19, %v5801_v18 }
 0x1a0   : > { %4104 = vmatpush.bf16.msrb.mxu0 %v6174_v34  ;;  %v5602_v10 = vor.u32 %v6541_v7, %v5601_v6  ;;  %v3664_v34 = vpop.f32.mrf.mxu2  ;;  %v2004_v6 = vunpack.c.h.b16 %v627_v57  ;;  %v2003_v7 = vunpack.c.l.b16 %v627_v57 }
 0x1a2   : > { %4091 = vmatpush.bf16.msrb.mxu1 %v4638_v15  ;;  %v2484_v27 = vpack.c.b16 %v2004_v6, %v2004_v6 }
 0x1a3   : > { %4078 = vmatpush.bf16.msrb.mxu2 %v6170_v22  ;;  %4065 = vmatpush.bf16.msrb.mxu3 %v4634_v43  ;;  %v3665_v22 = vadd.f32 %v3664_v34, %v3652_v20  ;;  %v3679_v45 = vpop.f32.mrf.mxu1  ;;  %v3692_v3 = vpop.f32.mrf.mxu0  ;;  %v6470_v20 = vld [vmem:[%s6744_s17 + $0x6ac] sm:$0xf]  ;;  %v7837_v34 = vld [vmem:[%s6744_s17 + $0xe30] sm:$0x77] }
 0x1a4   : > { %4136 = vmatpush.bf16.msra.mxu0 %v5990_v41  ;;  %v4341_v41 = vmax.f32 %v3691_v23, 0.0  ;;  %v5419_v23 = vld [vmem:[%s6744_s17 + $0x768] sm:$0xf0]  ;;  %v2005_v39 = vunpack.c.l.b16 %v7837_v34  ;;  %v6615_v3 = vld [vmem:[%s6744_s17 + $0xb34] sm:$0xf] }
 0x1a5   : > { %v4340_v43 = vmax.f32 %v3665_v22, 0.0  ;;  %4092 = vmatmul.bf16.vlgmr.msrb.gmra.mxu1 %v6840_v58  ;;  %v5422_v36 = vor.u32 %v6470_v20, %v5419_v23  ;;  %v5227_v22 = vld [vmem:[%s6744_s17 + $0x5e8] sm:$0xf0]  ;;  %v6193_v20 = vld [vmem:[%s6744_s17 + $0xcb0] sm:$0xf] }
 0x1a6   : > { %4066 = vmatmul.bf16.vlgmr.msrb.gmra.mxu3 %v6840_v58  ;;  %4155 = vmatpush.bf16.msra.mxu1 %v3050_v28  ;;  %v2483_v28 = vpack.c.b16 %v2003_v7, %v2003_v7  ;;  %v2485_v2 = vpack.c.b16 %v2005_v39, %v2005_v39  ;;  %v6687_v23 = vld [vmem:[%s6744_s17 + $0xd6c] sm:$0xf0] }
 0x1a7   : > { %4110 = vmatpush.bf16.msra.mxu2 %v5986_v46  ;;  %4129 = vmatpush.bf16.msra.mxu3 %v3047_v51  ;;  %v5217_v46 = vld [vmem:[%s6744_s17 + $0x520] sm:$0xf]  ;;  %v5610_v51 = vor.u32 %v6542_v40, %v5609_v38  ;;  %v4377_v59 = vpack.c.bf16 %v4341_v41, %v4340_v43  ;;  %v3056_v38 = vsel %vm2925_vm0, %v2484_v27, 0  ;;  %v6422_v41 = vld [vmem:[%s6744_s17 + $0x52c] sm:$0xf] }
 0x1a8   : > { %4137 = vmatpush.bf16.msra.mxu0 %v5798_v56  ;;  %v5218_v54 = vor.u32 %v6445_v47, %v5217_v46  ;;  %v6494_v56 = vld [vmem:[%s6744_s17 + $0x764] sm:$0xf0]  ;;  %v3666_v8 = vpop.f32.mrf.mxu2  ;;  %v3053_v40 = vsel %vm2925_vm0, %v2483_v28, 0  ;;  %v6187_v43 = vld [vmem:[%s6744_s17 + $0xd68] sm:$0xf0]  ;;  %v5230_v53 = vor.u32 %v6422_v41, %v5227_v22  ;;  %v6194_v22 = vor.u32 %v6687_v23, %v6193_v20 }
 0x1a9   : > { %4401 = vst [vmem:[%s7264_s25 + $0x58] sm:$0xff] %v4377_v59  ;;  %v5418_v1 = vor.u32 %v6494_v56, %v5417_v55  ;;  %v4841_v46 = vld [vmem:[%s6744_s17 + $0x228] sm:$0xf]  ;;  %v6374_v56 = vld [vmem:[%s6744_s17 + $0x3ac] sm:$0xf] }
 0x1aa   : > { %4156 = vmatpush.bf16.msra.mxu1 %v6182_v21  ;;  %v4642_v21 = vor.u32 %v6301_v33, %v4641_v32  ;;  %v6350_v47 = vld [vmem:[%s6744_s17 + $0x2e4] sm:$0xf0]  ;;  %v6375_v20 = vld [vmem:[%s6744_s17 + $0x3b4] sm:$0xf] }
 0x1ab   : > { %4111 = vmatpush.bf16.msra.mxu2 %v5794_v63  ;;  %4130 = vmatpush.bf16.msra.mxu3 %v6178_v9  ;;  %v5611_v63 = vld [vmem:[%s6744_s17 + $0x8e8] sm:$0xf0]  ;;  %v7819_v9 = vpop.f32.mrf.mxu3  ;;  %v3742_v15 = vpop.f32.mrf.mxu1  ;;  %v6686_v55 = vld [vmem:[%s6744_s17 + $0xd64] sm:$0xf0]  ;;  %v4842_v17 = vor.u32 %v6350_v47, %v4841_v46 }
 0x1ac   : > { %4138 = vmatpush.bf16.msra.mxu0 %v5606_v13  ;;  %v6446_v13 = vld [vmem:[%s6744_s17 + $0x5e4] sm:$0xf0]  ;;  %v3729_v18 = vpop.f32.mrf.mxu0 }
 0x1ad   : > { %6246 = vmatmul.msk.bf16.vlgmr.msrb.gmra.mxu0 %vm2921_vm1, %v6782_v44  ;;  %v5226_v19 = vor.u32 %v6446_v13, %v5225_v12  ;;  %v3730_v31 = vadd.f32 %v3729_v18, %v7216_v49  ;;  %v5038_v12 = vor.u32 %v6374_v56, %v5035_v60  ;;  %v6591_v18 = vld [vmem:[%s6744_s17 + $0xa6c] sm:$0xf0]  ;;  %v6663_v56 = vld [vmem:[%s6744_s17 + $0xcb4] sm:$0xf]  ;;  %v6616_v60 = vld [vmem:[%s6744_s17 + $0xb3c] sm:$0xf] }
 0x1ae   : > { %6245 = vmatmul.msk.bf16.vlgmr.msrb.gmra.mxu2 %vm2921_vm1, %v6782_v44  ;;  %4188 = vmatpush.bf16.msrb.mxu1 %v5998_v48  ;;  %v6662_v48 = vld [vmem:[%s6744_s17 + $0xcac] sm:$0xf] }
 0x1af   : > { %4162 = vmatpush.bf16.msrb.mxu3 %v5994_v14  ;;  %4112 = vmatpush.bf16.msra.mxu2 %v5602_v10  ;;  %v4833_v14 = vld [vmem:[%s6744_s17 + $0x220] sm:$0xf]  ;;  %v5614_v10 = vor.u32 %v6518_v62, %v5611_v63  ;;  %v3743_v42 = vadd.f32 %v3742_v15, %v3730_v31  ;;  %v6639_v62 = vld [vmem:[%s6744_s17 + $0xbec] sm:$0xf0]  ;;  %v6190_v63 = vor.u32 %v6662_v48, %v6187_v43  ;;  %v4843_v15 = vld [vmem:[%s6744_s17 + $0x2e8] sm:$0xf0] }
 0x1b0   : > { %4139 = vmatpush.bf16.msra.mxu0 %v5414_v30  ;;  %v4834_v26 = vor.u32 %v6349_v0, %v4833_v14  ;;  %v5033_v30 = vld [vmem:[%s6744_s17 + $0x3a8] sm:$0xf]  ;;  %v5811_v14 = vld [vmem:[%s6744_s17 + $0xa70] sm:$0xf0]  ;;  %v6326_v0 = vld [vmem:[%s6744_s17 + $0x22c] sm:$0xf] }
 0x1b1   : > { %v4343_v5 = vmax.f32 %v3743_v42, 0.0  ;;  %v4846_v32 = vor.u32 %v6326_v0, %v4843_v15  ;;  %v6471_v48 = vld [vmem:[%s6744_s17 + $0x6b4] sm:$0xf]  ;;  %v6568_v15 = vld [vmem:[%s6744_s17 + $0x9bc] sm:$0xf] }
 0x1b2   : > { %4189 = vmatpush.bf16.msrb.mxu1 %v5806_v61  ;;  %v6001_v61 = vld [vmem:[%s6744_s17 + $0xb30] sm:$0xf]  ;;  %v5427_v43 = vld [vmem:[%s6744_s17 + $0x770] sm:$0xf0] }
 0x1b3   : > { %4163 = vmatpush.bf16.msrb.mxu3 %v5802_v24  ;;  %4113 = vmatpush.bf16.msra.mxu2 %v5410_v35  ;;  %v6398_v24 = vld [vmem:[%s6744_s17 + $0x464] sm:$0xf0]  ;;  %v4646_v35 = vor.u32 %v6277_v25, %v4643_v29  ;;  %v3718_v45 = vpop.f32.mrf.mxu3  ;;  %v3744_v52 = vpop.f32.mrf.mxu1  ;;  %v6002_v13 = vor.u32 %v6639_v62, %v6001_v61  ;;  %v2006_v25 = vunpack.c.h.b16 %v7837_v34  ;;  %v5619_v29 = vld [vmem:[%s6744_s17 + $0x8f0] sm:$0xf0]  ;;  %v6009_v34 = vld [vmem:[%s6744_s17 + $0xb38] sm:$0xf] }
 0x1b4   : > { %4140 = vmatpush.bf16.msra.mxu0 %v5222_v50  ;;  %v5034_v37 = vor.u32 %v6398_v24, %v5033_v30  ;;  %v6003_v50 = vld [vmem:[%s6744_s17 + $0xbf0] sm:$0xf0]  ;;  %v3731_v59 = vpop.f32.mrf.mxu0  ;;  %v6278_v30 = vld [vmem:[%s6744_s17 + $0xac] sm:$0xf]  ;;  %v6011_v61 = vld [vmem:[%s6744_s17 + $0xbf8] sm:$0xf0] }
 0x1b5   : > { %6248 = vmatmul.msk.bf16.vlgmr.msra.gmra.mxu1 %vm2921_vm1, %v6782_v44  ;;  %v6006_v7 = vor.u32 %v6615_v3, %v6003_v50  ;;  %v2486_v45 = vpack.c.b16 %v2006_v25, %v2006_v25  ;;  %v5817_v3 = vld [vmem:[%s6744_s17 + $0x9b8] sm:$0xf]  ;;  %v5430_v59 = vor.u32 %v6471_v48, %v5427_v43  ;;  %v6423_v62 = vld [vmem:[%s6744_s17 + $0x534] sm:$0xf]  ;;  %v6014_v0 = vor.u32 %v6616_v60, %v6011_v61  ;;  %v6303_v60 = vld [vmem:[%s6744_s17 + $0x16c] sm:$0xf0] }
 0x1b6   : > { %6247 = vmatmul.msk.bf16.vlgmr.msra.gmra.mxu3 %vm2921_vm1, %v6782_v44  ;;  %4190 = vmatpush.bf16.msrb.mxu1 %v5614_v10  ;;  %v6592_v50 = vld [vmem:[%s6744_s17 + $0xa74] sm:$0xf0]  ;;  %v5043_v25 = vld [vmem:[%s6744_s17 + $0x470] sm:$0xf0] }
 0x1b7   : > { %4164 = vmatpush.bf16.msrb.mxu3 %v5610_v51  ;;  %4114 = vmatpush.bf16.msra.mxu2 %v5218_v54  ;;  %v3703_v51 = vpop.f32.mrf.mxu2  ;;  %v6185_v54 = vld [vmem:[%s6744_s17 + $0xca8] sm:$0xf] }
 0x1b8   : > { %4141 = vmatpush.bf16.msra.mxu0 %v5030_v4  ;;  %v3704_v57 = vadd.f32 %v3703_v51, %v7216_v49  ;;  %v4649_v4 = vld [vmem:[%s6744_s17 + $0xa8] sm:$0xf]  ;;  %v6186_v8 = vor.u32 %v6686_v55, %v6185_v54  ;;  %v6495_v54 = vld [vmem:[%s6744_s17 + $0x76c] sm:$0xf0]  ;;  %v3062_v55 = vsel %vm2925_vm0, %v2486_v45, 0 }
 0x1b9   : > { %v6448_v45 = vld [vmem:[%s6744_s17 + $0x5f4] sm:$0xf0] }
 0x1ba   : > { %4191 = vmatpush.bf16.msrb.mxu1 %v5422_v36  ;;  %v3717_v6 = vadd.f32 %v7819_v9, %v3704_v57  ;;  %v4651_v36 = vld [vmem:[%s6744_s17 + $0x168] sm:$0xf0]  ;;  %v6195_v57 = vld [vmem:[%s6744_s17 + $0xd70] sm:$0xf0] }
 0x1bb   : > { %4165 = vmatpush.bf16.msrb.mxu3 %v5418_v1  ;;  %4115 = vmatpush.bf16.msra.mxu2 %v5026_v11  ;;  %v6302_v1 = vld [vmem:[%s6744_s17 + $0x164] sm:$0xf0]  ;;  %v6567_v11 = vld [vmem:[%s6744_s17 + $0x9b4] sm:$0xf]  ;;  %v3755_v31 = vpop.f32.mrf.mxu3  ;;  %v4654_v39 = vor.u32 %v6278_v30, %v4651_v36  ;;  %v6399_v30 = vld [vmem:[%s6744_s17 + $0x46c] sm:$0xf0] }
 0x1bc   : > { %4142 = vmatpush.bf16.msra.mxu0 %v4838_v16  ;;  %v4342_v9 = vmax.f32 %v3717_v6, 0.0  ;;  %v4650_v10 = vor.u32 %v6302_v1, %v4649_v4  ;;  %v5809_v16 = vld [vmem:[%s6744_s17 + $0x9b0] sm:$0xf]  ;;  %v5814_v28 = vor.u32 %v6567_v11, %v5811_v14  ;;  %v3756_v51 = vadd.f32 %v3755_v31, %v7216_v49  ;;  %v6544_v6 = vld [vmem:[%s6744_s17 + $0x8f4] sm:$0xf0] }
 0x1bd   : > { %v5810_v33 = vor.u32 %v6591_v18, %v5809_v16  ;;  %v6447_v14 = vld [vmem:[%s6744_s17 + $0x5ec] sm:$0xf0]  ;;  %v6520_v31 = vld [vmem:[%s6744_s17 + $0x83c] sm:$0xf] }
 0x1be   : > { %4192 = vmatpush.bf16.msrb.mxu1 %v5230_v53  ;;  %v4378_v27 = vpack.c.bf16 %v4343_v5, %v4342_v9  ;;  %v5425_v53 = vld [vmem:[%s6744_s17 + $0x6b0] sm:$0xf]  ;;  %v5625_v5 = vld [vmem:[%s6744_s17 + $0x838] sm:$0xf] }
 0x1bf   : > { %4166 = vmatpush.bf16.msrb.mxu3 %v5226_v19  ;;  %4116 = vmatpush.bf16.msra.mxu2 %v4834_v26  ;;  %v3059_v19 = vsel %vm2925_vm0, %v2485_v2, 0  ;;  %v6519_v26 = vld [vmem:[%s6744_s17 + $0x834] sm:$0xf]  ;;  %v3705_v24 = vpop.f32.mrf.mxu2  ;;  %v5426_v1 = vor.u32 %v6495_v54, %v5425_v53  ;;  %v5626_v18 = vor.u32 %v6544_v6, %v5625_v5  ;;  %v5243_v5 = vld [vmem:[%s6744_s17 + $0x5f8] sm:$0xf0] }
 0x1c0   : > { %4143 = vmatpush.bf16.msra.mxu0 %v4646_v35  ;;  %v6640_v35 = vld [vmem:[%s6744_s17 + $0xbf4] sm:$0xf0]  ;;  %4402 = vst [vmem:[%s7264_s25 + $0x60] sm:$0xff] %v4378_v27  ;;  %v5622_v46 = vor.u32 %v6519_v26, %v5619_v29  ;;  %v5235_v2 = vld [vmem:[%s6744_s17 + $0x5f0] sm:$0xf0] }
 0x1c1   : > { %v6010_v47 = vor.u32 %v6640_v35, %v6009_v34  ;;  %v5238_v16 = vor.u32 %v6423_v62, %v5235_v2  ;;  %v5433_v27 = vld [vmem:[%s6744_s17 + $0x6b8] sm:$0xf]  ;;  %v5041_v29 = vld [vmem:[%s6744_s17 + $0x3b0] sm:$0xf]  ;;  %v5627_v34 = vld [vmem:[%s6744_s17 + $0x8f8] sm:$0xf0] }
 0x1c2   : > { %4193 = vmatpush.bf16.msrb.mxu1 %v5038_v12  ;;  %v6198_v12 = vor.u32 %v6663_v56, %v6195_v57  ;;  %v6327_v35 = vld [vmem:[%s6744_s17 + $0x234] sm:$0xf]  ;;  %v5049_v56 = vld [vmem:[%s6744_s17 + $0x3b8] sm:$0xf]  ;;  %v6424_v2 = vld [vmem:[%s6744_s17 + $0x53c] sm:$0xf] }
 0x1c3   : > { %4167 = vmatpush.bf16.msrb.mxu3 %v5034_v37  ;;  %4117 = vmatpush.bf16.msra.mxu2 %v4642_v21  ;;  %v3781_v37 = vpop.f32.mrf.mxu1  ;;  %v3794_v21 = vpop.f32.mrf.mxu0  ;;  %v6279_v53 = vld [vmem:[%s6744_s17 + $0xb4] sm:$0xf]  ;;  %v6400_v57 = vld [vmem:[%s6744_s17 + $0x474] sm:$0xf0] }
 0x1c4   : > { %4207 = vmatpush.bf16.msrb.mxu0 %v3056_v38  ;;  %v5617_v38 = vld [vmem:[%s6744_s17 + $0x830] sm:$0xf]  ;;  %v3782_v41 = vadd.f32 %v3781_v37, %v7216_v49  ;;  %v3757_v4 = vpop.f32.mrf.mxu3 }
 0x1c5   : > { %4144 = vmatmul.bf16.vlgmr.msra.gmra.mxu0 %v6840_v58 }
 0x1c6   : > { %4118 = vmatmul.bf16.vlgmr.msra.gmra.mxu2 %v6840_v58  ;;  %4194 = vmatpush.bf16.msrb.mxu1 %v4846_v32  ;;  %v3795_v52 = vadd.f32 %v3794_v21, %v3782_v41  ;;  %v629_v32 = vld [vmem:[%s6744_s17 + $0xe38] sm:$0x77]  ;;  %v4851_v41 = vld [vmem:[%s6744_s17 + $0x2f0] sm:$0xf0]  ;;  %v4849_v21 = vld [vmem:[%s6744_s17 + $0x230] sm:$0xf] }
 0x1c7   : > { %4181 = vmatpush.bf16.msrb.mxu2 %v3053_v40  ;;  %4168 = vmatpush.bf16.msrb.mxu3 %v4842_v17  ;;  %v6543_v40 = vld [vmem:[%s6744_s17 + $0x8ec] sm:$0xf0]  ;;  %v5818_v17 = vor.u32 %v6592_v50, %v5817_v3  ;;  %v2008_v48 = vunpack.c.h.b16 %v629_v32  ;;  %v4854_v3 = vor.u32 %v6327_v35, %v4851_v41  ;;  %v6328_v35 = vld [vmem:[%s6744_s17 + $0x23c] sm:$0xf] }
 0x1c8   : > { %4208 = vmatpush.bf16.msrb.mxu0 %v6190_v63  ;;  %v5618_v42 = vor.u32 %v6543_v40, %v5617_v38  ;;  %v3768_v63 = vpop.f32.mrf.mxu2  ;;  %v5042_v40 = vor.u32 %v6399_v30, %v5041_v29  ;;  %v6304_v29 = vld [vmem:[%s6744_s17 + $0x174] sm:$0xf0] }
 0x1c9   : > { %v2488_v62 = vpack.c.b16 %v2008_v48, %v2008_v48 }
 0x1ca   : > { %4195 = vmatpush.bf16.msrb.mxu1 %v4654_v39 }
 0x1cb   : > { %4182 = vmatpush.bf16.msrb.mxu2 %v6186_v8  ;;  %4169 = vmatpush.bf16.msrb.mxu3 %v4650_v10  ;;  %v3769_v8 = vadd.f32 %v3768_v63, %v3756_v51  ;;  %v3783_v11 = vpop.f32.mrf.mxu1  ;;  %v3796_v10 = vpop.f32.mrf.mxu0  ;;  %v6472_v51 = vld [vmem:[%s6744_s17 + $0x6bc] sm:$0xf] }
 0x1cc   : > { %4240 = vmatpush.bf16.msra.mxu0 %v6006_v7  ;;  %v4345_v7 = vmax.f32 %v3795_v52, 0.0  ;;  %v7921_v38 = vpop.f32.mrf.mxu3  ;;  %v5435_v52 = vld [vmem:[%s6744_s17 + $0x778] sm:$0xf0]  ;;  %v6352_v11 = vld [vmem:[%s6744_s17 + $0x2f4] sm:$0xf0]  ;;  %v5246_v10 = vor.u32 %v6424_v2, %v5243_v5 }
 0x1cd   : > { %v4344_v9 = vmax.f32 %v3769_v8, 0.0  ;;  %4196 = vmatmul.bf16.vlgmr.msrb.gmra.mxu1 %v6840_v58  ;;  %v5438_v63 = vor.u32 %v6472_v51, %v5435_v52  ;;  %v4857_v8 = vld [vmem:[%s6744_s17 + $0x238] sm:$0xf] }
 0x1ce   : > { %4170 = vmatmul.bf16.vlgmr.msrb.gmra.mxu3 %v6840_v58  ;;  %4259 = vmatpush.bf16.msra.mxu1 %v3062_v55  ;;  %v4659_v55 = vld [vmem:[%s6744_s17 + $0x170] sm:$0xf0] }
 0x1cf   : > { %4214 = vmatpush.bf16.msra.mxu2 %v6002_v13  ;;  %4233 = vmatpush.bf16.msra.mxu3 %v3059_v19  ;;  %v5233_v13 = vld [vmem:[%s6744_s17 + $0x530] sm:$0xf]  ;;  %v5819_v19 = vld [vmem:[%s6744_s17 + $0xa78] sm:$0xf0]  ;;  %v4379_v26 = vpack.c.bf16 %v4345_v7, %v4344_v9  ;;  %v4662_v4 = vor.u32 %v6279_v53, %v4659_v55 }
 0x1d0   : > { %4241 = vmatpush.bf16.msra.mxu0 %v5814_v28  ;;  %v5234_v23 = vor.u32 %v6447_v14, %v5233_v13  ;;  %v6496_v28 = vld [vmem:[%s6744_s17 + $0x774] sm:$0xf0]  ;;  %v5822_v24 = vor.u32 %v6568_v15, %v5819_v19  ;;  %v3770_v37 = vpop.f32.mrf.mxu2  ;;  %v3068_v14 = vsel %vm2925_vm0, %v2488_v62, 0  ;;  %v6203_v19 = vld [vmem:[%s6744_s17 + $0xd78] sm:$0xf0] }
 0x1d1   : > { %4403 = vst [vmem:[%s7264_s25 + $0x68] sm:$0xff] %v4379_v26  ;;  %v5434_v36 = vor.u32 %v6496_v28, %v5433_v27  ;;  %v6376_v27 = vld [vmem:[%s6744_s17 + $0x3bc] sm:$0xf]  ;;  %v4665_v26 = vld [vmem:[%s6744_s17 + $0xb8] sm:$0xf] }
 0x1d2   : > { %4260 = vmatpush.bf16.msra.mxu1 %v6198_v12  ;;  %v5051_v28 = vld [vmem:[%s6744_s17 + $0x478] sm:$0xf0] }
 0x1d3   : > { %4215 = vmatpush.bf16.msra.mxu2 %v5810_v33  ;;  %4234 = vmatpush.bf16.msra.mxu3 %v6194_v22  ;;  %v5046_v33 = vor.u32 %v6375_v20, %v5043_v25  ;;  %v5241_v22 = vld [vmem:[%s6744_s17 + $0x538] sm:$0xf]  ;;  %v3846_v39 = vpop.f32.mrf.mxu1  ;;  %v3833_v43 = vpop.f32.mrf.mxu0  ;;  %v4858_v25 = vor.u32 %v6352_v11, %v4857_v8  ;;  %v4859_v37 = vld [vmem:[%s6744_s17 + $0x2f8] sm:$0xf0] }
 0x1d4   : > { %4242 = vmatpush.bf16.msra.mxu0 %v5622_v46  ;;  %v6351_v46 = vld [vmem:[%s6744_s17 + $0x2ec] sm:$0xf0]  ;;  %v5242_v50 = vor.u32 %v6448_v45, %v5241_v22  ;;  %v3822_v6 = vpop.f32.mrf.mxu3  ;;  %v4862_v22 = vor.u32 %v6328_v35, %v4859_v37 }
 0x1d5   : > { %6250 = vmatmul.msk.bf16.vlgmr.msrb.gmra.mxu0 %vm2921_vm1, %v6782_v44  ;;  %v4850_v54 = vor.u32 %v6351_v46, %v4849_v21  ;;  %v6280_v21 = vld [vmem:[%s6744_s17 + $0xbc] sm:$0xf] }
 0x1d6   : > { %6249 = vmatmul.msk.bf16.vlgmr.msrb.gmra.mxu2 %vm2921_vm1, %v6782_v44  ;;  %4292 = vmatpush.bf16.msrb.mxu1 %v6014_v0  ;;  %v6201_v0 = vld [vmem:[%s6744_s17 + $0xcb8] sm:$0xf]  ;;  %v4667_v46 = vld [vmem:[%s6744_s17 + $0x178] sm:$0xf0] }
 0x1d7   : > { %4266 = vmatpush.bf16.msrb.mxu3 %v6010_v47  ;;  %4216 = vmatpush.bf16.msra.mxu2 %v5618_v42  ;;  %v2007_v47 = vunpack.c.l.b16 %v629_v32  ;;  %v5630_v42 = vor.u32 %v6520_v31, %v5627_v34  ;;  %v4666_v34 = vor.u32 %v6304_v29, %v4665_v26 }
 0x1d8   : > { %4243 = vmatpush.bf16.msra.mxu0 %v5430_v59  ;;  %v3834_v59 = vadd.f32 %v3833_v43, %v7216_v49  ;;  %v3807_v15 = vpop.f32.mrf.mxu2 }
 0x1d9   : > { %v2487_v61 = vpack.c.b16 %v2007_v47, %v2007_v47  ;;  %v3808_v20 = vadd.f32 %v3807_v15, %v7216_v49 }
 0x1da   : > { %4293 = vmatpush.bf16.msrb.mxu1 %v5822_v24  ;;  %v3847_v12 = vadd.f32 %v3846_v39, %v3834_v59  ;;  %v4670_v39 = vor.u32 %v6280_v21, %v4667_v46 }
 0x1db   : > { %4267 = vmatpush.bf16.msrb.mxu3 %v5818_v17  ;;  %4217 = vmatpush.bf16.msra.mxu2 %v5426_v1  ;;  %v4657_v17 = vld [vmem:[%s6744_s17 + $0xb0] sm:$0xf]  ;;  %v5050_v1 = vor.u32 %v6400_v57, %v5049_v56  ;;  %v3065_v13 = vsel %vm2925_vm0, %v2487_v61, 0  ;;  %v3848_v9 = vpop.f32.mrf.mxu1  ;;  %v3821_v24 = vadd.f32 %v7921_v38, %v3808_v20 }
 0x1dc   : > { %4244 = vmatpush.bf16.msra.mxu0 %v5238_v16  ;;  %v4658_v7 = vor.u32 %v6303_v60, %v4657_v17  ;;  %v6688_v16 = vld [vmem:[%s6744_s17 + $0xd74] sm:$0xf0]  ;;  %v4347_v30 = vmax.f32 %v3847_v12, 0.0  ;;  %v3859_v41 = vpop.f32.mrf.mxu3 }
 0x1dd   : > { %6252 = vmatmul.msk.bf16.vlgmr.msra.gmra.mxu1 %vm2921_vm1, %v6782_v44  ;;  %v6202_v31 = vor.u32 %v6688_v16, %v6201_v0 }
 0x1de   : > { %6251 = vmatmul.msk.bf16.vlgmr.msra.gmra.mxu3 %vm2921_vm1, %v6782_v44  ;;  %4294 = vmatpush.bf16.msrb.mxu1 %v5630_v42  ;;  %v3860_v42 = vadd.f32 %v3859_v41, %v7216_v49 }
 0x1df   : > { %4268 = vmatpush.bf16.msrb.mxu3 %v5626_v18  ;;  %4218 = vmatpush.bf16.msra.mxu2 %v5234_v23  ;;  %v6664_v18 = vld [vmem:[%s6744_s17 + $0xcbc] sm:$0xf]  ;;  %v3835_v23 = vpop.f32.mrf.mxu0 }
 0x1e0   : > { %4245 = vmatpush.bf16.msra.mxu0 %v5046_v33  ;;  %v6206_v32 = vor.u32 %v6664_v18, %v6203_v19  ;;  %v5054_v33 = vor.u32 %v6376_v27, %v5051_v28  ;;  %v3809_v38 = vpop.f32.mrf.mxu2 }
 0x1e2   : > { %4295 = vmatpush.bf16.msrb.mxu1 %v5438_v63 }
 0x1e3   : > { %4269 = vmatpush.bf16.msrb.mxu3 %v5434_v36  ;;  %4219 = vmatpush.bf16.msra.mxu2 %v5042_v40  ;;  %v4346_v36 = vmax.f32 %v3821_v24, 0.0  ;;  %v3885_v45 = vpop.f32.mrf.mxu1 }
 0x1e4   : > { %4246 = vmatpush.bf16.msra.mxu0 %v4854_v3  ;;  %v3886_v47 = vadd.f32 %v3885_v45, %v7216_v49 }
 0x1e5   : > { %v4380_v40 = vpack.c.bf16 %v4347_v30, %v4346_v36 }
 0x1e6   : > { %4296 = vmatpush.bf16.msrb.mxu1 %v5246_v10 }
 0x1e7   : > { %4270 = vmatpush.bf16.msrb.mxu3 %v5242_v50  ;;  %4220 = vmatpush.bf16.msra.mxu2 %v4850_v54  ;;  %4404 = vst [vmem:[%s7264_s25 + $0x70] sm:$0xff] %v4380_v40  ;;  %v3898_v48 = vpop.f32.mrf.mxu0  ;;  %v3861_v50 = vpop.f32.mrf.mxu3 }
 0x1e8   : > { %4247 = vmatpush.bf16.msra.mxu0 %v4662_v4  ;;  %v3899_v43 = vadd.f32 %v3898_v48, %v3886_v47  ;;  %v3872_v3 = vpop.f32.mrf.mxu2 }
 0x1e9   : > { %v3873_v52 = vadd.f32 %v3872_v3, %v3860_v42 }
 0x1ea   : > { %4297 = vmatpush.bf16.msrb.mxu1 %v5054_v33  ;;  %v4349_v51 = vmax.f32 %v3899_v43, 0.0 }
 0x1eb   : > { %4271 = vmatpush.bf16.msrb.mxu3 %v5050_v1  ;;  %4221 = vmatpush.bf16.msra.mxu2 %v4658_v7  ;;  %v3887_v53 = vpop.f32.mrf.mxu1  ;;  %v4348_v54 = vmax.f32 %v3873_v52, 0.0 }
 0x1ec   : > { %4311 = vmatpush.bf16.msrb.mxu0 %v3068_v14 }
 0x1ed   : > { %4248 = vmatmul.bf16.vlgmr.msra.gmra.mxu0 %v6840_v58  ;;  %v4381_v56 = vpack.c.bf16 %v4349_v51, %v4348_v54 }
 0x1ee   : > { %4222 = vmatmul.bf16.vlgmr.msra.gmra.mxu2 %v6840_v58  ;;  %4298 = vmatpush.bf16.msrb.mxu1 %v4862_v22 }
 0x1ef   : > { %4285 = vmatpush.bf16.msrb.mxu2 %v3065_v13  ;;  %4272 = vmatpush.bf16.msrb.mxu3 %v4858_v25  ;;  %v3900_v55 = vpop.f32.mrf.mxu0  ;;  %4405 = vst [vmem:[%s7264_s25 + $0x78] sm:$0xff] %v4381_v56  ;;  %v3924_v59 = vpop.f32.mrf.mxu3 }
 0x1f0   : > { %4312 = vmatpush.bf16.msrb.mxu0 %v6206_v32  ;;  %v3874_v57 = vpop.f32.mrf.mxu2 }
 0x1f2   : > { %4299 = vmatpush.bf16.msrb.mxu1 %v4670_v39 }
 0x1f3   : > { %4286 = vmatpush.bf16.msrb.mxu2 %v6202_v31  ;;  %4273 = vmatpush.bf16.msrb.mxu3 %v4666_v34  ;;  %v3950_v17 = vpop.f32.mrf.mxu1 }
 0x1f5   : > { %4300 = vmatmul.bf16.vlgmr.msrb.gmra.mxu1 %v6840_v58 }
 0x1f6   : > { %4274 = vmatmul.bf16.vlgmr.msrb.gmra.mxu3 %v6840_v58 }
 0x1f7   : > { %v3937_v60 = vpop.f32.mrf.mxu0  ;;  %v3926_v62 = vpop.f32.mrf.mxu3 }
 0x1f8   : > { %v3938_v61 = vadd.f32 %v3937_v60, %v7216_v49 }
 0x1f9   : > { %v3911_v4 = vpop.f32.mrf.mxu2 }
 0x1fa   : > { %v3951_v63 = vadd.f32 %v3950_v17, %v3938_v61  ;;  %v3912_v1 = vadd.f32 %v3911_v4, %v7216_v49 }
 0x1fb   : > { %v3952_v58 = vpop.f32.mrf.mxu1 }
 0x1fc   : > { %v4351_v5 = vmax.f32 %v3951_v63, 0.0  ;;  %v3925_v6 = vadd.f32 %v3924_v59, %v3912_v1 }
 0x1fd   : > { %6254 = vmatmul.msk.bf16.vlgmr.msrb.gmra.mxu0 %vm2921_vm1, %v6782_v44 }
 0x1fe   : > { %6253 = vmatmul.msk.bf16.vlgmr.msrb.gmra.mxu2 %vm2921_vm1, %v6782_v44  ;;  %v4350_v7 = vmax.f32 %v3925_v6, 0.0 }
 0x1ff   : > { %v3939_v2 = vpop.f32.mrf.mxu0 }
 0x200   : > { %v4382_v8 = vpack.c.bf16 %v4351_v5, %v4350_v7 }
 0x201   : > { %v3913_v44 = vpop.f32.mrf.mxu2  ;;  %v3963_v11 = vpop.f32.mrf.mxu3 }
 0x202   : > { %4406 = vst [vmem:[%s7264_s25 + $0x80] sm:$0xff] %v4382_v8  ;;  %v3964_v0 = vadd.f32 %v3963_v11, %v7216_v49 }
 0x203   : > { %v3989_v12 = vpop.f32.mrf.mxu1 }
 0x204   : > { %v3990_v13 = vadd.f32 %v3989_v12, %v7216_v49 }
 0x207   : > { %v4002_v14 = vpop.f32.mrf.mxu0 }
 0x208   : > { %v4003_v15 = vadd.f32 %v4002_v14, %v3990_v13 }
 0x209   : > { %v3976_v9 = vpop.f32.mrf.mxu2  ;;  %v3965_v10 = vpop.f32.mrf.mxu3 }
 0x20a   : > { %v4353_v16 = vmax.f32 %v4003_v15, 0.0  ;;  %v3977_v18 = vadd.f32 %v3976_v9, %v3964_v0 }
 0x20b   : > { %v3991_v19 = vpop.f32.mrf.mxu1 }
 0x20c   : > { %v4352_v20 = vmax.f32 %v3977_v18, 0.0 }
 0x20e   : > { %v4383_v25 = vpack.c.bf16 %v4353_v16, %v4352_v20 }
 0x20f   : > { %v4004_v23 = vpop.f32.mrf.mxu0 }
 0x210   : > { %4407 = vst [vmem:[%s7264_s25 + $0x88] sm:$0xff] %v4383_v25 }
 0x211   : > { %v3978_v27 = vpop.f32.mrf.mxu2  ;;  %v4028_v28 = vpop.f32.mrf.mxu3 }
 0x213   : > { %v4054_v26 = vpop.f32.mrf.mxu1 }
 0x219   : > { %v4030_v24 = vpop.f32.mrf.mxu3 }
 0x21a   : > { %v4041_v29 = vpop.f32.mrf.mxu0 }
 0x21b   : > { %v4042_v30 = vadd.f32 %v4041_v29, %v7216_v49  ;;  %v4056_v33 = vpop.f32.mrf.mxu1 }
 0x21d   : > { %v4055_v31 = vadd.f32 %v4054_v26, %v4042_v30 }
 0x21f   : > { %v4355_v35 = vmax.f32 %v4055_v31, 0.0 }
 0x221   : > { %v4015_v32 = vpop.f32.mrf.mxu2 }
 0x222   : > { %v4016_v36 = vadd.f32 %v4015_v32, %v7216_v49  ;;  %v4043_v34 = vpop.f32.mrf.mxu0 }
 0x223   : > { %v4093_v45 = vpop.f32.mrf.mxu1 }
 0x224   : > { %v4029_v37 = vadd.f32 %v4028_v28, %v4016_v36  ;;  %v4094_v21 = vadd.f32 %v4093_v45, %v7216_v49 }
 0x226   : > { %v4354_v40 = vmax.f32 %v4029_v37, 0.0 }
 0x228   : > { %v4384_v38 = vpack.c.bf16 %v4355_v35, %v4354_v40 }
 0x229   : > { %v4017_v41 = vpop.f32.mrf.mxu2  ;;  %v4067_v22 = vpop.f32.mrf.mxu3 }
 0x22a   : > { %4408 = vst [vmem:[%s7264_s25 + $0x90] sm:$0xff] %v4384_v38  ;;  %v4106_v46 = vpop.f32.mrf.mxu0  ;;  %v4068_v47 = vadd.f32 %v4067_v22, %v7216_v49 }
 0x22b   : > { %v4107_v48 = vadd.f32 %v4106_v46, %v4094_v21  ;;  %v4095_v50 = vpop.f32.mrf.mxu1 }
 0x22d   : > { %v4357_v43 = vmax.f32 %v4107_v48, 0.0 }
 0x231   : > { %v4080_v39 = vpop.f32.mrf.mxu2  ;;  %v4069_v42 = vpop.f32.mrf.mxu3 }
 0x232   : > { %v4081_v3 = vadd.f32 %v4080_v39, %v4068_v47  ;;  %v4108_v52 = vpop.f32.mrf.mxu0 }
 0x233   : > { %v4158_v56 = vpop.f32.mrf.mxu1 }
 0x234   : > { %v4356_v51 = vmax.f32 %v4081_v3, 0.0 }
 0x236   : > { %v4385_v53 = vpack.c.bf16 %v4357_v43, %v4356_v51 }
 0x238   : > { %4409 = vst [vmem:[%s7264_s25 + $0x98] sm:$0xff] %v4385_v53 }
 0x239   : > { %v4082_v54 = vpop.f32.mrf.mxu2  ;;  %v4132_v55 = vpop.f32.mrf.mxu3 }
 0x23b   : > { %v4160_v62 = vpop.f32.mrf.mxu1 }
 0x241   : > { %v4134_v17 = vpop.f32.mrf.mxu3 }
 0x242   : > { %v4145_v57 = vpop.f32.mrf.mxu0 }
 0x243   : > { %v4146_v59 = vadd.f32 %v4145_v57, %v7216_v49 }
 0x245   : > { %v4159_v60 = vadd.f32 %v4158_v56, %v4146_v59 }
 0x247   : > { %v4359_v58 = vmax.f32 %v4159_v60, 0.0 }
 0x249   : > { %v4119_v61 = vpop.f32.mrf.mxu2 }
 0x24a   : > { %v4120_v63 = vadd.f32 %v4119_v61, %v7216_v49  ;;  %v4147_v4 = vpop.f32.mrf.mxu0  ;;  %v4197_v8 = vpop.f32.mrf.mxu1 }
 0x24b   : > { %v4198_v44 = vadd.f32 %v4197_v8, %v7216_v49 }
 0x24c   : > { %v4133_v1 = vadd.f32 %v4132_v55, %v4120_v63 }
 0x24e   : > { %v4358_v2 = vmax.f32 %v4133_v1, 0.0 }
 0x250   : > { %v4386_v5 = vpack.c.bf16 %v4359_v58, %v4358_v2 }
 0x251   : > { %v4121_v6 = vpop.f32.mrf.mxu2  ;;  %v4171_v7 = vpop.f32.mrf.mxu3 }
 0x252   : > { %4410 = vst [vmem:[%s7264_s25 + $0xa0] sm:$0xff] %v4386_v5  ;;  %v4210_v11 = vpop.f32.mrf.mxu0  ;;  %v4172_v12 = vadd.f32 %v4171_v7, %v7216_v49  ;;  %v4199_v10 = vpop.f32.mrf.mxu1 }
 0x253   : > { %v4211_v13 = vadd.f32 %v4210_v11, %v4198_v44 }
 0x255   : > { %v4361_v15 = vmax.f32 %v4211_v13, 0.0 }
 0x259   : > { %v4184_v14 = vpop.f32.mrf.mxu2  ;;  %v4173_v0 = vpop.f32.mrf.mxu3 }
 0x25a   : > { %v4185_v9 = vadd.f32 %v4184_v14, %v4172_v12  ;;  %v4212_v18 = vpop.f32.mrf.mxu0  ;;  %v4262_v25 = vpop.f32.mrf.mxu1 }
 0x25c   : > { %v4360_v16 = vmax.f32 %v4185_v9, 0.0 }
 0x25e   : > { %v4387_v19 = vpack.c.bf16 %v4361_v15, %v4360_v16 }
 0x260   : > { %4411 = vst [vmem:[%s7264_s25 + $0xa8] sm:$0xff] %v4387_v19 }
 0x261   : > { %v4186_v20 = vpop.f32.mrf.mxu2  ;;  %v4236_v23 = vpop.f32.mrf.mxu3 }
 0x262   : > { %v4264_v29 = vpop.f32.mrf.mxu1 }
 0x269   : > { %v4238_v26 = vpop.f32.mrf.mxu3 }
 0x26a   : > { %v4249_v27 = vpop.f32.mrf.mxu0 }
 0x26b   : > { %v4250_v28 = vadd.f32 %v4249_v27, %v7216_v49 }
 0x26d   : > { %v4263_v24 = vadd.f32 %v4262_v25, %v4250_v28 }
 0x26f   : > { %v4363_v36 = vmax.f32 %v4263_v24, 0.0 }
 0x271   : > { %v4223_v30 = vpop.f32.mrf.mxu2 }
 0x272   : > { %v4224_v31 = vadd.f32 %v4223_v30, %v7216_v49  ;;  %v4251_v32 = vpop.f32.mrf.mxu0  ;;  %v4301_v40 = vpop.f32.mrf.mxu1 }
 0x273   : > { %v4302_v41 = vadd.f32 %v4301_v40, %v7216_v49 }
 0x274   : > { %v4237_v33 = vadd.f32 %v4236_v23, %v4224_v31 }
 0x276   : > { %v4362_v34 = vmax.f32 %v4237_v33, 0.0 }
 0x278   : > { %v4388_v35 = vpack.c.bf16 %v4363_v36, %v4362_v34 }
 0x279   : > { %v4275_v37 = vpop.f32.mrf.mxu3  ;;  %v4225_v38 = vpop.f32.mrf.mxu2 }
 0x27a   : > { %4412 = vst [vmem:[%s7264_s25 + $0xb0] sm:$0xff] %v4388_v35  ;;  %v4314_v22 = vpop.f32.mrf.mxu0  ;;  %v4276_v45 = vadd.f32 %v4275_v37, %v7216_v49  ;;  %v4303_v47 = vpop.f32.mrf.mxu1 }
 0x27b   : > { %v4315_v21 = vadd.f32 %v4314_v22, %v4302_v41 }
 0x27d   : > { %v4365_v39 = vmax.f32 %v4315_v21, 0.0 }
 0x281   : > { %v4277_v46 = vpop.f32.mrf.mxu3  ;;  %v4288_v48 = vpop.f32.mrf.mxu2 }
 0x282   : > { %v4289_v42 = vadd.f32 %v4288_v48, %v4276_v45  ;;  %v4316_v43 = vpop.f32.mrf.mxu0 }
 0x284   : > { %v4364_v3 = vmax.f32 %v4289_v42, 0.0 }
 0x286   : > { %v4389_v50 = vpack.c.bf16 %v4365_v39, %v4364_v3 }
 0x288   : > { %4416 = vst.msk [vmem:[%s7264_s25 + $0xb8] sm:$0xff] %vm4415_vm4, %v4389_v50 }
 0x289   : > { %v4290_v51 = vpop.f32.mrf.mxu2 }
 0x28a PF: > { %s13_s12 = sadd.s32 1, %s6707_s12  }
 0x28b   : > { %p10_p4 = scmp.ge.s32.totalorder %s13_s12, 4  }
 0x28d   :  { %12 = sbr.rel (!%p10_p4) target bundleno = 1 (0x1), region = 62 }

// kernel: xtma_cnn_forward.5
= control target key start
LH: loop header
LB: loop body
LE: loop exit
PB: predicated region body
PF: predicated region fallthrough
CT: control target
= control target key end

     0   :  { %s2224_s12 = smov 0   ;;  %s2635_s0 = inlined_call_operand.vmem [shape: bf16[16,200], index: 0, kind: input, shape index: {}]   ;;  %s2636_s1 = inlined_call_operand.vmem [shape: f32[16,1], index: 1, kind: input, shape index: {}]   ;;  %s2637_s2 = inlined_call_operand.vmem [shape: bf16[2,200,1369], index: 2, kind: input, shape index: {}]   ;;  %s2638_s3 = inlined_call_operand.vmem [shape: bf16[2,16,1369], index: 3, kind: output, shape index: {}]  }
   0x1 LB: > { %s1493_s13 = sadd.s32 4294967295, %s2201_s12   ;;  %p1497_p0 = scmp.ge.s32.totalorder %s2201_s12, 1  ;;  %s2201_s12 = sphi %s2224_s12, %s13_s12  }
   0x2   : > { %p137_p1 = scmp.lt.s32.totalorder %s2201_s12, 3 }
   0x4   : > { %p138_p2 = pnand %p1497_p0, %p137_p1 }
   0x5   : > { %p161_p3 = scmp.lt.s32.totalorder (!%p138_p2), %s1493_s13, 1 }
   0x6   : > { %141 = sbr.rel (%p138_p2) target bundleno = 320 (0x140), region = 32 }
   0xb   : > { %s2640_s13 = smov (!%p161_p3, %s1493_s13), 1  ;;  %vm1049_vm0 = vcmask 1043456   ;;  %vm1045_vm1 = vcmask 588800   ;;  %vm1430_vm2 = vcmask 723968  }
   0xc   : > { %s2183_s14 = smul.u32 1100, %s2640_s13 }
   0xd   : > { %s2184_s30 = smul.u32 88, %s2640_s13 }
   0xe   : > { %s2238_s17 = scalar_lea.vmem %s2637_s2, %s2183_s14 }
   0xf   : > { %v1818_v0 = vld [vmem:[%s2238_s17 + $0x268] sm:$0xf]  ;;  %v2133_v1 = vld [vmem:[%s2238_s17 + $0x290] sm:$0xf0]  ;;  %v2128_v2 = vld [vmem:[%s2238_s17 + $0x26c] sm:$0xf]  ;;  %s2599_s6 = scalar_lea.vmem %s2638_s3, %s2184_s30 }
  0x10   : > { %v1819_v3 = vor.u32 %v2133_v1, %v1818_v0  ;;  %v1820_v4 = vld [vmem:[%s2238_s17 + $0x294] sm:$0xf0]  ;;  %v320_v5 = vld [vmem:[%s2238_s17 + $0x420] sm:$0xff]  ;;  %v1774_v6 = vld [vmem:[%s2238_s17 + $0x210] sm:$0xf] }
  0x11   : > { %v1823_v7 = vor.u32 %v2128_v2, %v1820_v4  ;;  %v759_v8 = vunpack.c.l.b16 %v320_v5  ;;  %v760_v9 = vunpack.c.h.b16 %v320_v5  ;;  %v2122_v10 = vld [vmem:[%s2238_s17 + $0x238] sm:$0xf0]  ;;  %v2117_v11 = vld [vmem:[%s2238_s17 + $0x214] sm:$0xf]  ;;  %v1776_v12 = vld [vmem:[%s2238_s17 + $0x23c] sm:$0xf0] }
  0x12   : > { %1083 = vmatpush.bf16.msra.mxu0 %v1819_v3  ;;  %v1994_v13 = vld [vmem:[%s2238_s17 + $0x3c8] sm:$0xf]  ;;  %v2177_v14 = vld [vmem:[%s2238_s17 + $0x3f0] sm:$0xf0]  ;;  %v1775_v17 = vor.u32 %v2122_v10, %v1774_v6  ;;  %v1779_v18 = vor.u32 %v2117_v11, %v1776_v12  ;;  %v2172_v19 = vld [vmem:[%s2238_s17 + $0x3cc] sm:$0xf] }
  0x13   : > { %1111 = vmatpush.bf16.msra.mxu2 %v1823_v7  ;;  %v902_v15 = vpack.c.b16 %v759_v8, %v759_v8  ;;  %v903_v16 = vpack.c.b16 %v760_v9, %v760_v9  ;;  %v1996_v20 = vld [vmem:[%s2238_s17 + $0x3f4] sm:$0xf0]  ;;  %v2111_v22 = vld [vmem:[%s2238_s17 + $0x1e0] sm:$0xf0]  ;;  %v2106_v23 = vld [vmem:[%s2238_s17 + $0x1bc] sm:$0xf]  ;;  %v1995_v27 = vor.u32 %v2177_v14, %v1994_v13 }
  0x14   : > { %v1730_v21 = vld [vmem:[%s2238_s17 + $0x1b8] sm:$0xf]  ;;  %v1732_v24 = vld [vmem:[%s2238_s17 + $0x1e4] sm:$0xf0]  ;;  %v1999_v28 = vor.u32 %v2172_v19, %v1996_v20  ;;  %v1950_v29 = vld [vmem:[%s2238_s17 + $0x370] sm:$0xf] }
  0x15   : > { %v1051_v25 = vsel %vm1049_vm0, %v902_v15, 0  ;;  %v1054_v26 = vsel %vm1049_vm0, %v903_v16, 0  ;;  %v2166_v30 = vld [vmem:[%s2238_s17 + $0x398] sm:$0xf0]  ;;  %v1731_v31 = vor.u32 %v2111_v22, %v1730_v21  ;;  %v1735_v32 = vor.u32 %v2106_v23, %v1732_v24  ;;  %v2161_v33 = vld [vmem:[%s2238_s17 + $0x374] sm:$0xf] }
  0x16   : > { %1100 = vmatpush.bf16.msra.mxu1 %v1051_v25  ;;  %1128 = vmatpush.bf16.msra.mxu3 %v1054_v26  ;;  %v1952_v34 = vld [vmem:[%s2238_s17 + $0x39c] sm:$0xf0]  ;;  %v2100_v36 = vld [vmem:[%s2238_s17 + $0x188] sm:$0xf0]  ;;  %v2095_v37 = vld [vmem:[%s2238_s17 + $0x164] sm:$0xf]  ;;  %v1951_v39 = vor.u32 %v2166_v30, %v1950_v29 }
  0x17   : > { %1084 = vmatpush.bf16.msra.mxu0 %v1775_v17  ;;  %1112 = vmatpush.bf16.msra.mxu2 %v1779_v18  ;;  %v1686_v35 = vld [vmem:[%s2238_s17 + $0x160] sm:$0xf]  ;;  %v1688_v38 = vld [vmem:[%s2238_s17 + $0x18c] sm:$0xf0]  ;;  %v1955_v40 = vor.u32 %v2161_v33, %v1952_v34  ;;  %v1906_v41 = vld [vmem:[%s2238_s17 + $0x318] sm:$0xf] }
  0x18   : > { %v2155_v42 = vld [vmem:[%s2238_s17 + $0x340] sm:$0xf0]  ;;  %v1687_v43 = vor.u32 %v2100_v36, %v1686_v35  ;;  %v1691_v44 = vor.u32 %v2095_v37, %v1688_v38  ;;  %v2150_v45 = vld [vmem:[%s2238_s17 + $0x31c] sm:$0xf]  ;;  %v1908_v46 = vld [vmem:[%s2238_s17 + $0x344] sm:$0xf0] }
  0x19   : > { %v1642_v47 = vld [vmem:[%s2238_s17 + $0x108] sm:$0xf]  ;;  %v2089_v48 = vld [vmem:[%s2238_s17 + $0x130] sm:$0xf0]  ;;  %v2084_v49 = vld [vmem:[%s2238_s17 + $0x10c] sm:$0xf]  ;;  %v1907_v52 = vor.u32 %v2155_v42, %v1906_v41  ;;  %v1911_v53 = vor.u32 %v2150_v45, %v1908_v46 }
  0x1a   : > { %1101 = vmatpush.bf16.msra.mxu1 %v1995_v27  ;;  %1129 = vmatpush.bf16.msra.mxu3 %v1999_v28  ;;  %v1644_v50 = vld [vmem:[%s2238_s17 + $0x134] sm:$0xf0]  ;;  %v321_v51 = vld [vmem:[%s2238_s17 + $0x428] sm:$0xff]  ;;  %v1862_v54 = vld [vmem:[%s2238_s17 + $0x2c0] sm:$0xf]  ;;  %v1643_v57 = vor.u32 %v2089_v48, %v1642_v47 }
  0x1b   : > { %1085 = vmatpush.bf16.msra.mxu0 %v1731_v31  ;;  %1113 = vmatpush.bf16.msra.mxu2 %v1735_v32  ;;  %v2144_v55 = vld [vmem:[%s2238_s17 + $0x2e8] sm:$0xf0]  ;;  %v761_v56 = vunpack.c.l.b16 %v321_v51  ;;  %v1647_v58 = vor.u32 %v2084_v49, %v1644_v50  ;;  %v2139_v59 = vld [vmem:[%s2238_s17 + $0x2c4] sm:$0xf]  ;;  %v1864_v60 = vld [vmem:[%s2238_s17 + $0x2ec] sm:$0xf0]  ;;  %v762_v15 = vunpack.c.h.b16 %v321_v51 }
  0x1c   : > { %v1598_v61 = vld [vmem:[%s2238_s17 + $0xb0] sm:$0xf]  ;;  %v2078_v62 = vld [vmem:[%s2238_s17 + $0xd8] sm:$0xf0]  ;;  %v2073_v63 = vld [vmem:[%s2238_s17 + $0xb4] sm:$0xf]  ;;  %v1863_v4 = vor.u32 %v2144_v55, %v1862_v54  ;;  %v1867_v5 = vor.u32 %v2139_v59, %v1864_v60 }
  0x1d   : > { %v1600_v0 = vld [vmem:[%s2238_s17 + $0xdc] sm:$0xf0]  ;;  %v1826_v1 = vld [vmem:[%s2238_s17 + $0x270] sm:$0xf]  ;;  %v2134_v2 = vld [vmem:[%s2238_s17 + $0x298] sm:$0xf0]  ;;  %v904_v3 = vpack.c.b16 %v761_v56, %v761_v56  ;;  %v1599_v6 = vor.u32 %v2078_v62, %v1598_v61  ;;  %v905_v29 = vpack.c.b16 %v762_v15, %v762_v15 }
  0x1e   : > { %1102 = vmatpush.bf16.msra.mxu1 %v1951_v39  ;;  %1130 = vmatpush.bf16.msra.mxu3 %v1955_v40  ;;  %v1603_v7 = vor.u32 %v2073_v63, %v1600_v0  ;;  %v1554_v8 = vld [vmem:[%s2238_s17 + $0x58] sm:$0xf]  ;;  %v2067_v9 = vld [vmem:[%s2238_s17 + $0x80] sm:$0xf0]  ;;  %v2062_v10 = vld [vmem:[%s2238_s17 + $0x5c] sm:$0xf]  ;;  %v1827_v11 = vor.u32 %v2134_v2, %v1826_v1 }
  0x1f   : > { %1086 = vmatpush.bf16.msra.mxu0 %v1687_v43  ;;  %1114 = vmatpush.bf16.msra.mxu2 %v1691_v44  ;;  %v1556_v12 = vld [vmem:[%s2238_s17 + $0x84] sm:$0xf0]  ;;  %v1782_v13 = vld [vmem:[%s2238_s17 + $0x218] sm:$0xf]  ;;  %v2123_v14 = vld [vmem:[%s2238_s17 + $0x240] sm:$0xf0]  ;;  %v1555_v20 = vor.u32 %v2067_v9, %v1554_v8 }
  0x20   : > { %v1057_v16 = vsel %vm1049_vm0, %v904_v3, 0  ;;  %v2002_v17 = vld [vmem:[%s2238_s17 + $0x3d0] sm:$0xf]  ;;  %v2178_v18 = vld [vmem:[%s2238_s17 + $0x3f8] sm:$0xf0]  ;;  %v1559_v21 = vor.u32 %v2062_v10, %v1556_v12  ;;  %v1783_v25 = vor.u32 %v2123_v14, %v1782_v13  ;;  %v1060_v43 = vsel %vm1049_vm0, %v905_v29, 0 }
  0x21   : > { %v1510_v19 = vld [vmem:[%s2238_s17] sm:$0xf]  ;;  %v2056_v22 = vld [vmem:[%s2238_s17 + $0x28] sm:$0xf0]  ;;  %v2051_v23 = vld [vmem:[%s2238_s17 + $0x4] sm:$0xf]  ;;  %v2003_v26 = vor.u32 %v2178_v18, %v2002_v17 }
  0x22   : > { %1103 = vmatpush.bf16.msra.mxu1 %v1907_v52  ;;  %1131 = vmatpush.bf16.msra.mxu3 %v1911_v53  ;;  %v2049_v24 = vld [vmem:[%s2635_s0 + $0x4] sm:$0xf]  ;;  %v1512_v27 = vld [vmem:[%s2238_s17 + $0x2c] sm:$0xf0]  ;;  %v1738_v28 = vld [vmem:[%s2238_s17 + $0x1c0] sm:$0xf]  ;;  %v1511_v37 = vor.u32 %v2056_v22, %v1510_v19 }
  0x23   : > { %1087 = vmatpush.bf16.msra.mxu0 %v1643_v57  ;;  %1115 = vmatpush.bf16.msra.mxu2 %v1647_v58  ;;  %v1504_v30 = vld [vmem:[%s2635_s0 + $0x8] sm:$0xf0]  ;;  %v1958_v32 = vld [vmem:[%s2238_s17 + $0x378] sm:$0xf]  ;;  %v2167_v33 = vld [vmem:[%s2238_s17 + $0x3a0] sm:$0xf0]  ;;  %v1515_v38 = vor.u32 %v2051_v23, %v1512_v27 }
  0x24   : > { %v2112_v31 = vld [vmem:[%s2238_s17 + $0x1e8] sm:$0xf0]  ;;  %v2309_v34 = vor.u32 %v2049_v24, %v1504_v30  ;;  %v2129_v35 = vld [vmem:[%s2238_s17 + $0x274] sm:$0xf]  ;;  %v1828_v36 = vld [vmem:[%s2238_s17 + $0x29c] sm:$0xf0]  ;;  %v1959_v42 = vor.u32 %v2167_v33, %v1958_v32 }
  0x25   : > { %v1502_v39 = vld [vmem:[%s2635_s0] sm:$0xf]  ;;  %v2050_v40 = vld [vmem:[%s2635_s0 + $0x4] sm:$0xf0]  ;;  %v1739_v41 = vor.u32 %v2112_v31, %v1738_v28  ;;  %v2101_v45 = vld [vmem:[%s2238_s17 + $0x190] sm:$0xf0]  ;;  %v1831_v46 = vor.u32 %v2129_v35, %v1828_v36 }
  0x26   : > { %1104 = vmatpush.bf16.msra.mxu1 %v1863_v4  ;;  %1132 = vmatpush.bf16.msra.mxu3 %v1867_v5  ;;  %v1694_v44 = vld [vmem:[%s2238_s17 + $0x168] sm:$0xf]  ;;  %v1914_v47 = vld [vmem:[%s2238_s17 + $0x320] sm:$0xf]  ;;  %v2156_v48 = vld [vmem:[%s2238_s17 + $0x348] sm:$0xf0]  ;;  %v2329_v50 = vor.u32 %v2050_v40, %v1502_v39 }
  0x27   : > { %1088 = vmatpush.bf16.msra.mxu0 %v1599_v6  ;;  %1116 = vmatpush.bf16.msra.mxu2 %v1603_v7  ;;  %v2118_v49 = vld [vmem:[%s2238_s17 + $0x21c] sm:$0xf]  ;;  %v1784_v51 = vld [vmem:[%s2238_s17 + $0x244] sm:$0xf0]  ;;  %v2173_v52 = vld [vmem:[%s2238_s17 + $0x3d4] sm:$0xf]  ;;  %v1695_v54 = vor.u32 %v2101_v45, %v1694_v44  ;;  %v1915_v55 = vor.u32 %v2156_v48, %v1914_v47 }
  0x28   : > { %v2004_v53 = vld [vmem:[%s2238_s17 + $0x3fc] sm:$0xf0]  ;;  %v1650_v56 = vld [vmem:[%s2238_s17 + $0x110] sm:$0xf]  ;;  %v2090_v57 = vld [vmem:[%s2238_s17 + $0x138] sm:$0xf0]  ;;  %v1787_v59 = vor.u32 %v2118_v49, %v1784_v51 }
  0x29   : > { %2037 = vmatmul.msk.bf16.vlgmr.msra.gmra.mxu3 %vm1045_vm1, %v2309_v34  ;;  %2036 = vmatmul.msk.bf16.vlgmr.msra.gmra.mxu1 %vm1045_vm1, %v2309_v34  ;;  %v1870_v58 = vld [vmem:[%s2238_s17 + $0x2c8] sm:$0xf]  ;;  %v2007_v60 = vor.u32 %v2173_v52, %v2004_v53  ;;  %v2145_v61 = vld [vmem:[%s2238_s17 + $0x2f0] sm:$0xf0]  ;;  %v2107_v62 = vld [vmem:[%s2238_s17 + $0x1c4] sm:$0xf]  ;;  %v1651_v5 = vor.u32 %v2090_v57, %v1650_v56 }
  0x2a   : > { %1139 = vmatpush.bf16.msrb.mxu1 %v1827_v11  ;;  %1156 = vmatpush.bf16.msrb.mxu3 %v1057_v16  ;;  %v1740_v63 = vld [vmem:[%s2238_s17 + $0x1ec] sm:$0xf0]  ;;  %v2162_v0 = vld [vmem:[%s2238_s17 + $0x37c] sm:$0xf]  ;;  %v1960_v1 = vld [vmem:[%s2238_s17 + $0x3a4] sm:$0xf0]  ;;  %v1871_v6 = vor.u32 %v2145_v61, %v1870_v58 }
  0x2b   : > { %1089 = vmatpush.bf16.msra.mxu0 %v1555_v20  ;;  %1117 = vmatpush.bf16.msra.mxu2 %v1559_v21  ;;  %v1834_v2 = vld [vmem:[%s2238_s17 + $0x278] sm:$0xf]  ;;  %v2135_v3 = vld [vmem:[%s2238_s17 + $0x2a0] sm:$0xf0]  ;;  %v2203_v4 = vmov 0   ;;  %v1743_v8 = vor.u32 %v2107_v62, %v1740_v63  ;;  %v1963_v9 = vor.u32 %v2162_v0, %v1960_v1  ;;  %v2358_v19 = vld [vmem:[%s2238_s17 + $0x430] sm:$0xff] }
  0x2c   : > { %2194 = vset.pattern.permute.xlu0 %v2203_v4  ;;  %v174_v7 = vld [vmem:[%s2636_s1] sm:$0xff]  ;;  %v1606_v10 = vld [vmem:[%s2238_s17 + $0xb8] sm:$0xf]  ;;  %v2096_v12 = vld [vmem:[%s2238_s17 + $0x16c] sm:$0xf]  ;;  %v1835_v13 = vor.u32 %v2135_v3, %v1834_v2  ;;  %v763_v32 = vunpack.c.l.b16 %v2358_v19  ;;  %v764_v1 = vunpack.c.h.b16 %v2358_v19 }
  0x2d   : > { %v2079_v11 = vld [vmem:[%s2238_s17 + $0xe0] sm:$0xf0]  ;;  %v1696_v14 = vld [vmem:[%s2238_s17 + $0x194] sm:$0xf0]  ;;  %v1916_v16 = vld [vmem:[%s2238_s17 + $0x34c] sm:$0xf0]  ;;  %328 = vperm.xlu0 %2194, %v174_v7  }
  0x2e   : > { %1140 = vmatpush.bf16.msrb.mxu1 %v1783_v25  ;;  %1157 = vmatpush.bf16.msrb.mxu3 %v2003_v26  ;;  %v2151_v15 = vld [vmem:[%s2238_s17 + $0x324] sm:$0xf]  ;;  %v1790_v17 = vld [vmem:[%s2238_s17 + $0x220] sm:$0xf]  ;;  %v2124_v18 = vld [vmem:[%s2238_s17 + $0x248] sm:$0xf0]  ;;  %v1607_v20 = vor.u32 %v2079_v11, %v1606_v10  ;;  %v1699_v23 = vor.u32 %v2096_v12, %v1696_v14  ;;  %v906_v47 = vpack.c.b16 %v763_v32, %v763_v32 }
  0x2f   : > { %1090 = vmatpush.bf16.msra.mxu0 %v1511_v37  ;;  %1118 = vmatpush.bf16.msra.mxu2 %v1515_v38  ;;  %v1562_v21 = vld [vmem:[%s2238_s17 + $0x60] sm:$0xf]  ;;  %v2068_v22 = vld [vmem:[%s2238_s17 + $0x88] sm:$0xf0]  ;;  %v1919_v24 = vor.u32 %v2151_v15, %v1916_v16  ;;  %v2085_v25 = vld [vmem:[%s2238_s17 + $0x114] sm:$0xf]  ;;  %v1791_v28 = vor.u32 %v2124_v18, %v1790_v17  ;;  %v907_v14 = vpack.c.b16 %v764_v1, %v764_v1 }
  0x30   : > { %v1652_v26 = vld [vmem:[%s2238_s17 + $0x13c] sm:$0xf0]  ;;  %v2140_v27 = vld [vmem:[%s2238_s17 + $0x2cc] sm:$0xf]  ;;  %v1872_v29 = vld [vmem:[%s2238_s17 + $0x2f4] sm:$0xf0]  ;;  %v1563_v37 = vor.u32 %v2068_v22, %v1562_v21 }
  0x31   : > { %v1746_v30 = vld [vmem:[%s2238_s17 + $0x1c8] sm:$0xf]  ;;  %v2113_v31 = vld [vmem:[%s2238_s17 + $0x1f0] sm:$0xf0]  ;;  %v2130_v33 = vld [vmem:[%s2238_s17 + $0x27c] sm:$0xf]  ;;  %v1655_v38 = vor.u32 %v2085_v25, %v1652_v26  ;;  %v1875_v39 = vor.u32 %v2140_v27, %v1872_v29 }
  0x32   : > { %1141 = vmatpush.bf16.msrb.mxu1 %v1739_v41  ;;  %1158 = vmatpush.bf16.msrb.mxu3 %v1959_v42  ;;  %v1836_v35 = vld [vmem:[%s2238_s17 + $0x2a4] sm:$0xf0]  ;;  %v2057_v41 = vld [vmem:[%s2238_s17 + $0x30] sm:$0xf0]  ;;  %v1747_v42 = vor.u32 %v2113_v31, %v1746_v30  ;;  %v2074_v44 = vld [vmem:[%s2238_s17 + $0xbc] sm:$0xf] }
  0x33   : > { %1167 = vmatpush.bf16.msrb.mxu0 %v1831_v46  ;;  %1184 = vmatpush.bf16.msrb.mxu2 %v1060_v43  ;;  %v175_v36 = vld [vmem:[%s2636_s1 + $0x8] sm:$0xff]  ;;  %v1839_v43 = vor.u32 %v2130_v33, %v1836_v35  ;;  %v1702_v46 = vld [vmem:[%s2238_s17 + $0x170] sm:$0xf]  ;;  %v2102_v48 = vld [vmem:[%s2238_s17 + $0x198] sm:$0xf0]  ;;  %v1063_v58 = vsel %vm1049_vm0, %v906_v47, 0 }
  0x34   : > { %1119 = vmatmul.bf16.vlgmr.msra.gmra.mxu2 %v2329_v50  ;;  %1091 = vmatmul.bf16.vlgmr.msra.gmra.mxu0 %v2329_v50  ;;  %v1518_v40 = vld [vmem:[%s2238_s17 + $0x8] sm:$0xf]  ;;  %v2119_v49 = vld [vmem:[%s2238_s17 + $0x224] sm:$0xf]  ;;  %v1792_v51 = vld [vmem:[%s2238_s17 + $0x24c] sm:$0xf0]  ;;  %v1703_v57 = vor.u32 %v2102_v48, %v1702_v46 }
  0x35   : > { %v1608_v45 = vld [vmem:[%s2238_s17 + $0xe4] sm:$0xf0]  ;;  %333 = vperm.xlu0 %2194, %v175_v36   ;;  %v1519_v52 = vor.u32 %v2057_v41, %v1518_v40  ;;  %v1658_v56 = vld [vmem:[%s2238_s17 + $0x118] sm:$0xf]  ;;  %v2179_v61 = vld [vmem:[%s2238_s17 + $0x400] sm:$0xf0] }
  0x36   : > { %1142 = vmatpush.bf16.msrb.mxu1 %v1695_v54  ;;  %1159 = vmatpush.bf16.msrb.mxu3 %v1915_v55  ;;  %v1611_v53 = vor.u32 %v2074_v44, %v1608_v45  ;;  %v2063_v54 = vld [vmem:[%s2238_s17 + $0x64] sm:$0xf]  ;;  %v1564_v55 = vld [vmem:[%s2238_s17 + $0x8c] sm:$0xf0]  ;;  %v2108_v63 = vld [vmem:[%s2238_s17 + $0x1cc] sm:$0xf] }
  0x37   : > { %1168 = vmatpush.bf16.msrb.mxu0 %v1787_v59  ;;  %1185 = vmatpush.bf16.msrb.mxu2 %v2007_v60  ;;  %v1795_v59 = vor.u32 %v2119_v49, %v1792_v51  ;;  %v2010_v60 = vld [vmem:[%s2238_s17 + $0x3d8] sm:$0xf]  ;;  %v2091_v62 = vld [vmem:[%s2238_s17 + $0x140] sm:$0xf0]  ;;  %v1567_v2 = vor.u32 %v2063_v54, %v1564_v55  ;;  %v2052_v4 = vld [vmem:[%s2238_s17 + $0xc] sm:$0xf] }
  0x38   : > { %v1748_v0 = vld [vmem:[%s2238_s17 + $0x1f4] sm:$0xf0]  ;;  %v2011_v3 = vor.u32 %v2179_v61, %v2010_v60  ;;  %v2168_v10 = vld [vmem:[%s2238_s17 + $0x3a8] sm:$0xf0]  ;;  %v2097_v12 = vld [vmem:[%s2238_s17 + $0x174] sm:$0xf] }
  0x39   : > { %v1751_v7 = vor.u32 %v2108_v63, %v1748_v0  ;;  %v2080_v11 = vld [vmem:[%s2238_s17 + $0xe8] sm:$0xf0]  ;;  %v2406_v17 = vld [vmem:[%s2238_s17 + $0x438] sm:$0xff]  ;;  %v1922_v21 = vld [vmem:[%s2238_s17 + $0x328] sm:$0xf]  ;;  %v1066_v26 = vsel %vm1049_vm0, %v907_v14, 0 }
  0x3a   : > { %1143 = vmatpush.bf16.msrb.mxu1 %v1651_v5  ;;  %1160 = vmatpush.bf16.msrb.mxu3 %v1871_v6  ;;  %v1520_v5 = vld [vmem:[%s2238_s17 + $0x34] sm:$0xf0]  ;;  %v1659_v6 = vor.u32 %v2091_v62, %v1658_v56  ;;  %v2157_v22 = vld [vmem:[%s2238_s17 + $0x350] sm:$0xf0]  ;;  %v1660_v25 = vld [vmem:[%s2238_s17 + $0x144] sm:$0xf0]  ;;  %v765_v31 = vunpack.c.l.b16 %v2406_v17  ;;  %v766_v63 = vunpack.c.h.b16 %v2406_v17 }
  0x3b   : > { %1169 = vmatpush.bf16.msrb.mxu0 %v1743_v8  ;;  %1186 = vmatpush.bf16.msrb.mxu2 %v1963_v9  ;;  %v1614_v8 = vld [vmem:[%s2238_s17 + $0xc0] sm:$0xf]  ;;  %v1523_v15 = vor.u32 %v2052_v4, %v1520_v5  ;;  %v2174_v27 = vld [vmem:[%s2238_s17 + $0x3dc] sm:$0xf]  ;;  %v1923_v29 = vor.u32 %v2157_v22, %v1922_v21  ;;  %v1526_v30 = vld [vmem:[%s2238_s17 + $0x10] sm:$0xf] }
  0x3c   : > { %v1966_v9 = vld [vmem:[%s2238_s17 + $0x380] sm:$0xf]  ;;  %v1615_v18 = vor.u32 %v2080_v11, %v1614_v8  ;;  %v2058_v35 = vld [vmem:[%s2238_s17 + $0x38] sm:$0xf0]  ;;  %v1878_v36 = vld [vmem:[%s2238_s17 + $0x2d0] sm:$0xf]  ;;  %v908_v46 = vpack.c.b16 %v765_v31, %v765_v31 }
  0x3d   : > { %2038 = vmatmul.msk.bf16.vlgmr.msrb.gmra.mxu3 %vm1045_vm1, %v2309_v34  ;;  %v1967_v16 = vor.u32 %v2168_v10, %v1966_v9  ;;  %v1616_v40 = vld [vmem:[%s2238_s17 + $0xec] sm:$0xf0]  ;;  %v2163_v41 = vld [vmem:[%s2238_s17 + $0x384] sm:$0xf]  ;;  %v2136_v44 = vld [vmem:[%s2238_s17 + $0x2a8] sm:$0xf0]  ;;  %v1527_v47 = vor.u32 %v2058_v35, %v1526_v30 }
  0x3e   : > { %1195 = vmatpush.bf16.msra.mxu3 %v1835_v13  ;;  %1144 = vmatpush.bf16.msrb.mxu1 %v1607_v20  ;;  %v1704_v13 = vld [vmem:[%s2238_s17 + $0x19c] sm:$0xf0]  ;;  %v1570_v20 = vld [vmem:[%s2238_s17 + $0x68] sm:$0xf]  ;;  %v2152_v54 = vld [vmem:[%s2238_s17 + $0x32c] sm:$0xf] }
  0x3f   : > { %1170 = vmatpush.bf16.msrb.mxu0 %v1699_v23  ;;  %1187 = vmatpush.bf16.msrb.mxu2 %v1919_v24  ;;  %v1707_v19 = vor.u32 %v2097_v12, %v1704_v13  ;;  %v2069_v23 = vld [vmem:[%s2238_s17 + $0x90] sm:$0xf0]  ;;  %v2086_v24 = vld [vmem:[%s2238_s17 + $0x11c] sm:$0xf]  ;;  %v1924_v55 = vld [vmem:[%s2238_s17 + $0x354] sm:$0xf0]  ;;  %v909_v13 = vpack.c.b16 %v766_v63, %v766_v63 }
  0x40   : > { %v1571_v32 = vor.u32 %v2069_v23, %v1570_v20  ;;  %v1663_v33 = vor.u32 %v2086_v24, %v1660_v25  ;;  %v1798_v56 = vld [vmem:[%s2238_s17 + $0x228] sm:$0xf]  ;;  %v2180_v60 = vld [vmem:[%s2238_s17 + $0x408] sm:$0xf0]  ;;  %v2053_v62 = vld [vmem:[%s2238_s17 + $0x14] sm:$0xf]  ;;  %v1927_v0 = vor.u32 %v2152_v54, %v1924_v55 }
  0x41   : > { %v1880_v4 = vld [vmem:[%s2238_s17 + $0x2fc] sm:$0xf0]  ;;  %v1974_v8 = vld [vmem:[%s2238_s17 + $0x388] sm:$0xf]  ;;  %v2169_v9 = vld [vmem:[%s2238_s17 + $0x3b0] sm:$0xf0] }
  0x42   : > { %1196 = vmatpush.bf16.msra.mxu3 %v1791_v28  ;;  %1145 = vmatpush.bf16.msrb.mxu1 %v1563_v37  ;;  %v2012_v28 = vld [vmem:[%s2238_s17 + $0x404] sm:$0xf0]  ;;  %v2146_v37 = vld [vmem:[%s2238_s17 + $0x2f8] sm:$0xf0]  ;;  %v2131_v10 = vld [vmem:[%s2238_s17 + $0x284] sm:$0xf] }
  0x43   : > { %1171 = vmatpush.bf16.msrb.mxu0 %v1655_v38  ;;  %1188 = vmatpush.bf16.msrb.mxu2 %v1875_v39  ;;  %v2015_v38 = vor.u32 %v2174_v27, %v2012_v28  ;;  %v2075_v39 = vld [vmem:[%s2238_s17 + $0xc4] sm:$0xf]  ;;  %v1879_v45 = vor.u32 %v2146_v37, %v1878_v36  ;;  %v1844_v11 = vld [vmem:[%s2238_s17 + $0x2ac] sm:$0xf0]  ;;  %v2158_v21 = vld [vmem:[%s2238_s17 + $0x358] sm:$0xf0] }
  0x44   : > { %v1619_v48 = vor.u32 %v2075_v39, %v1616_v40  ;;  %v1847_v17 = vor.u32 %v2131_v10, %v1844_v11  ;;  %v1930_v20 = vld [vmem:[%s2238_s17 + $0x330] sm:$0xf]  ;;  %v2120_v22 = vld [vmem:[%s2238_s17 + $0x22c] sm:$0xf]  ;;  %v1800_v23 = vld [vmem:[%s2238_s17 + $0x254] sm:$0xf0] }
  0x45   : > { %v1072_v24 = vsel %vm1049_vm0, %v909_v13, 0  ;;  %v2175_v25 = vld [vmem:[%s2238_s17 + $0x3e4] sm:$0xf]  ;;  %v1666_v28 = vld [vmem:[%s2238_s17 + $0x120] sm:$0xf]  ;;  %v1803_v30 = vor.u32 %v2120_v22, %v1800_v23 }
  0x46   : > { %1197 = vmatpush.bf16.msra.mxu3 %v1747_v42  ;;  %1146 = vmatpush.bf16.msrb.mxu1 %v1519_v52  ;;  %v1968_v42 = vld [vmem:[%s2238_s17 + $0x3ac] sm:$0xf0]  ;;  %v2064_v52 = vld [vmem:[%s2238_s17 + $0x6c] sm:$0xf]  ;;  %v2109_v36 = vld [vmem:[%s2238_s17 + $0x1d4] sm:$0xf] }
  0x47   : > { %1223 = vmatpush.bf16.msra.mxu2 %v1839_v43  ;;  %1172 = vmatpush.bf16.msrb.mxu0 %v1611_v53  ;;  %v1842_v43 = vld [vmem:[%s2238_s17 + $0x280] sm:$0xf]  ;;  %v1971_v49 = vor.u32 %v2163_v41, %v1968_v42  ;;  %v1572_v53 = vld [vmem:[%s2238_s17 + $0x94] sm:$0xf0]  ;;  %v2092_v31 = vld [vmem:[%s2238_s17 + $0x148] sm:$0xf0] }
  0x48   : > { %2039 = vmatmul.msk.bf16.vlgmr.msrb.gmra.mxu2 %vm1045_vm1, %v2309_v34  ;;  %v1843_v51 = vor.u32 %v2136_v44, %v1842_v43  ;;  %v1575_v61 = vor.u32 %v2064_v52, %v1572_v53  ;;  %v1756_v37 = vld [vmem:[%s2238_s17 + $0x1fc] sm:$0xf0]  ;;  %v1976_v39 = vld [vmem:[%s2238_s17 + $0x3b4] sm:$0xf0]  ;;  %v1850_v40 = vld [vmem:[%s2238_s17 + $0x288] sm:$0xf]  ;;  %v1667_v42 = vor.u32 %v2092_v31, %v1666_v28 }
  0x49   : > { %1147 = vmatmul.bf16.vlgmr.msrb.gmra.mxu1 %v2329_v50  ;;  %v2137_v41 = vld [vmem:[%s2238_s17 + $0x2b0] sm:$0xf0]  ;;  %v1759_v44 = vor.u32 %v2109_v36, %v1756_v37  ;;  %v1932_v53 = vld [vmem:[%s2238_s17 + $0x35c] sm:$0xf0]  ;;  %v1806_v54 = vld [vmem:[%s2238_s17 + $0x230] sm:$0xf] }
  0x4a   : > { %1212 = vmatpush.bf16.msra.mxu1 %v1063_v58  ;;  %1198 = vmatpush.bf16.msra.mxu3 %v1703_v57  ;;  %v2125_v57 = vld [vmem:[%s2238_s17 + $0x250] sm:$0xf0]  ;;  %v1069_v58 = vsel %vm1049_vm0, %v908_v46, 0  ;;  %v2126_v55 = vld [vmem:[%s2238_s17 + $0x258] sm:$0xf0] }
  0x4b   : > { %1224 = vmatpush.bf16.msra.mxu2 %v1795_v59  ;;  %1173 = vmatpush.bf16.msrb.mxu0 %v1567_v2  ;;  %v2018_v59 = vld [vmem:[%s2238_s17 + $0x3e0] sm:$0xf]  ;;  %v1799_v1 = vor.u32 %v2125_v57, %v1798_v56  ;;  %v2081_v46 = vld [vmem:[%s2238_s17 + $0xf0] sm:$0xf0]  ;;  %v2087_v63 = vld [vmem:[%s2238_s17 + $0x124] sm:$0xf] }
  0x4c   : > { %v1528_v2 = vld [vmem:[%s2238_s17 + $0x3c] sm:$0xf0]  ;;  %v2019_v5 = vor.u32 %v2180_v60, %v2018_v59  ;;  %v2153_v52 = vld [vmem:[%s2238_s17 + $0x334] sm:$0xf]  ;;  %v1578_v59 = vld [vmem:[%s2238_s17 + $0x70] sm:$0xf] }
  0x4d   : > { %v1531_v12 = vor.u32 %v2053_v62, %v1528_v2  ;;  %v2483_v56 = vld [vmem:[%s2238_s17 + $0x440] sm:$0xff]  ;;  %v2070_v60 = vld [vmem:[%s2238_s17 + $0x98] sm:$0xf0]  ;;  %v1807_v62 = vor.u32 %v2126_v55, %v1806_v54  ;;  %v1534_v10 = vld [vmem:[%s2238_s17 + $0x18] sm:$0xf] }
  0x4e   : > { %1213 = vmatpush.bf16.msra.mxu1 %v2011_v3  ;;  %1199 = vmatpush.bf16.msra.mxu3 %v1659_v6  ;;  %v2141_v3 = vld [vmem:[%s2238_s17 + $0x2d4] sm:$0xf]  ;;  %v1754_v6 = vld [vmem:[%s2238_s17 + $0x1d0] sm:$0xf]  ;;  %v767_v2 = vunpack.c.l.b16 %v2483_v56  ;;  %v2059_v11 = vld [vmem:[%s2238_s17 + $0x40] sm:$0xf0] }
  0x4f   : > { %1225 = vmatpush.bf16.msra.mxu2 %v1751_v7  ;;  %1174 = vmatpush.bf16.msrb.mxu0 %v1523_v15  ;;  %v2114_v7 = vld [vmem:[%s2238_s17 + $0x1f8] sm:$0xf0]  ;;  %v1883_v14 = vor.u32 %v2141_v3, %v1880_v4  ;;  %v1888_v3 = vld [vmem:[%s2238_s17 + $0x304] sm:$0xf0]  ;;  %v1762_v4 = vld [vmem:[%s2238_s17 + $0x1d8] sm:$0xf] }
  0x50   : > { %v1755_v15 = vor.u32 %v2114_v7, %v1754_v6  ;;  %v1579_v6 = vor.u32 %v2070_v60, %v1578_v59  ;;  %v2132_v7 = vld [vmem:[%s2238_s17 + $0x28c] sm:$0xf]  ;;  %v1808_v22 = vld [vmem:[%s2238_s17 + $0x25c] sm:$0xf0]  ;;  %v2026_v28 = vld [vmem:[%s2238_s17 + $0x3e8] sm:$0xf] }
  0x51   : > { %v1674_v31 = vld [vmem:[%s2238_s17 + $0x128] sm:$0xf]  ;;  %v1586_v54 = vld [vmem:[%s2238_s17 + $0x78] sm:$0xf] }
  0x52   : > { %1214 = vmatpush.bf16.msra.mxu1 %v1967_v16  ;;  %1200 = vmatpush.bf16.msra.mxu3 %v1615_v18  ;;  %v1975_v16 = vor.u32 %v2169_v9, %v1974_v8  ;;  %v1710_v18 = vld [vmem:[%s2238_s17 + $0x178] sm:$0xf]  ;;  %v1764_v36 = vld [vmem:[%s2238_s17 + $0x204] sm:$0xf0] }
  0x53   : > { %1226 = vmatpush.bf16.msra.mxu2 %v1707_v19  ;;  %1240 = vmatpush.bf16.msra.mxu0 %v1066_v26  ;;  %v2103_v19 = vld [vmem:[%s2238_s17 + $0x1a0] sm:$0xf0]  ;;  %v2020_v26 = vld [vmem:[%s2238_s17 + $0x40c] sm:$0xf0]  ;;  %v1852_v8 = vld [vmem:[%s2238_s17 + $0x2b4] sm:$0xf0] }
  0x54   : > { %1175 = vmatmul.bf16.vlgmr.msrb.gmra.mxu0 %v2329_v50  ;;  %v1711_v27 = vor.u32 %v2103_v19, %v1710_v18  ;;  %v2023_v35 = vor.u32 %v2175_v25, %v2020_v26  ;;  %v1718_v18 = vld [vmem:[%s2238_s17 + $0x180] sm:$0xf]  ;;  %v2104_v19 = vld [vmem:[%s2238_s17 + $0x1a8] sm:$0xf0] }
  0x55   : > { %v1580_v25 = vld [vmem:[%s2238_s17 + $0x9c] sm:$0xf0]  ;;  %v1719_v26 = vor.u32 %v2104_v19, %v1718_v18 }
  0x56   : > { %1215 = vmatpush.bf16.msra.mxu1 %v1923_v29  ;;  %1201 = vmatpush.bf16.msra.mxu3 %v1571_v32  ;;  %v1931_v29 = vor.u32 %v2158_v21, %v1930_v20  ;;  %v1886_v32 = vld [vmem:[%s2238_s17 + $0x2d8] sm:$0xf]  ;;  %v1535_v20 = vor.u32 %v2059_v11, %v1534_v10  ;;  %v2121_v21 = vld [vmem:[%s2238_s17 + $0x234] sm:$0xf]  ;;  %v2060_v10 = vld [vmem:[%s2238_s17 + $0x48] sm:$0xf0] }
  0x57   : > { %1227 = vmatpush.bf16.msra.mxu2 %v1663_v33  ;;  %1241 = vmatpush.bf16.msra.mxu0 %v2015_v38  ;;  %v2147_v33 = vld [vmem:[%s2238_s17 + $0x300] sm:$0xf0]  ;;  %v2164_v38 = vld [vmem:[%s2238_s17 + $0x38c] sm:$0xf]  ;;  %v1858_v11 = vld [vmem:[%s2238_s17 + $0x290] sm:$0xf] }
  0x58   : > { %v1887_v43 = vor.u32 %v2147_v33, %v1886_v32  ;;  %v2093_v32 = vld [vmem:[%s2238_s17 + $0x150] sm:$0xf0]  ;;  %v768_v33 = vunpack.c.h.b16 %v2483_v56  ;;  %v2071_v56 = vld [vmem:[%s2238_s17 + $0xa0] sm:$0xf0] }
  0x5a   : > { %1216 = vmatpush.bf16.msra.mxu1 %v1879_v45  ;;  %1202 = vmatpush.bf16.msra.mxu3 %v1527_v47  ;;  %v1622_v45 = vld [vmem:[%s2238_s17 + $0xc8] sm:$0xf]  ;;  %v2098_v47 = vld [vmem:[%s2238_s17 + $0x17c] sm:$0xf] }
  0x5b   : > { %1228 = vmatpush.bf16.msra.mxu2 %v1619_v48  ;;  %1242 = vmatpush.bf16.msra.mxu0 %v1971_v49  ;;  %v1979_v48 = vor.u32 %v2164_v38, %v1976_v39  ;;  %v1851_v49 = vor.u32 %v2137_v41, %v1850_v40  ;;  %v1623_v57 = vor.u32 %v2081_v46, %v1622_v45  ;;  %v2054_v39 = vld [vmem:[%s2238_s17 + $0x1c] sm:$0xf]  ;;  %v1536_v41 = vld [vmem:[%s2238_s17 + $0x44] sm:$0xf0]  ;;  %v1630_v45 = vld [vmem:[%s2238_s17 + $0xd0] sm:$0xf] }
  0x5c   : > { %v1675_v40 = vor.u32 %v2093_v32, %v1674_v31  ;;  %v2082_v46 = vld [vmem:[%s2238_s17 + $0xf8] sm:$0xf0] }
  0x5d   : > { %2040 = vmatmul.msk.bf16.vlgmr.msra.gmra.mxu1 %vm1045_vm1, %v2309_v34  ;;  %1203 = vmatmul.bf16.vlgmr.msra.gmra.mxu3 %v2329_v50  ;;  %v1631_v55 = vor.u32 %v2082_v46, %v1630_v45 }
  0x5e   : > { %1251 = vmatpush.bf16.msrb.mxu1 %v1843_v51  ;;  %1268 = vmatpush.bf16.msrb.mxu3 %v1069_v58  ;;  %v1712_v51 = vld [vmem:[%s2238_s17 + $0x1a4] sm:$0xf0] }
  0x5f   : > { %1229 = vmatpush.bf16.msra.mxu2 %v1575_v61  ;;  %1243 = vmatpush.bf16.msra.mxu0 %v1927_v0  ;;  %v1715_v58 = vor.u32 %v2098_v47, %v1712_v51  ;;  %v1935_v61 = vor.u32 %v2153_v52, %v1932_v53  ;;  %v1668_v0 = vld [vmem:[%s2238_s17 + $0x14c] sm:$0xf0]  ;;  %v911_v47 = vpack.c.b16 %v768_v33, %v768_v33 }
  0x60   : > { %v1671_v9 = vor.u32 %v2087_v63, %v1668_v0  ;;  %v1720_v51 = vld [vmem:[%s2238_s17 + $0x1ac] sm:$0xf0]  ;;  %v1539_v52 = vor.u32 %v2054_v39, %v1536_v41  ;;  %v2028_v63 = vld [vmem:[%s2238_s17 + $0x414] sm:$0xf0]  ;;  %v2088_v0 = vld [vmem:[%s2238_s17 + $0x12c] sm:$0xf] }
  0x61   : > { %v1990_v39 = vld [vmem:[%s2238_s17 + $0x398] sm:$0xf] }
  0x62   : > { %1252 = vmatpush.bf16.msrb.mxu1 %v1799_v1  ;;  %1269 = vmatpush.bf16.msrb.mxu3 %v2019_v5  ;;  %v2142_v1 = vld [vmem:[%s2238_s17 + $0x2dc] sm:$0xf]  ;;  %v2115_v5 = vld [vmem:[%s2238_s17 + $0x200] sm:$0xf0] }
  0x63   : > { %1230 = vmatpush.bf16.msra.mxu2 %v1531_v12  ;;  %1244 = vmatpush.bf16.msra.mxu0 %v1883_v14  ;;  %v1891_v12 = vor.u32 %v2142_v1, %v1888_v3  ;;  %v1763_v13 = vor.u32 %v2115_v5, %v1762_v4  ;;  %v2076_v14 = vld [vmem:[%s2238_s17 + $0xcc] sm:$0xf]  ;;  %v1676_v1 = vld [vmem:[%s2238_s17 + $0x154] sm:$0xf0]  ;;  %v1587_v3 = vor.u32 %v2071_v56, %v1586_v54  ;;  %v1542_v4 = vld [vmem:[%s2238_s17 + $0x20] sm:$0xf] }
  0x64   : > { %v1894_v5 = vld [vmem:[%s2238_s17 + $0x2e0] sm:$0xf]  ;;  %v1543_v18 = vor.u32 %v2060_v10, %v1542_v4  ;;  %v2094_v56 = vld [vmem:[%s2238_s17 + $0x158] sm:$0xf0]  ;;  %v2061_v4 = vld [vmem:[%s2238_s17 + $0x50] sm:$0xf0] }
  0x66   : > { %1253 = vmatpush.bf16.msrb.mxu1 %v1755_v15  ;;  %1270 = vmatpush.bf16.msrb.mxu3 %v1975_v16  ;;  %v1624_v15 = vld [vmem:[%s2238_s17 + $0xf4] sm:$0xf0]  ;;  %v910_v16 = vpack.c.b16 %v767_v2, %v767_v2 }
  0x67   : > { %1279 = vmatpush.bf16.msrb.mxu0 %v1847_v17  ;;  %1296 = vmatpush.bf16.msrb.mxu2 %v1072_v24  ;;  %v1855_v17 = vor.u32 %v2132_v7, %v1852_v8  ;;  %v1627_v23 = vor.u32 %v2076_v14, %v1624_v15  ;;  %v2065_v24 = vld [vmem:[%s2238_s17 + $0x74] sm:$0xf]  ;;  %v1632_v14 = vld [vmem:[%s2238_s17 + $0xfc] sm:$0xf0] }
  0x68   : > { %1231 = vmatmul.bf16.vlgmr.msra.gmra.mxu2 %v2329_v50  ;;  %2041 = vmatmul.msk.bf16.vlgmr.msra.gmra.mxu0 %vm1045_vm1, %v2309_v34  ;;  %v1583_v37 = vor.u32 %v2065_v24, %v1580_v25  ;;  %v2127_v24 = vld [vmem:[%s2238_s17 + $0x260] sm:$0xf0]  ;;  %v1588_v25 = vld [vmem:[%s2238_s17 + $0xa4] sm:$0xf0] }
  0x6a   : > { %1254 = vmatpush.bf16.msrb.mxu1 %v1711_v27  ;;  %1271 = vmatpush.bf16.msrb.mxu3 %v1931_v29  ;;  %v1075_v27 = vsel %vm1049_vm0, %v910_v16, 0  ;;  %v2181_v29 = vld [vmem:[%s2238_s17 + $0x410] sm:$0xf0] }
  0x6b   : > { %1280 = vmatpush.bf16.msrb.mxu0 %v1803_v30  ;;  %1297 = vmatpush.bf16.msrb.mxu2 %v2023_v35  ;;  %v1811_v30 = vor.u32 %v2121_v21, %v1808_v22  ;;  %v2110_v35 = vld [vmem:[%s2238_s17 + $0x1dc] sm:$0xf]  ;;  %v2027_v38 = vor.u32 %v2181_v29, %v2026_v28  ;;  %v2165_v16 = vld [vmem:[%s2238_s17 + $0x394] sm:$0xf] }
  0x6c   : > { %v2066_v22 = vld [vmem:[%s2238_s17 + $0x7c] sm:$0xf] }
  0x6d   : > { %v2154_v29 = vld [vmem:[%s2238_s17 + $0x33c] sm:$0xf]  ;;  %v1591_v32 = vor.u32 %v2066_v22, %v1588_v25 }
  0x6e   : > { %1255 = vmatpush.bf16.msrb.mxu1 %v1667_v42  ;;  %1272 = vmatpush.bf16.msrb.mxu3 %v1887_v43  ;;  %v1982_v42 = vld [vmem:[%s2238_s17 + $0x390] sm:$0xf]  ;;  %v2170_v43 = vld [vmem:[%s2238_s17 + $0x3b8] sm:$0xf0] }
  0x6f   : > { %1281 = vmatpush.bf16.msrb.mxu0 %v1759_v44  ;;  %1298 = vmatpush.bf16.msrb.mxu2 %v1979_v48  ;;  %v1767_v44 = vor.u32 %v2110_v35, %v1764_v36  ;;  %v325_v48 = vld [vmem:[%s2238_s17 + $0x448] sm:$0xf]  ;;  %v1983_v53 = vor.u32 %v2170_v43, %v1982_v42  ;;  %v2055_v35 = vld [vmem:[%s2238_s17 + $0x24] sm:$0xf]  ;;  %v1770_v36 = vld [vmem:[%s2238_s17 + $0x1e0] sm:$0xf] }
  0x70   : > { %v769_v59 = vunpack.c.l.b16 %v325_v48  ;;  %v2143_v42 = vld [vmem:[%s2238_s17 + $0x2e4] sm:$0xf]  ;;  %v1896_v43 = vld [vmem:[%s2238_s17 + $0x30c] sm:$0xf0]  ;;  %v2105_v48 = vld [vmem:[%s2238_s17 + $0x1b0] sm:$0xf0] }
  0x71   : > { %2042 = vmatmul.msk.bf16.vlgmr.msrb.gmra.mxu3 %vm1045_vm1, %v2309_v34 }
  0x72   : > { %1307 = vmatpush.bf16.msra.mxu3 %v1851_v49  ;;  %1256 = vmatpush.bf16.msrb.mxu1 %v1623_v57  ;;  %v2099_v49 = vld [vmem:[%s2238_s17 + $0x184] sm:$0xf]  ;;  %v1938_v57 = vld [vmem:[%s2238_s17 + $0x338] sm:$0xf]  ;;  %v912_v7 = vpack.c.b16 %v769_v59, %v769_v59 }
  0x73   : > { %1282 = vmatpush.bf16.msrb.mxu0 %v1715_v58  ;;  %1299 = vmatpush.bf16.msrb.mxu2 %v1935_v61  ;;  %v2159_v58 = vld [vmem:[%s2238_s17 + $0x360] sm:$0xf0]  ;;  %v1723_v60 = vor.u32 %v2099_v49, %v1720_v51  ;;  %v1078_v61 = vsel %vm1049_vm0, %v911_v47, 0  ;;  %v1726_v47 = vld [vmem:[%s2238_s17 + $0x188] sm:$0xf] }
  0x74   : > { %v1939_v2 = vor.u32 %v2159_v58, %v1938_v57  ;;  %v1946_v49 = vld [vmem:[%s2238_s17 + $0x340] sm:$0xf]  ;;  %v2160_v51 = vld [vmem:[%s2238_s17 + $0x368] sm:$0xf0]  ;;  %v1902_v57 = vld [vmem:[%s2238_s17 + $0x2e8] sm:$0xf] }
  0x75   : > { %v1947_v54 = vor.u32 %v2160_v51, %v1946_v49  ;;  %v2149_v58 = vld [vmem:[%s2238_s17 + $0x310] sm:$0xf0] }
  0x76   : > { %1308 = vmatpush.bf16.msra.mxu3 %v1807_v62  ;;  %1257 = vmatpush.bf16.msrb.mxu1 %v1579_v6  ;;  %v2176_v62 = vld [vmem:[%s2238_s17 + $0x3ec] sm:$0xf] }
  0x77   : > { %1283 = vmatpush.bf16.msrb.mxu0 %v1671_v9  ;;  %1300 = vmatpush.bf16.msrb.mxu2 %v1891_v12  ;;  %v2148_v6 = vld [vmem:[%s2238_s17 + $0x308] sm:$0xf0]  ;;  %v2031_v8 = vor.u32 %v2176_v62, %v2028_v63  ;;  %v1679_v9 = vor.u32 %v2088_v0, %v1676_v1  ;;  %v2138_v12 = vld [vmem:[%s2238_s17 + $0x2b8] sm:$0xf0]  ;;  %v2083_v62 = vld [vmem:[%s2238_s17 + $0x100] sm:$0xf0] }
  0x78   : > { %v1895_v15 = vor.u32 %v2148_v6, %v1894_v5  ;;  %v1859_v19 = vor.u32 %v2138_v12, %v1858_v11  ;;  %v1594_v0 = vld [vmem:[%s2238_s17 + $0x80] sm:$0xf]  ;;  %v2072_v1 = vld [vmem:[%s2238_s17 + $0xa8] sm:$0xf0] }
  0x7a   : > { %1309 = vmatpush.bf16.msra.mxu3 %v1763_v13  ;;  %1258 = vmatpush.bf16.msrb.mxu1 %v1535_v20  ;;  %v2077_v13 = vld [vmem:[%s2238_s17 + $0xd4] sm:$0xf]  ;;  %v1081_v20 = vsel %vm1049_vm0, %v912_v7, 0 }
  0x7b   : > { %1335 = vmatpush.bf16.msra.mxu2 %v1855_v17  ;;  %1284 = vmatpush.bf16.msrb.mxu0 %v1627_v23  ;;  %v1984_v17 = vld [vmem:[%s2238_s17 + $0x3bc] sm:$0xf0]  ;;  %v1635_v21 = vor.u32 %v2077_v13, %v1632_v14  ;;  %v1814_v23 = vld [vmem:[%s2238_s17 + $0x238] sm:$0xf] }
  0x7c   : > { %2043 = vmatmul.msk.bf16.vlgmr.msrb.gmra.mxu2 %vm1045_vm1, %v2309_v34  ;;  %v1987_v28 = vor.u32 %v2165_v16, %v1984_v17  ;;  %v1815_v31 = vor.u32 %v2127_v24, %v1814_v23 }
  0x7d   : > { %1259 = vmatmul.bf16.vlgmr.msrb.gmra.mxu1 %v2329_v50 }
  0x7e   : > { %1324 = vmatpush.bf16.msra.mxu1 %v1075_v27  ;;  %1310 = vmatpush.bf16.msra.mxu3 %v1719_v26  ;;  %v2034_v26 = vld [vmem:[%s2238_s17 + $0x3f0] sm:$0xf]  ;;  %v2182_v27 = vld [vmem:[%s2238_s17 + $0x418] sm:$0xf0] }
  0x7f   : > { %1336 = vmatpush.bf16.msra.mxu2 %v1811_v30  ;;  %1285 = vmatpush.bf16.msrb.mxu0 %v1583_v37  ;;  %v1940_v30 = vld [vmem:[%s2238_s17 + $0x364] sm:$0xf0]  ;;  %v2035_v33 = vor.u32 %v2182_v27, %v2034_v26  ;;  %v2116_v37 = vld [vmem:[%s2238_s17 + $0x208] sm:$0xf0] }
  0x80   : > { %v1943_v41 = vor.u32 %v2154_v29, %v1940_v30 }
  0x82   : > { %1325 = vmatpush.bf16.msra.mxu1 %v2027_v38  ;;  %1311 = vmatpush.bf16.msra.mxu3 %v1675_v40  ;;  %v1544_v38 = vld [vmem:[%s2238_s17 + $0x4c] sm:$0xf0]  ;;  %v2171_v40 = vld [vmem:[%s2238_s17 + $0x3c0] sm:$0xf0] }
  0x83   : > { %1337 = vmatpush.bf16.msra.mxu2 %v1767_v44  ;;  %1286 = vmatpush.bf16.msrb.mxu0 %v1539_v52  ;;  %v1771_v44 = vor.u32 %v2116_v37, %v1770_v36  ;;  %v1547_v45 = vor.u32 %v2055_v35, %v1544_v38  ;;  %v1991_v46 = vor.u32 %v2171_v40, %v1990_v39 }
  0x84   : > { %v1899_v52 = vor.u32 %v2143_v42, %v1896_v43 }
  0x86   : > { %1326 = vmatpush.bf16.msra.mxu1 %v1983_v53  ;;  %1312 = vmatpush.bf16.msra.mxu3 %v1631_v55  ;;  %v1727_v53 = vor.u32 %v2105_v48, %v1726_v47  ;;  %v1682_v55 = vld [vmem:[%s2238_s17 + $0x130] sm:$0xf] }
  0x87   : > { %1352 = vmatpush.bf16.msra.mxu0 %v1078_v61  ;;  %1338 = vmatpush.bf16.msra.mxu2 %v1723_v60  ;;  %v1683_v59 = vor.u32 %v2094_v56, %v1682_v55  ;;  %v1903_v60 = vor.u32 %v2149_v58, %v1902_v57  ;;  %v1638_v61 = vld [vmem:[%s2238_s17 + $0xd8] sm:$0xf] }
  0x88   : > { %1287 = vmatmul.bf16.vlgmr.msrb.gmra.mxu0 %v2329_v50  ;;  %v1639_v63 = vor.u32 %v2083_v62, %v1638_v61 }
  0x8a   : > { %1327 = vmatpush.bf16.msra.mxu1 %v1939_v2  ;;  %1313 = vmatpush.bf16.msra.mxu3 %v1587_v3  ;;  %v1595_v2 = vor.u32 %v2072_v1, %v1594_v0  ;;  %v1550_v3 = vld [vmem:[%s2238_s17 + $0x28] sm:$0xf] }
  0x8b   : > { %1353 = vmatpush.bf16.msra.mxu0 %v2031_v8  ;;  %1339 = vmatpush.bf16.msra.mxu2 %v1679_v9  ;;  %v1551_v5 = vor.u32 %v2061_v4, %v1550_v3 }
  0x8e   : > { %1328 = vmatpush.bf16.msra.mxu1 %v1895_v15  ;;  %1314 = vmatpush.bf16.msra.mxu3 %v1543_v18 }
  0x8f   : > { %1340 = vmatpush.bf16.msra.mxu2 %v1635_v21  ;;  %1354 = vmatpush.bf16.msra.mxu0 %v1987_v28 }
  0x91   : > { %2044 = vmatmul.msk.bf16.vlgmr.msra.gmra.mxu1 %vm1045_vm1, %v2309_v34  ;;  %1315 = vmatmul.bf16.vlgmr.msra.gmra.mxu3 %v2329_v50 }
  0x92   : > { %1363 = vmatpush.bf16.msrb.mxu1 %v1859_v19  ;;  %1380 = vmatpush.bf16.msrb.mxu3 %v1081_v20 }
  0x93   : > { %1341 = vmatpush.bf16.msra.mxu2 %v1591_v32  ;;  %1355 = vmatpush.bf16.msra.mxu0 %v1943_v41 }
  0x96   : > { %1364 = vmatpush.bf16.msrb.mxu1 %v1815_v31  ;;  %1381 = vmatpush.bf16.msrb.mxu3 %v2035_v33 }
  0x97   : > { %1342 = vmatpush.bf16.msra.mxu2 %v1547_v45  ;;  %1356 = vmatpush.bf16.msra.mxu0 %v1899_v52 }
  0x9a   : > { %1365 = vmatpush.bf16.msrb.mxu1 %v1771_v44  ;;  %1382 = vmatpush.bf16.msrb.mxu3 %v1991_v46 }
  0x9b   : > { %1343 = vmatmul.bf16.vlgmr.msra.gmra.mxu2 %v2329_v50  ;;  %2045 = vmatmul.msk.bf16.vlgmr.msra.gmra.mxu0 %vm1045_vm1, %v2309_v34 }
  0x9e   : > { %1366 = vmatpush.bf16.msrb.mxu1 %v1727_v53  ;;  %1383 = vmatpush.bf16.msrb.mxu3 %v1947_v54 }
  0x9f   : > { %v2588_v6 = vpop.permute.xlu0 %328 }
  0xa2   : > { %1367 = vmatpush.bf16.msrb.mxu1 %v1683_v59  ;;  %1384 = vmatpush.bf16.msrb.mxu3 %v1903_v60 }
  0xa5   : > { %2046 = vmatmul.msk.bf16.vlgmr.msrb.gmra.mxu3 %vm1045_vm1, %v2309_v34 }
  0xa6   : > { %1368 = vmatpush.bf16.msrb.mxu1 %v1639_v63  ;;  %v1106_v8 = vpop.f32.mrf.mxu1 }
  0xa7   : > { %v2591_v34 = vpop.permute.xlu0 %333 }
  0xaa   : > { %1369 = vmatpush.bf16.msrb.mxu1 %v1595_v2 }
  0xac   : > { %v1134_v10 = vpop.f32.mrf.mxu3 }
  0xae   : > { %1370 = vmatpush.bf16.msrb.mxu1 %v1551_v5 }
  0xb1   : > { %1371 = vmatmul.bf16.vlgmr.msrb.gmra.mxu1 %v2329_v50  ;;  %v1092_v7 = vpop.f32.mrf.mxu0  ;;  %v1108_v50 = vpop.f32.mrf.mxu1 }
  0xb2   : > { %v1093_v9 = vadd.f32 %v1092_v7, %v2588_v6 }
  0xb4   : > { %v1107_v11 = vadd.f32 %v1106_v8, %v1093_v9  ;;  %v1136_v22 = vpop.f32.mrf.mxu3 }
  0xb6   : > { %v1391_v15 = vmax.f32 %v1107_v11, 0.0 }
  0xb7   : > { %v1120_v12 = vpop.f32.mrf.mxu2 }
  0xb8   : > { %v1121_v13 = vadd.f32 %v1120_v12, %v2588_v6 }
  0xb9   : > { %v1094_v14 = vpop.f32.mrf.mxu0 }
  0xba   : > { %v1135_v16 = vadd.f32 %v1134_v10, %v1121_v13  ;;  %v1095_v17 = vadd.f32 %v1094_v14, %v2591_v34 }
  0xbc   : > { %v1392_v18 = vmax.f32 %v1135_v16, 0.0  ;;  %v1109_v20 = vadd.f32 %v1108_v50, %v1095_v17 }
  0xbe   : > { %v1413_v19 = vpack.c.bf16 %v1392_v18, %v1391_v15  ;;  %v1402_v24 = vmax.f32 %v1109_v20, 0.0 }
  0xbf   : > { %v1122_v21 = vpop.f32.mrf.mxu2 }
  0xc0   : > { %1425 = vst [vmem:[%s2599_s6] sm:$0xff] %v1413_v19  ;;  %v1123_v23 = vadd.f32 %v1122_v21, %v2591_v34  ;;  %v1162_v30 = vpop.f32.mrf.mxu3 }
  0xc2   : > { %v1137_v25 = vadd.f32 %v1136_v22, %v1123_v23 }
  0xc4   : > { %v1403_v26 = vmax.f32 %v1137_v25, 0.0 }
  0xc6   : > { %v1419_v27 = vpack.c.bf16 %v1403_v26, %v1402_v24  ;;  %v1148_v28 = vpop.f32.mrf.mxu1 }
  0xc7   : > { %v1149_v29 = vadd.f32 %v1148_v28, %v2588_v6 }
  0xc8   : > { %1432 = vst [vmem:[%s2599_s6 + $0x2c] sm:$0xff] %v1419_v27  ;;  %v1164_v41 = vpop.f32.mrf.mxu3 }
  0xc9   : > { %v1163_v32 = vadd.f32 %v1162_v30, %v1149_v29 }
  0xcb   : > { %v1190_v31 = vpop.f32.mrf.mxu2  ;;  %v1393_v37 = vmax.f32 %v1163_v32, 0.0 }
  0xce   : > { %v1150_v36 = vpop.f32.mrf.mxu1 }
  0xcf   : > { %v1151_v40 = vadd.f32 %v1150_v36, %v2591_v34 }
  0xd1   : > { %v1176_v33 = vpop.f32.mrf.mxu0  ;;  %v1165_v45 = vadd.f32 %v1164_v41, %v1151_v40 }
  0xd2   : > { %v1177_v35 = vadd.f32 %v1176_v33, %v2588_v6 }
  0xd3   : > { %v1192_v44 = vpop.f32.mrf.mxu2  ;;  %v1404_v48 = vmax.f32 %v1165_v45, 0.0 }
  0xd4   : > { %v1191_v38 = vadd.f32 %v1190_v31, %v1177_v35 }
  0xd6   : > { %v1394_v39 = vmax.f32 %v1191_v38, 0.0 }
  0xd8   : > { %v1414_v42 = vpack.c.bf16 %v1394_v39, %v1393_v37 }
  0xd9   : > { %v1178_v43 = vpop.f32.mrf.mxu0 }
  0xda   : > { %1426 = vst [vmem:[%s2599_s6 + $0x8] sm:$0xff] %v1414_v42  ;;  %v1179_v46 = vadd.f32 %v1178_v43, %v2591_v34  ;;  %v1218_v53 = vpop.f32.mrf.mxu1 }
  0xdc   : > { %v1193_v47 = vadd.f32 %v1192_v44, %v1179_v46 }
  0xde   : > { %v1405_v49 = vmax.f32 %v1193_v47, 0.0 }
  0xe0   : > { %v1420_v51 = vpack.c.bf16 %v1405_v49, %v1404_v48  ;;  %v1204_v52 = vpop.f32.mrf.mxu3 }
  0xe1   : > { %v1205_v54 = vadd.f32 %v1204_v52, %v2588_v6 }
  0xe2   : > { %1433 = vst [vmem:[%s2599_s6 + $0x34] sm:$0xff] %v1420_v51  ;;  %v1220_v63 = vpop.f32.mrf.mxu1 }
  0xe3   : > { %v1219_v56 = vadd.f32 %v1218_v53, %v1205_v54 }
  0xe5   : > { %v1246_v55 = vpop.f32.mrf.mxu0  ;;  %v1395_v60 = vmax.f32 %v1219_v56, 0.0 }
  0xe8   : > { %v1206_v58 = vpop.f32.mrf.mxu3 }
  0xe9   : > { %v1207_v62 = vadd.f32 %v1206_v58, %v2591_v34 }
  0xeb   : > { %v1232_v57 = vpop.f32.mrf.mxu2  ;;  %v1221_v2 = vadd.f32 %v1220_v63, %v1207_v62 }
  0xec   : > { %v1233_v59 = vadd.f32 %v1232_v57, %v2588_v6 }
  0xed   : > { %v1248_v4 = vpop.f32.mrf.mxu0  ;;  %v1406_v7 = vmax.f32 %v1221_v2, 0.0 }
  0xee   : > { %v1247_v61 = vadd.f32 %v1246_v55, %v1233_v59 }
  0xf0   : > { %v1396_v0 = vmax.f32 %v1247_v61, 0.0 }
  0xf2   : > { %v1415_v1 = vpack.c.bf16 %v1396_v0, %v1395_v60 }
  0xf3   : > { %v1234_v3 = vpop.f32.mrf.mxu2 }
  0xf4   : > { %1427 = vst [vmem:[%s2599_s6 + $0x10] sm:$0xff] %v1415_v1  ;;  %v1235_v5 = vadd.f32 %v1234_v3, %v2591_v34  ;;  %v1274_v13 = vpop.f32.mrf.mxu3 }
  0xf6   : > { %v1249_v8 = vadd.f32 %v1248_v4, %v1235_v5 }
  0xf8   : > { %v1407_v9 = vmax.f32 %v1249_v8, 0.0 }
  0xfa   : > { %v1421_v10 = vpack.c.bf16 %v1407_v9, %v1406_v7  ;;  %v1260_v11 = vpop.f32.mrf.mxu1 }
  0xfb   : > { %v1261_v12 = vadd.f32 %v1260_v11, %v2588_v6 }
  0xfc   : > { %1434 = vst [vmem:[%s2599_s6 + $0x3c] sm:$0xff] %v1421_v10  ;;  %v1276_v22 = vpop.f32.mrf.mxu3 }
  0xfd   : > { %v1275_v15 = vadd.f32 %v1274_v13, %v1261_v12 }
  0xff   : > { %v1302_v14 = vpop.f32.mrf.mxu2  ;;  %v1397_v18 = vmax.f32 %v1275_v15, 0.0 }
 0x102   : > { %v1262_v50 = vpop.f32.mrf.mxu1 }
 0x103   : > { %v1263_v21 = vadd.f32 %v1262_v50, %v2591_v34 }
 0x105   : > { %v1288_v16 = vpop.f32.mrf.mxu0  ;;  %v1277_v26 = vadd.f32 %v1276_v22, %v1263_v21 }
 0x106   : > { %v1289_v17 = vadd.f32 %v1288_v16, %v2588_v6 }
 0x107   : > { %v1304_v25 = vpop.f32.mrf.mxu2  ;;  %v1408_v29 = vmax.f32 %v1277_v26, 0.0 }
 0x108   : > { %v1303_v19 = vadd.f32 %v1302_v14, %v1289_v17 }
 0x10a   : > { %v1398_v20 = vmax.f32 %v1303_v19, 0.0 }
 0x10c   : > { %v1416_v23 = vpack.c.bf16 %v1398_v20, %v1397_v18 }
 0x10d   : > { %v1290_v24 = vpop.f32.mrf.mxu0 }
 0x10e   : > { %1428 = vst [vmem:[%s2599_s6 + $0x18] sm:$0xff] %v1416_v23  ;;  %v1291_v27 = vadd.f32 %v1290_v24, %v2591_v34  ;;  %v1330_v33 = vpop.f32.mrf.mxu1 }
 0x110   : > { %v1305_v28 = vadd.f32 %v1304_v25, %v1291_v27 }
 0x112   : > { %v1409_v30 = vmax.f32 %v1305_v28, 0.0 }
 0x114   : > { %v1422_v31 = vpack.c.bf16 %v1409_v30, %v1408_v29  ;;  %v1316_v32 = vpop.f32.mrf.mxu3 }
 0x115   : > { %v1317_v35 = vadd.f32 %v1316_v32, %v2588_v6 }
 0x116   : > { %1435 = vst [vmem:[%s2599_s6 + $0x44] sm:$0xff] %v1422_v31  ;;  %v1332_v43 = vpop.f32.mrf.mxu1 }
 0x117   : > { %v1331_v38 = vadd.f32 %v1330_v33, %v1317_v35 }
 0x118   : > { %v1358_v36 = vpop.f32.mrf.mxu0 }
 0x119   : > { %v1399_v42 = vmax.f32 %v1331_v38, 0.0 }
 0x11c   : > { %v1318_v40 = vpop.f32.mrf.mxu3 }
 0x11d   : > { %v1319_v44 = vadd.f32 %v1318_v40, %v2591_v34 }
 0x11e   : > { %v1344_v37 = vpop.f32.mrf.mxu2 }
 0x11f   : > { %v1345_v39 = vadd.f32 %v1344_v37, %v2588_v6  ;;  %v1333_v49 = vadd.f32 %v1332_v43, %v1319_v44 }
 0x120   : > { %v1360_v48 = vpop.f32.mrf.mxu0 }
 0x121   : > { %v1359_v41 = vadd.f32 %v1358_v36, %v1345_v39  ;;  %v1410_v53 = vmax.f32 %v1333_v49, 0.0 }
 0x123   : > { %v1400_v45 = vmax.f32 %v1359_v41, 0.0 }
 0x125   : > { %v1417_v46 = vpack.c.bf16 %v1400_v45, %v1399_v42 }
 0x126   : > { %v1346_v47 = vpop.f32.mrf.mxu2 }
 0x127   : > { %1429 = vst [vmem:[%s2599_s6 + $0x20] sm:$0xff] %v1417_v46  ;;  %v1347_v51 = vadd.f32 %v1346_v47, %v2591_v34 }
 0x128   : > { %v1386_v54 = vpop.f32.mrf.mxu3 }
 0x129   : > { %v1361_v52 = vadd.f32 %v1360_v48, %v1347_v51 }
 0x12b   : > { %v1411_v55 = vmax.f32 %v1361_v52, 0.0 }
 0x12d   : > { %v1423_v58 = vpack.c.bf16 %v1411_v55, %v1410_v53 }
 0x12e   : > { %v1372_v56 = vpop.f32.mrf.mxu1 }
 0x12f   : > { %v1373_v57 = vadd.f32 %v1372_v56, %v2588_v6  ;;  %1436 = vst [vmem:[%s2599_s6 + $0x4c] sm:$0xff] %v1423_v58 }
 0x130   : > { %v1388_v0 = vpop.f32.mrf.mxu3 }
 0x131   : > { %v1387_v59 = vadd.f32 %v1386_v54, %v1373_v57 }
 0x133   : > { %v1401_v60 = vmax.f32 %v1387_v59, 0.0 }
 0x135   : > { %v1418_v61 = vpack.c.bf16 %v1401_v60, %v1401_v60 }
 0x136   : > { %v1374_v62 = vpop.f32.mrf.mxu1 }
 0x137   : > { %1431 = vst.msk [vmem:[%s2599_s6 + $0x28] sm:$0xf] %vm1430_vm2, %v1418_v61  ;;  %v1375_v63 = vadd.f32 %v1374_v62, %v2591_v34 }
 0x139   : > { %v1389_v1 = vadd.f32 %v1388_v0, %v1375_v63 }
 0x13b   : > { %v1412_v2 = vmax.f32 %v1389_v1, 0.0 }
 0x13d   : > { %v1424_v3 = vpack.c.bf16 %v1412_v2, %v1412_v2 }
 0x13f   : > { %1437 = vst.msk [vmem:[%s2599_s6 + $0x54] sm:$0xf] %vm1430_vm2, %v1424_v3 }
 0x140 PF: > { %s13_s12 = sadd.s32 1, %s2201_s12  }
 0x141   : > { %p10_p4 = scmp.ge.s32.totalorder %s13_s12, 4  }
 0x143   :  { %12 = sbr.rel (!%p10_p4) target bundleno = 1 (0x1), region = 62 }

// kernel: xtma_cnn_forward.6
= control target key start
LH: loop header
LB: loop body
LE: loop exit
PB: predicated region body
PF: predicated region fallthrough
CT: control target
= control target key end

     0   :  { %s1541_s12 = smov 0   ;;  %s1855_s0 = inlined_call_operand.vmem [shape: bf16[32,400], index: 0, kind: input, shape index: {}]   ;;  %s1856_s1 = inlined_call_operand.vmem [shape: f32[32,1], index: 1, kind: input, shape index: {}]   ;;  %s1857_s2 = inlined_call_operand.vmem [shape: bf16[2,400,289], index: 2, kind: input, shape index: {}]   ;;  %s1858_s3 = inlined_call_operand.vmem [shape: bf16[2,32,289], index: 3, kind: output, shape index: {}]  }
   0x1 LB: > { %s1061_s13 = sadd.s32 4294967295, %s1518_s12   ;;  %p1065_p0 = scmp.ge.s32.totalorder %s1518_s12, 1  ;;  %s1518_s12 = sphi %s1541_s12, %s13_s12  }
   0x2   : > { %p137_p1 = scmp.lt.s32.totalorder %s1518_s12, 3 }
   0x4   : > { %p138_p2 = pnand %p1065_p0, %p137_p1 }
   0x5   : > { %p161_p3 = scmp.lt.s32.totalorder (!%p138_p2), %s1061_s13, 1 }
   0x6   : > { %141 = sbr.rel (%p138_p2) target bundleno = 278 (0x116), region = 32 }
   0xb   : > { %s1860_s13 = smov (!%p161_p3, %s1061_s13), 1  ;;  %v1409_v0 = vld [vmem:[%s1855_s0 + $0xc] sm:$0xf]  ;;  %v1080_v1 = vld [vmem:[%s1855_s0 + $0x18] sm:$0xf0]  ;;  %vm742_vm0 = vcmask 130048  }
   0xc   : > { %s1499_s14 = smul.u32 600, %s1860_s13  ;;  %v1575_v18 = vor.u32 %v1409_v0, %v1080_v1  ;;  %v1413_v60 = vld [vmem:[%s1855_s0 + $0x2c] sm:$0xf]  ;;  %v1096_v62 = vld [vmem:[%s1855_s0 + $0x38] sm:$0xf0]  ;;  %vm998_vm1 = vcmask 265216  }
   0xe   : > { %s1555_s17 = scalar_lea.vmem %s1857_s2, %s1499_s14 }
   0xf   : > { %v1186_v2 = vld [vmem:[%s1555_s17 + $0xa8] sm:$0xf]  ;;  %v1438_v3 = vld [vmem:[%s1555_s17 + $0xb0] sm:$0xf0]  ;;  %v1390_v11 = vld [vmem:[%s1555_s17 + $0x240] sm:$0xf] }
  0x10   : > { %v1282_v4 = vld [vmem:[%s1555_s17 + $0x168] sm:$0xf]  ;;  %v1187_v5 = vor.u32 %v1438_v3, %v1186_v2  ;;  %v1462_v6 = vld [vmem:[%s1555_s17 + $0x170] sm:$0xf0]  ;;  %v1489_v12 = vld [vmem:[%s1555_s17 + $0x248] sm:$0xf0] }
  0x11   : > { %v1378_v7 = vld [vmem:[%s1555_s17 + $0x228] sm:$0xf]  ;;  %v1486_v8 = vld [vmem:[%s1555_s17 + $0x230] sm:$0xf0]  ;;  %v1283_v9 = vor.u32 %v1462_v6, %v1282_v4  ;;  %v1174_v13 = vld [vmem:[%s1555_s17 + $0x90] sm:$0xf]  ;;  %v1391_v14 = vor.u32 %v1489_v12, %v1390_v11 }
  0x12   : > { %v1379_v10 = vor.u32 %v1486_v8, %v1378_v7  ;;  %749 = vmatpush.bf16.msra.mxu0 %v1187_v5  ;;  %v1435_v15 = vld [vmem:[%s1555_s17 + $0x98] sm:$0xf0]  ;;  %v1270_v16 = vld [vmem:[%s1555_s17 + $0x150] sm:$0xf]  ;;  %v1437_v23 = vld [vmem:[%s1555_s17 + $0xac] sm:$0xf] }
  0x13   : > { %v1459_v17 = vld [vmem:[%s1555_s17 + $0x158] sm:$0xf0]  ;;  %768 = vmatpush.bf16.msra.mxu1 %v1283_v9  ;;  %v1175_v19 = vor.u32 %v1435_v15, %v1174_v13  ;;  %v1366_v21 = vld [vmem:[%s1555_s17 + $0x210] sm:$0xf]  ;;  %813 = vmatpush.bf16.msra.mxu3 %v1391_v14  ;;  %v1188_v25 = vld [vmem:[%s1555_s17 + $0xb4] sm:$0xf0] }
  0x14   : > { %787 = vmatpush.bf16.msra.mxu2 %v1379_v10  ;;  %v1271_v20 = vor.u32 %v1459_v17, %v1270_v16  ;;  %v1483_v22 = vld [vmem:[%s1555_s17 + $0x218] sm:$0xf0]  ;;  %v1162_v26 = vld [vmem:[%s1555_s17 + $0x78] sm:$0xf]  ;;  %v1432_v27 = vld [vmem:[%s1555_s17 + $0x80] sm:$0xf0]  ;;  %v1191_v28 = vor.u32 %v1437_v23, %v1188_v25  ;;  %v1621_v10 = vor.u32 %v1413_v60, %v1096_v62 }
  0x15   : > { %v1367_v24 = vor.u32 %v1483_v22, %v1366_v21  ;;  %v1258_v29 = vld [vmem:[%s1555_s17 + $0x138] sm:$0xf]  ;;  %v1456_v30 = vld [vmem:[%s1555_s17 + $0x140] sm:$0xf0]  ;;  %v1163_v32 = vor.u32 %v1432_v27, %v1162_v26  ;;  %v1434_v34 = vld [vmem:[%s1555_s17 + $0x94] sm:$0xf] }
  0x16   : > { %v1354_v31 = vld [vmem:[%s1555_s17 + $0x1f8] sm:$0xf]  ;;  %750 = vmatpush.bf16.msra.mxu0 %v1175_v19  ;;  %v1480_v33 = vld [vmem:[%s1555_s17 + $0x200] sm:$0xf0]  ;;  %v1176_v35 = vld [vmem:[%s1555_s17 + $0x9c] sm:$0xf0]  ;;  %1400 = vmatmul.msk.bf16.vlgmr.msra.gmra.mxu3 %vm742_vm0, %v1575_v18  ;;  %v1259_v36 = vor.u32 %v1456_v30, %v1258_v29 }
  0x17   : > { %769 = vmatpush.bf16.msra.mxu1 %v1271_v20  ;;  %v1150_v37 = vld [vmem:[%s1555_s17 + $0x60] sm:$0xf]  ;;  %v1429_v38 = vld [vmem:[%s1555_s17 + $0x68] sm:$0xf0]  ;;  %825 = vmatpush.bf16.msrb.mxu3 %v1191_v28  ;;  %v1355_v39 = vor.u32 %v1480_v33, %v1354_v31  ;;  %v1179_v40 = vor.u32 %v1434_v34, %v1176_v35  ;;  %v1431_v45 = vld [vmem:[%s1555_s17 + $0x7c] sm:$0xf] }
  0x18   : > { %788 = vmatpush.bf16.msra.mxu2 %v1367_v24  ;;  %v1246_v41 = vld [vmem:[%s1555_s17 + $0x120] sm:$0xf]  ;;  %v1453_v42 = vld [vmem:[%s1555_s17 + $0x128] sm:$0xf0]  ;;  %v1164_v46 = vld [vmem:[%s1555_s17 + $0x84] sm:$0xf0]  ;;  %v1151_v47 = vor.u32 %v1429_v38, %v1150_v37 }
  0x19   : > { %v1342_v43 = vld [vmem:[%s1555_s17 + $0x1e0] sm:$0xf]  ;;  %v1477_v44 = vld [vmem:[%s1555_s17 + $0x1e8] sm:$0xf0]  ;;  %v1247_v48 = vor.u32 %v1453_v42, %v1246_v41  ;;  %v1138_v49 = vld [vmem:[%s1555_s17 + $0x48] sm:$0xf]  ;;  %v1167_v52 = vor.u32 %v1431_v45, %v1164_v46 }
  0x1a   : > { %751 = vmatpush.bf16.msra.mxu0 %v1163_v32  ;;  %v1426_v50 = vld [vmem:[%s1555_s17 + $0x50] sm:$0xf0]  ;;  %v1343_v51 = vor.u32 %v1477_v44, %v1342_v43  ;;  %v1234_v53 = vld [vmem:[%s1555_s17 + $0x108] sm:$0xf]  ;;  %v1428_v57 = vld [vmem:[%s1555_s17 + $0x64] sm:$0xf] }
  0x1b   : > { %770 = vmatpush.bf16.msra.mxu1 %v1259_v36  ;;  %826 = vmatpush.bf16.msrb.mxu3 %v1179_v40  ;;  %v1450_v54 = vld [vmem:[%s1555_s17 + $0x110] sm:$0xf0]  ;;  %v1330_v55 = vld [vmem:[%s1555_s17 + $0x1c8] sm:$0xf]  ;;  %v1152_v58 = vld [vmem:[%s1555_s17 + $0x6c] sm:$0xf0]  ;;  %v1139_v59 = vor.u32 %v1426_v50, %v1138_v49 }
  0x1c   : > { %789 = vmatpush.bf16.msra.mxu2 %v1355_v39  ;;  %v1474_v56 = vld [vmem:[%s1555_s17 + $0x1d0] sm:$0xf0]  ;;  %v1235_v61 = vor.u32 %v1450_v54, %v1234_v53  ;;  %v1126_v63 = vld [vmem:[%s1555_s17 + $0x30] sm:$0xf]  ;;  %v1423_v0 = vld [vmem:[%s1555_s17 + $0x38] sm:$0xf0]  ;;  %v1155_v2 = vor.u32 %v1428_v57, %v1152_v58 }
  0x1d   : > { %v1331_v1 = vor.u32 %v1474_v56, %v1330_v55  ;;  %v1222_v3 = vld [vmem:[%s1555_s17 + $0xf0] sm:$0xf]  ;;  %v1447_v4 = vld [vmem:[%s1555_s17 + $0xf8] sm:$0xf0]  ;;  %v1425_v7 = vld [vmem:[%s1555_s17 + $0x4c] sm:$0xf]  ;;  %v1127_v9 = vor.u32 %v1423_v0, %v1126_v63 }
  0x1e   : > { %752 = vmatpush.bf16.msra.mxu0 %v1151_v47  ;;  %v1318_v5 = vld [vmem:[%s1555_s17 + $0x1b0] sm:$0xf]  ;;  %v1471_v6 = vld [vmem:[%s1555_s17 + $0x1b8] sm:$0xf0]  ;;  %v1140_v8 = vld [vmem:[%s1555_s17 + $0x54] sm:$0xf0]  ;;  %v1223_v11 = vor.u32 %v1447_v4, %v1222_v3 }
  0x1f   : > { %771 = vmatpush.bf16.msra.mxu1 %v1247_v48  ;;  %827 = vmatpush.bf16.msrb.mxu3 %v1167_v52  ;;  %v1114_v12 = vld [vmem:[%s1555_s17 + $0x18] sm:$0xf]  ;;  %v1420_v13 = vld [vmem:[%s1555_s17 + $0x20] sm:$0xf0]  ;;  %v1319_v15 = vor.u32 %v1471_v6, %v1318_v5  ;;  %v1143_v16 = vor.u32 %v1425_v7, %v1140_v8  ;;  %v1422_v21 = vld [vmem:[%s1555_s17 + $0x34] sm:$0xf] }
  0x20   : > { %790 = vmatpush.bf16.msra.mxu2 %v1343_v51  ;;  %v1210_v14 = vld [vmem:[%s1555_s17 + $0xd8] sm:$0xf]  ;;  %v1444_v17 = vld [vmem:[%s1555_s17 + $0xe0] sm:$0xf0]  ;;  %v1128_v22 = vld [vmem:[%s1555_s17 + $0x3c] sm:$0xf0]  ;;  %v1115_v24 = vor.u32 %v1420_v13, %v1114_v12 }
  0x21   : > { %v1306_v19 = vld [vmem:[%s1555_s17 + $0x198] sm:$0xf]  ;;  %v1468_v20 = vld [vmem:[%s1555_s17 + $0x1a0] sm:$0xf0]  ;;  %v1102_v23 = vld [vmem:[%s1555_s17] sm:$0xf]  ;;  %v1211_v28 = vor.u32 %v1444_v17, %v1210_v14  ;;  %v1131_v33 = vor.u32 %v1422_v21, %v1128_v22 }
  0x22   : > { %753 = vmatpush.bf16.msra.mxu0 %v1139_v59  ;;  %v1417_v25 = vld [vmem:[%s1555_s17 + $0x8] sm:$0xf0]  ;;  %v1198_v26 = vld [vmem:[%s1555_s17 + $0xc0] sm:$0xf]  ;;  %v1419_v31 = vld [vmem:[%s1555_s17 + $0x1c] sm:$0xf]  ;;  %v1307_v32 = vor.u32 %v1468_v20, %v1306_v19 }
  0x23   : > { %772 = vmatpush.bf16.msra.mxu1 %v1235_v61  ;;  %828 = vmatpush.bf16.msrb.mxu3 %v1155_v2  ;;  %v1441_v27 = vld [vmem:[%s1555_s17 + $0xc8] sm:$0xf0]  ;;  %v1294_v29 = vld [vmem:[%s1555_s17 + $0x180] sm:$0xf]  ;;  %v1116_v34 = vld [vmem:[%s1555_s17 + $0x24] sm:$0xf0]  ;;  %v1103_v40 = vor.u32 %v1417_v25, %v1102_v23 }
  0x24   : > { %791 = vmatpush.bf16.msra.mxu2 %v1331_v1  ;;  %v1465_v30 = vld [vmem:[%s1555_s17 + $0x188] sm:$0xf0]  ;;  %v1284_v36 = vld [vmem:[%s1555_s17 + $0x174] sm:$0xf0]  ;;  %v1070_v37 = vld [vmem:[%s1855_s0] sm:$0xf]  ;;  %v1199_v44 = vor.u32 %v1441_v27, %v1198_v26  ;;  %v1119_v50 = vor.u32 %v1419_v31, %v1116_v34 }
  0x25   : > { %v1461_v35 = vld [vmem:[%s1555_s17 + $0x16c] sm:$0xf]  ;;  %v1410_v38 = vld [vmem:[%s1855_s0 + $0xc] sm:$0xf0]  ;;  %v1408_v39 = vld [vmem:[%s1855_s0 + $0x4] sm:$0xf]  ;;  %v1295_v49 = vor.u32 %v1465_v30, %v1294_v29 }
  0x26   : > { %754 = vmatpush.bf16.msra.mxu0 %v1127_v9  ;;  %1401 = vmatmul.msk.bf16.gmra.mxu3 %vm742_vm0, %v1621_v10  ;;  %v1072_v41 = vld [vmem:[%s1855_s0 + $0x10] sm:$0xf0]  ;;  %v1488_v42 = vld [vmem:[%s1555_s17 + $0x244] sm:$0xf]  ;;  %v1392_v43 = vld [vmem:[%s1555_s17 + $0x24c] sm:$0xf0]  ;;  %v1287_v48 = vor.u32 %v1461_v35, %v1284_v36  ;;  %v1667_v54 = vor.u32 %v1410_v38, %v1070_v37 }
  0x27   : > { %773 = vmatpush.bf16.msra.mxu1 %v1223_v11  ;;  %829 = vmatpush.bf16.msrb.mxu3 %v1143_v16  ;;  %v1078_v45 = vld [vmem:[%s1855_s0 + $0x8] sm:$0xf]  ;;  %v1411_v46 = vld [vmem:[%s1855_s0 + $0x14] sm:$0xf0]  ;;  %v1416_v47 = vld [vmem:[%s1555_s17 + $0x4] sm:$0xf]  ;;  %v1395_v55 = vor.u32 %v1488_v42, %v1392_v43  ;;  %v1671_v58 = vor.u32 %v1408_v39, %v1072_v41 }
  0x28   : > { %792 = vmatpush.bf16.msra.mxu2 %v1319_v15  ;;  %v1104_v51 = vld [vmem:[%s1555_s17 + $0xc] sm:$0xf0]  ;;  %v1485_v52 = vld [vmem:[%s1555_s17 + $0x22c] sm:$0xf]  ;;  %v1380_v53 = vld [vmem:[%s1555_s17 + $0x234] sm:$0xf0]  ;;  %v1675_v62 = vor.u32 %v1411_v46, %v1078_v45 }
  0x29   : > { %v1458_v56 = vld [vmem:[%s1555_s17 + $0x154] sm:$0xf]  ;;  %v1272_v57 = vld [vmem:[%s1555_s17 + $0x15c] sm:$0xf0]  ;;  %v1194_v59 = vld [vmem:[%s1555_s17 + $0xb0] sm:$0xf]  ;;  %v1383_v63 = vor.u32 %v1485_v52, %v1380_v53  ;;  %v1107_v1 = vor.u32 %v1416_v47, %v1104_v51 }
  0x2a   : > { %755 = vmatpush.bf16.msra.mxu0 %v1115_v24  ;;  %v1439_v60 = vld [vmem:[%s1555_s17 + $0xb8] sm:$0xf0]  ;;  %v1520_v61 = vmov 0   ;;  %v180_v0 = vld [vmem:[%s1856_s1] sm:$0xff]  ;;  %v1275_v2 = vor.u32 %v1458_v56, %v1272_v57  ;;  %v1482_v3 = vld [vmem:[%s1555_s17 + $0x214] sm:$0xf] }
  0x2b   : > { %774 = vmatpush.bf16.msra.mxu1 %v1211_v28  ;;  %830 = vmatpush.bf16.msrb.mxu3 %v1131_v33  ;;  %v1368_v4 = vld [vmem:[%s1555_s17 + $0x21c] sm:$0xf0]  ;;  %v1195_v5 = vor.u32 %v1439_v60, %v1194_v59  ;;  %v1455_v6 = vld [vmem:[%s1555_s17 + $0x13c] sm:$0xf]  ;;  %v1260_v7 = vld [vmem:[%s1555_s17 + $0x144] sm:$0xf0] }
  0x2c   : > { %793 = vmatpush.bf16.msra.mxu2 %v1307_v32  ;;  %1510 = vset.pattern.permute.xlu0 %v1520_v61  ;;  %v1182_v8 = vld [vmem:[%s1555_s17 + $0x98] sm:$0xf]  ;;  %v1436_v9 = vld [vmem:[%s1555_s17 + $0xa0] sm:$0xf0]  ;;  %v1371_v11 = vor.u32 %v1482_v3, %v1368_v4  ;;  %v1263_v12 = vor.u32 %v1455_v6, %v1260_v7  ;;  %v1479_v13 = vld [vmem:[%s1555_s17 + $0x1fc] sm:$0xf] }
  0x2d   : > { %286 = vperm.xlu0 %1510, %v180_v0   ;;  %v1356_v14 = vld [vmem:[%s1555_s17 + $0x204] sm:$0xf0]  ;;  %v1183_v15 = vor.u32 %v1436_v9, %v1182_v8  ;;  %v1452_v16 = vld [vmem:[%s1555_s17 + $0x124] sm:$0xf]  ;;  %v1248_v17 = vld [vmem:[%s1555_s17 + $0x12c] sm:$0xf0]  ;;  %1511 = vset.pattern.permute.xlu1 %v1520_v61 }
  0x2e   : > { %756 = vmatpush.bf16.msra.mxu0 %v1103_v40  ;;  %v1170_v19 = vld [vmem:[%s1555_s17 + $0x80] sm:$0xf]  ;;  %v1433_v20 = vld [vmem:[%s1555_s17 + $0x88] sm:$0xf0]  ;;  %v1359_v21 = vor.u32 %v1479_v13, %v1356_v14  ;;  %v1476_v22 = vld [vmem:[%s1555_s17 + $0x1e4] sm:$0xf]  ;;  %v1251_v25 = vor.u32 %v1452_v16, %v1248_v17 }
  0x2f   : > { %775 = vmatpush.bf16.msra.mxu1 %v1199_v44  ;;  %831 = vmatpush.bf16.msrb.mxu3 %v1119_v50  ;;  %v181_v23 = vld [vmem:[%s1856_s1 + $0x8] sm:$0xff]  ;;  %v182_v24 = vld [vmem:[%s1856_s1 + $0x10] sm:$0xff]  ;;  %v1086_v27 = vld [vmem:[%s1855_s0 + $0x20] sm:$0xf]  ;;  %v1171_v29 = vor.u32 %v1433_v20, %v1170_v19 }
  0x30   : > { %794 = vmatpush.bf16.msra.mxu2 %v1295_v49  ;;  %v1344_v26 = vld [vmem:[%s1555_s17 + $0x1ec] sm:$0xf0]  ;;  %296 = vperm.xlu1 %1511, %v182_v24   ;;  %v1449_v30 = vld [vmem:[%s1555_s17 + $0x10c] sm:$0xf]  ;;  %v1236_v31 = vld [vmem:[%s1555_s17 + $0x114] sm:$0xf0] }
  0x31   : > { %757 = vmatmul.bf16.vlgmr.msra.gmra.mxu0 %v1667_v54  ;;  %v1414_v28 = vld [vmem:[%s1855_s0 + $0x2c] sm:$0xf0]  ;;  %v1158_v32 = vld [vmem:[%s1555_s17 + $0x68] sm:$0xf]  ;;  %v1430_v33 = vld [vmem:[%s1555_s17 + $0x70] sm:$0xf0]  ;;  %v1347_v36 = vor.u32 %v1476_v22, %v1344_v26  ;;  %v1239_v42 = vor.u32 %v1449_v30, %v1236_v31 }
  0x32   : > { %844 = vmatpush.bf16.msrb.mxu0 %v1287_v48  ;;  %776 = vmatmul.bf16.vlgmr.msra.gmra.mxu1 %v1671_v58  ;;  %v1398_v34 = vld [vmem:[%s1555_s17 + $0x248] sm:$0xf]  ;;  %v1490_v35 = vld [vmem:[%s1555_s17 + $0x250] sm:$0xf0]  ;;  %v1412_v37 = vld [vmem:[%s1855_s0 + $0x24] sm:$0xf]  ;;  %v1730_v45 = vor.u32 %v1414_v28, %v1086_v27  ;;  %v1159_v46 = vor.u32 %v1430_v33, %v1158_v32 }
  0x33   : > { %795 = vmatmul.bf16.vlgmr.msra.gmra.mxu2 %v1675_v62  ;;  %863 = vmatpush.bf16.msrb.mxu1 %v1383_v63  ;;  %v1088_v38 = vld [vmem:[%s1855_s0 + $0x30] sm:$0xf0]  ;;  %v1094_v39 = vld [vmem:[%s1855_s0 + $0x28] sm:$0xf]  ;;  %v1399_v40 = vor.u32 %v1490_v35, %v1398_v34  ;;  %v1415_v41 = vld [vmem:[%s1855_s0 + $0x34] sm:$0xf0] }
  0x34   : > { %889 = vmatpush.bf16.msrb.mxu2 %v1395_v55  ;;  %832 = vmatpush.bf16.msrb.mxu3 %v1107_v1  ;;  %v1473_v43 = vld [vmem:[%s1555_s17 + $0x1cc] sm:$0xf]  ;;  %v1332_v44 = vld [vmem:[%s1555_s17 + $0x1d4] sm:$0xf0]  ;;  %v1446_v47 = vld [vmem:[%s1555_s17 + $0xf4] sm:$0xf]  ;;  %v1737_v50 = vor.u32 %v1412_v37, %v1088_v38  ;;  %v1741_v53 = vor.u32 %v1415_v41, %v1094_v39 }
  0x35   : > { %291 = vperm.xlu0 %1510, %v181_v23   ;;  %v1224_v48 = vld [vmem:[%s1555_s17 + $0xfc] sm:$0xf0]  ;;  %v183_v49 = vld [vmem:[%s1856_s1 + $0x18] sm:$0xff]  ;;  %v1146_v51 = vld [vmem:[%s1555_s17 + $0x50] sm:$0xf]  ;;  %v1335_v55 = vor.u32 %v1473_v43, %v1332_v44 }
  0x36   : > { %845 = vmatpush.bf16.msrb.mxu0 %v1275_v2  ;;  %v1427_v52 = vld [vmem:[%s1555_s17 + $0x58] sm:$0xf0]  ;;  %v1227_v56 = vor.u32 %v1446_v47, %v1224_v48  ;;  %v1470_v57 = vld [vmem:[%s1555_s17 + $0x1b4] sm:$0xf]  ;;  %v1320_v59 = vld [vmem:[%s1555_s17 + $0x1bc] sm:$0xf0] }
  0x37   : > { %833 = vmatmul.bf16.vlgmr.msrb.gmra.mxu3 %v1667_v54  ;;  %864 = vmatpush.bf16.msrb.mxu1 %v1371_v11  ;;  %v1147_v60 = vor.u32 %v1427_v52, %v1146_v51  ;;  %v1443_v61 = vld [vmem:[%s1555_s17 + $0xdc] sm:$0xf]  ;;  %v1212_v63 = vld [vmem:[%s1555_s17 + $0xe4] sm:$0xf0]  ;;  %v1134_v0 = vld [vmem:[%s1555_s17 + $0x38] sm:$0xf]  ;;  %v1323_v2 = vor.u32 %v1470_v57, %v1320_v59 }
  0x38   : > { %901 = vmatpush.bf16.msra.mxu3 %v1195_v5  ;;  %965 = vmatpush.bf16.msra.mxu2 %v1399_v40  ;;  %v1424_v1 = vld [vmem:[%s1555_s17 + $0x40] sm:$0xf0]  ;;  %v1215_v3 = vor.u32 %v1443_v61, %v1212_v63  ;;  %v1467_v4 = vld [vmem:[%s1555_s17 + $0x19c] sm:$0xf]  ;;  %v1308_v5 = vld [vmem:[%s1555_s17 + $0x1a4] sm:$0xf0] }
  0x39   : > { %301 = vperm.xlu1 %1511, %v183_v49   ;;  %v1135_v6 = vor.u32 %v1424_v1, %v1134_v0  ;;  %v1440_v7 = vld [vmem:[%s1555_s17 + $0xc4] sm:$0xf]  ;;  %v1200_v8 = vld [vmem:[%s1555_s17 + $0xcc] sm:$0xf0]  ;;  %v1122_v9 = vld [vmem:[%s1555_s17 + $0x20] sm:$0xf]  ;;  %v1311_v14 = vor.u32 %v1467_v4, %v1308_v5 }
  0x3a   : > { %846 = vmatpush.bf16.msrb.mxu0 %v1263_v12  ;;  %v1421_v11 = vld [vmem:[%s1555_s17 + $0x28] sm:$0xf0]  ;;  %v1290_v12 = vld [vmem:[%s1555_s17 + $0x170] sm:$0xf]  ;;  %v1463_v13 = vld [vmem:[%s1555_s17 + $0x178] sm:$0xf0] }
  0x3b   : > { %865 = vmatpush.bf16.msrb.mxu1 %v1359_v21  ;;  %v1464_v16 = vld [vmem:[%s1555_s17 + $0x184] sm:$0xf]  ;;  %v1296_v17 = vld [vmem:[%s1555_s17 + $0x18c] sm:$0xf0]  ;;  %v1123_v19 = vor.u32 %v1421_v11, %v1122_v9  ;;  %v1291_v20 = vor.u32 %v1463_v13, %v1290_v12  ;;  %v1487_v22 = vld [vmem:[%s1555_s17 + $0x238] sm:$0xf0] }
  0x3c   : > { %902 = vmatpush.bf16.msra.mxu3 %v1183_v15  ;;  %v1203_v15 = vor.u32 %v1440_v7, %v1200_v8  ;;  %v1386_v21 = vld [vmem:[%s1555_s17 + $0x230] sm:$0xf]  ;;  %v1110_v23 = vld [vmem:[%s1555_s17 + $0x8] sm:$0xf]  ;;  %v1418_v24 = vld [vmem:[%s1555_s17 + $0x10] sm:$0xf0] }
  0x3d   : > { %v1387_v26 = vor.u32 %v1487_v22, %v1386_v21  ;;  %v1278_v27 = vld [vmem:[%s1555_s17 + $0x158] sm:$0xf]  ;;  %v1460_v28 = vld [vmem:[%s1555_s17 + $0x160] sm:$0xf0]  ;;  %v1266_v34 = vld [vmem:[%s1555_s17 + $0x140] sm:$0xf] }
  0x3e   : > { %847 = vmatpush.bf16.msrb.mxu0 %v1251_v25  ;;  %v1299_v25 = vor.u32 %v1464_v16, %v1296_v17  ;;  %v1374_v30 = vld [vmem:[%s1555_s17 + $0x218] sm:$0xf]  ;;  %v1484_v31 = vld [vmem:[%s1555_s17 + $0x220] sm:$0xf0]  ;;  %v1279_v32 = vor.u32 %v1460_v28, %v1278_v27  ;;  %v1457_v35 = vld [vmem:[%s1555_s17 + $0x148] sm:$0xf0] }
  0x3f   : > { %866 = vmatpush.bf16.msrb.mxu1 %v1347_v36  ;;  %v1375_v33 = vor.u32 %v1484_v31, %v1374_v30  ;;  %v1362_v36 = vld [vmem:[%s1555_s17 + $0x200] sm:$0xf]  ;;  %v1481_v37 = vld [vmem:[%s1555_s17 + $0x208] sm:$0xf0]  ;;  %v1267_v38 = vor.u32 %v1457_v35, %v1266_v34  ;;  %v1254_v40 = vld [vmem:[%s1555_s17 + $0x128] sm:$0xf] }
  0x40   : > { %903 = vmatpush.bf16.msra.mxu3 %v1171_v29  ;;  %v1111_v29 = vor.u32 %v1418_v24, %v1110_v23  ;;  %v1363_v39 = vor.u32 %v1481_v37, %v1362_v36  ;;  %v1454_v41 = vld [vmem:[%s1555_s17 + $0x130] sm:$0xf0]  ;;  %v1242_v47 = vld [vmem:[%s1555_s17 + $0x110] sm:$0xf]  ;;  %v1451_v48 = vld [vmem:[%s1555_s17 + $0x118] sm:$0xf0] }
  0x41   : > { %762 = vmatmul.bf16.gmra.mxu0 %v1730_v45  ;;  %v1478_v43 = vld [vmem:[%s1555_s17 + $0x1f0] sm:$0xf0]  ;;  %v1255_v44 = vor.u32 %v1454_v41, %v1254_v40  ;;  %v1338_v49 = vld [vmem:[%s1555_s17 + $0x1d0] sm:$0xf]  ;;  %v1475_v51 = vld [vmem:[%s1555_s17 + $0x1d8] sm:$0xf0]  ;;  %v1243_v52 = vor.u32 %v1451_v48, %v1242_v47 }
  0x42   : > { %848 = vmatpush.bf16.msrb.mxu0 %v1239_v42  ;;  %781 = vmatmul.bf16.gmra.mxu1 %v1737_v50  ;;  %v1350_v42 = vld [vmem:[%s1555_s17 + $0x1e8] sm:$0xf]  ;;  %v1326_v57 = vld [vmem:[%s1555_s17 + $0x1b8] sm:$0xf]  ;;  %v1472_v59 = vld [vmem:[%s1555_s17 + $0x1c0] sm:$0xf0] }
  0x43   : > { %800 = vmatmul.bf16.gmra.mxu2 %v1741_v53  ;;  %867 = vmatpush.bf16.msrb.mxu1 %v1335_v55  ;;  %v1339_v55 = vor.u32 %v1475_v51, %v1338_v49  ;;  %v1327_v61 = vor.u32 %v1472_v59, %v1326_v57  ;;  %v1218_v63 = vld [vmem:[%s1555_s17 + $0xe0] sm:$0xf]  ;;  %v1445_v0 = vld [vmem:[%s1555_s17 + $0xe8] sm:$0xf0]  ;;  %v1206_v5 = vld [vmem:[%s1555_s17 + $0xc8] sm:$0xf] }
  0x44   : > { %904 = vmatpush.bf16.msra.mxu3 %v1159_v46  ;;  %v1351_v46 = vor.u32 %v1478_v43, %v1350_v42  ;;  %v1314_v1 = vld [vmem:[%s1555_s17 + $0x1a0] sm:$0xf]  ;;  %v1302_v7 = vld [vmem:[%s1555_s17 + $0x188] sm:$0xf]  ;;  %v1466_v8 = vld [vmem:[%s1555_s17 + $0x190] sm:$0xf0] }
  0x45   : > { %v1303_v11 = vor.u32 %v1466_v8, %v1302_v7 }
  0x46   : > { %849 = vmatpush.bf16.msrb.mxu0 %v1227_v56  ;;  %v1448_v56 = vld [vmem:[%s1555_s17 + $0x100] sm:$0xf0] }
  0x47   : > { %838 = vmatmul.bf16.gmra.mxu3 %v1730_v45  ;;  %868 = vmatpush.bf16.msrb.mxu1 %v1323_v2  ;;  %v1469_v2 = vld [vmem:[%s1555_s17 + $0x1a8] sm:$0xf0] }
  0x48   : > { %905 = vmatpush.bf16.msra.mxu3 %v1147_v60  ;;  %v1315_v4 = vor.u32 %v1469_v2, %v1314_v1 }
  0x4a   : > { %850 = vmatpush.bf16.msrb.mxu0 %v1215_v3  ;;  %v1219_v3 = vor.u32 %v1445_v0, %v1218_v63 }
  0x4b   : > { %869 = vmatpush.bf16.msrb.mxu1 %v1311_v14 }
  0x4c   : > { %906 = vmatpush.bf16.msra.mxu3 %v1135_v6  ;;  %v1442_v6 = vld [vmem:[%s1555_s17 + $0xd0] sm:$0xf0] }
  0x4d   : > { %v1207_v9 = vor.u32 %v1442_v6, %v1206_v5 }
  0x4e   : > { %851 = vmatpush.bf16.msrb.mxu0 %v1203_v15 }
  0x4f   : > { %870 = vmatpush.bf16.msrb.mxu1 %v1299_v25 }
  0x50   : > { %907 = vmatpush.bf16.msra.mxu3 %v1123_v19 }
  0x51   : > { %852 = vmatmul.bf16.vlgmr.msrb.gmra.mxu0 %v1671_v58 }
  0x52   : > { %920 = vmatpush.bf16.msra.mxu0 %v1291_v20  ;;  %871 = vmatmul.bf16.vlgmr.msrb.gmra.mxu1 %v1675_v62 }
  0x53   : > { %939 = vmatpush.bf16.msra.mxu1 %v1387_v26  ;;  %1402 = vmatmul.msk.bf16.vlgmr.msrb.gmra.mxu2 %vm742_vm0, %v1575_v18 }
  0x54   : > { %908 = vmatpush.bf16.msra.mxu3 %v1111_v29 }
  0x56   : > { %921 = vmatpush.bf16.msra.mxu0 %v1279_v32 }
  0x57   : > { %940 = vmatpush.bf16.msra.mxu1 %v1375_v33  ;;  %909 = vmatmul.bf16.vlgmr.msra.gmra.mxu3 %v1667_v54  ;;  %v1230_v54 = vld [vmem:[%s1555_s17 + $0xf8] sm:$0xf]  ;;  %s1500_s17 = smul.u32 48, %s1860_s13 }
  0x58   : > { %1491 = vmatpush.bf16.msrb.mxu3 %v1291_v20  ;;  %v1231_v60 = vor.u32 %v1448_v56, %v1230_v54 }
  0x59   : > { %s1832_s9 = scalar_lea.vmem %s1858_s3, %s1500_s17 }
  0x5a   : > { %922 = vmatpush.bf16.msra.mxu0 %v1267_v38 }
  0x5b   : > { %941 = vmatpush.bf16.msra.mxu1 %v1363_v39 }
  0x5c   : > { %1492 = vmatpush.bf16.msrb.mxu3 %v1279_v32 }
  0x5e   : > { %923 = vmatpush.bf16.msra.mxu0 %v1255_v44 }
  0x5f   : > { %942 = vmatpush.bf16.msra.mxu1 %v1351_v46 }
  0x60   : > { %1493 = vmatpush.bf16.msrb.mxu3 %v1267_v38 }
  0x61   : > { %857 = vmatmul.bf16.gmra.mxu0 %v1737_v50 }
  0x62   : > { %924 = vmatpush.bf16.msra.mxu0 %v1243_v52  ;;  %876 = vmatmul.bf16.gmra.mxu1 %v1741_v53 }
  0x63   : > { %943 = vmatpush.bf16.msra.mxu1 %v1339_v55  ;;  %1403 = vmatmul.msk.bf16.gmra.mxu2 %vm742_vm0, %v1621_v10 }
  0x64   : > { %1494 = vmatpush.bf16.msrb.mxu3 %v1255_v44 }
  0x66   : > { %925 = vmatpush.bf16.msra.mxu0 %v1231_v60 }
  0x67   : > { %944 = vmatpush.bf16.msra.mxu1 %v1327_v61  ;;  %914 = vmatmul.bf16.gmra.mxu3 %v1730_v45 }
  0x68   : > { %1495 = vmatpush.bf16.msrb.mxu3 %v1243_v52 }
  0x6a   : > { %926 = vmatpush.bf16.msra.mxu0 %v1219_v3 }
  0x6b   : > { %945 = vmatpush.bf16.msra.mxu1 %v1315_v4 }
  0x6c   : > { %1496 = vmatpush.bf16.msrb.mxu3 %v1231_v60 }
  0x6e   : > { %927 = vmatpush.bf16.msra.mxu0 %v1207_v9 }
  0x6f   : > { %946 = vmatpush.bf16.msra.mxu1 %v1303_v11 }
  0x70   : > { %1497 = vmatpush.bf16.msrb.mxu3 %v1219_v3 }
  0x71   : > { %928 = vmatmul.bf16.vlgmr.msra.gmra.mxu0 %v1671_v58 }
  0x72   : > { %947 = vmatmul.bf16.vlgmr.msra.gmra.mxu1 %v1675_v62 }
  0x73   : > { %1404 = vmatmul.msk.bf16.vlgmr.msra.gmra.mxu2 %vm742_vm0, %v1575_v18 }
  0x74   : > { %1498 = vmatpush.bf16.msrb.mxu3 %v1207_v9 }
  0x77   : > { %933 = vmatmul.bf16.vlgmr.msrb.gmra.mxu3 %v1737_v50 }
  0x82   : > { %952 = vmatmul.bf16.gmra.mxu1 %v1741_v53 }
  0x83   : > { %1405 = vmatmul.msk.bf16.gmra.mxu2 %vm742_vm0, %v1621_v10 }
  0x99   : > { %v815_v45 = vpop.f32.mrf.mxu3 }
  0x9f   : > { %v1817_v53 = vpop.permute.xlu0 %286 }
  0xa1   : > { %v817_v12 = vpop.f32.mrf.mxu3 }
  0xa2   : > { %v1824_v37 = vpop.permute.xlu1 %296 }
  0xa7   : > { %v1821_v32 = vpop.permute.xlu0 %291 }
  0xa9   : > { %v1813_v13 = vpop.f32.mrf.mxu3 }
  0xab   : > { %v302_v1 = vpop.permute.xlu1 %301 }
  0xae   : > { %v758_v14 = vpop.f32.mrf.mxu0 }
  0xaf   : > { %v777_v15 = vpop.f32.mrf.mxu1  ;;  %v759_v24 = vadd.f32 %v758_v14, %v1817_v53 }
  0xb1   : > { %v1815_v16 = vpop.f32.mrf.mxu3  ;;  %v778_v26 = vadd.f32 %v777_v15, %v759_v24 }
  0xb6   : > { %v796_v58 = vpop.f32.mrf.mxu2  ;;  %v760_v62 = vpop.f32.mrf.mxu0 }
  0xb7   : > { %v779_v17 = vpop.f32.mrf.mxu1  ;;  %v797_v31 = vadd.f32 %v796_v58, %v778_v26  ;;  %v761_v35 = vadd.f32 %v760_v62, %v1821_v32 }
  0xb9   : > { %v816_v36 = vadd.f32 %v815_v45, %v797_v31  ;;  %v780_v41 = vadd.f32 %v779_v17, %v761_v35 }
  0xba   : > { %v834_v19 = vpop.f32.mrf.mxu3 }
  0xbb   : > { %v835_v29 = vadd.f32 %v834_v19, %v1817_v53  ;;  %v977_v46 = vmax.f32 %v816_v36, 0.0 }
  0xbe   : > { %v798_v18 = vpop.f32.mrf.mxu2  ;;  %v763_v20 = vpop.f32.mrf.mxu0 }
  0xbf   : > { %v782_v50 = vpop.f32.mrf.mxu1  ;;  %v799_v47 = vadd.f32 %v798_v18, %v780_v41  ;;  %v764_v48 = vadd.f32 %v763_v20, %v1824_v37 }
  0xc1   : > { %v818_v54 = vadd.f32 %v817_v12, %v799_v47  ;;  %v783_v56 = vadd.f32 %v782_v50, %v764_v48 }
  0xc2   : > { %v836_v21 = vpop.f32.mrf.mxu3 }
  0xc3   : > { %v837_v42 = vadd.f32 %v836_v21, %v1821_v32  ;;  %v980_v2 = vmax.f32 %v818_v54, 0.0 }
  0xc6   : > { %v801_v22 = vpop.f32.mrf.mxu2  ;;  %v765_v10 = vpop.f32.mrf.mxu0 }
  0xc7   : > { %v784_v23 = vpop.f32.mrf.mxu1  ;;  %v802_v3 = vadd.f32 %v801_v22, %v783_v56  ;;  %v766_v7 = vadd.f32 %v765_v10, %v302_v1 }
  0xc9   : > { %v821_v9 = vadd.f32 %v1813_v13, %v802_v3  ;;  %v785_v14 = vadd.f32 %v784_v23, %v766_v7 }
  0xca   : > { %v839_v25 = vpop.f32.mrf.mxu3 }
  0xcb   : > { %v840_v61 = vadd.f32 %v839_v25, %v1824_v37  ;;  %v983_v17 = vmax.f32 %v821_v9, 0.0 }
  0xce   : > { %v803_v27 = vpop.f32.mrf.mxu2  ;;  %v853_v28 = vpop.f32.mrf.mxu0 }
  0xcf   : > { %v872_v30 = vpop.f32.mrf.mxu1  ;;  %v854_v33 = vadd.f32 %v853_v28, %v835_v29  ;;  %v804_v19 = vadd.f32 %v803_v27, %v785_v14 }
  0xd1   : > { %v873_v38 = vadd.f32 %v872_v30, %v854_v33  ;;  %v823_v22 = vadd.f32 %v1815_v16, %v804_v19 }
  0xd2   : > { %v841_v34 = vpop.f32.mrf.mxu3 }
  0xd3   : > { %v842_v15 = vadd.f32 %v841_v34, %v302_v1  ;;  %v986_v28 = vmax.f32 %v823_v22, 0.0 }
  0xd6   : > { %v891_v39 = vpop.f32.mrf.mxu2  ;;  %v855_v40 = vpop.f32.mrf.mxu0 }
  0xd7   : > { %v892_v43 = vadd.f32 %v891_v39, %v873_v38  ;;  %v874_v44 = vpop.f32.mrf.mxu1  ;;  %v856_v51 = vadd.f32 %v855_v40, %v837_v42 }
  0xd9   : > { %v978_v49 = vmax.f32 %v892_v43, 0.0  ;;  %v875_v57 = vadd.f32 %v874_v44, %v856_v51 }
  0xda   : > { %v910_v52 = vpop.f32.mrf.mxu3 }
  0xdb   : > { %v989_v55 = vpack.c.bf16 %v978_v49, %v977_v46  ;;  %v911_v25 = vadd.f32 %v910_v52, %v1817_v53 }
  0xdd   : > { %997 = vst [vmem:[%s1832_s9] sm:$0xff] %v989_v55 }
  0xde   : > { %v893_v59 = vpop.f32.mrf.mxu2  ;;  %v858_v60 = vpop.f32.mrf.mxu0 }
  0xdf   : > { %v894_v63 = vadd.f32 %v893_v59, %v875_v57  ;;  %v877_v0 = vpop.f32.mrf.mxu1  ;;  %v859_v5 = vadd.f32 %v858_v60, %v840_v61 }
  0xe1   : > { %v981_v4 = vmax.f32 %v894_v63, 0.0  ;;  %v878_v11 = vadd.f32 %v877_v0, %v859_v5 }
  0xe2   : > { %v912_v6 = vpop.f32.mrf.mxu3 }
  0xe3   : > { %v991_v8 = vpack.c.bf16 %v981_v4, %v980_v2  ;;  %v913_v16 = vadd.f32 %v912_v6, %v1821_v32 }
  0xe5   : > { %1000 = vst [vmem:[%s1832_s9 + $0xc] sm:$0xff] %v991_v8 }
  0xe6   : > { %v896_v45 = vpop.f32.mrf.mxu2  ;;  %v860_v12 = vpop.f32.mrf.mxu0 }
  0xe7   : > { %v897_v58 = vadd.f32 %v896_v45, %v878_v11  ;;  %v879_v62 = vpop.f32.mrf.mxu1  ;;  %v861_v20 = vadd.f32 %v860_v12, %v842_v15 }
  0xe9   : > { %v984_v18 = vmax.f32 %v897_v58, 0.0  ;;  %v880_v13 = vadd.f32 %v879_v62, %v861_v20 }
  0xea   : > { %v915_v50 = vpop.f32.mrf.mxu3 }
  0xeb   : > { %v993_v21 = vpack.c.bf16 %v984_v18, %v983_v17  ;;  %v916_v47 = vadd.f32 %v915_v50, %v1824_v37 }
  0xed   : > { %1002 = vst [vmem:[%s1832_s9 + $0x18] sm:$0xff] %v993_v21 }
  0xee   : > { %v898_v10 = vpop.f32.mrf.mxu2  ;;  %v929_v24 = vpop.f32.mrf.mxu0 }
  0xef   : > { %v899_v26 = vadd.f32 %v898_v10, %v880_v13  ;;  %v948_v23 = vpop.f32.mrf.mxu1  ;;  %v930_v30 = vadd.f32 %v929_v24, %v911_v25 }
  0xf1   : > { %v987_v29 = vmax.f32 %v899_v26, 0.0  ;;  %v949_v33 = vadd.f32 %v948_v23, %v930_v30 }
  0xf2   : > { %v917_v31 = vpop.f32.mrf.mxu3 }
  0xf3   : > { %v995_v27 = vpack.c.bf16 %v987_v29, %v986_v28  ;;  %v918_v56 = vadd.f32 %v917_v31, %v302_v1 }
  0xf5   : > { %1004 = vst [vmem:[%s1832_s9 + $0x24] sm:$0xff] %v995_v27 }
  0xf6   : > { %v967_v34 = vpop.f32.mrf.mxu2  ;;  %v931_v35 = vpop.f32.mrf.mxu0 }
  0xf7   : > { %v968_v36 = vadd.f32 %v967_v34, %v949_v33  ;;  %v950_v38 = vpop.f32.mrf.mxu1  ;;  %v932_v40 = vadd.f32 %v931_v35, %v913_v16 }
  0xf9   : > { %v979_v39 = vmax.f32 %v968_v36, 0.0  ;;  %v951_v41 = vadd.f32 %v950_v38, %v932_v40 }
  0xfa   : > { %v934_v42 = vpop.f32.mrf.mxu3 }
  0xfb   : > { %v990_v53 = vpack.c.bf16 %v979_v39, %v979_v39  ;;  %v935_v49 = vadd.f32 %v934_v42, %v916_v47 }
  0xfd   : > { %999 = vst.msk [vmem:[%s1832_s9 + $0x8] sm:$0xf] %vm998_vm1, %v990_v53 }
  0xfe   : > { %v969_v43 = vpop.f32.mrf.mxu2 }
  0xff   : > { %v970_v44 = vadd.f32 %v969_v43, %v951_v41  ;;  %v953_v46 = vpop.f32.mrf.mxu1 }
 0x100   : > { %v954_v51 = vadd.f32 %v953_v46, %v935_v49 }
 0x101   : > { %v982_v48 = vmax.f32 %v970_v44, 0.0 }
 0x102   : > { %v936_v54 = vpop.f32.mrf.mxu3 }
 0x103   : > { %v992_v32 = vpack.c.bf16 %v982_v48, %v982_v48  ;;  %v937_v60 = vadd.f32 %v936_v54, %v918_v56 }
 0x105   : > { %1001 = vst.msk [vmem:[%s1832_s9 + $0x14] sm:$0xf] %vm998_vm1, %v992_v32 }
 0x106   : > { %v972_v52 = vpop.f32.mrf.mxu2 }
 0x107   : > { %v973_v55 = vadd.f32 %v972_v52, %v954_v51  ;;  %v955_v59 = vpop.f32.mrf.mxu1 }
 0x108   : > { %v956_v63 = vadd.f32 %v955_v59, %v937_v60 }
 0x109   : > { %v985_v57 = vmax.f32 %v973_v55, 0.0 }
 0x10b   : > { %v994_v61 = vpack.c.bf16 %v985_v57, %v985_v57 }
 0x10d   : > { %1003 = vst.msk [vmem:[%s1832_s9 + $0x20] sm:$0xf] %vm998_vm1, %v994_v61 }
 0x10e   : > { %v974_v0 = vpop.f32.mrf.mxu2 }
 0x10f   : > { %v975_v37 = vadd.f32 %v974_v0, %v956_v63 }
 0x111   : > { %v988_v2 = vmax.f32 %v975_v37, 0.0 }
 0x113   : > { %v996_v3 = vpack.c.bf16 %v988_v2, %v988_v2 }
 0x115   : > { %1005 = vst.msk [vmem:[%s1832_s9 + $0x2c] sm:$0xf] %vm998_vm1, %v996_v3 }
 0x116 PF: > { %s13_s12 = sadd.s32 1, %s1518_s12  }
 0x117   : > { %p10_p4 = scmp.ge.s32.totalorder %s13_s12, 4  }
 0x119   :  { %12 = sbr.rel (!%p10_p4) target bundleno = 1 (0x1), region = 62 }

// kernel: xtma_cnn_forward.7
= control target key start
LH: loop header
LB: loop body
LE: loop exit
PB: predicated region body
PF: predicated region fallthrough
CT: control target
= control target key end

     0   :  { %s9366_s0 = inlined_call_operand.vmem [shape: bf16[2,289,32], index: 0, kind: input, shape index: {}]   ;;  %s9367_s1 = inlined_call_operand.vmem [shape: f32[2,1,8], index: 1, kind: input, shape index: {}]   ;;  %s9368_s2 = inlined_call_operand.vmem [shape: f32[9,64,289], index: 2, kind: input, shape index: {}]   ;;  %s9369_s3 = inlined_call_operand.vmem [shape: f32[9,9,64], index: 3, kind: input, shape index: {}]   ;;  %s9370_s4 = inlined_call_operand.vmem [shape: f32[288,64], index: 4, kind: input, shape index: {}]   ;;  %s9371_s5 = inlined_call_operand.vmem [shape: f32[1,64], index: 5, kind: input, shape index: {}]   ;;  %s9372_s6 = inlined_call_operand.vmem [shape: f32[576,128], index: 6, kind: input, shape index: {}]   ;;  %s9373_s7 = inlined_call_operand.vmem [shape: f32[1,128], index: 7, kind: input, shape index: {}]   ;;  %s9374_s8 = inlined_call_operand.vmem [shape: f32[9,128,256], index: 8, kind: input, shape index: {}]   ;;  %s9375_s9 = inlined_call_operand.vmem [shape: f32[1,256], index: 9, kind: input, shape index: {}]   ;;  %s9376_s10 = inlined_call_operand.vmem [shape: f32[8,8], index: 10, kind: input, shape index: {}]   ;;  %s9377_s11 = inlined_call_operand.vmem [shape: f32[1,8], index: 11, kind: input, shape index: {}]   ;;  %s9378_s12 = inlined_call_operand.vmem [shape: f32[8,16], index: 12, kind: input, shape index: {}]   ;;  %s9379_s13 = inlined_call_operand.vmem [shape: f32[1,16], index: 13, kind: input, shape index: {}]   ;;  %s9380_s14 = inlined_call_operand.vmem [shape: f32[256,512], index: 14, kind: input, shape index: {}]   ;;  %s9381_s15 = inlined_call_operand.vmem [shape: f32[16,512], index: 15, kind: input, shape index: {}]   ;;  %s9382_s16 = inlined_call_operand.vmem [shape: f32[1,512], index: 16, kind: input, shape index: {}]   ;;  %s9383_s17 = inlined_call_operand.vmem [shape: f32[512,64], index: 17, kind: input, shape index: {}]   ;;  %s9384_s18 = inlined_call_operand.vmem [shape: f32[1,64], index: 18, kind: input, shape index: {}]   ;;  %s9385_s19 = inlined_call_operand.hbm [shape: f32[2,1,64], index: 19, kind: output, shape index: {}]  }
   0x1   :  { %9401 = sst [smem:[#allocation51_spill]] %s9366_s0 }
   0x2   :  { %9402 = sst [smem:[#allocation52_spill]] %s9367_s1 }
   0x3   :  { %9403 = sst [smem:[#allocation53_spill]] %s9368_s2 }
   0x4   :  { %9404 = sst [smem:[#allocation54_spill]] %s9369_s3 }
   0x5   :  { %9405 = sst [smem:[#allocation55_spill]] %s9370_s4 }
   0x6   :  { %9406 = sst [smem:[#allocation56_spill]] %s9371_s5 }
   0x7   :  { %24 = vsyncpa [#allocation3], 0 }
   0x8   :  { %26 = vsyncpa [#allocation3 + $0x1], 0  ;;  %s5630_s0 = smov 0   ;;  %s5632_s30 = smov 0  }
   0x9   :  { %s5634_s20 = smov 0   ;;  %s5636_s21 = smov 0  }
   0xa LB: > { %9407 = sst [smem:[#allocation5_spill]] %s5513_s0  ;;  %s5651_s1 = sadd.s32 4294967295, %s5525_s21   ;;  %s5525_s21 = sphi %s5636_s21, %s9507_s21   ;;  %s5521_s20 = sphi %s5634_s20, %s9509_s20   ;;  %s5517_s30 = sphi %s5632_s30, %s9511_s30   ;;  %s5513_s0 = sphi %s5630_s0, %s9510_s0  }
   0xb   : > { %9408 = sst [smem:[#allocation6_spill]] %s5521_s20  ;;  %s4613_s22 = sadd.s32 4294967294, %s5525_s21  }
   0xc   : > { %9409 = sst [smem:[#allocation7_spill]] %s5525_s21  ;;  %s5655_s2 = sadd.s32 1, %s5525_s21  }
   0xd   : > { %9410 = sst [smem:[#allocation8_spill]] %s5655_s2  ;;  %s448_s23 = sadd.s32 1, %s5521_s20 }
   0xe   : > { %s445_s24 = ssub.s32 %s5525_s21, %s5655_s2  ;;  %p458_p0 = scmp.ne.s32.totalorder %s5521_s20, %s5517_s30 }
   0xf   : > { %p446_p1 = scmp.eq.s32.totalorder %s445_s24, 0  ;;  %p459_p2 = scmp.eq.s32.totalorder %s5651_s1, 1 }
  0x10   : > { %p464_p3 = scmp.ne.s32.totalorder %s5517_s30, %s5513_s0  ;;  %p465_p4 = scmp.eq.s32.totalorder %s4613_s22, 1 }
  0x11   : > { %s5666_s25 = scalar_select %p446_p1, %s5521_s20, %s448_s23  }
  0x12   : > { %p5668_p5 = por %p459_p2, %p458_p0  ;;  %p5672_p6 = por %p465_p4, %p464_p3 }
  0x13   : > { %9411 = sst [smem:[#allocation9_spill]] %s5666_s25  ;;  %p4616_p7 = scmp.ge.s32.totalorder %s5525_s21, 1 }
  0x14   : > { %s9413_s26 = scalar_select %p5672_p6, 1, 0 }
  0x15   : > { %p548_p8 = scmp.lt.s32.totalorder %s5525_s21, 3 }
  0x16   : > { %9414 = sst [smem:[#allocation10_spill]] %s9413_s26 }
  0x17   : > { %p549_p9 = pnand %p4616_p7, %p548_p8 }
  0x19   : > { %552 = sbr.rel (%p549_p9) target bundleno = 1981 (0x7bd), region = 96 }
  0x1e   : > { %p606_p10 = scmp.lt.s32.totalorder %s5651_s1, 1  ;;  %s9415_s23 = sld [smem:[#allocation51_spill]]  ;;  %vm845_vm0 = vcmask 1040384   ;;  %vm820_vm1 = vcmask 269312   ;;  %vm2540_vm2 = vcmask 261120   ;;  %vm2549_vm3 = vcmask 523264  }
  0x1f   : > { %s9416_s22 = sld [smem:[#allocation53_spill]]  ;;  %s9394_s20 = smov 32   ;;  %vm2558_vm4 = vcmask 785408   ;;  %vm3934_vm5 = vcmask 64512   ;;  %vm4121_vm6 = vcmask 130048   ;;  %vm4534_vm7 = vcmask 516096  }
  0x20   : > { %s5680_s27 = scalar_select %p606_p10, %s5651_s1, 1 }
  0x21   : > { %s9392_s25 = smov 64   ;;  %s9463_s4 = sld [smem:[#allocation55_spill]] }
  0x22   : > { %s5288_s28 = smul.u32 148, %s5680_s27  ;;  %s9501_s5 = sld [smem:[#allocation56_spill]] }
  0x23   : > { %s9503_s0 = sld [smem:[#allocation52_spill]]  ;;  %s4545_s2 = scalar_lea.hbm %s9385_s19, %s5651_s1 }
  0x24   : > { %s5686_s24 = scalar_lea.vmem %s9415_s23, %s5288_s28  ;;  %s9458_s23 = smov 64  }
  0x25   : > { %v5277_v0 = vld [vmem:[%s5686_s24 + $0x38] sm:$0xff]   ;;  %v758_v1 = vld [vmem:[%s5686_s24 + $0x90] sm:$0x1]  ;;  %v5287_v2 = vld [vmem:[%s5686_s24 + $0x88] sm:$0xff]  }
  0x26   : > { %v5691_v3 = vunpack.c.h.bf16 %v5277_v0  ;;  %v5693_v4 = vunpack.c.l.bf16 %v758_v1  ;;  %v5695_v5 = vunpack.c.l.bf16 %v5277_v0  ;;  %v5697_v6 = vunpack.c.h.bf16 %v5287_v2  ;;  %v5276_v7 = vld [vmem:[%s5686_s24 + $0x30] sm:$0xff]   ;;  %v5285_v8 = vld [vmem:[%s5686_s24 + $0x78] sm:$0xff]   ;;  %v5286_v10 = vld [vmem:[%s5686_s24 + $0x80] sm:$0xff]  }
  0x27   : > { %v5701_v9 = vunpack.c.h.bf16 %v5285_v8  ;;  %v5284_v11 = vld [vmem:[%s5686_s24 + $0x70] sm:$0xff]   ;;  %v5708_v12 = vunpack.c.h.bf16 %v5276_v7  ;;  %v5710_v13 = vunpack.c.l.bf16 %v5287_v2  ;;  %v5712_v14 = vunpack.c.l.bf16 %v5285_v8  ;;  %v5275_v15 = vld [vmem:[%s5686_s24 + $0x28] sm:$0xff]   ;;  %v5274_v23 = vld [vmem:[%s5686_s24 + $0x20] sm:$0xff]  }
  0x28   : > { %849 = vmatpush.msra.mxu0 %v5691_v3  ;;  %4618 = vmatpush.msk.msra.mxu2 %vm845_vm0, %v5693_v4  ;;  %v5717_v16 = vunpack.c.h.bf16 %v5284_v11  ;;  %v5721_v17 = vunpack.c.l.bf16 %v5276_v7  ;;  %v5723_v18 = vunpack.c.h.bf16 %v5286_v10  ;;  %v5727_v19 = vunpack.c.l.bf16 %v5284_v11  ;;  %v5283_v20 = vld [vmem:[%s5686_s24 + $0x68] sm:$0xff]   ;;  %v798_v24 = vld [vmem:[%s9416_s22 + $0x10] sm:$0xff]  ;;  %v5282_v27 = vld [vmem:[%s5686_s24 + $0x60] sm:$0xff]  }
  0x29   : > { %1021 = vmatpush.msra.mxu3 %v5691_v3  ;;  %890 = vmatpush.msra.mxu1 %v5701_v9  ;;  %v5732_v21 = vunpack.c.h.bf16 %v5275_v15  ;;  %v5734_v22 = vunpack.c.l.bf16 %v5286_v10  ;;  %v5744_v25 = vunpack.c.l.bf16 %v5275_v15  ;;  %v5746_v26 = vunpack.c.h.bf16 %v5283_v20  ;;  %v5273_v30 = vld [vmem:[%s5686_s24 + $0x18] sm:$0xff]   ;;  %v5272_v36 = vld [vmem:[%s5686_s24 + $0x10] sm:$0xff]   ;;  %v801_v37 = vld [vmem:[%s9416_s22 + $0x28] sm:$0xff]  ;;  %s613_s21 = scalar_lea.vmem %s9503_s0, %s5680_s27 }
  0x2a   : > { %850 = vmatpush.msra.mxu0 %v5695_v5  ;;  %943 = vmatpush.msra.mxu2 %v5697_v6  ;;  %v5753_v28 = vunpack.c.h.bf16 %v5274_v23  ;;  %v5755_v29 = vunpack.c.l.bf16 %v5283_v20  ;;  %v5762_v31 = vunpack.c.l.bf16 %v5274_v23  ;;  %v5764_v32 = vunpack.c.h.bf16 %v5282_v27  ;;  %v5281_v33 = vld [vmem:[%s5686_s24 + $0x58] sm:$0xff]   ;;  %v5280_v40 = vld [vmem:[%s5686_s24 + $0x50] sm:$0xff]   ;;  %v5271_v43 = vld [vmem:[%s5686_s24 + $0x8] sm:$0xff]  }
  0x2b   : > { %1022 = vmatpush.msra.mxu3 %v5695_v5  ;;  %891 = vmatpush.msra.mxu1 %v5712_v14  ;;  %v5771_v34 = vunpack.c.h.bf16 %v5273_v30  ;;  %v5773_v35 = vunpack.c.l.bf16 %v5282_v27  ;;  %v5783_v38 = vunpack.c.l.bf16 %v5273_v30  ;;  %v5785_v39 = vunpack.c.h.bf16 %v5281_v33  ;;  %v5279_v46 = vld [vmem:[%s5686_s24 + $0x48] sm:$0xff]   ;;  %v5200_v49 = vld [vmem:[%s5686_s24] sm:$0xff]   ;;  %v807_v61 = vld [vmem:[%s9416_s22 + $0x58] sm:$0xff] }
  0x2c   : > { %851 = vmatpush.msra.mxu0 %v5708_v12  ;;  %944 = vmatpush.msra.mxu2 %v5710_v13  ;;  %v5792_v41 = vunpack.c.h.bf16 %v5272_v36  ;;  %v5794_v42 = vunpack.c.l.bf16 %v5281_v33  ;;  %v5801_v44 = vunpack.c.l.bf16 %v5272_v36  ;;  %v5803_v45 = vunpack.c.h.bf16 %v5280_v40  ;;  %v804_v50 = vld [vmem:[%s9416_s22 + $0x40] sm:$0xff]  ;;  %v797_v62 = vld [vmem:[%s9416_s22 + $0x8] sm:$0xff]  ;;  %v799_v63 = vld [vmem:[%s9416_s22 + $0x18] sm:$0xff] }
  0x2d   : > { %1023 = vmatpush.msra.mxu3 %v5708_v12  ;;  %892 = vmatpush.msra.mxu1 %v5717_v16  ;;  %v5810_v47 = vunpack.c.h.bf16 %v5271_v43  ;;  %v5812_v48 = vunpack.c.l.bf16 %v5280_v40  ;;  %v5822_v51 = vunpack.c.l.bf16 %v5271_v43  ;;  %v5824_v52 = vunpack.c.h.bf16 %v5279_v46  ;;  %v5278_v53 = vld [vmem:[%s5686_s24 + $0x40] sm:$0xff]   ;;  %v4630_v0 = vld [vmem:[%s9416_s22 + $0xd8] sm:$0xff]  ;;  %v810_v1 = vld [vmem:[%s9416_s22 + $0x70] sm:$0xff]  ;;  %s9396_s24 = smov 96  }
  0x2e   : > { %852 = vmatpush.msra.mxu0 %v5721_v17  ;;  %945 = vmatpush.msra.mxu2 %v5723_v18  ;;  %v5831_v54 = vunpack.c.h.bf16 %v5200_v49  ;;  %v5833_v55 = vunpack.c.l.bf16 %v5279_v46  ;;  %v5839_v56 = vunpack.c.l.bf16 %v5200_v49  ;;  %v5841_v57 = vunpack.c.h.bf16 %v5278_v53  ;;  %v796_v58 = vld [vmem:[%s9416_s22] sm:$0xff]  ;;  %v802_v7 = vld [vmem:[%s9416_s22 + $0x30] sm:$0xff]  ;;  %v813_v10 = vld [vmem:[%s9416_s22 + $0x88] sm:$0xff] }
  0x2f   : > { %1024 = vmatpush.msra.mxu3 %v5721_v17  ;;  %893 = vmatpush.msra.mxu1 %v5727_v19  ;;  %v5850_v59 = vunpack.c.l.bf16 %v5278_v53  ;;  %v4627_v60 = vld [vmem:[%s9416_s22 + $0xc0] sm:$0xff]  ;;  %v4633_v8 = vld [vmem:[%s9416_s22 + $0xf0] sm:$0xff]  ;;  %v803_v11 = vld [vmem:[%s9416_s22 + $0x38] sm:$0xff] }
  0x30   : > { %853 = vmatpush.msra.mxu0 %v5732_v21  ;;  %946 = vmatpush.msra.mxu2 %v5734_v22  ;;  %v800_v2 = vld [vmem:[%s9416_s22 + $0x20] sm:$0xff]  ;;  %v805_v15 = vld [vmem:[%s9416_s22 + $0x48] sm:$0xff]  ;;  %v819_v33 = vld [vmem:[%s9416_s22 + $0xb8] sm:$0xff] }
  0x31   : > { %1025 = vmatpush.msra.mxu3 %v5732_v21  ;;  %4619 = vmatmul.msk.f32.vlgmr.msra.gmra.mxu2 %vm820_vm1, %v798_v24  ;;  %v4636_v20 = vld [vmem:[%s9416_s22 + $0x108] sm:$0xff]  ;;  %v816_v23 = vld [vmem:[%s9416_s22 + $0xa0] sm:$0xff]  ;;  %v806_v24 = vld [vmem:[%s9416_s22 + $0x50] sm:$0xff] }
  0x32   : > { %854 = vmatpush.msra.mxu0 %v5744_v25  ;;  %894 = vmatpush.msra.mxu1 %v5746_v26  ;;  %v808_v27 = vld [vmem:[%s9416_s22 + $0x60] sm:$0xff]  ;;  %v809_v36 = vld [vmem:[%s9416_s22 + $0x68] sm:$0xff]  ;;  %v4642_v40 = vld [vmem:[%s9416_s22 + $0x138] sm:$0xff] }
  0x33   : > { %1026 = vmatpush.msra.mxu3 %v5744_v25  ;;  %1062 = vmatpush.msrb.mxu2 %v5701_v9  ;;  %v4639_v30 = vld [vmem:[%s9416_s22 + $0x120] sm:$0xff]  ;;  %v4628_v43 = vld [vmem:[%s9416_s22 + $0xc8] sm:$0xff]  ;;  %v814_v49 = vld [vmem:[%s9416_s22 + $0x90] sm:$0xff] }
  0x34   : > { %855 = vmatpush.msra.mxu0 %v5753_v28  ;;  %895 = vmatpush.msra.mxu1 %v5755_v29  ;;  %v812_v46 = vld [vmem:[%s9416_s22 + $0x80] sm:$0xff] }
  0x35   : > { %1027 = vmatpush.msra.mxu3 %v5753_v28  ;;  %1063 = vmatpush.msrb.mxu2 %v5712_v14  ;;  %v4631_v53 = vld [vmem:[%s9416_s22 + $0xe0] sm:$0xff] }
  0x36   : > { %856 = vmatpush.msra.mxu0 %v5762_v31  ;;  %896 = vmatpush.msra.mxu1 %v5764_v32 }
  0x37   : > { %1028 = vmatpush.msra.mxu3 %v5762_v31  ;;  %1064 = vmatpush.msrb.mxu2 %v5717_v16 }
  0x38   : > { %857 = vmatpush.msra.mxu0 %v5771_v34  ;;  %897 = vmatpush.msra.mxu1 %v5773_v35 }
  0x39   : > { %1029 = vmatpush.msra.mxu3 %v5771_v34  ;;  %4620 = vmatmul.msk.f32.gmra.mxu2 %vm820_vm1, %v801_v37  ;;  %v811_v37 = vld [vmem:[%s9416_s22 + $0x78] sm:$0xff] }
  0x3a   : > { %858 = vmatpush.msra.mxu0 %v5783_v38  ;;  %898 = vmatpush.msra.mxu1 %v5785_v39 }
  0x3b   : > { %1030 = vmatpush.msra.mxu3 %v5783_v38  ;;  %1065 = vmatpush.msrb.mxu2 %v5727_v19 }
  0x3c   : > { %859 = vmatpush.msra.mxu0 %v5792_v41  ;;  %899 = vmatpush.msra.mxu1 %v5794_v42 }
  0x3d   : > { %1031 = vmatpush.msra.mxu3 %v5792_v41  ;;  %1066 = vmatpush.msrb.mxu2 %v5746_v26 }
  0x3e   : > { %860 = vmatpush.msra.mxu0 %v5801_v44  ;;  %900 = vmatpush.msra.mxu1 %v5803_v45 }
  0x3f   : > { %1032 = vmatpush.msra.mxu3 %v5801_v44  ;;  %1067 = vmatpush.msrb.mxu2 %v5755_v29 }
  0x40   : > { %861 = vmatpush.msra.mxu0 %v5810_v47  ;;  %901 = vmatpush.msra.mxu1 %v5812_v48 }
  0x41   : > { %1033 = vmatpush.msra.mxu3 %v5810_v47  ;;  %4621 = vmatmul.msk.f32.gmra.mxu2 %vm820_vm1, %v804_v50  ;;  %v4645_v50 = vld [vmem:[%s9416_s22 + $0x150] sm:$0xff] }
  0x42   : > { %862 = vmatpush.msra.mxu0 %v5822_v51  ;;  %902 = vmatpush.msra.mxu1 %v5824_v52 }
  0x43   : > { %1034 = vmatpush.msra.mxu3 %v5822_v51  ;;  %1068 = vmatpush.msrb.mxu2 %v5764_v32 }
  0x44   : > { %863 = vmatpush.msra.mxu0 %v5831_v54  ;;  %903 = vmatpush.msra.mxu1 %v5833_v55 }
  0x45   : > { %1035 = vmatpush.msra.mxu3 %v5831_v54  ;;  %1069 = vmatpush.msrb.mxu2 %v5773_v35 }
  0x46   : > { %864 = vmatpush.msra.mxu0 %v5839_v56  ;;  %904 = vmatpush.msra.mxu1 %v5841_v57 }
  0x47   : > { %1036 = vmatpush.msra.mxu3 %v5839_v56  ;;  %865 = vmatmul.f32.vlgmr.msra.gmra.mxu0 %v796_v58  ;;  %v815_v58 = vld [vmem:[%s9416_s22 + $0x98] sm:$0xff] }
  0x48   : > { %1037 = vmatmul.f32.vlgmr.msra.gmra.mxu3 %v4627_v60  ;;  %905 = vmatpush.msra.mxu1 %v5850_v59  ;;  %v817_v60 = vld [vmem:[%s9416_s22 + $0xa8] sm:$0xff] }
  0x49   : > { %4622 = vmatmul.msk.f32.gmra.mxu2 %vm820_vm1, %v807_v61  ;;  %906 = vmatmul.f32.vlgmr.msra.gmra.mxu1 %v797_v62  ;;  %v4648_v61 = vld [vmem:[%s9416_s22 + $0x168] sm:$0xff]  ;;  %v4634_v62 = vld [vmem:[%s9416_s22 + $0xf8] sm:$0xff] }
  0x4a   : > { %1070 = vmatpush.msrb.mxu2 %v5785_v39  ;;  %1234 = vmatpush.msrb.mxu3 %v5701_v9 }
  0x4b   : > { %1193 = vmatpush.msrb.mxu1 %v5691_v3  ;;  %4651 = vmatpush.msk.msrb.mxu0 %vm845_vm0, %v5693_v4 }
  0x4c   : > { %1071 = vmatpush.msrb.mxu2 %v5794_v42  ;;  %1235 = vmatpush.msrb.mxu3 %v5712_v14 }
  0x4d   : > { %1194 = vmatpush.msrb.mxu1 %v5695_v5  ;;  %1115 = vmatpush.msrb.mxu0 %v5697_v6 }
  0x4e   : > { %1072 = vmatpush.msrb.mxu2 %v5803_v45  ;;  %1236 = vmatpush.msrb.mxu3 %v5717_v16 }
  0x4f   : > { %868 = vmatmul.f32.gmra.mxu0 %v799_v63  ;;  %1195 = vmatpush.msrb.mxu1 %v5708_v12  ;;  %v818_v63 = vld [vmem:[%s9416_s22 + $0xb0] sm:$0xff] }
  0x50   : > { %1040 = vmatmul.f32.gmra.mxu3 %v4630_v0  ;;  %1073 = vmatpush.msrb.mxu2 %v5812_v48  ;;  %v4629_v0 = vld [vmem:[%s9416_s22 + $0xd0] sm:$0xff] }
  0x51   : > { %4623 = vmatmul.msk.f32.gmra.mxu2 %vm820_vm1, %v810_v1  ;;  %909 = vmatmul.f32.gmra.mxu1 %v800_v2  ;;  %v4661_v1 = vld [vmem:[%s9416_s22 + $0x188] sm:$0xff]  ;;  %v4637_v2 = vld [vmem:[%s9416_s22 + $0x110] sm:$0xff] }
  0x52   : > { %1074 = vmatpush.msrb.mxu2 %v5824_v52  ;;  %1237 = vmatpush.msrb.mxu3 %v5727_v19 }
  0x53   : > { %1196 = vmatpush.msrb.mxu1 %v5721_v17  ;;  %1116 = vmatpush.msrb.mxu0 %v5710_v13 }
  0x54   : > { %1075 = vmatpush.msrb.mxu2 %v5833_v55  ;;  %1238 = vmatpush.msrb.mxu3 %v5746_v26 }
  0x55   : > { %1197 = vmatpush.msrb.mxu1 %v5732_v21  ;;  %1117 = vmatpush.msrb.mxu0 %v5723_v18 }
  0x56   : > { %1076 = vmatpush.msrb.mxu2 %v5841_v57  ;;  %1239 = vmatpush.msrb.mxu3 %v5755_v29 }
  0x57   : > { %871 = vmatmul.f32.gmra.mxu0 %v802_v7  ;;  %1198 = vmatpush.msrb.mxu1 %v5744_v25  ;;  %v4660_v7 = vld [vmem:[%s9416_s22 + $0x180] sm:$0xff] }
  0x58   : > { %1043 = vmatmul.f32.gmra.mxu3 %v4633_v8  ;;  %1077 = vmatpush.msrb.mxu2 %v5850_v59  ;;  %v4632_v8 = vld [vmem:[%s9416_s22 + $0xe8] sm:$0xff] }
  0x59   : > { %4624 = vmatmul.msk.f32.gmra.mxu2 %vm820_vm1, %v813_v10  ;;  %912 = vmatmul.f32.gmra.mxu1 %v803_v11  ;;  %v4664_v10 = vld [vmem:[%s9416_s22 + $0x1a0] sm:$0xff]  ;;  %v4640_v11 = vld [vmem:[%s9416_s22 + $0x128] sm:$0xff] }
  0x5a   : > { %1240 = vmatpush.msrb.mxu3 %v5764_v32  ;;  %1199 = vmatpush.msrb.mxu1 %v5753_v28 }
  0x5b   : > { %1118 = vmatpush.msrb.mxu0 %v5734_v22  ;;  %4684 = vmatpush.msk.msra.mxu2 %vm845_vm0, %v5693_v4 }
  0x5c   : > { %1241 = vmatpush.msrb.mxu3 %v5773_v35  ;;  %1200 = vmatpush.msrb.mxu1 %v5762_v31 }
  0x5d   : > { %1365 = vmatpush.msra.mxu0 %v5691_v3  ;;  %1287 = vmatpush.msra.mxu2 %v5697_v6 }
  0x5e   : > { %1242 = vmatpush.msrb.mxu3 %v5785_v39  ;;  %1201 = vmatpush.msrb.mxu1 %v5771_v34 }
  0x5f   : > { %874 = vmatmul.f32.gmra.mxu0 %v805_v15  ;;  %1288 = vmatpush.msra.mxu2 %v5710_v13  ;;  %v4663_v15 = vld [vmem:[%s9416_s22 + $0x198] sm:$0xff] }
  0x60   : > { %1046 = vmatmul.f32.gmra.mxu3 %v4636_v20  ;;  %1202 = vmatpush.msrb.mxu1 %v5783_v38  ;;  %v4635_v20 = vld [vmem:[%s9416_s22 + $0x100] sm:$0xff] }
  0x61   : > { %4625 = vmatmul.msk.f32.gmra.mxu2 %vm820_vm1, %v816_v23  ;;  %915 = vmatmul.f32.gmra.mxu1 %v806_v24  ;;  %v4667_v23 = vld [vmem:[%s9416_s22 + $0x1b8] sm:$0xff]  ;;  %v4643_v24 = vld [vmem:[%s9416_s22 + $0x140] sm:$0xff] }
  0x62   : > { %1243 = vmatpush.msrb.mxu3 %v5794_v42  ;;  %1203 = vmatpush.msrb.mxu1 %v5792_v41 }
  0x63   : > { %1366 = vmatpush.msra.mxu0 %v5695_v5  ;;  %1289 = vmatpush.msra.mxu2 %v5723_v18 }
  0x64   : > { %1244 = vmatpush.msrb.mxu3 %v5803_v45  ;;  %1204 = vmatpush.msrb.mxu1 %v5801_v44 }
  0x65   : > { %1367 = vmatpush.msra.mxu0 %v5708_v12  ;;  %1290 = vmatpush.msra.mxu2 %v5734_v22 }
  0x66   : > { %1245 = vmatpush.msrb.mxu3 %v5812_v48  ;;  %1205 = vmatpush.msrb.mxu1 %v5810_v47 }
  0x67   : > { %877 = vmatmul.f32.gmra.mxu0 %v808_v27  ;;  %v4666_v27 = vld [vmem:[%s9416_s22 + $0x1b0] sm:$0xff] }
  0x68   : > { %1049 = vmatmul.f32.gmra.mxu3 %v4639_v30  ;;  %1206 = vmatpush.msrb.mxu1 %v5822_v51  ;;  %v4638_v30 = vld [vmem:[%s9416_s22 + $0x118] sm:$0xff] }
  0x69   : > { %4626 = vmatmul.msk.f32.gmra.mxu2 %vm820_vm1, %v819_v33  ;;  %918 = vmatmul.f32.gmra.mxu1 %v809_v36  ;;  %v4670_v33 = vld [vmem:[%s9416_s22 + $0x1d0] sm:$0xff]  ;;  %v4646_v36 = vld [vmem:[%s9416_s22 + $0x158] sm:$0xff] }
  0x6a   : > { %1246 = vmatpush.msrb.mxu3 %v5824_v52  ;;  %1207 = vmatpush.msrb.mxu1 %v5831_v54 }
  0x6b   : > { %1368 = vmatpush.msra.mxu0 %v5721_v17 }
  0x6c   : > { %1247 = vmatpush.msrb.mxu3 %v5833_v55  ;;  %1208 = vmatpush.msrb.mxu1 %v5839_v56 }
  0x6d   : > { %1369 = vmatpush.msra.mxu0 %v5732_v21 }
  0x6e   : > { %1406 = vmatpush.msra.mxu1 %v5701_v9  ;;  %1248 = vmatpush.msrb.mxu3 %v5841_v57 }
  0x6f   : > { %880 = vmatmul.f32.gmra.mxu0 %v811_v37  ;;  %v4669_v37 = vld [vmem:[%s9416_s22 + $0x1c8] sm:$0xff] }
  0x70   : > { %1407 = vmatpush.msra.mxu1 %v5712_v14  ;;  %1052 = vmatmul.f32.gmra.mxu3 %v4642_v40  ;;  %v4641_v40 = vld [vmem:[%s9416_s22 + $0x130] sm:$0xff] }
  0x71   : > { %1370 = vmatpush.msra.mxu0 %v5744_v25  ;;  %1078 = vmatmul.f32.vlgmr.msrb.gmra.mxu2 %v4628_v43  ;;  %v4673_v43 = vld [vmem:[%s9416_s22 + $0x1e8] sm:$0xff] }
  0x72   : > { %921 = vmatmul.f32.gmra.mxu1 %v812_v46  ;;  %1249 = vmatpush.msrb.mxu3 %v5850_v59  ;;  %v4649_v46 = vld [vmem:[%s9416_s22 + $0x170] sm:$0xff] }
  0x73   : > { %1408 = vmatpush.msra.mxu1 %v5717_v16  ;;  %1371 = vmatpush.msra.mxu0 %v5753_v28 }
  0x74   : > { %4717 = vmatpush.msk.msra.mxu3 %vm845_vm0, %v5693_v4  ;;  %1537 = vmatpush.msrb.mxu2 %v5691_v3 }
  0x75   : > { %1409 = vmatpush.msra.mxu1 %v5727_v19  ;;  %1372 = vmatpush.msra.mxu0 %v5762_v31 }
  0x76   : > { %1459 = vmatpush.msra.mxu3 %v5697_v6  ;;  %1538 = vmatpush.msrb.mxu2 %v5695_v5 }
  0x77   : > { %1410 = vmatpush.msra.mxu1 %v5746_v26  ;;  %883 = vmatmul.f32.gmra.mxu0 %v814_v49  ;;  %v4672_v49 = vld [vmem:[%s9416_s22 + $0x1e0] sm:$0xff] }
  0x78   : > { %1460 = vmatpush.msra.mxu3 %v5710_v13  ;;  %1373 = vmatpush.msra.mxu0 %v5771_v34 }
  0x79   : > { %1055 = vmatmul.f32.gmra.mxu3 %v4645_v50  ;;  %1411 = vmatpush.msra.mxu1 %v5755_v29  ;;  %v4644_v50 = vld [vmem:[%s9416_s22 + $0x148] sm:$0xff] }
  0x7a   : > { %1081 = vmatmul.f32.gmra.mxu2 %v4631_v53  ;;  %924 = vmatmul.f32.gmra.mxu1 %v815_v58  ;;  %v4676_v53 = vld [vmem:[%s9416_s22 + $0x200] sm:$0xff]  ;;  %v4662_v58 = vld [vmem:[%s9416_s22 + $0x190] sm:$0xff] }
  0x7b   : > { %1412 = vmatpush.msra.mxu1 %v5764_v32  ;;  %1461 = vmatpush.msra.mxu3 %v5723_v18 }
  0x7c   : > { %1539 = vmatpush.msrb.mxu2 %v5708_v12  ;;  %1374 = vmatpush.msra.mxu0 %v5783_v38 }
  0x7d   : > { %1413 = vmatpush.msra.mxu1 %v5773_v35  ;;  %1462 = vmatpush.msra.mxu3 %v5734_v22 }
  0x7e   : > { %1540 = vmatpush.msrb.mxu2 %v5721_v17  ;;  %1375 = vmatpush.msra.mxu0 %v5792_v41 }
  0x7f   : > { %1414 = vmatpush.msra.mxu1 %v5785_v39  ;;  %886 = vmatmul.f32.gmra.mxu0 %v817_v60  ;;  %v4675_v60 = vld [vmem:[%s9416_s22 + $0x1f8] sm:$0xff] }
  0x80   : > { %1541 = vmatpush.msrb.mxu2 %v5732_v21  ;;  %1376 = vmatpush.msra.mxu0 %v5801_v44 }
  0x81   : > { %1058 = vmatmul.f32.gmra.mxu3 %v4648_v61  ;;  %1415 = vmatpush.msra.mxu1 %v5794_v42 }
  0x82   : > { %1084 = vmatmul.f32.gmra.mxu2 %v4634_v62  ;;  %927 = vmatmul.f32.gmra.mxu1 %v818_v63  ;;  %v4647_v62 = vld [vmem:[%s9416_s22 + $0x160] sm:$0xff]  ;;  %v4679_v63 = vld [vmem:[%s9416_s22 + $0x218] sm:$0xff] }
  0x83   : > { %1377 = vmatpush.msra.mxu0 %v5810_v47  ;;  %1542 = vmatpush.msrb.mxu2 %v5744_v25 }
  0x84   : > { %1416 = vmatpush.msra.mxu1 %v5803_v45 }
  0x85   : > { %1378 = vmatpush.msra.mxu0 %v5822_v51  ;;  %1543 = vmatpush.msrb.mxu2 %v5753_v28 }
  0x86   : > { %1417 = vmatpush.msra.mxu1 %v5812_v48 }
  0x87   : > { %1379 = vmatpush.msra.mxu0 %v5831_v54  ;;  %1544 = vmatpush.msrb.mxu2 %v5762_v31 }
  0x88   : > { %4652 = vmatmul.msk.f32.vlgmr.msrb.gmra.mxu0 %vm820_vm1, %v4629_v0  ;;  %1418 = vmatpush.msra.mxu1 %v5824_v52  ;;  %v4665_v0 = vld [vmem:[%s9416_s22 + $0x1a8] sm:$0xff] }
  0x89   : > { %1250 = vmatmul.f32.vlgmr.msrb.gmra.mxu3 %v4661_v1  ;;  %1380 = vmatpush.msra.mxu0 %v5839_v56  ;;  %v4678_v1 = vld [vmem:[%s9416_s22 + $0x210] sm:$0xff] }
  0x8a   : > { %1087 = vmatmul.f32.gmra.mxu2 %v4637_v2  ;;  %1209 = vmatmul.f32.vlgmr.msrb.gmra.mxu1 %v4660_v7  ;;  %v4650_v7 = vld [vmem:[%s9416_s22 + $0x178] sm:$0xff] }
  0x8b   : > { %1419 = vmatpush.msra.mxu1 %v5833_v55  ;;  %1545 = vmatpush.msrb.mxu2 %v5771_v34 }
  0x8c   : > { %1578 = vmatpush.msrb.mxu0 %v5701_v9  ;;  %1709 = vmatpush.msrb.mxu3 %v5691_v3 }
  0x8d   : > { %1420 = vmatpush.msra.mxu1 %v5841_v57  ;;  %1546 = vmatpush.msrb.mxu2 %v5783_v38 }
  0x8e   : > { %1579 = vmatpush.msrb.mxu0 %v5712_v14  ;;  %1710 = vmatpush.msrb.mxu3 %v5695_v5 }
  0x8f   : > { %1421 = vmatpush.msra.mxu1 %v5850_v59  ;;  %1547 = vmatpush.msrb.mxu2 %v5792_v41 }
  0x90   : > { %4653 = vmatmul.msk.f32.gmra.mxu0 %vm820_vm1, %v4632_v8  ;;  %1711 = vmatpush.msrb.mxu3 %v5708_v12  ;;  %v4682_v8 = vld [vmem:[%s9416_s22 + $0x230] sm:$0xff] }
  0x91   : > { %1253 = vmatmul.f32.gmra.mxu3 %v4664_v10  ;;  %1580 = vmatpush.msrb.mxu0 %v5717_v16  ;;  %v4668_v10 = vld [vmem:[%s9416_s22 + $0x1c0] sm:$0xff] }
  0x92   : > { %1090 = vmatmul.f32.gmra.mxu2 %v4640_v11  ;;  %1212 = vmatmul.f32.gmra.mxu1 %v4663_v15  ;;  %v4681_v11 = vld [vmem:[%s9416_s22 + $0x228] sm:$0xff] }
  0x93   : > { %1548 = vmatpush.msrb.mxu2 %v5801_v44  ;;  %1581 = vmatpush.msrb.mxu0 %v5727_v19 }
  0x94   : > { %4750 = vmatpush.msk.msrb.mxu1 %vm845_vm0, %v5693_v4  ;;  %1712 = vmatpush.msrb.mxu3 %v5721_v17 }
  0x95   : > { %1549 = vmatpush.msrb.mxu2 %v5810_v47  ;;  %1582 = vmatpush.msrb.mxu0 %v5746_v26 }
  0x96   : > { %1631 = vmatpush.msrb.mxu1 %v5697_v6  ;;  %1713 = vmatpush.msrb.mxu3 %v5732_v21 }
  0x97   : > { %1550 = vmatpush.msrb.mxu2 %v5822_v51  ;;  %1583 = vmatpush.msrb.mxu0 %v5755_v29 }
  0x98   : > { %4654 = vmatmul.msk.f32.gmra.mxu0 %vm820_vm1, %v4635_v20  ;;  %1632 = vmatpush.msrb.mxu1 %v5710_v13 }
  0x99   : > { %1256 = vmatmul.f32.gmra.mxu3 %v4667_v23  ;;  %1551 = vmatpush.msrb.mxu2 %v5831_v54  ;;  %v4693_v23 = vld [vmem:[%s9416_s22 + $0x240] sm:$0xff] }
  0x9a   : > { %1093 = vmatmul.f32.gmra.mxu2 %v4643_v24  ;;  %1215 = vmatmul.f32.gmra.mxu1 %v4666_v27  ;;  %v4695_v24 = vld [vmem:[%s9416_s22 + $0x250] sm:$0xff] }
  0x9b   : > { %1552 = vmatpush.msrb.mxu2 %v5839_v56  ;;  %1714 = vmatpush.msrb.mxu3 %v5744_v25 }
  0x9c   : > { %1633 = vmatpush.msrb.mxu1 %v5723_v18  ;;  %1584 = vmatpush.msrb.mxu0 %v5764_v32 }
  0x9d   : > { %1715 = vmatpush.msrb.mxu3 %v5753_v28 }
  0x9e   : > { %1634 = vmatpush.msrb.mxu1 %v5734_v22  ;;  %1585 = vmatpush.msrb.mxu0 %v5773_v35 }
  0x9f   : > { %1716 = vmatpush.msrb.mxu3 %v5762_v31 }
  0xa0   : > { %4655 = vmatmul.msk.f32.gmra.mxu0 %vm820_vm1, %v4638_v30  ;;  %v4671_v30 = vld [vmem:[%s9416_s22 + $0x1d8] sm:$0xff] }
  0xa1   : > { %1259 = vmatmul.f32.gmra.mxu3 %v4670_v33  ;;  %1586 = vmatpush.msrb.mxu0 %v5785_v39  ;;  %v4694_v33 = vld [vmem:[%s9416_s22 + $0x248] sm:$0xff] }
  0xa2   : > { %1096 = vmatmul.f32.gmra.mxu2 %v4646_v36  ;;  %1218 = vmatmul.f32.gmra.mxu1 %v4669_v37 }
  0xa3   : > { %1717 = vmatpush.msrb.mxu3 %v5771_v34  ;;  %1587 = vmatpush.msrb.mxu0 %v5794_v42 }
  0xa5   : > { %1718 = vmatpush.msrb.mxu3 %v5783_v38  ;;  %1588 = vmatpush.msrb.mxu0 %v5803_v45 }
  0xa7   : > { %1719 = vmatpush.msrb.mxu3 %v5792_v41  ;;  %1589 = vmatpush.msrb.mxu0 %v5812_v48 }
  0xa8   : > { %4656 = vmatmul.msk.f32.gmra.mxu0 %vm820_vm1, %v4641_v40 }
  0xa9   : > { %1262 = vmatmul.f32.gmra.mxu3 %v4673_v43  ;;  %1590 = vmatpush.msrb.mxu0 %v5824_v52 }
  0xaa   : > { %1099 = vmatmul.f32.gmra.mxu2 %v4649_v46  ;;  %1221 = vmatmul.f32.gmra.mxu1 %v4672_v49  ;;  %v4696_v49 = vld [vmem:[%s9416_s22 + $0x258] sm:$0xff] }
  0xab   : > { %1720 = vmatpush.msrb.mxu3 %v5801_v44  ;;  %1591 = vmatpush.msrb.mxu0 %v5833_v55 }
  0xad   : > { %1721 = vmatpush.msrb.mxu3 %v5810_v47  ;;  %1592 = vmatpush.msrb.mxu0 %v5841_v57 }
  0xaf   : > { %1722 = vmatpush.msrb.mxu3 %v5822_v51  ;;  %1593 = vmatpush.msrb.mxu0 %v5850_v59 }
  0xb0   : > { %4657 = vmatmul.msk.f32.gmra.mxu0 %vm820_vm1, %v4644_v50  ;;  %v4698_v50 = vld [vmem:[%s9416_s22 + $0x268] sm:$0xff] }
  0xb1   : > { %1265 = vmatmul.f32.gmra.mxu3 %v4676_v53 }
  0xb2   : > { %4685 = vmatmul.msk.f32.vlgmr.msra.gmra.mxu2 %vm820_vm1, %v4662_v58  ;;  %1224 = vmatmul.f32.gmra.mxu1 %v4675_v60  ;;  %v4674_v58 = vld [vmem:[%s9416_s22 + $0x1f0] sm:$0xff]  ;;  %v4697_v60 = vld [vmem:[%s9416_s22 + $0x260] sm:$0xff] }
  0xb3   : > { %1723 = vmatpush.msrb.mxu3 %v5831_v54  ;;  %1750 = vmatpush.msra.mxu2 %v5701_v9 }
  0xb4   : > { %v948_v61 = vpop.f32.mrf.mxu2 }
  0xb5   : > { %1724 = vmatpush.msrb.mxu3 %v5839_v56  ;;  %1751 = vmatpush.msra.mxu2 %v5712_v14 }
  0xb7   : > { %1752 = vmatpush.msra.mxu2 %v5717_v16 }
  0xb8   : > { %4658 = vmatmul.msk.f32.gmra.mxu0 %vm820_vm1, %v4647_v62 }
  0xb9   : > { %1268 = vmatmul.f32.gmra.mxu3 %v4679_v63  ;;  %1753 = vmatpush.msra.mxu2 %v5727_v19 }
  0xba   : > { %4686 = vmatmul.msk.f32.gmra.mxu2 %vm820_vm1, %v4665_v0  ;;  %1227 = vmatmul.f32.gmra.mxu1 %v4678_v1 }
  0xbb   : > { %1754 = vmatpush.msra.mxu2 %v5746_v26 }
  0xbc   : > { %v951_v2 = vpop.f32.mrf.mxu2 }
  0xbd   : > { %1755 = vmatpush.msra.mxu2 %v5755_v29 }
  0xbf   : > { %1756 = vmatpush.msra.mxu2 %v5764_v32 }
  0xc0   : > { %4659 = vmatmul.msk.f32.gmra.mxu0 %vm820_vm1, %v4650_v7  ;;  %v4699_v7 = vld [vmem:[%s9416_s22 + $0x270] sm:$0xff] }
  0xc1   : > { %1271 = vmatmul.f32.gmra.mxu3 %v4682_v8  ;;  %1757 = vmatpush.msra.mxu2 %v5773_v35 }
  0xc2   : > { %4687 = vmatmul.msk.f32.gmra.mxu2 %vm820_vm1, %v4668_v10  ;;  %1230 = vmatmul.f32.gmra.mxu1 %v4681_v11  ;;  %v4677_v10 = vld [vmem:[%s9416_s22 + $0x208] sm:$0xff]  ;;  %v4700_v11 = vld [vmem:[%s9416_s22 + $0x278] sm:$0xff] }
  0xc3   : > { %1758 = vmatpush.msra.mxu2 %v5785_v39 }
  0xc4   : > { %v866_v15 = vpop.f32.mrf.mxu0  ;;  %v954_v20 = vpop.f32.mrf.mxu2 }
  0xc5   : > { %1759 = vmatpush.msra.mxu2 %v5794_v42 }
  0xc6   : > { %v907_v27 = vpop.f32.mrf.mxu1 }
  0xc7   : > { %1760 = vmatpush.msra.mxu2 %v5803_v45  ;;  %v908_v36 = vadd.f32 %v907_v27, %v866_v15 }
  0xc8   : > { %1381 = vmatmul.f32.vlgmr.msra.gmra.mxu0 %v4693_v23 }
  0xc9   : > { %4718 = vmatmul.msk.f32.vlgmr.msra.gmra.mxu3 %vm820_vm1, %v4695_v24  ;;  %1761 = vmatpush.msra.mxu2 %v5812_v48  ;;  %v6232_v37 = vadd.f32 %v948_v61, %v908_v36 }
  0xca   : > { %4688 = vmatmul.msk.f32.gmra.mxu2 %vm820_vm1, %v4671_v30  ;;  %1422 = vmatmul.f32.vlgmr.msra.gmra.mxu1 %v4694_v33  ;;  %v4702_v33 = vld [vmem:[%s9416_s22 + $0x288] sm:$0xff] }
  0xcb   : > { %9417 = vst [vmem:[#allocation11_spill] sm:$0xff] %v6232_v37  ;;  %1922 = vmatpush.msra.mxu3 %v5701_v9  ;;  %1762 = vmatpush.msra.mxu2 %v5824_v52  ;;  %v6237_v40 = vpop.f32.mrf.mxu3 }
  0xcc   : > { %1881 = vmatpush.msra.mxu1 %v5691_v3  ;;  %4783 = vmatpush.msk.msra.mxu0 %vm845_vm0, %v5693_v4  ;;  %v869_v43 = vpop.f32.mrf.mxu0  ;;  %v957_v46 = vpop.f32.mrf.mxu2 }
  0xcd   : > { %1923 = vmatpush.msra.mxu3 %v5712_v14  ;;  %1763 = vmatpush.msra.mxu2 %v5833_v55 }
  0xce   : > { %1882 = vmatpush.msra.mxu1 %v5695_v5  ;;  %1803 = vmatpush.msra.mxu0 %v5697_v6  ;;  %v910_v53 = vpop.f32.mrf.mxu1 }
  0xcf   : > { %1924 = vmatpush.msra.mxu3 %v5717_v16  ;;  %1764 = vmatpush.msra.mxu2 %v5841_v57  ;;  %v911_v61 = vadd.f32 %v910_v53, %v869_v43  ;;  %v4680_v43 = vld [vmem:[%s9416_s22 + $0x220] sm:$0xff] }
  0xd0   : > { %1384 = vmatmul.f32.gmra.mxu0 %v4696_v49  ;;  %1883 = vmatpush.msra.mxu1 %v5708_v12  ;;  %v4703_v49 = vld [vmem:[%s9416_s22 + $0x290] sm:$0xff] }
  0xd1   : > { %4719 = vmatmul.msk.f32.gmra.mxu3 %vm820_vm1, %v4698_v50  ;;  %1765 = vmatpush.msra.mxu2 %v5850_v59  ;;  %v6263_v62 = vadd.f32 %v951_v2, %v911_v61  ;;  %v4701_v2 = vld [vmem:[%s9416_s22 + $0x280] sm:$0xff] }
  0xd2   : > { %4689 = vmatmul.msk.f32.gmra.mxu2 %vm820_vm1, %v4674_v58  ;;  %1425 = vmatmul.f32.gmra.mxu1 %v4697_v60 }
  0xd3   : > { %9418 = vst [vmem:[#allocation12_spill] sm:$0xff] %v6263_v62  ;;  %1925 = vmatpush.msra.mxu3 %v5727_v19  ;;  %1884 = vmatpush.msra.mxu1 %v5721_v17  ;;  %v6268_v63 = vpop.f32.mrf.mxu3 }
  0xd4   : > { %1804 = vmatpush.msra.mxu0 %v5710_v13  ;;  %v872_v0 = vpop.f32.mrf.mxu0  ;;  %v960_v1 = vpop.f32.mrf.mxu2 }
  0xd5   : > { %1926 = vmatpush.msra.mxu3 %v5746_v26  ;;  %1885 = vmatpush.msra.mxu1 %v5732_v21 }
  0xd6   : > { %1805 = vmatpush.msra.mxu0 %v5723_v18  ;;  %v913_v8 = vpop.f32.mrf.mxu1 }
  0xd7   : > { %1927 = vmatpush.msra.mxu3 %v5755_v29  ;;  %1886 = vmatpush.msra.mxu1 %v5744_v25  ;;  %v914_v15 = vadd.f32 %v913_v8, %v872_v0  ;;  %v4705_v0 = vld [vmem:[%s9416_s22 + $0x2a0] sm:$0xff]  ;;  %v4706_v8 = vld [vmem:[%s9416_s22 + $0x2a8] sm:$0xff] }
  0xd8   : > { %1387 = vmatmul.f32.gmra.mxu0 %v4699_v7 }
  0xd9   : > { %4720 = vmatmul.msk.f32.gmra.mxu3 %vm820_vm1, %v4701_v2  ;;  %1887 = vmatpush.msra.mxu1 %v5753_v28  ;;  %v6290_v23 = vadd.f32 %v954_v20, %v914_v15  ;;  %v4704_v20 = vld [vmem:[%s9416_s22 + $0x298] sm:$0xff] }
  0xda   : > { %4690 = vmatmul.msk.f32.gmra.mxu2 %vm820_vm1, %v4677_v10  ;;  %1428 = vmatmul.f32.gmra.mxu1 %v4700_v11  ;;  %v4683_v2 = vld [vmem:[%s9416_s22 + $0x238] sm:$0xff] }
  0xdb   : > { %9419 = vst [vmem:[#allocation13_spill] sm:$0xff] %v6290_v23  ;;  %1928 = vmatpush.msra.mxu3 %v5764_v32  ;;  %1888 = vmatpush.msra.mxu1 %v5762_v31  ;;  %v6295_v24 = vpop.f32.mrf.mxu3 }
  0xdc   : > { %1806 = vmatpush.msra.mxu0 %v5734_v22  ;;  %v875_v27 = vpop.f32.mrf.mxu0  ;;  %v963_v30 = vpop.f32.mrf.mxu2 }
  0xdd   : > { %1929 = vmatpush.msra.mxu3 %v5773_v35  ;;  %1889 = vmatpush.msra.mxu1 %v5771_v34 }
  0xde   : > { %v916_v36 = vpop.f32.mrf.mxu1 }
  0xdf   : > { %1930 = vmatpush.msra.mxu3 %v5785_v39  ;;  %1890 = vmatpush.msra.mxu1 %v5783_v38  ;;  %v917_v50 = vadd.f32 %v916_v36, %v875_v27 }
  0xe0   : > { %1390 = vmatmul.f32.gmra.mxu0 %v4702_v33 }
  0xe1   : > { %4721 = vmatmul.msk.f32.gmra.mxu3 %vm820_vm1, %v4704_v20  ;;  %1891 = vmatpush.msra.mxu1 %v5792_v41  ;;  %v6316_v53 = vadd.f32 %v957_v46, %v917_v50  ;;  %v4707_v46 = vld [vmem:[%s9416_s22 + $0x2b0] sm:$0xff]  ;;  %v4708_v20 = vld [vmem:[%s9416_s22 + $0x2b8] sm:$0xff] }
  0xe2   : > { %4691 = vmatmul.msk.f32.gmra.mxu2 %vm820_vm1, %v4680_v43  ;;  %1431 = vmatmul.f32.gmra.mxu1 %v4703_v49  ;;  %v4726_v43 = vld [vmem:[%s9416_s22 + $0x300] sm:$0xff] }
  0xe3   : > { %9420 = vst [vmem:[#allocation14_spill] sm:$0xff] %v6316_v53  ;;  %1931 = vmatpush.msra.mxu3 %v5794_v42  ;;  %1892 = vmatpush.msra.mxu1 %v5801_v44  ;;  %v6321_v58 = vpop.f32.mrf.mxu3  ;;  %v4709_v49 = vld [vmem:[%s9416_s22 + $0x2c0] sm:$0xff] }
  0xe4   : > { %v878_v60 = vpop.f32.mrf.mxu0  ;;  %v966_v61 = vpop.f32.mrf.mxu2 }
  0xe5   : > { %1932 = vmatpush.msra.mxu3 %v5803_v45  ;;  %1893 = vmatpush.msra.mxu1 %v5810_v47 }
  0xe6   : > { %v919_v7 = vpop.f32.mrf.mxu1 }
  0xe7   : > { %1933 = vmatpush.msra.mxu3 %v5812_v48  ;;  %1894 = vmatpush.msra.mxu1 %v5822_v51  ;;  %v920_v10 = vadd.f32 %v919_v7, %v878_v60 }
  0xe8   : > { %1393 = vmatmul.f32.gmra.mxu0 %v4705_v0 }
  0xe9   : > { %4722 = vmatmul.msk.f32.gmra.mxu3 %vm820_vm1, %v4707_v46  ;;  %1895 = vmatpush.msra.mxu1 %v5831_v54  ;;  %v6341_v11 = vadd.f32 %v960_v1, %v920_v10  ;;  %v4710_v1 = vld [vmem:[%s9416_s22 + $0x2c8] sm:$0xff] }
  0xea   : > { %4692 = vmatmul.msk.f32.gmra.mxu2 %vm820_vm1, %v4683_v2  ;;  %1434 = vmatmul.f32.gmra.mxu1 %v4706_v8  ;;  %v4711_v2 = vld [vmem:[%s9416_s22 + $0x2d0] sm:$0xff]  ;;  %v4713_v8 = vld [vmem:[%s9416_s22 + $0x2e0] sm:$0xff] }
  0xeb   : > { %9421 = vst [vmem:[#allocation15_spill] sm:$0xff] %v6341_v11  ;;  %1934 = vmatpush.msra.mxu3 %v5824_v52  ;;  %1896 = vmatpush.msra.mxu1 %v5839_v56  ;;  %v6346_v15 = vpop.f32.mrf.mxu3 }
  0xec   : > { %v881_v27 = vpop.f32.mrf.mxu0  ;;  %v969_v33 = vpop.f32.mrf.mxu2 }
  0xed   : > { %1935 = vmatpush.msra.mxu3 %v5833_v55 }
  0xef   : > { %v922_v36 = vpop.f32.mrf.mxu1  ;;  %1936 = vmatpush.msra.mxu3 %v5841_v57 }
  0xf0   : > { %1396 = vmatmul.f32.gmra.mxu0 %v4708_v20  ;;  %v923_v50 = vadd.f32 %v922_v36, %v881_v27  ;;  %v4729_v27 = vld [vmem:[%s9416_s22 + $0x318] sm:$0xff] }
  0xf1   : > { %4723 = vmatmul.msk.f32.gmra.mxu3 %vm820_vm1, %v4710_v1  ;;  %v4712_v20 = vld [vmem:[%s9416_s22 + $0x2d8] sm:$0xff] }
  0xf2   : > { %v6363_v60 = vadd.f32 %v963_v30, %v923_v50  ;;  %1553 = vmatmul.f32.vlgmr.msrb.gmra.mxu2 %v4726_v43  ;;  %1437 = vmatmul.f32.gmra.mxu1 %v4709_v49  ;;  %v4714_v50 = vld [vmem:[%s9416_s22 + $0x2e8] sm:$0xff] }
  0xf3   : > { %1937 = vmatpush.msra.mxu3 %v5850_v59  ;;  %4816 = vmatpush.msk.msrb.mxu2 %vm845_vm0, %v5693_v4  ;;  %v6368_v0 = vpop.f32.mrf.mxu3 }
  0xf4   : > { %9422 = vst [vmem:[#allocation16_spill] sm:$0xff] %v6363_v60  ;;  %v884_v46 = vpop.f32.mrf.mxu0  ;;  %v1079_v7 = vpop.f32.mrf.mxu2 }
  0xf5   : > { %1975 = vmatpush.msrb.mxu2 %v5697_v6  ;;  %v6375_v30 = vadd.f32 %v1079_v7, %v6237_v40 }
  0xf7   : > { %v925_v10 = vpop.f32.mrf.mxu1  ;;  %1976 = vmatpush.msrb.mxu2 %v5710_v13 }
  0xf8   : > { %1399 = vmatmul.f32.gmra.mxu0 %v4711_v2  ;;  %v926_v1 = vadd.f32 %v925_v10, %v884_v46  ;;  %v4732_v2 = vld [vmem:[%s9416_s22 + $0x330] sm:$0xff] }
  0xf9   : > { %4724 = vmatmul.msk.f32.gmra.mxu3 %vm820_vm1, %v4713_v8  ;;  %1977 = vmatpush.msrb.mxu2 %v5723_v18  ;;  %v4715_v8 = vld [vmem:[%s9416_s22 + $0x2f0] sm:$0xff] }
  0xfa   : > { %v6389_v40 = vadd.f32 %v966_v61, %v926_v1  ;;  %1556 = vmatmul.f32.gmra.mxu2 %v4729_v27  ;;  %1440 = vmatmul.f32.gmra.mxu1 %v4712_v20  ;;  %v4716_v61 = vld [vmem:[%s9416_s22 + $0x2f8] sm:$0xff] }
  0xfb   : > { %1978 = vmatpush.msrb.mxu2 %v5734_v22 }
  0xfc   : > { %9423 = vst [vmem:[#allocation17_spill] sm:$0xff] %v6389_v40  ;;  %v6392_v36 = vpop.f32.mrf.mxu3  ;;  %v887_v43 = vpop.f32.mrf.mxu0 }
  0xfd   : > { %v1082_v49 = vpop.f32.mrf.mxu2 }
  0xfe   : > { %v6398_v46 = vadd.f32 %v1082_v49, %v6268_v63  ;;  %v4727_v49 = vld [vmem:[%s9416_s22 + $0x308] sm:$0xff] }
  0xff   : > { %v928_v7 = vpop.f32.mrf.mxu1 }
 0x100   : > { %1402 = vmatmul.f32.gmra.mxu0 %v4714_v50  ;;  %v929_v10 = vadd.f32 %v928_v7, %v887_v43  ;;  %v4759_v43 = vld [vmem:[%s9416_s22 + $0x3c0] sm:$0xff]  ;;  %v4735_v50 = vld [vmem:[%s9416_s22 + $0x348] sm:$0xff] }
 0x101   : > { %4725 = vmatmul.msk.f32.gmra.mxu3 %vm820_vm1, %v4716_v61  ;;  %v4728_v61 = vld [vmem:[%s9416_s22 + $0x310] sm:$0xff] }
 0x102   : > { %v6410_v27 = vadd.f32 %v969_v33, %v929_v10  ;;  %1559 = vmatmul.f32.gmra.mxu2 %v4732_v2  ;;  %1443 = vmatmul.f32.gmra.mxu1 %v4715_v8  ;;  %v4730_v10 = vld [vmem:[%s9416_s22 + $0x320] sm:$0xff] }
 0x104   : > { %9424 = vst [vmem:[#allocation18_spill] sm:$0xff] %v6410_v27  ;;  %v6412_v63 = vpop.f32.mrf.mxu3 }
 0x105   : > { %v1085_v20 = vpop.f32.mrf.mxu2  ;;  %v6414_v1 = vpop.f32.mrf.mxu0 }
 0x106   : > { %v6420_v40 = vadd.f32 %v1085_v20, %v6295_v24 }
 0x107   : > { %v1210_v33 = vpop.f32.mrf.mxu1 }
 0x108   : > { %1594 = vmatmul.f32.vlgmr.msrb.gmra.mxu0 %v4727_v49  ;;  %v4762_v49 = vld [vmem:[%s9416_s22 + $0x3d8] sm:$0xff] }
 0x109   : > { %1725 = vmatmul.f32.vlgmr.msrb.gmra.mxu3 %v4759_v43  ;;  %2053 = vmatpush.msrb.mxu0 %v5691_v3 }
 0x10a   : > { %1562 = vmatmul.f32.gmra.mxu2 %v4735_v50  ;;  %4751 = vmatmul.msk.f32.vlgmr.msrb.gmra.mxu1 %vm820_vm1, %v4728_v61  ;;  %v4731_v50 = vld [vmem:[%s9416_s22 + $0x328] sm:$0xff] }
 0x10b   : > { %2094 = vmatpush.msrb.mxu1 %v5701_v9  ;;  %2054 = vmatpush.msrb.mxu0 %v5695_v5 }
 0x10c   : > { %v1251_v24 = vpop.f32.mrf.mxu3  ;;  %4849 = vmatpush.msk.msrb.mxu3 %vm845_vm0, %v5693_v4 }
 0x10d   : > { %v6437_v7 = vadd.f32 %v1251_v24, %v1210_v33  ;;  %v1088_v2 = vpop.f32.mrf.mxu2  ;;  %v6439_v8 = vpop.f32.mrf.mxu0  ;;  %2095 = vmatpush.msrb.mxu1 %v5712_v14  ;;  %2055 = vmatpush.msrb.mxu0 %v5708_v12  ;;  %v4738_v33 = vld [vmem:[%s9416_s22 + $0x360] sm:$0xff] }
 0x10e   : > { %v6447_v20 = vadd.f32 %v1088_v2, %v6321_v58  ;;  %2147 = vmatpush.msrb.mxu3 %v5697_v6 }
 0x10f   : > { %v1213_v43 = vpop.f32.mrf.mxu1  ;;  %2096 = vmatpush.msrb.mxu1 %v5717_v16  ;;  %2056 = vmatpush.msrb.mxu0 %v5721_v17 }
 0x110   : > { %1597 = vmatmul.f32.gmra.mxu0 %v4730_v10  ;;  %2148 = vmatpush.msrb.mxu3 %v5710_v13  ;;  %v4733_v10 = vld [vmem:[%s9416_s22 + $0x338] sm:$0xff] }
 0x111   : > { %1728 = vmatmul.f32.gmra.mxu3 %v4762_v49  ;;  %2097 = vmatpush.msrb.mxu1 %v5727_v19 }
 0x112   : > { %1565 = vmatmul.f32.gmra.mxu2 %v4738_v33  ;;  %4752 = vmatmul.msk.f32.gmra.mxu1 %vm820_vm1, %v4731_v50  ;;  %v4765_v33 = vld [vmem:[%s9416_s22 + $0x3f0] sm:$0xff]  ;;  %v4741_v50 = vld [vmem:[%s9416_s22 + $0x378] sm:$0xff] }
 0x113   : > { %2057 = vmatpush.msrb.mxu0 %v5732_v21  ;;  %2098 = vmatpush.msrb.mxu1 %v5746_v26 }
 0x114   : > { %v1254_v58 = vpop.f32.mrf.mxu3  ;;  %2149 = vmatpush.msrb.mxu3 %v5723_v18 }
 0x115   : > { %v6467_v61 = vadd.f32 %v1254_v58, %v1213_v43  ;;  %v1091_v24 = vpop.f32.mrf.mxu2  ;;  %v6469_v2 = vpop.f32.mrf.mxu0  ;;  %2058 = vmatpush.msrb.mxu0 %v5744_v25  ;;  %2099 = vmatpush.msrb.mxu1 %v5755_v29  ;;  %v4734_v58 = vld [vmem:[%s9416_s22 + $0x340] sm:$0xff] }
 0x116   : > { %v6477_v49 = vadd.f32 %v1091_v24, %v6346_v15  ;;  %2150 = vmatpush.msrb.mxu3 %v5734_v22 }
 0x117   : > { %v1216_v43 = vpop.f32.mrf.mxu1  ;;  %2059 = vmatpush.msrb.mxu0 %v5753_v28  ;;  %2100 = vmatpush.msrb.mxu1 %v5764_v32 }
 0x118   : > { %1600 = vmatmul.f32.gmra.mxu0 %v4733_v10  ;;  %v4736_v10 = vld [vmem:[%s9416_s22 + $0x350] sm:$0xff] }
 0x119   : > { %1731 = vmatmul.f32.gmra.mxu3 %v4765_v33  ;;  %2060 = vmatpush.msrb.mxu0 %v5762_v31 }
 0x11a   : > { %1568 = vmatmul.f32.gmra.mxu2 %v4741_v50  ;;  %4753 = vmatmul.msk.f32.gmra.mxu1 %vm820_vm1, %v4734_v58  ;;  %v4768_v50 = vld [vmem:[%s9416_s22 + $0x408] sm:$0xff]  ;;  %v4744_v58 = vld [vmem:[%s9416_s22 + $0x390] sm:$0xff] }
 0x11b   : > { %2101 = vmatpush.msrb.mxu1 %v5773_v35  ;;  %2061 = vmatpush.msrb.mxu0 %v5771_v34 }
 0x11c   : > { %v1257_v15 = vpop.f32.mrf.mxu3 }
 0x11d   : > { %v6495_v24 = vadd.f32 %v1257_v15, %v1216_v43  ;;  %v1094_v27 = vpop.f32.mrf.mxu2  ;;  %v6497_v60 = vpop.f32.mrf.mxu0  ;;  %2102 = vmatpush.msrb.mxu1 %v5785_v39  ;;  %2062 = vmatpush.msrb.mxu0 %v5783_v38  ;;  %v4737_v15 = vld [vmem:[%s9416_s22 + $0x358] sm:$0xff] }
 0x11e   : > { %v6505_v33 = vadd.f32 %v1094_v27, %v6368_v0 }
 0x11f   : > { %v1219_v43 = vpop.f32.mrf.mxu1  ;;  %2103 = vmatpush.msrb.mxu1 %v5794_v42  ;;  %2063 = vmatpush.msrb.mxu0 %v5792_v41 }
 0x120   : > { %1603 = vmatmul.f32.gmra.mxu0 %v4736_v10  ;;  %v4739_v10 = vld [vmem:[%s9416_s22 + $0x368] sm:$0xff] }
 0x121   : > { %1734 = vmatmul.f32.gmra.mxu3 %v4768_v50  ;;  %2104 = vmatpush.msrb.mxu1 %v5803_v45 }
 0x122   : > { %1571 = vmatmul.f32.gmra.mxu2 %v4744_v58  ;;  %4754 = vmatmul.msk.f32.gmra.mxu1 %vm820_vm1, %v4737_v15  ;;  %v4771_v58 = vld [vmem:[%s9416_s22 + $0x420] sm:$0xff]  ;;  %v4747_v15 = vld [vmem:[%s9416_s22 + $0x3a8] sm:$0xff] }
 0x123   : > { %2064 = vmatpush.msrb.mxu0 %v5801_v44  ;;  %2105 = vmatpush.msrb.mxu1 %v5812_v48 }
 0x124   : > { %v1260_v0 = vpop.f32.mrf.mxu3 }
 0x125   : > { %v6522_v27 = vadd.f32 %v1260_v0, %v1219_v43  ;;  %v1097_v11 = vpop.f32.mrf.mxu2  ;;  %v6524_v53 = vpop.f32.mrf.mxu0  ;;  %2065 = vmatpush.msrb.mxu0 %v5810_v47  ;;  %2106 = vmatpush.msrb.mxu1 %v5824_v52  ;;  %v4740_v0 = vld [vmem:[%s9416_s22 + $0x370] sm:$0xff] }
 0x126   : > { %v6532_v50 = vadd.f32 %v1097_v11, %v6392_v36 }
 0x127   : > { %v1222_v43 = vpop.f32.mrf.mxu1  ;;  %2066 = vmatpush.msrb.mxu0 %v5822_v51  ;;  %2107 = vmatpush.msrb.mxu1 %v5833_v55 }
 0x128   : > { %9425 = vst [vmem:[#allocation19_spill] sm:$0xff] %v6532_v50  ;;  %1606 = vmatmul.f32.gmra.mxu0 %v4739_v10  ;;  %v4742_v10 = vld [vmem:[%s9416_s22 + $0x380] sm:$0xff]  ;;  %v4745_v50 = vld [vmem:[%s9416_s22 + $0x398] sm:$0xff] }
 0x129   : > { %1737 = vmatmul.f32.gmra.mxu3 %v4771_v58  ;;  %2067 = vmatpush.msrb.mxu0 %v5831_v54 }
 0x12a   : > { %1574 = vmatmul.f32.gmra.mxu2 %v4747_v15  ;;  %4755 = vmatmul.msk.f32.gmra.mxu1 %vm820_vm1, %v4740_v0  ;;  %v4774_v15 = vld [vmem:[%s9416_s22 + $0x438] sm:$0xff] }
 0x12b   : > { %2108 = vmatpush.msrb.mxu1 %v5841_v57  ;;  %2068 = vmatpush.msrb.mxu0 %v5839_v56 }
 0x12c   : > { %v1263_v11 = vpop.f32.mrf.mxu3 }
 0x12d   : > { %v6549_v36 = vadd.f32 %v1263_v11, %v1222_v43  ;;  %v1100_v23 = vpop.f32.mrf.mxu2  ;;  %v6551_v62 = vpop.f32.mrf.mxu0  ;;  %2109 = vmatpush.msrb.mxu1 %v5850_v59  ;;  %v4760_v43 = vld [vmem:[%s9416_s22 + $0x3c8] sm:$0xff] }
 0x12e   : > { %v6558_v58 = vadd.f32 %v1100_v23, %v6412_v63  ;;  %v4743_v11 = vld [vmem:[%s9416_s22 + $0x388] sm:$0xff] }
 0x12f   : > { %v1225_v0 = vpop.f32.mrf.mxu1 }
 0x130   : > { %9426 = vst [vmem:[#allocation20_spill] sm:$0xff] %v6558_v58  ;;  %1609 = vmatmul.f32.gmra.mxu0 %v4742_v10 }
 0x131   : > { %1740 = vmatmul.f32.gmra.mxu3 %v4774_v15  ;;  %v4777_v15 = vld [vmem:[%s9416_s22 + $0x450] sm:$0xff] }
 0x132   : > { %1766 = vmatmul.f32.vlgmr.msra.gmra.mxu2 %v4760_v43  ;;  %4756 = vmatmul.msk.f32.gmra.mxu1 %vm820_vm1, %v4743_v11  ;;  %v4746_v43 = vld [vmem:[%s9416_s22 + $0x3a0] sm:$0xff] }
 0x133   : > { %2225 = vmatpush.msra.mxu2 %v5691_v3 }
 0x134   : > { %v1266_v23 = vpop.f32.mrf.mxu3 }
 0x135   : > { %v6571_v63 = vadd.f32 %v1266_v23, %v1225_v0  ;;  %v6573_v37 = vpop.f32.mrf.mxu0  ;;  %v1292_v58 = vpop.f32.mrf.mxu2  ;;  %2226 = vmatpush.msra.mxu2 %v5695_v5  ;;  %v4763_v0 = vld [vmem:[%s9416_s22 + $0x3e0] sm:$0xff]  ;;  %v4748_v23 = vld [vmem:[%s9416_s22 + $0x3b0] sm:$0xff] }
 0x136   : > { %v6580_v10 = vadd.f32 %v1292_v58, %v6437_v7 }
 0x137   : > { %v1228_v3 = vpop.f32.mrf.mxu1  ;;  %2227 = vmatpush.msra.mxu2 %v5708_v12 }
 0x138   : > { %1612 = vmatmul.f32.gmra.mxu0 %v4745_v50  ;;  %v4766_v50 = vld [vmem:[%s9416_s22 + $0x3f8] sm:$0xff] }
 0x139   : > { %1743 = vmatmul.f32.gmra.mxu3 %v4777_v15  ;;  %2228 = vmatpush.msra.mxu2 %v5721_v17  ;;  %v4780_v17 = vld [vmem:[%s9416_s22 + $0x468] sm:$0xff]  ;;  %v4749_v15 = vld [vmem:[%s9416_s22 + $0x3b8] sm:$0xff] }
 0x13a   : > { %1769 = vmatmul.f32.gmra.mxu2 %v4763_v0  ;;  %4757 = vmatmul.msk.f32.gmra.mxu1 %vm820_vm1, %v4746_v43  ;;  %v4761_v43 = vld [vmem:[%s9416_s22 + $0x3d0] sm:$0xff] }
 0x13b   : > { %2229 = vmatpush.msra.mxu2 %v5732_v21 }
 0x13c   : > { %v1269_v5 = vpop.f32.mrf.mxu3 }
 0x13d   : > { %v6595_v7 = vadd.f32 %v1269_v5, %v1228_v3  ;;  %v6597_v58 = vpop.f32.mrf.mxu0  ;;  %v1295_v11 = vpop.f32.mrf.mxu2  ;;  %2230 = vmatpush.msra.mxu2 %v5744_v25 }
 0x13e   : > { %v6604_v12 = vadd.f32 %v1295_v11, %v6467_v61  ;;  %v4792_v11 = vld [vmem:[%s9416_s22 + $0x480] sm:$0xff] }
 0x13f   : > { %v1231_v21 = vpop.f32.mrf.mxu1  ;;  %2231 = vmatpush.msra.mxu2 %v5753_v28 }
 0x140   : > { %1615 = vmatmul.f32.gmra.mxu0 %v4748_v23 }
 0x141   : > { %1746 = vmatmul.f32.gmra.mxu3 %v4780_v17  ;;  %2232 = vmatpush.msra.mxu2 %v5762_v31  ;;  %v4793_v31 = vld [vmem:[%s9416_s22 + $0x488] sm:$0xff] }
 0x142   : > { %1772 = vmatmul.f32.gmra.mxu2 %v4766_v50  ;;  %4758 = vmatmul.msk.f32.gmra.mxu1 %vm820_vm1, %v4749_v15 }
 0x143   : > { %2233 = vmatpush.msra.mxu2 %v5771_v34  ;;  %v4769_v34 = vld [vmem:[%s9416_s22 + $0x410] sm:$0xff] }
 0x144   : > { %v1272_v25 = vpop.f32.mrf.mxu3 }
 0x145   : > { %v6619_v61 = vadd.f32 %v1272_v25, %v1231_v21  ;;  %v1298_v3 = vpop.f32.mrf.mxu2  ;;  %v1382_v0 = vpop.f32.mrf.mxu0  ;;  %2234 = vmatpush.msra.mxu2 %v5783_v38  ;;  %v4764_v21 = vld [vmem:[%s9416_s22 + $0x3e8] sm:$0xff]  ;;  %v4770_v25 = vld [vmem:[%s9416_s22 + $0x418] sm:$0xff] }
 0x146   : > { %v6626_v28 = vadd.f32 %v1298_v3, %v6495_v24 }
 0x147   : > { %v1423_v5 = vpop.f32.mrf.mxu1  ;;  %2235 = vmatpush.msra.mxu2 %v5792_v41 }
 0x148   : > { %4784 = vmatmul.msk.f32.vlgmr.msra.gmra.mxu0 %vm820_vm1, %v4761_v43  ;;  %v1424_v38 = vadd.f32 %v1423_v5, %v1382_v0  ;;  %v4801_v0 = vld [vmem:[%s9416_s22 + $0x4c8] sm:$0xff] }
 0x149   : > { %1938 = vmatmul.f32.vlgmr.msra.gmra.mxu3 %v4793_v31  ;;  %2266 = vmatpush.msra.mxu0 %v5701_v9 }
 0x14a   : > { %1775 = vmatmul.f32.gmra.mxu2 %v4769_v34  ;;  %1897 = vmatmul.f32.vlgmr.msra.gmra.mxu1 %v4792_v11  ;;  %v4773_v34 = vld [vmem:[%s9416_s22 + $0x430] sm:$0xff] }
 0x14b   : > { %2267 = vmatpush.msra.mxu0 %v5712_v14  ;;  %2236 = vmatpush.msra.mxu2 %v5801_v44  ;;  %v4796_v14 = vld [vmem:[%s9416_s22 + $0x4a0] sm:$0xff]  ;;  %v4772_v44 = vld [vmem:[%s9416_s22 + $0x428] sm:$0xff] }
 0x14c   : > { %v1464_v24 = vpop.f32.mrf.mxu3  ;;  %4882 = vmatpush.msk.msra.mxu1 %vm845_vm0, %v5693_v4 }
 0x14d   : > { %v6644_v23 = vadd.f32 %v1464_v24, %v1424_v38  ;;  %v1301_v17 = vpop.f32.mrf.mxu2  ;;  %v1385_v41 = vpop.f32.mrf.mxu0  ;;  %2268 = vmatpush.msra.mxu0 %v5717_v16  ;;  %2237 = vmatpush.msra.mxu2 %v5810_v47  ;;  %v4795_v16 = vld [vmem:[%s9416_s22 + $0x498] sm:$0xff]  ;;  %v4804_v38 = vld [vmem:[%s9416_s22 + $0x4e0] sm:$0xff] }
 0x14e   : > { %v6652_v9 = vadd.f32 %v1301_v17, %v6522_v27  ;;  %2319 = vmatpush.msra.mxu1 %v5697_v6 }
 0x14f   : > { %v1426_v4 = vpop.f32.mrf.mxu1  ;;  %2269 = vmatpush.msra.mxu0 %v5727_v19  ;;  %2238 = vmatpush.msra.mxu2 %v5822_v51 }
 0x150   : > { %4785 = vmatmul.msk.f32.gmra.mxu0 %vm820_vm1, %v4764_v21  ;;  %2320 = vmatpush.msra.mxu1 %v5710_v13  ;;  %v1427_v47 = vadd.f32 %v1426_v4, %v1385_v41  ;;  %v4767_v13 = vld [vmem:[%s9416_s22 + $0x400] sm:$0xff]  ;;  %v4776_v21 = vld [vmem:[%s9416_s22 + $0x448] sm:$0xff] }
 0x151   : > { %1941 = vmatmul.f32.gmra.mxu3 %v4796_v14  ;;  %2270 = vmatpush.msra.mxu0 %v5746_v26 }
 0x152   : > { %1778 = vmatmul.f32.gmra.mxu2 %v4772_v44  ;;  %1900 = vmatmul.f32.gmra.mxu1 %v4795_v16  ;;  %v4794_v44 = vld [vmem:[%s9416_s22 + $0x490] sm:$0xff]  ;;  %v4807_v16 = vld [vmem:[%s9416_s22 + $0x4f8] sm:$0xff] }
 0x153   : > { %2271 = vmatpush.msra.mxu0 %v5755_v29  ;;  %2239 = vmatpush.msra.mxu2 %v5831_v54  ;;  %v4799_v29 = vld [vmem:[%s9416_s22 + $0x4b8] sm:$0xff]  ;;  %v4775_v54 = vld [vmem:[%s9416_s22 + $0x440] sm:$0xff] }
 0x154   : > { %v1467_v6 = vpop.f32.mrf.mxu3  ;;  %2321 = vmatpush.msra.mxu1 %v5723_v18 }
 0x155   : > { %v6672_v19 = vadd.f32 %v1467_v6, %v1427_v47  ;;  %v1304_v51 = vpop.f32.mrf.mxu2  ;;  %v1388_v27 = vpop.f32.mrf.mxu0  ;;  %2272 = vmatpush.msra.mxu0 %v5764_v32  ;;  %2240 = vmatpush.msra.mxu2 %v5839_v56  ;;  %v4798_v32 = vld [vmem:[%s9416_s22 + $0x4b0] sm:$0xff] }
 0x156   : > { %v6680_v26 = vadd.f32 %v1304_v51, %v6549_v36  ;;  %2322 = vmatpush.msra.mxu1 %v5734_v22 }
 0x157   : > { %v1429_v18 = vpop.f32.mrf.mxu1  ;;  %2273 = vmatpush.msra.mxu0 %v5773_v35 }
 0x158   : > { %4786 = vmatmul.msk.f32.gmra.mxu0 %vm820_vm1, %v4767_v13  ;;  %v1430_v56 = vadd.f32 %v1429_v18, %v1388_v27  ;;  %v4779_v13 = vld [vmem:[%s9416_s22 + $0x460] sm:$0xff] }
 0x159   : > { %1944 = vmatmul.f32.gmra.mxu3 %v4799_v29  ;;  %2274 = vmatpush.msra.mxu0 %v5785_v39  ;;  %v4802_v39 = vld [vmem:[%s9416_s22 + $0x4d0] sm:$0xff]  ;;  %v4811_v29 = vld [vmem:[%s9416_s22 + $0x518] sm:$0xff] }
 0x15a   : > { %1781 = vmatmul.f32.gmra.mxu2 %v4775_v54  ;;  %1903 = vmatmul.f32.gmra.mxu1 %v4798_v32  ;;  %v4797_v54 = vld [vmem:[%s9416_s22 + $0x4a8] sm:$0xff]  ;;  %v4810_v32 = vld [vmem:[%s9416_s22 + $0x510] sm:$0xff] }
 0x15b   : > { %2275 = vmatpush.msra.mxu0 %v5794_v42  ;;  %v4778_v42 = vld [vmem:[%s9416_s22 + $0x458] sm:$0xff] }
 0x15c   : > { %v1470_v22 = vpop.f32.mrf.mxu3 }
 0x15d   : > { %v6696_v36 = vadd.f32 %v1470_v22, %v1430_v56  ;;  %v1307_v50 = vpop.f32.mrf.mxu2  ;;  %v1391_v15 = vpop.f32.mrf.mxu0  ;;  %2276 = vmatpush.msra.mxu0 %v5803_v45 }
 0x15e   : > { %v6703_v35 = vadd.f32 %v1307_v50, %v6571_v63 }
 0x15f   : > { %v1432_v3 = vpop.f32.mrf.mxu1  ;;  %2277 = vmatpush.msra.mxu0 %v5812_v48 }
 0x160   : > { %4787 = vmatmul.msk.f32.gmra.mxu0 %vm820_vm1, %v4770_v25  ;;  %v1433_v45 = vadd.f32 %v1432_v3, %v1391_v15  ;;  %v4814_v3 = vld [vmem:[%s9416_s22 + $0x530] sm:$0xff] }
 0x161   : > { %1947 = vmatmul.f32.gmra.mxu3 %v4802_v39  ;;  %2278 = vmatpush.msra.mxu0 %v5824_v52  ;;  %v4805_v52 = vld [vmem:[%s9416_s22 + $0x4e8] sm:$0xff]  ;;  %v4782_v39 = vld [vmem:[%s9416_s22 + $0x478] sm:$0xff] }
 0x162   : > { %1784 = vmatmul.f32.gmra.mxu2 %v4778_v42  ;;  %1906 = vmatmul.f32.gmra.mxu1 %v4801_v0  ;;  %v4800_v0 = vld [vmem:[%s9416_s22 + $0x4c0] sm:$0xff] }
 0x163   : > { %2279 = vmatpush.msra.mxu0 %v5833_v55  ;;  %v4781_v55 = vld [vmem:[%s9416_s22 + $0x470] sm:$0xff] }
 0x164   : > { %v1473_v63 = vpop.f32.mrf.mxu3 }
 0x165   : > { %v6718_v43 = vadd.f32 %v1473_v63, %v1433_v45  ;;  %v1310_v31 = vpop.f32.mrf.mxu2  ;;  %v1394_v5 = vpop.f32.mrf.mxu0  ;;  %2280 = vmatpush.msra.mxu0 %v5841_v57  ;;  %v4813_v45 = vld [vmem:[%s9416_s22 + $0x528] sm:$0xff] }
 0x166   : > { %v6725_v48 = vadd.f32 %v1310_v31, %v6595_v7 }
 0x167   : > { %v1435_v11 = vpop.f32.mrf.mxu1  ;;  %2281 = vmatpush.msra.mxu0 %v5850_v59  ;;  %v4808_v59 = vld [vmem:[%s9416_s22 + $0x500] sm:$0xff] }
 0x168   : > { %9427 = vst [vmem:[#allocation21_spill] sm:$0xff] %v6725_v48  ;;  %4788 = vmatmul.msk.f32.gmra.mxu0 %vm820_vm1, %v4773_v34  ;;  %v1436_v57 = vadd.f32 %v1435_v11, %v1394_v5  ;;  %v4825_v11 = vld [vmem:[%s9416_s22 + $0x540] sm:$0xff]  ;;  %v1127_v48 = vadd.f32 %v6469_v2, %v6420_v40 }
 0x169   : > { %1950 = vmatmul.f32.gmra.mxu3 %v4805_v52 }
 0x16a   : > { %1787 = vmatmul.f32.gmra.mxu2 %v4781_v55  ;;  %1909 = vmatmul.f32.gmra.mxu1 %v4804_v38  ;;  %v4827_v55 = vld [vmem:[%s9416_s22 + $0x550] sm:$0xff] }
 0x16c   : > { %v1476_v7 = vpop.f32.mrf.mxu3 }
 0x16d   : > { %v6738_v24 = vadd.f32 %v1476_v7, %v1436_v57  ;;  %v1313_v17 = vpop.f32.mrf.mxu2  ;;  %v1397_v41 = vpop.f32.mrf.mxu0  ;;  %v4803_v57 = vld [vmem:[%s9416_s22 + $0x4d8] sm:$0xff]  ;;  %v4826_v7 = vld [vmem:[%s9416_s22 + $0x548] sm:$0xff] }
 0x16e   : > { %v6744_v14 = vadd.f32 %v1313_v17, %v6619_v61 }
 0x16f   : > { %v1438_v4 = vpop.f32.mrf.mxu1 }
 0x170   : > { %9428 = vst [vmem:[#allocation22_spill] sm:$0xff] %v6744_v14  ;;  %4789 = vmatmul.msk.f32.gmra.mxu0 %vm820_vm1, %v4776_v21  ;;  %v1439_v47 = vadd.f32 %v1438_v4, %v1397_v41  ;;  %v4830_v4 = vld [vmem:[%s9416_s22 + $0x568] sm:$0xff] }
 0x171   : > { %1953 = vmatmul.f32.gmra.mxu3 %v4808_v59  ;;  %v4828_v59 = vld [vmem:[%s9416_s22 + $0x558] sm:$0xff] }
 0x172   : > { %4817 = vmatmul.msk.f32.vlgmr.msrb.gmra.mxu2 %vm820_vm1, %v4794_v44  ;;  %1912 = vmatmul.f32.gmra.mxu1 %v4807_v16  ;;  %v4806_v16 = vld [vmem:[%s9416_s22 + $0x4f0] sm:$0xff] }
 0x174   : > { %v1479_v61 = vpop.f32.mrf.mxu3 }
 0x175   : > { %v6757_v6 = vadd.f32 %v1479_v61, %v1439_v47  ;;  %v1400_v51 = vpop.f32.mrf.mxu0  ;;  %v6759_v27 = vpop.f32.mrf.mxu2  ;;  %v4829_v47 = vld [vmem:[%s9416_s22 + $0x560] sm:$0xff] }
 0x176   : > { %9430 = vst [vmem:[#allocation24_spill] sm:$0xff] %v6759_v27 }
 0x177   : > { %9429 = vst [vmem:[#allocation23_spill] sm:$0xff] %v6757_v6  ;;  %v1441_v18 = vpop.f32.mrf.mxu1 }
 0x178   : > { %4790 = vmatmul.msk.f32.gmra.mxu0 %vm820_vm1, %v4779_v13  ;;  %v1442_v56 = vadd.f32 %v1441_v18, %v1400_v51  ;;  %v4833_v18 = vld [vmem:[%s9416_s22 + $0x580] sm:$0xff] }
 0x179   : > { %1956 = vmatmul.f32.gmra.mxu3 %v4811_v29  ;;  %v4831_v29 = vld [vmem:[%s9416_s22 + $0x570] sm:$0xff] }
 0x17a   : > { %4818 = vmatmul.msk.f32.gmra.mxu2 %vm820_vm1, %v4797_v54  ;;  %1915 = vmatmul.f32.gmra.mxu1 %v4810_v32  ;;  %v4809_v32 = vld [vmem:[%s9416_s22 + $0x508] sm:$0xff] }
 0x17c   : > { %v1482_v22 = vpop.f32.mrf.mxu3 }
 0x17d   : > { %v6775_v50 = vadd.f32 %v1482_v22, %v1442_v56  ;;  %v1403_v15 = vpop.f32.mrf.mxu0  ;;  %v6777_v25 = vpop.f32.mrf.mxu2  ;;  %v4832_v56 = vld [vmem:[%s9416_s22 + $0x578] sm:$0xff] }
 0x17e   : > { %9432 = vst [vmem:[#allocation26_spill] sm:$0xff] %v6777_v25  ;;  %v4860_v25 = vld [vmem:[%s9416_s22 + $0x610] sm:$0xff] }
 0x17f   : > { %9431 = vst [vmem:[#allocation25_spill] sm:$0xff] %v6775_v50  ;;  %v1444_v42 = vpop.f32.mrf.mxu1 }
 0x180   : > { %4791 = vmatmul.msk.f32.gmra.mxu0 %vm820_vm1, %v4782_v39  ;;  %v1445_v63 = vadd.f32 %v1444_v42, %v1403_v15  ;;  %v4836_v42 = vld [vmem:[%s9416_s22 + $0x598] sm:$0xff] }
 0x181   : > { %1959 = vmatmul.f32.gmra.mxu3 %v4814_v3  ;;  %v4834_v3 = vld [vmem:[%s9416_s22 + $0x588] sm:$0xff] }
 0x182   : > { %4819 = vmatmul.msk.f32.gmra.mxu2 %vm820_vm1, %v4800_v0  ;;  %1918 = vmatmul.f32.gmra.mxu1 %v4813_v45  ;;  %v4812_v45 = vld [vmem:[%s9416_s22 + $0x520] sm:$0xff] }
 0x184   : > { %v1485_v31 = vpop.f32.mrf.mxu3 }
 0x185   : > { %v6793_v5 = vadd.f32 %v1485_v31, %v1445_v63  ;;  %v6795_v34 = vpop.f32.mrf.mxu2  ;;  %v6797_v52 = vpop.f32.mrf.mxu0  ;;  %v4835_v63 = vld [vmem:[%s9416_s22 + $0x590] sm:$0xff] }
 0x186   : > { %9434 = vst [vmem:[#allocation28_spill] sm:$0xff] %v6795_v34 }
 0x187   : > { %9433 = vst [vmem:[#allocation27_spill] sm:$0xff] %v6793_v5  ;;  %v6805_v38 = vpop.f32.mrf.mxu1 }
 0x188   : > { %9435 = vst [vmem:[#allocation29_spill] sm:$0xff] %v6797_v52  ;;  %2069 = vmatmul.f32.vlgmr.msrb.gmra.mxu0 %v4825_v11 }
 0x189   : > { %9436 = vst [vmem:[#allocation30_spill] sm:$0xff] %v6805_v38  ;;  %4850 = vmatmul.msk.f32.vlgmr.msrb.gmra.mxu3 %vm820_vm1, %v4827_v55 }
 0x18a   : > { %4820 = vmatmul.msk.f32.gmra.mxu2 %vm820_vm1, %v4803_v57  ;;  %2110 = vmatmul.f32.vlgmr.msrb.gmra.mxu1 %v4826_v7  ;;  %v4837_v57 = vld [vmem:[%s9416_s22 + $0x5a0] sm:$0xff]  ;;  %v4839_v7 = vld [vmem:[%s9416_s22 + $0x5b0] sm:$0xff] }
 0x18c   : > { %v6815_v17 = vpop.f32.mrf.mxu3 }
 0x18d   : > { %v6817_v41 = vpop.f32.mrf.mxu2  ;;  %v6819_v21 = vpop.f32.mrf.mxu0 }
 0x18e   : > { %9437 = vst [vmem:[#allocation31_spill] sm:$0xff] %v6817_v41  ;;  %v4858_v41 = vld [vmem:[%s9416_s22 + $0x600] sm:$0xff] }
 0x18f   : > { %9438 = vst [vmem:[#allocation32_spill] sm:$0xff] %v6819_v21  ;;  %v6827_v44 = vpop.f32.mrf.mxu1 }
 0x190   : > { %9439 = vst [vmem:[#allocation33_spill] sm:$0xff] %v6827_v44  ;;  %2072 = vmatmul.f32.gmra.mxu0 %v4828_v59  ;;  %v4859_v44 = vld [vmem:[%s9416_s22 + $0x608] sm:$0xff] }
 0x191   : > { %4851 = vmatmul.msk.f32.gmra.mxu3 %vm820_vm1, %v4830_v4  ;;  %v4815_v4 = vld [vmem:[%s9416_s22 + $0x538] sm:$0xff] }
 0x192   : > { %4821 = vmatmul.msk.f32.gmra.mxu2 %vm820_vm1, %v4806_v16  ;;  %2113 = vmatmul.f32.gmra.mxu1 %v4829_v47  ;;  %v4838_v16 = vld [vmem:[%s9416_s22 + $0x5a8] sm:$0xff] }
 0x194   : > { %v6837_v61 = vpop.f32.mrf.mxu3 }
 0x195   : > { %v6839_v51 = vpop.f32.mrf.mxu2  ;;  %v6841_v13 = vpop.f32.mrf.mxu0 }
 0x196   : > { %9440 = vst [vmem:[#allocation34_spill] sm:$0xff] %v6839_v51 }
 0x197   : > { %9441 = vst [vmem:[#allocation35_spill] sm:$0xff] %v6841_v13  ;;  %v6849_v54 = vpop.f32.mrf.mxu1 }
 0x198   : > { %9442 = vst [vmem:[#allocation36_spill] sm:$0xff] %v6849_v54  ;;  %2075 = vmatmul.f32.gmra.mxu0 %v4831_v29 }
 0x199   : > { %4852 = vmatmul.msk.f32.gmra.mxu3 %vm820_vm1, %v4833_v18 }
 0x19a   : > { %4822 = vmatmul.msk.f32.gmra.mxu2 %vm820_vm1, %v4809_v32  ;;  %2116 = vmatmul.f32.gmra.mxu1 %v4832_v56  ;;  %v4840_v32 = vld [vmem:[%s9416_s22 + $0x5b8] sm:$0xff]  ;;  %v4842_v56 = vld [vmem:[%s9416_s22 + $0x5c8] sm:$0xff] }
 0x19c   : > { %v6859_v22 = vpop.f32.mrf.mxu3 }
 0x19d   : > { %v6861_v15 = vpop.f32.mrf.mxu2  ;;  %v6863_v39 = vpop.f32.mrf.mxu0 }
 0x19e   : > { %9443 = vst [vmem:[#allocation37_spill] sm:$0xff] %v6861_v15 }
 0x19f   : > { %9444 = vst [vmem:[#allocation38_spill] sm:$0xff] %v6863_v39  ;;  %v6871_v0 = vpop.f32.mrf.mxu1 }
 0x1a0   : > { %9445 = vst [vmem:[#allocation39_spill] sm:$0xff] %v6871_v0  ;;  %2078 = vmatmul.f32.gmra.mxu0 %v4834_v3 }
 0x1a1   : > { %4853 = vmatmul.msk.f32.gmra.mxu3 %vm820_vm1, %v4836_v42  ;;  %v4841_v42 = vld [vmem:[%s9416_s22 + $0x5c0] sm:$0xff] }
 0x1a2   : > { %4823 = vmatmul.msk.f32.gmra.mxu2 %vm820_vm1, %v4812_v45  ;;  %2119 = vmatmul.f32.gmra.mxu1 %v4835_v63 }
 0x1a4   : > { %v6881_v31 = vpop.f32.mrf.mxu3 }
 0x1a5   : > { %v6883_v11 = vpop.f32.mrf.mxu2  ;;  %v6885_v55 = vpop.f32.mrf.mxu0 }
 0x1a6   : > { %9446 = vst [vmem:[#allocation40_spill] sm:$0xff] %v6883_v11 }
 0x1a7   : > { %9447 = vst [vmem:[#allocation41_spill] sm:$0xff] %v6885_v55  ;;  %v6893_v59 = vpop.f32.mrf.mxu1 }
 0x1a8   : > { %9448 = vst [vmem:[#allocation42_spill] sm:$0xff] %v6893_v59  ;;  %2081 = vmatmul.f32.gmra.mxu0 %v4837_v57 }
 0x1a9   : > { %4854 = vmatmul.msk.f32.gmra.mxu3 %vm820_vm1, %v4839_v7  ;;  %v4843_v7 = vld [vmem:[%s9416_s22 + $0x5d0] sm:$0xff] }
 0x1aa   : > { %4824 = vmatmul.msk.f32.gmra.mxu2 %vm820_vm1, %v4815_v4  ;;  %2122 = vmatmul.f32.gmra.mxu1 %v4838_v16  ;;  %v4845_v4 = vld [vmem:[%s9416_s22 + $0x5e0] sm:$0xff] }
 0x1ac   : > { %v6903_v47 = vpop.f32.mrf.mxu3 }
 0x1ad   : > { %v6905_v29 = vpop.f32.mrf.mxu2  ;;  %v6907_v18 = vpop.f32.mrf.mxu0 }
 0x1ae   : > { %9449 = vst [vmem:[#allocation43_spill] sm:$0xff] %v6905_v29 }
 0x1af   : > { %9450 = vst [vmem:[#allocation44_spill] sm:$0xff] %v6907_v18  ;;  %v6915_v3 = vpop.f32.mrf.mxu1  ;;  %v1121_v18 = vadd.f32 %v6414_v1, %v6375_v30 }
 0x1b0   : > { %9451 = vst [vmem:[#allocation45_spill] sm:$0xff] %v6915_v3  ;;  %2084 = vmatmul.f32.gmra.mxu0 %v4840_v32  ;;  %v4844_v32 = vld [vmem:[%s9416_s22 + $0x5d8] sm:$0xff] }
 0x1b1   : > { %4855 = vmatmul.msk.f32.gmra.mxu3 %vm820_vm1, %v4842_v56 }
 0x1b2   : > { %2125 = vmatmul.f32.gmra.mxu1 %v4841_v42  ;;  %2241 = vmatmul.f32.vlgmr.msra.gmra.mxu2 %v4858_v41  ;;  %v4861_v41 = vld [vmem:[%s9416_s22 + $0x618] sm:$0xff] }
 0x1b4   : > { %v6921_v45 = vpop.f32.mrf.mxu3 }
 0x1b5   : > { %v6923_v63 = vpop.f32.mrf.mxu0  ;;  %v1767_v57 = vpop.f32.mrf.mxu2 }
 0x1b6   : > { %9452 = vst [vmem:[#allocation46_spill] sm:$0xff] %v6923_v63  ;;  %v4846_v63 = vld [vmem:[%s9416_s22 + $0x5e8] sm:$0xff] }
 0x1b7   : > { %v6931_v16 = vpop.f32.mrf.mxu1 }
 0x1b8   : > { %9453 = vst [vmem:[#allocation47_spill] sm:$0xff] %v6931_v16  ;;  %2087 = vmatmul.f32.gmra.mxu0 %v4843_v7  ;;  %v4848_v16 = vld [vmem:[%s9416_s22 + $0x5f8] sm:$0xff]  ;;  %v4847_v7 = vld [vmem:[%s9416_s22 + $0x5f0] sm:$0xff] }
 0x1b9   : > { %4856 = vmatmul.msk.f32.gmra.mxu3 %vm820_vm1, %v4845_v4  ;;  %v1768_v4 = vadd.f32 %v1767_v57, %v6815_v17 }
 0x1ba   : > { %2128 = vmatmul.f32.gmra.mxu1 %v4844_v32  ;;  %2244 = vmatmul.f32.gmra.mxu2 %v4861_v41  ;;  %v4864_v41 = vld [vmem:[%s9416_s22 + $0x630] sm:$0xff] }
 0x1bc   : > { %v6937_v56 = vpop.f32.mrf.mxu3 }
 0x1bd   : > { %v6939_v42 = vpop.f32.mrf.mxu0  ;;  %v6941_v29 = vpop.f32.mrf.mxu2 }
 0x1be   : > { %9454 = vst [vmem:[#allocation48_spill] sm:$0xff] %v6939_v42 }
 0x1bf   : > { %v6949_v11 = vpop.f32.mrf.mxu1 }
 0x1c0   : > { %9455 = vst [vmem:[#allocation49_spill] sm:$0xff] %v6949_v11  ;;  %2090 = vmatmul.f32.gmra.mxu0 %v4846_v63 }
 0x1c1   : > { %4857 = vmatmul.msk.f32.gmra.mxu3 %vm820_vm1, %v4848_v16 }
 0x1c2   : > { %2131 = vmatmul.f32.gmra.mxu1 %v4847_v7  ;;  %2247 = vmatmul.f32.gmra.mxu2 %v4864_v41 }
 0x1c4   : > { %v6956_v32 = vpop.f32.mrf.mxu3 }
 0x1c5   : > { %v1773_v42 = vpop.f32.mrf.mxu2  ;;  %v1808_v3 = vpop.f32.mrf.mxu0 }
 0x1c6   : > { %v1809_v15 = vadd.f32 %v1808_v3, %v1768_v4 }
 0x1c7   : > { %v1898_v59 = vpop.f32.mrf.mxu1 }
 0x1c8   : > { %v5331_v11 = vpack.i.bf16 %v1809_v15, %v1121_v18  ;;  %2282 = vmatmul.f32.vlgmr.msra.gmra.mxu0 %v4859_v44 }
 0x1ca   : > { %5332 = vrot.lane.b32.xlu0 %v5331_v11, %s9394_s20  ;;  %4883 = vmatmul.msk.f32.vlgmr.msra.gmra.mxu1 %vm820_vm1, %v4860_v25  ;;  %v4862_v25 = vld [vmem:[%s9416_s22 + $0x620] sm:$0xff] }
 0x1cc   : > { %v1939_v55 = vpop.f32.mrf.mxu3 }
 0x1cd   : > { %v1776_v63 = vpop.f32.mrf.mxu2  ;;  %v6961_v51 = vpop.f32.mrf.mxu0  ;;  %v1940_v38 = vadd.f32 %v1939_v55, %v1898_v59  ;;  %v4863_v55 = vld [vmem:[%s9416_s22 + $0x628] sm:$0xff]  ;;  %v1774_v59 = vadd.f32 %v1773_v42, %v6859_v22 }
 0x1ce   : > { %v1777_v40 = vadd.f32 %v1776_v63, %v6881_v31  ;;  %v4868_v31 = vld [vmem:[%s9416_s22 + $0x650] sm:$0xff] }
 0x1cf   : > { %v1901_v16 = vpop.f32.mrf.mxu1 }
 0x1d0   : > { %2285 = vmatmul.f32.gmra.mxu0 %v4862_v25 }
 0x1d2   : > { %4884 = vmatmul.msk.f32.gmra.mxu1 %vm820_vm1, %v4863_v55  ;;  %v4870_v55 = vld [vmem:[%s9416_s22 + $0x660] sm:$0xff] }
 0x1d4   : > { %v1942_v7 = vpop.f32.mrf.mxu3 }
 0x1d5   : > { %v6963_v17 = vpop.f32.mrf.mxu2  ;;  %v1814_v57 = vpop.f32.mrf.mxu0 }
 0x1d7   : > { %v6965_v0 = vpop.f32.mrf.mxu1 }
 0x1dc   : > { %v6967_v39 = vpop.f32.mrf.mxu3 }
 0x1dd   : > { %v6969_v30 = vpop.f32.mrf.mxu2  ;;  %v1817_v1 = vpop.f32.mrf.mxu0 }
 0x1de   : > { %v1818_v2 = vadd.f32 %v1817_v1, %v1777_v40  ;;  %v4869_v1 = vld [vmem:[%s9416_s22 + $0x658] sm:$0xff]  ;;  %v1124_v40 = vadd.f32 %v6439_v8, %v6398_v46  ;;  %v4875_v8 = vld [vmem:[%s9416_s22 + $0x688] sm:$0xff] }
 0x1df   : > { %v6971_v15 = vpop.f32.mrf.mxu1 }
 0x1e4   : > { %v6973_v18 = vpop.f32.mrf.mxu3 }
 0x1e5   : > { %v6975_v11 = vpop.f32.mrf.mxu2  ;;  %v6977_v3 = vpop.f32.mrf.mxu0 }
 0x1e7   : > { %v6979_v4 = vpop.f32.mrf.mxu1 }
 0x1ec   : > { %v6984_v54 = vpop.f32.mrf.mxu3 }
 0x1ed   : > { %v6986_v13 = vpop.f32.mrf.mxu2  ;;  %v6988_v34 = vpop.f32.mrf.mxu0 }
 0x1ef   : > { %v6993_v21 = vpop.f32.mrf.mxu1 }
 0x1f4   : > { %v7002_v52 = vpop.f32.mrf.mxu3 }
 0x1f5   : > { %v7004_v27 = vpop.f32.mrf.mxu0  ;;  %v1980_v5 = vpop.f32.mrf.mxu2 }
 0x1f6   : > { %v1981_v14 = vadd.f32 %v1980_v5, %v1940_v38 }
 0x1f7   : > { %v7006_v50 = vpop.f32.mrf.mxu1 }
 0x1f8   : > { %9456 = vst [vmem:[#allocation50_spill] sm:$0xff] %v7006_v50  ;;  %v5336_v44 = vpack.i.bf16 %v1981_v14, %v6580_v10  ;;  %v1943_v10 = vadd.f32 %v1942_v7, %v1901_v16  ;;  %v1815_v14 = vadd.f32 %v1814_v57, %v1774_v59  ;;  %v4867_v16 = vld [vmem:[%s9416_s22 + $0x648] sm:$0xff]  ;;  %v4866_v7 = vld [vmem:[%s9416_s22 + $0x640] sm:$0xff]  ;;  %v1780_v59 = vadd.f32 %v6963_v17, %v6903_v47 }
 0x1f9   : > { %2250 = vmatmul.f32.gmra.mxu2 %v4867_v16  ;;  %4885 = vmatmul.msk.f32.gmra.mxu1 %vm820_vm1, %v4866_v7  ;;  %v4871_v47 = vld [vmem:[%s9416_s22 + $0x668] sm:$0xff]  ;;  %v1771_v17 = vadd.f32 %v6941_v29, %v6837_v61 }
 0x1fa   : > { %5337 = vrot.lane.b32.xlu0 %v5336_v44, %s9392_s25  ;;  %v5356_v22 = vpack.i.bf16 %v1815_v14, %v1127_v48  ;;  %v4865_v44 = vld [vmem:[%s9416_s22 + $0x638] sm:$0xff] }
 0x1fb   : > { %2288 = vmatmul.f32.gmra.mxu0 %v4865_v44  ;;  %v1812_v61 = vadd.f32 %v6961_v51, %v1771_v17  ;;  %v4874_v51 = vld [vmem:[%s9416_s22 + $0x680] sm:$0xff] }
 0x1fc   : > { %v7021_v5 = vpop.f32.mrf.mxu3 }
 0x1fd   : > { %v7023_v38 = vpop.f32.mrf.mxu0  ;;  %v1983_v25 = vpop.f32.mrf.mxu2 }
 0x1fe   : > { %v1984_v50 = vadd.f32 %v1983_v25, %v1943_v10  ;;  %v1133_v25 = vadd.f32 %v6524_v53, %v6477_v49  ;;  %v4873_v53 = vld [vmem:[%s9416_s22 + $0x678] sm:$0xff]  ;;  %v4872_v49 = vld [vmem:[%s9416_s22 + $0x670] sm:$0xff] }
 0x1ff   : > { %v7027_v6 = vpop.f32.mrf.mxu1 }
 0x200   : > { %v5351_v42 = vpack.i.bf16 %v1984_v50, %v6604_v12  ;;  %v1130_v50 = vadd.f32 %v6497_v60, %v6447_v20  ;;  %v1821_v60 = vadd.f32 %v6977_v3, %v1780_v59 }
 0x201   : > { %2253 = vmatmul.f32.gmra.mxu2 %v4870_v55  ;;  %4886 = vmatmul.msk.f32.gmra.mxu1 %vm820_vm1, %v4869_v1  ;;  %v9457_v1 = vld [vmem:[#allocation19_spill] sm:$0xff] }
 0x202   : > { %5352 = vrot.lane.b32.xlu2 %v5351_v42, %s9392_s25  ;;  %5357 = vrot.lane.b32.xlu0 %v5356_v22, %s9394_s20  ;;  %v5366_v41 = vpack.i.bf16 %v1818_v2, %v1130_v50  ;;  %v5371_v16 = vpack.i.bf16 %v1821_v60, %v1133_v25  ;;  %v1136_v50 = vadd.f32 %v6551_v62, %v6505_v33  ;;  %v4876_v62 = vld [vmem:[%s9416_s22 + $0x690] sm:$0xff]  ;;  %s9459_s25 = smov 32  }
 0x203   : > { %2291 = vmatmul.f32.gmra.mxu0 %v4868_v31  ;;  %v1786_v33 = vadd.f32 %v6975_v11, %v6937_v56  ;;  %v1139_v59 = vadd.f32 %v6573_v37, %v9457_v1  ;;  %v4877_v11 = vld [vmem:[%s9416_s22 + $0x698] sm:$0xff]  ;;  %v4879_v37 = vld [vmem:[%s9416_s22 + $0x6a8] sm:$0xff] }
 0x204   : > { %v7043_v12 = vpop.f32.mrf.mxu3 }
 0x205   : > { %v2070_v48 = vpop.f32.mrf.mxu0  ;;  %v1986_v22 = vpop.f32.mrf.mxu2 }
 0x207   : > { %v2111_v57 = vpop.f32.mrf.mxu1 }
 0x208   : > { %v2112_v63 = vadd.f32 %v2111_v57, %v2070_v48  ;;  %v5346_v57 = vpack.i.bf16 %v1812_v61, %v1124_v40  ;;  %v1955_v40 = vadd.f32 %v7002_v52, %v6993_v21 }
 0x209   : > { %2256 = vmatmul.f32.gmra.mxu2 %v4873_v53  ;;  %4887 = vmatmul.msk.f32.gmra.mxu1 %vm820_vm1, %v4872_v49  ;;  %v1952_v49 = vadd.f32 %v6984_v54, %v6979_v4 }
 0x20a   : > { %5367 = vrot.lane.b32.xlu0 %v5366_v41, %s9394_s20 }
 0x20b   : > { %2294 = vmatmul.f32.gmra.mxu0 %v4871_v47 }
 0x20c   : > { %v2152_v20 = vpop.f32.mrf.mxu3 }
 0x20d   : > { %v2153_v10 = vadd.f32 %v2152_v20, %v2112_v63  ;;  %v2073_v14 = vpop.f32.mrf.mxu0  ;;  %v1989_v31 = vpop.f32.mrf.mxu2 }
 0x20f   : > { %v5341_v42 = vpack.i.bf16 %v2153_v10, %v6644_v23  ;;  %v2114_v44 = vpop.f32.mrf.mxu1  ;;  %v1783_v23 = vadd.f32 %v6969_v30, %v6921_v45 }
 0x210   : > { %v2115_v3 = vadd.f32 %v2114_v44, %v2073_v14  ;;  %v1949_v14 = vadd.f32 %v6973_v18, %v6971_v15 }
 0x211   : > { %5342 = vrot.lane.b32.xlu1 %v5341_v42, %s9396_s24  ;;  %v1824_v29 = vadd.f32 %v6988_v34, %v1783_v23  ;;  %v1946_v34 = vadd.f32 %v6967_v39, %v6965_v0  ;;  %2259 = vmatmul.f32.gmra.mxu2 %v4876_v62  ;;  %v1827_v39 = vadd.f32 %v7004_v27, %v1786_v33 }
 0x212   : > { %5372 = vrot.lane.b32.xlu0 %v5371_v16, %s9394_s20  ;;  %4888 = vmatmul.msk.f32.gmra.mxu1 %vm820_vm1, %v4875_v8  ;;  %v1990_v15 = vadd.f32 %v1989_v31, %v1949_v14  ;;  %v9460_v16 = vld [vmem:[#allocation20_spill] sm:$0xff]  ;;  %v629_v8 = vld [vmem:[%s9463_s4 + $0x78] sm:$0xff] }
 0x213   : > { %v5376_v41 = vpack.i.bf16 %v1824_v29, %v1136_v50  ;;  %2297 = vmatmul.f32.gmra.mxu0 %v4874_v51  ;;  %v5381_v10 = vpack.i.bf16 %v1827_v39, %v1139_v59  ;;  %v1142_v47 = vadd.f32 %v6597_v58, %v9460_v16  ;;  %v4881_v58 = vld [vmem:[%s9416_s22 + $0x6b8] sm:$0xff]  ;;  %2619 = vmatpush.msra.mxu3 %v629_v8  ;;  %v627_v59 = vld [vmem:[%s9463_s4 + $0x68] sm:$0xff] }
 0x214   : > { %v2155_v7 = vpop.f32.mrf.mxu3  ;;  %v5391_v17 = vpack.i.bf16 %v1990_v15, %v6652_v9  ;;  %v9464_v39 = vld [vmem:[#allocation21_spill] sm:$0xff]  ;;  %v639_v16 = vld [vmem:[%s9463_s4 + $0xc8] sm:$0xff] }
 0x215   : > { %v2156_v2 = vadd.f32 %v2155_v7, %v2115_v3  ;;  %v2076_v48 = vpop.f32.mrf.mxu0  ;;  %v1992_v25 = vpop.f32.mrf.mxu2  ;;  %v4880_v3 = vld [vmem:[%s9416_s22 + $0x6b0] sm:$0xff]  ;;  %v625_v15 = vld [vmem:[%s9463_s4 + $0x58] sm:$0xff] }
 0x216   : > { %v1993_v9 = vadd.f32 %v1992_v25, %v1952_v49  ;;  %v619_v49 = vld [vmem:[%s9463_s4 + $0x28] sm:$0xff] }
 0x217   : > { %v5396_v45 = vpack.i.bf16 %v2156_v2, %v6672_v19  ;;  %v2117_v30 = vpop.f32.mrf.mxu1  ;;  %v1987_v19 = vadd.f32 %v1986_v22, %v1946_v34 }
 0x218   : > { %v2118_v46 = vadd.f32 %v2117_v30, %v2076_v48  ;;  %v5401_v54 = vpack.i.bf16 %v1993_v9, %v6680_v26  ;;  %v634_v9 = vld [vmem:[%s9463_s4 + $0xa0] sm:$0xff] }
 0x219   : > { %5397 = vrot.lane.b32.xlu2 %v5396_v45, %s9396_s24  ;;  %5347 = vrot.lane.b32.xlu1 %v5346_v57, %s9394_s20  ;;  %v5361_v60 = vpack.i.bf16 %v1987_v19, %v6626_v28  ;;  %v4878_v28 = vld [vmem:[%s9416_s22 + $0x6a0] sm:$0xff]  ;;  %v644_v19 = vld [vmem:[%s9463_s4 + $0xf0] sm:$0xff]  ;;  %s9466_s22 = smov 96  }
 0x21a   : > { %5377 = vrot.lane.b32.xlu0 %v5376_v41, %s9394_s20  ;;  %2262 = vmatmul.f32.gmra.mxu2 %v4879_v37  ;;  %v9461_v41 = vld [vmem:[#allocation23_spill] sm:$0xff]  ;;  %v9467_v37 = vld [vmem:[#allocation22_spill] sm:$0xff]  ;;  %s4549_s20 = sshll.u32 %s4545_s2, 4  ;;  %s4550_s20 = int_to_ptr.hbm [resolvable:$true] %s4549_s20 }
 0x21b   : > { %2300 = vmatmul.f32.gmra.mxu0 %v4877_v11  ;;  %4889 = vmatmul.msk.f32.gmra.mxu1 %vm820_vm1, %v4878_v28 }
 0x21c   : > { %v2158_v0 = vpop.f32.mrf.mxu3 }
 0x21d   : > { %v2159_v63 = vadd.f32 %v2158_v0, %v2118_v46  ;;  %v2079_v55 = vpop.f32.mrf.mxu0 }
 0x21f   : > { %v5406_v20 = vpack.i.bf16 %v2159_v63, %v6696_v36  ;;  %v2120_v56 = vpop.f32.mrf.mxu1  ;;  %v1789_v36 = vadd.f32 %v6986_v13, %v6956_v32  ;;  %v9465_v63 = vld [vmem:[#allocation25_spill] sm:$0xff] }
 0x220   : > { %v2121_v27 = vadd.f32 %v2120_v56, %v2079_v55  ;;  %v1961_v56 = vadd.f32 %v7043_v12, %v7027_v6  ;;  %v626_v6 = vld [vmem:[%s9463_s4 + $0x60] sm:$0xff] }
 0x221   : > { %5407 = vrot.lane.b32.xlu2 %v5406_v20, %s9396_s24  ;;  %5362 = vrot.lane.b32.xlu1 %v5361_v60, %s9458_s23  ;;  %v1830_v18 = vadd.f32 %v7023_v38, %v1789_v36  ;;  %v643_v60 = vld [vmem:[%s9463_s4 + $0xe8] sm:$0xff]  ;;  %v642_v12 = vld [vmem:[%s9463_s4 + $0xe0] sm:$0xff] }
 0x222   : > { %5382 = vrot.lane.b32.xlu0 %v5381_v10, %s9459_s25  ;;  %v9468_v36 = vld [vmem:[#allocation27_spill] sm:$0xff] }
 0x223   : > { %v5386_v53 = vpack.i.bf16 %v1830_v18, %v1142_v47  ;;  %2303 = vmatmul.f32.gmra.mxu0 %v4880_v3  ;;  %4890 = vmatmul.msk.f32.gmra.mxu1 %vm820_vm1, %v4881_v58  ;;  %v641_v18 = vld [vmem:[%s9463_s4 + $0xd8] sm:$0xff]  ;;  %v622_v47 = vld [vmem:[%s9463_s4 + $0x40] sm:$0xff]  ;;  %v620_v3 = vld [vmem:[%s9463_s4 + $0x30] sm:$0xff] }
 0x224   : > { %v2161_v22 = vpop.f32.mrf.mxu3  ;;  %v618_v58 = vld [vmem:[%s9463_s4 + $0x20] sm:$0xff] }
 0x225   : > { %v2162_v42 = vadd.f32 %v2161_v22, %v2121_v27  ;;  %v2082_v44 = vpop.f32.mrf.mxu0  ;;  %v624_v22 = vld [vmem:[%s9463_s4 + $0x50] sm:$0xff] }
 0x227   : > { %v5416_v13 = vpack.i.bf16 %v2162_v42, %v6718_v43  ;;  %v2123_v32 = vpop.f32.mrf.mxu1  ;;  %v1995_v43 = vpop.f32.mrf.mxu2  ;;  %v640_v42 = vld [vmem:[%s9463_s4 + $0xd0] sm:$0xff] }
 0x228   : > { %v2124_v38 = vadd.f32 %v2123_v32, %v2082_v44  ;;  %v1996_v48 = vadd.f32 %v1995_v43, %v1955_v40  ;;  %v623_v44 = vld [vmem:[%s9463_s4 + $0x48] sm:$0xff]  ;;  %v637_v32 = vld [vmem:[%s9463_s4 + $0xb8] sm:$0xff]  ;;  %v614_v40 = vld [vmem:[%s9463_s4] sm:$0xff] }
 0x229   : > { %5417 = vrot.lane.b32.xlu2 %v5416_v13, %s9396_s24  ;;  %5392 = vrot.lane.b32.xlu1 %v5391_v17, %s9458_s23  ;;  %v638_v17 = vld [vmem:[%s9463_s4 + $0xc0] sm:$0xff]  ;;  %v621_v13 = vld [vmem:[%s9463_s4 + $0x38] sm:$0xff] }
 0x22a   : > { %5387 = vrot.lane.b32.xlu0 %v5386_v53, %s9459_s25  ;;  %v5411_v51 = vpack.i.bf16 %v1996_v48, %v6703_v35  ;;  %v645_v35 = vld [vmem:[%s9463_s4 + $0xf8] sm:$0xff]  ;;  %v636_v53 = vld [vmem:[%s9463_s4 + $0xb0] sm:$0xff]  ;;  %s9502_s25 = sld [smem:[#allocation54_spill]] }
 0x22b   : > { %2660 = vmatpush.msrb.mxu2 %v645_v35  ;;  %v617_v43 = vld [vmem:[%s9463_s4 + $0x18] sm:$0xff]  ;;  %v648_v48 = vld [vmem:[%s9463_s4 + $0x110] sm:$0xff] }
 0x22c   : > { %v2164_v23 = vpop.f32.mrf.mxu3 }
 0x22d   : > { %v2165_v61 = vadd.f32 %v2164_v23, %v2124_v38  ;;  %v2085_v29 = vpop.f32.mrf.mxu0  ;;  %2661 = vmatpush.msrb.mxu2 %v644_v19  ;;  %v635_v38 = vld [vmem:[%s9463_s4 + $0xa8] sm:$0xff]  ;;  %v633_v23 = vld [vmem:[%s9463_s4 + $0x98] sm:$0xff] }
 0x22f   : > { %v5426_v4 = vpack.i.bf16 %v2165_v61, %v6738_v24  ;;  %v2126_v7 = vpop.f32.mrf.mxu1  ;;  %v1998_v30 = vpop.f32.mrf.mxu2  ;;  %v9462_v24 = vld [vmem:[#allocation50_spill] sm:$0xff]  ;;  %2662 = vmatpush.msrb.mxu2 %v643_v60  ;;  %v616_v61 = vld [vmem:[%s9463_s4 + $0x10] sm:$0xff] }
 0x230   : > { %v2127_v2 = vadd.f32 %v2126_v7, %v2085_v29  ;;  %v1958_v34 = vadd.f32 %v7021_v5, %v9462_v24  ;;  %v628_v5 = vld [vmem:[%s9463_s4 + $0x70] sm:$0xff]  ;;  %v649_v7 = vld [vmem:[%s9463_s4 + $0x118] sm:$0xff] }
 0x231   : > { %5427 = vrot.lane.b32.xlu2 %v5426_v4, %s9396_s24  ;;  %5402 = vrot.lane.b32.xlu1 %v5401_v54, %s9458_s23  ;;  %v632_v29 = vld [vmem:[%s9463_s4 + $0x90] sm:$0xff]  ;;  %v615_v54 = vld [vmem:[%s9463_s4 + $0x8] sm:$0xff] }
 0x232   : > { %v1999_v21 = vadd.f32 %v1998_v30, %v1958_v34  ;;  %2620 = vmatpush.msra.mxu3 %v628_v5  ;;  %2663 = vmatpush.msrb.mxu2 %v642_v12  ;;  %v631_v4 = vld [vmem:[%s9463_s4 + $0x88] sm:$0xff]  ;;  %v646_v30 = vld [vmem:[%s9463_s4 + $0x100] sm:$0xff] }
 0x233   : > { %2713 = vmatpush.msrb.mxu0 %v649_v7  ;;  %v9469_v5 = vld [vmem:[#allocation24_spill] sm:$0xff] }
 0x234   : > { %v2167_v50 = vpop.f32.mrf.mxu3  ;;  %v5421_v0 = vpack.i.bf16 %v1999_v21, %v9464_v39  ;;  %2621 = vmatpush.msra.mxu3 %v627_v59  ;;  %2664 = vmatpush.msrb.mxu2 %v641_v18  ;;  %v9476_v7 = vld [vmem:[#allocation12_spill] sm:$0xff] }
 0x235   : > { %v2168_v57 = vadd.f32 %v2167_v50, %v2127_v2  ;;  %v2088_v45 = vpop.f32.mrf.mxu0  ;;  %v630_v2 = vld [vmem:[%s9463_s4 + $0x80] sm:$0xff]  ;;  %2714 = vmatpush.msrb.mxu0 %v648_v48 }
 0x236   : > { %2622 = vmatpush.msra.mxu3 %v626_v6  ;;  %2665 = vmatpush.msrb.mxu2 %v640_v42 }
 0x237   : > { %v5436_v26 = vpack.i.bf16 %v2168_v57, %v9461_v41  ;;  %v2129_v31 = vpop.f32.mrf.mxu1  ;;  %v2001_v20 = vpop.f32.mrf.mxu2 }
 0x238   : > { %v2130_v52 = vadd.f32 %v2129_v31, %v2088_v45  ;;  %v2002_v10 = vadd.f32 %v2001_v20, %v1961_v56  ;;  %2623 = vmatpush.msra.mxu3 %v625_v15  ;;  %2666 = vmatpush.msrb.mxu2 %v639_v16  ;;  %v647_v45 = vld [vmem:[%s9463_s4 + $0x108] sm:$0xff] }
 0x239   : > { %5437 = vrot.lane.b32.xlu2 %v5436_v26, %s9396_s24  ;;  %5412 = vrot.lane.b32.xlu1 %v5411_v51, %s9458_s23  ;;  %s604_s24 = sand.u32 1, %s5517_s30  }
 0x23a   : > { %v5431_v28 = vpack.i.bf16 %v2002_v10, %v9467_v37  ;;  %2624 = vmatpush.msra.mxu3 %v624_v22  ;;  %2667 = vmatpush.msrb.mxu2 %v638_v17  ;;  %v9474_v17 = vld [vmem:[#allocation32_spill] sm:$0xff]  ;;  %s605_s26 = scalar_lea.vmem [#allocation2], %s604_s24  ;;  %s4537_s0 = scalar_lea.sflag [#allocation3], %s604_s24 }
 0x23b   : > { %2715 = vmatpush.msrb.mxu0 %v647_v45  ;;  %v9478_v45 = vld [vmem:[#allocation35_spill] sm:$0xff] }
 0x23c   : > { %v2170_v46 = vpop.f32.mrf.mxu3  ;;  %2625 = vmatpush.msra.mxu3 %v623_v44  ;;  %2668 = vmatpush.msrb.mxu2 %v637_v32  ;;  %v5333_v31 = vpop.permute.xlu0 %5332 }
 0x23d   : > { %v2171_v62 = vadd.f32 %v2170_v46, %v2130_v52  ;;  %v2091_v33 = vpop.f32.mrf.mxu0  ;;  %2716 = vmatpush.msrb.mxu0 %v646_v30 }
 0x23e   : > { %2626 = vmatpush.msra.mxu3 %v622_v47  ;;  %2669 = vmatpush.msrb.mxu2 %v636_v53  ;;  %v9473_v47 = vld [vmem:[#allocation26_spill] sm:$0xff] }
 0x23f   : > { %v5441_v55 = vpack.i.bf16 %v2171_v62, %v9465_v63  ;;  %v2132_v1 = vpop.f32.mrf.mxu1  ;;  %v2242_v50 = vpop.f32.mrf.mxu2 }
 0x240   : > { %v2133_v11 = vadd.f32 %v2132_v1, %v2091_v33  ;;  %2627 = vmatpush.msra.mxu3 %v621_v13  ;;  %2670 = vmatpush.msrb.mxu2 %v635_v38  ;;  %v9470_v33 = vld [vmem:[#allocation29_spill] sm:$0xff]  ;;  %v5334_v1 = vunpack.i.l.bf16 %v5333_v31  ;;  %v1599_v13 = vadd.f32 %v9474_v17, %v9473_v47 }
 0x241   : > { %5442 = vrot.lane.b32.xlu2 %v5441_v55, %s9466_s22  ;;  %5422 = vrot.lane.b32.xlu1 %v5421_v0, %s9458_s23  ;;  %v1596_v19 = vadd.f32 %v9470_v33, %v9469_v5  ;;  %v5335_v55 = vunpack.i.h.bf16 %v5333_v31  ;;  %v9475_v38 = vld [vmem:[#allocation33_spill] sm:$0xff] }
 0x242   : > { %2628 = vmatpush.msra.mxu3 %v620_v3  ;;  %2671 = vmatpush.msrb.mxu2 %v634_v9 }
 0x244   : > { %v2173_v14 = vpop.f32.mrf.mxu3  ;;  %2629 = vmatpush.msra.mxu3 %v619_v49  ;;  %2672 = vmatpush.msrb.mxu2 %v633_v23 }
 0x245   : > { %v2174_v27 = vadd.f32 %v2173_v14, %v2133_v11  ;;  %v2283_v57 = vpop.f32.mrf.mxu0  ;;  %v9471_v11 = vld [vmem:[#allocation30_spill] sm:$0xff] }
 0x246   : > { %2630 = vmatpush.msra.mxu3 %v618_v58  ;;  %2673 = vmatpush.msrb.mxu2 %v632_v29  ;;  %v2284_v51 = vadd.f32 %v2283_v57, %v2242_v50  ;;  %v1637_v10 = vadd.f32 %v9471_v11, %v1596_v19  ;;  %v1640_v58 = vadd.f32 %v9475_v38, %v1599_v13  ;;  %v9477_v57 = vld [vmem:[#allocation28_spill] sm:$0xff]  ;;  %v9482_v11 = vld [vmem:[#allocation38_spill] sm:$0xff] }
 0x247   : > { %v5446_v25 = vpack.i.bf16 %v2174_v27, %v9468_v36  ;;  %v2324_v41 = vpop.f32.mrf.mxu1  ;;  %v2245_v24 = vpop.f32.mrf.mxu2  ;;  %v1602_v30 = vadd.f32 %v9478_v45, %v9477_v57  ;;  %v9487_v57 = vld [vmem:[#allocation42_spill] sm:$0xff] }
 0x248   : > { %2631 = vmatpush.msra.mxu3 %v617_v43  ;;  %2674 = vmatpush.msrb.mxu2 %v631_v4  ;;  %v2325_v26 = vadd.f32 %v2324_v41, %v2284_v51  ;;  %v2567_v37 = vsel %vm2540_vm2, %v1637_v10, %v5335_v55 }
 0x249   : > { %5447 = vrot.lane.b32.xlu2 %v5446_v25, %s9466_s22  ;;  %5432 = vrot.lane.b32.xlu1 %v5431_v28, %s9458_s23  ;;  %v9472_v28 = vld [vmem:[#allocation11_spill] sm:$0xff]  ;;  %s5483_s22 = scalar_lea.hbm %s9385_s19, 2 }
 0x24a   : > { %2632 = vmatpush.msra.mxu3 %v616_v61  ;;  %2675 = vmatpush.msrb.mxu2 %v630_v2  ;;  %v2541_v36 = vsel %vm2540_vm2, %v9472_v28, %v5334_v1 }
 0x24b   : > { %4891 = vmatmul.msk.f32.vlgmr.msrb.gmra.mxu0 %vm2540_vm2, %v2325_v26 }
 0x24c   : > { %2633 = vmatpush.msra.mxu3 %v615_v54 }
 0x24d   : > { %v2286_v52 = vpop.f32.mrf.mxu0 }
 0x24e   : > { %2634 = vmatpush.msra.mxu3 %v614_v40  ;;  %v2287_v21 = vadd.f32 %v2286_v52, %v2245_v24 }
 0x24f   : > { %v2327_v46 = vpop.f32.mrf.mxu1  ;;  %v2248_v35 = vpop.f32.mrf.mxu2 }
 0x250   : > { %v2328_v8 = vadd.f32 %v2327_v46, %v2287_v21 }
 0x253   : > { %4892 = vmatmul.msk.f32.gmra.mxu0 %vm2540_vm2, %v2328_v8  ;;  %v9479_v8 = vld [vmem:[#allocation36_spill] sm:$0xff] }
 0x25c   : > { %v5353_v34 = vpop.permute.xlu2 %5352 }
 0x25d   : > { %v5355_v23 = vunpack.i.h.bf16 %v5353_v34  ;;  %v5354_v61 = vunpack.i.l.bf16 %v5353_v34 }
 0x26c   : > { %v5338_v62 = vpop.permute.xlu0 %5337 }
 0x26d   : > { %v5340_v60 = vunpack.i.h.bf16 %v5338_v62  ;;  %v5339_v20 = vunpack.i.l.bf16 %v5338_v62 }
 0x26f   : > { %v2550_v12 = vsel %vm2549_vm3, %v2541_v36, %v5339_v20  ;;  %v2575_v15 = vsel %vm2549_vm3, %v2567_v37, %v5340_v60 }
 0x273   : > { %v5398_v39 = vpop.permute.xlu2 %5397 }
 0x274   : > { %v5358_v14 = vpop.permute.xlu0 %5357  ;;  %v5400_v54 = vunpack.i.h.bf16 %v5398_v39  ;;  %v5399_v4 = vunpack.i.l.bf16 %v5398_v39 }
 0x275   : > { %v5360_v52 = vunpack.i.h.bf16 %v5358_v14  ;;  %v5359_v21 = vunpack.i.l.bf16 %v5358_v14 }
 0x276   : > { %v2330_v59 = vpop.f32.mrf.mxu1 }
 0x278   : > { %v2289_v0 = vpop.f32.mrf.mxu0 }
 0x279   : > { %v2290_v63 = vadd.f32 %v2289_v0, %v2248_v35  ;;  %v1643_v35 = vadd.f32 %v9479_v8, %v1602_v30 }
 0x27b   : > { %v2331_v56 = vadd.f32 %v2330_v59, %v2290_v63  ;;  %v5408_v32 = vpop.permute.xlu2 %5407  ;;  %v9480_v63 = vld [vmem:[#allocation13_spill] sm:$0xff]  ;;  %v2569_v1 = vsel %vm2540_vm2, %v1643_v35, %v5360_v52 }
 0x27c   : > { %v2251_v42 = vpop.f32.mrf.mxu2  ;;  %v5368_v29 = vpop.permute.xlu0 %5367  ;;  %v5410_v39 = vunpack.i.h.bf16 %v5408_v32  ;;  %v5409_v0 = vunpack.i.l.bf16 %v5408_v32  ;;  %v2543_v55 = vsel %vm2540_vm2, %v9480_v63, %v5359_v21  ;;  %v9484_v32 = vld [vmem:[#allocation14_spill] sm:$0xff]  ;;  %v9489_v35 = vld [vmem:[#allocation37_spill] sm:$0xff] }
 0x27d   : > { %4893 = vmatmul.msk.f32.gmra.mxu0 %vm2540_vm2, %v2331_v56  ;;  %v9481_v56 = vld [vmem:[#allocation31_spill] sm:$0xff] }
 0x27e   : > { %v2333_v3 = vpop.f32.mrf.mxu1  ;;  %v1605_v10 = vadd.f32 %v9482_v11, %v9481_v56 }
 0x280   : > { %v2292_v44 = vpop.f32.mrf.mxu0 }
 0x281   : > { %v2293_v16 = vadd.f32 %v2292_v44, %v2251_v42 }
 0x283   : > { %v5343_v27 = vpop.permute.xlu1 %5342  ;;  %v2334_v53 = vadd.f32 %v2333_v3, %v2293_v16  ;;  %v5418_v62 = vpop.permute.xlu2 %5417 }
 0x284   : > { %v5345_v25 = vunpack.i.h.bf16 %v5343_v27  ;;  %v5344_v6 = vunpack.i.l.bf16 %v5343_v27  ;;  %v2254_v48 = vpop.f32.mrf.mxu2  ;;  %v5373_v28 = vpop.permute.xlu0 %5372  ;;  %v5420_v17 = vunpack.i.h.bf16 %v5418_v62  ;;  %v5419_v13 = vunpack.i.l.bf16 %v5418_v62 }
 0x285   : > { %4894 = vmatmul.msk.f32.gmra.mxu0 %vm2540_vm2, %v2334_v53 }
 0x286   : > { %v2559_v18 = vsel %vm2558_vm4, %v2550_v12, %v5344_v6  ;;  %v2583_v22 = vsel %vm2558_vm4, %v2575_v15, %v5345_v25  ;;  %v2336_v34 = vpop.f32.mrf.mxu1  ;;  %v5370_v6 = vunpack.i.h.bf16 %v5368_v29  ;;  %v5369_v12 = vunpack.i.l.bf16 %v5368_v29 }
 0x287   : > { %2635 = vmatmul.f32.vlgmr.msra.gmra.mxu3 %v2559_v18  ;;  %2676 = vmatmul.f32.vlgmr.msrb.gmra.mxu2 %v2583_v22  ;;  %v9483_v18 = vld [vmem:[#allocation39_spill] sm:$0xff] }
 0x288   : > { %v2295_v50 = vpop.f32.mrf.mxu0  ;;  %v1646_v22 = vadd.f32 %v9483_v18, %v1605_v10  ;;  %v2544_v3 = vsel %vm2540_vm2, %v9484_v32, %v5369_v12  ;;  %v9493_v18 = vld [vmem:[#allocation40_spill] sm:$0xff]  ;;  %v9495_v32 = vld [vmem:[#allocation47_spill] sm:$0xff] }
 0x289   : > { %v2296_v26 = vadd.f32 %v2295_v50, %v2254_v48 }
 0x28a   : > { %v2570_v53 = vsel %vm2540_vm2, %v1646_v22, %v5370_v6  ;;  %v9494_v22 = vld [vmem:[#allocation46_spill] sm:$0xff] }
 0x28b   : > { %v5348_v49 = vpop.permute.xlu1 %5347  ;;  %v2337_v46 = vadd.f32 %v2336_v34, %v2296_v26  ;;  %v5428_v44 = vpop.permute.xlu2 %5427 }
 0x28c   : > { %v5350_v9 = vunpack.i.h.bf16 %v5348_v49  ;;  %v5349_v43 = vunpack.i.l.bf16 %v5348_v49  ;;  %v2257_v20 = vpop.f32.mrf.mxu2  ;;  %v5378_v48 = vpop.permute.xlu0 %5377  ;;  %v5430_v26 = vunpack.i.h.bf16 %v5428_v44 }
 0x28d   : > { %4895 = vmatmul.msk.f32.gmra.mxu0 %vm2540_vm2, %v2337_v46 }
 0x28e   : > { %v2542_v40 = vsel %vm2540_vm2, %v9476_v7, %v5349_v43  ;;  %v2568_v2 = vsel %vm2540_vm2, %v1640_v58, %v5350_v9  ;;  %v9485_v9 = vld [vmem:[#allocation34_spill] sm:$0xff]  ;;  %v9486_v43 = vld [vmem:[#allocation41_spill] sm:$0xff] }
 0x28f   : > { %v2551_v51 = vsel %vm2549_vm3, %v2542_v40, %v5354_v61  ;;  %v2576_v41 = vsel %vm2549_vm3, %v2568_v2, %v5355_v23  ;;  %v2339_v25 = vpop.f32.mrf.mxu1  ;;  %v1608_v23 = vadd.f32 %v9486_v43, %v9485_v9  ;;  %v5375_v40 = vunpack.i.h.bf16 %v5373_v28  ;;  %v9496_v43 = vld [vmem:[#allocation17_spill] sm:$0xff] }
 0x290   : > { %v2560_v31 = vsel %vm2558_vm4, %v2551_v51, %v5399_v4  ;;  %v2584_v24 = vsel %vm2558_vm4, %v2576_v41, %v5400_v54  ;;  %v2298_v37 = vpop.f32.mrf.mxu0  ;;  %v5374_v2 = vunpack.i.l.bf16 %v5373_v28 }
 0x291   : > { %2638 = vmatmul.f32.gmra.mxu3 %v2560_v31  ;;  %2679 = vmatmul.f32.gmra.mxu2 %v2584_v24  ;;  %v2299_v36 = vadd.f32 %v2298_v37, %v2257_v20  ;;  %v1649_v45 = vadd.f32 %v9487_v57, %v1608_v23  ;;  %v5429_v31 = vunpack.i.l.bf16 %v5428_v44  ;;  %v9488_v24 = vld [vmem:[#allocation15_spill] sm:$0xff]  ;;  %v9491_v20 = vld [vmem:[#allocation45_spill] sm:$0xff] }
 0x292   : > { %v2545_v34 = vsel %vm2540_vm2, %v9488_v24, %v5374_v2 }
 0x293   : > { %v5363_v5 = vpop.permute.xlu1 %5362  ;;  %v2340_v15 = vadd.f32 %v2339_v25, %v2299_v36  ;;  %v2571_v52 = vsel %vm2540_vm2, %v1649_v45, %v5375_v40  ;;  %v5438_v21 = vpop.permute.xlu2 %5437  ;;  %v9492_v36 = vld [vmem:[#allocation16_spill] sm:$0xff] }
 0x294   : > { %v5365_v33 = vunpack.i.h.bf16 %v5363_v5  ;;  %v5364_v19 = vunpack.i.l.bf16 %v5363_v5  ;;  %v2260_v58 = vpop.f32.mrf.mxu2  ;;  %v9490_v5 = vld [vmem:[#allocation44_spill] sm:$0xff]  ;;  %v5383_v10 = vpop.permute.xlu0 %5382  ;;  %v5440_v37 = vunpack.i.h.bf16 %v5438_v21  ;;  %v5439_v28 = vunpack.i.l.bf16 %v5438_v21  ;;  %v9500_v21 = vld [vmem:[#allocation18_spill] sm:$0xff] }
 0x295   : > { %4896 = vmatmul.msk.f32.gmra.mxu0 %vm2540_vm2, %v2340_v15  ;;  %v9498_v40 = vld [vmem:[#allocation48_spill] sm:$0xff] }
 0x296   : > { %v2552_v59 = vsel %vm2549_vm3, %v2543_v55, %v5364_v19  ;;  %v2577_v60 = vsel %vm2549_vm3, %v2569_v1, %v5365_v33  ;;  %v1611_v33 = vadd.f32 %v9490_v5, %v9489_v35  ;;  %v5380_v1 = vunpack.i.h.bf16 %v5378_v48 }
 0x297   : > { %v2561_v14 = vsel %vm2558_vm4, %v2552_v59, %v5409_v0  ;;  %v2585_v27 = vsel %vm2558_vm4, %v2577_v60, %v5410_v39  ;;  %v5379_v59 = vunpack.i.l.bf16 %v5378_v48 }
 0x298   : > { %v2301_v54 = vpop.f32.mrf.mxu0  ;;  %v2342_v7 = vpop.f32.mrf.mxu1  ;;  %v1652_v56 = vadd.f32 %v9491_v20, %v1611_v33 }
 0x299   : > { %2641 = vmatmul.f32.gmra.mxu3 %v2561_v14  ;;  %2682 = vmatmul.f32.gmra.mxu2 %v2585_v27  ;;  %v2302_v4 = vadd.f32 %v2301_v54, %v2260_v58  ;;  %v2546_v25 = vsel %vm2540_vm2, %v9492_v36, %v5379_v59 }
 0x29a   : > { %v2572_v6 = vsel %vm2540_vm2, %v1652_v56, %v5380_v1 }
 0x29b   : > { %v5393_v42 = vpop.permute.xlu1 %5392  ;;  %v2343_v50 = vadd.f32 %v2342_v7, %v2302_v4  ;;  %v9497_v7 = vld [vmem:[#allocation43_spill] sm:$0xff] }
 0x29c   : > { %v5395_v16 = vunpack.i.h.bf16 %v5393_v42  ;;  %v5394_v47 = vunpack.i.l.bf16 %v5393_v42  ;;  %v1614_v42 = vadd.f32 %v9494_v22, %v9493_v18  ;;  %v1617_v2 = vadd.f32 %v9498_v40, %v9497_v7 }
 0x29d   : > { %4897 = vmatmul.msk.f32.gmra.mxu0 %vm2540_vm2, %v2343_v50  ;;  %v2263_v8 = vpop.f32.mrf.mxu2 }
 0x29e   : > { %v2553_v49 = vsel %vm2549_vm3, %v2544_v3, %v5394_v47  ;;  %v2578_v38 = vsel %vm2549_vm3, %v2570_v53, %v5395_v16  ;;  %v5443_v47 = vpop.permute.xlu2 %5442  ;;  %v1655_v3 = vadd.f32 %v9495_v32, %v1614_v42 }
 0x29f   : > { %v2562_v61 = vsel %vm2558_vm4, %v2553_v49, %v5419_v13  ;;  %v2586_v29 = vsel %vm2558_vm4, %v2578_v38, %v5420_v17  ;;  %v5385_v17 = vunpack.i.h.bf16 %v5383_v10  ;;  %v5384_v13 = vunpack.i.l.bf16 %v5383_v10 }
 0x2a0   : > { %v2304_v0 = vpop.f32.mrf.mxu0  ;;  %v2345_v55 = vpop.f32.mrf.mxu1  ;;  %v5445_v58 = vunpack.i.h.bf16 %v5443_v47  ;;  %v5444_v9 = vunpack.i.l.bf16 %v5443_v47 }
 0x2a1   : > { %2644 = vmatmul.f32.gmra.mxu3 %v2562_v61  ;;  %2685 = vmatmul.f32.gmra.mxu2 %v2586_v29  ;;  %v2305_v63 = vadd.f32 %v2304_v0, %v2263_v8  ;;  %v2547_v23 = vsel %vm2540_vm2, %v9496_v43, %v5384_v13  ;;  %v2573_v61 = vsel %vm2540_vm2, %v1655_v3, %v5385_v17  ;;  %v5388_v29 = vpop.permute.xlu0 %5387 }
 0x2a2   : > { %v5390_v57 = vunpack.i.h.bf16 %v5388_v29  ;;  %v5389_v45 = vunpack.i.l.bf16 %v5388_v29 }
 0x2a3   : > { %v5403_v30 = vpop.permute.xlu1 %5402  ;;  %v2346_v60 = vadd.f32 %v2345_v55, %v2305_v63 }
 0x2a4   : > { %v5405_v51 = vunpack.i.h.bf16 %v5403_v30  ;;  %v5404_v41 = vunpack.i.l.bf16 %v5403_v30 }
 0x2a5   : > { %4898 = vmatmul.msk.f32.gmra.mxu0 %vm2540_vm2, %v2346_v60 }
 0x2a6   : > { %v2554_v46 = vsel %vm2549_vm3, %v2545_v34, %v5404_v41  ;;  %v2579_v62 = vsel %vm2549_vm3, %v2571_v52, %v5405_v51  ;;  %v5448_v30 = vpop.permute.xlu2 %5447  ;;  %v9499_v51 = vld [vmem:[#allocation49_spill] sm:$0xff] }
 0x2a7   : > { %v2563_v19 = vsel %vm2558_vm4, %v2554_v46, %v5429_v31  ;;  %v2587_v39 = vsel %vm2558_vm4, %v2579_v62, %v5430_v26  ;;  %v1658_v41 = vadd.f32 %v9499_v51, %v1617_v2  ;;  %v5450_v34 = vunpack.i.h.bf16 %v5448_v30 }
 0x2a8   : > { %v5449_v52 = vunpack.i.l.bf16 %v5448_v30  ;;  %v2548_v46 = vsel %vm2540_vm2, %v9500_v21, %v5389_v45  ;;  %v2750_v21 = vld [vmem:[%s9502_s25] sm:$0xff] }
 0x2a9   : > { %2647 = vmatmul.f32.gmra.mxu3 %v2563_v19  ;;  %2688 = vmatmul.f32.gmra.mxu2 %v2587_v39  ;;  %v2574_v62 = vsel %vm2540_vm2, %v1658_v41, %v5390_v57  ;;  %v5461_v39 = vld [vmem:[%s9501_s5] ss:$0 sm:$0xff]  ;;  %s4547_s5 = sshll.u32 %s605_s26, 4  ;;  %s4548_s5 = int_to_ptr.vmem [resolvable:$true] %s4547_s5 }
 0x2ab   : > { %v5413_v11 = vpop.permute.xlu1 %5412 }
 0x2ac   : > { %v5415_v14 = vunpack.i.h.bf16 %v5413_v11  ;;  %v5414_v27 = vunpack.i.l.bf16 %v5413_v11 }
 0x2ae   : > { %v2555_v12 = vsel %vm2549_vm3, %v2546_v25, %v5414_v27  ;;  %v2580_v15 = vsel %vm2549_vm3, %v2572_v6, %v5415_v14 }
 0x2af   : > { %v2564_v44 = vsel %vm2558_vm4, %v2555_v12, %v5439_v28  ;;  %v2588_v16 = vsel %vm2558_vm4, %v2580_v15, %v5440_v37 }
 0x2b1   : > { %2650 = vmatmul.f32.gmra.mxu3 %v2564_v44  ;;  %2691 = vmatmul.f32.gmra.mxu2 %v2588_v16 }
 0x2b3   : > { %v5423_v53 = vpop.permute.xlu1 %5422 }
 0x2b4   : > { %v5425_v49 = vunpack.i.h.bf16 %v5423_v53  ;;  %v5424_v38 = vunpack.i.l.bf16 %v5423_v53 }
 0x2b6   : > { %v2556_v54 = vsel %vm2549_vm3, %v2547_v23, %v5424_v38  ;;  %v2581_v4 = vsel %vm2549_vm3, %v2573_v61, %v5425_v49 }
 0x2b7   : > { %v2565_v48 = vsel %vm2558_vm4, %v2556_v54, %v5444_v9  ;;  %v2589_v50 = vsel %vm2558_vm4, %v2581_v4, %v5445_v58 }
 0x2b9   : > { %2653 = vmatmul.f32.gmra.mxu3 %v2565_v48  ;;  %2694 = vmatmul.f32.gmra.mxu2 %v2589_v50 }
 0x2bb   : > { %v5433_v26 = vpop.permute.xlu1 %5432 }
 0x2bc   : > { %v5435_v31 = vunpack.i.h.bf16 %v5433_v26  ;;  %v5434_v24 = vunpack.i.l.bf16 %v5433_v26 }
 0x2be   : > { %v2557_v8 = vsel %vm2549_vm3, %v2548_v46, %v5434_v24  ;;  %v2582_v35 = vsel %vm2549_vm3, %v2574_v62, %v5435_v31  ;;  %v4901_v46 = vld [vmem:[%s9502_s25 + $0x10] sm:$0xff]  ;;  %v2751_v62 = vld [vmem:[%s9502_s25 + $0x8] sm:$0x1] }
 0x2bf   : > { %v2566_v5 = vsel %vm2558_vm4, %v2557_v8, %v5449_v52  ;;  %v2590_v33 = vsel %vm2558_vm4, %v2582_v35, %v5450_v34  ;;  %v4902_v8 = vld [vmem:[%s9502_s25 + $0x18] sm:$0x1]  ;;  %v4905_v35 = vld [vmem:[%s9502_s25 + $0x20] sm:$0xff] }
 0x2c1   : > { %2656 = vmatmul.f32.gmra.mxu3 %v2566_v5  ;;  %2697 = vmatmul.f32.gmra.mxu2 %v2590_v33  ;;  %v4909_v5 = vld [vmem:[%s9502_s25 + $0x30] sm:$0xff]  ;;  %v4906_v33 = vld [vmem:[%s9502_s25 + $0x28] sm:$0x1] }
 0x2c8   : > { %v2718_v19 = vpop.f32.mrf.mxu0 }
 0x2d0   : > { %v2721_v0 = vpop.f32.mrf.mxu0 }
 0x2fa   : > { %v2724_v20 = vpop.f32.mrf.mxu0 }
 0x302   : > { %v2727_v27 = vpop.f32.mrf.mxu0 }
 0x30a   : > { %v2636_v63 = vpop.f32.mrf.mxu3  ;;  %v2677_v1 = vpop.f32.mrf.mxu2 }
 0x30b   : > { %v2637_v55 = vadd.f32 %v5461_v39, %v2636_v63  ;;  %v2730_v36 = vpop.f32.mrf.mxu0  ;;  %v4914_v63 = vld [vmem:[%s9502_s25 + $0x48] sm:$0x1] }
 0x30d   : > { %v2678_v59 = vadd.f32 %v2677_v1, %v2637_v55  ;;  %v4918_v55 = vld [vmem:[%s9502_s25 + $0x58] sm:$0x1]  ;;  %v4925_v1 = vld [vmem:[%s9502_s25 + $0x70] sm:$0xff] }
 0x30f   : > { %v7364_v60 = vadd.f32 %v2718_v19, %v2678_v59  ;;  %v4910_v19 = vld [vmem:[%s9502_s25 + $0x38] sm:$0x1] }
 0x310   : > { %v4926_v59 = vld [vmem:[%s9502_s25 + $0x78] sm:$0x1] }
 0x311   : > { %v7399_v52 = vmax.f32 %v7364_v60, 0.0 }
 0x313   : > { %v2733_v12 = vpop.f32.mrf.mxu0 }
 0x314   : > { %v2639_v56 = vpop.f32.mrf.mxu3  ;;  %v2680_v11 = vpop.f32.mrf.mxu2 }
 0x315   : > { %v2640_v54 = vadd.f32 %v5461_v39, %v2639_v56 }
 0x317   : > { %v2681_v57 = vadd.f32 %v2680_v11, %v2640_v54 }
 0x319   : > { %v2722_v26 = vadd.f32 %v2721_v0, %v2681_v57  ;;  %v4917_v0 = vld [vmem:[%s9502_s25 + $0x50] sm:$0xff]  ;;  %v674_v57 = vld [vmem:[%s9372_s6 + $0xc0] sm:$0xff] }
 0x31b   : > { %v2736_v22 = vpop.f32.mrf.mxu0  ;;  %v7393_v34 = vmax.f32 %v2722_v26, 0.0 }
 0x31c   : > { %v2642_v10 = vpop.f32.mrf.mxu3  ;;  %v2683_v14 = vpop.f32.mrf.mxu2 }
 0x31d   : > { %v2643_v43 = vadd.f32 %v5461_v39, %v2642_v10  ;;  %v4929_v10 = vld [vmem:[%s9502_s25 + $0x80] sm:$0xff] }
 0x31f   : > { %v2684_v2 = vadd.f32 %v2683_v14, %v2643_v43  ;;  %v677_v43 = vld [vmem:[%s9372_s6 + $0xd8] sm:$0xff] }
 0x321   : > { %v2725_v51 = vadd.f32 %v2724_v20, %v2684_v2  ;;  %v4921_v20 = vld [vmem:[%s9502_s25 + $0x60] sm:$0xff]  ;;  %v675_v2 = vld [vmem:[%s9372_s6 + $0xc8] sm:$0xff] }
 0x323   : > { %v2739_v49 = vpop.f32.mrf.mxu0  ;;  %v7388_v24 = vmax.f32 %v2725_v51, 0.0  ;;  %v673_v51 = vld [vmem:[%s9372_s6 + $0xb8] sm:$0xff] }
 0x324   : > { %v2645_v37 = vpop.f32.mrf.mxu3  ;;  %v2686_v28 = vpop.f32.mrf.mxu2 }
 0x325   : > { %v2646_v38 = vadd.f32 %v5461_v39, %v2645_v37 }
 0x327   : > { %v2687_v4 = vadd.f32 %v2686_v28, %v2646_v38  ;;  %v4930_v28 = vld [vmem:[%s9502_s25 + $0x88] sm:$0x1]  ;;  %v678_v38 = vld [vmem:[%s9372_s6 + $0xe0] sm:$0xff] }
 0x329   : > { %v2728_v45 = vadd.f32 %v2727_v27, %v2687_v4  ;;  %v4922_v27 = vld [vmem:[%s9502_s25 + $0x68] sm:$0x1]  ;;  %v690_v4 = vld [vmem:[%s9372_s6 + $0x140] sm:$0xff] }
 0x32b   : > { %v7383_v31 = vmax.f32 %v2728_v45, 0.0  ;;  %v688_v45 = vld [vmem:[%s9372_s6 + $0x130] sm:$0xff] }
 0x32c   : > { %v2648_v25 = vpop.f32.mrf.mxu3  ;;  %v2689_v6 = vpop.f32.mrf.mxu2 }
 0x32d   : > { %v2649_v13 = vadd.f32 %v5461_v39, %v2648_v25 }
 0x32f   : > { %v2690_v23 = vadd.f32 %v2689_v6, %v2649_v13  ;;  %v663_v13 = vld [vmem:[%s9372_s6 + $0x68] sm:$0xff] }
 0x331   : > { %v2731_v48 = vadd.f32 %v2730_v36, %v2690_v23  ;;  %v691_v23 = vld [vmem:[%s9372_s6 + $0x148] sm:$0xff] }
 0x333   : > { %v7378_v41 = vmax.f32 %v2731_v48, 0.0  ;;  %v689_v48 = vld [vmem:[%s9372_s6 + $0x138] sm:$0xff] }
 0x334   : > { %v2651_v15 = vpop.f32.mrf.mxu3  ;;  %v2692_v18 = vpop.f32.mrf.mxu2 }
 0x335   : > { %v2652_v47 = vadd.f32 %v5461_v39, %v2651_v15  ;;  %v696_v15 = vld [vmem:[%s9372_s6 + $0x170] sm:$0xff] }
 0x337   : > { %v2693_v58 = vadd.f32 %v2692_v18, %v2652_v47  ;;  %v695_v18 = vld [vmem:[%s9372_s6 + $0x168] sm:$0xff] }
 0x339   : > { %v2734_v7 = vadd.f32 %v2733_v12, %v2693_v58  ;;  %v697_v12 = vld [vmem:[%s9372_s6 + $0x178] sm:$0xff]  ;;  %v692_v58 = vld [vmem:[%s9372_s6 + $0x150] sm:$0xff] }
 0x33b   : > { %v7373_v30 = vmax.f32 %v2734_v7, 0.0 }
 0x33c   : > { %v2654_v42 = vpop.f32.mrf.mxu3  ;;  %v2695_v44 = vpop.f32.mrf.mxu2 }
 0x33d   : > { %v2655_v16 = vadd.f32 %v5461_v39, %v2654_v42  ;;  %v681_v42 = vld [vmem:[%s9372_s6 + $0xf8] sm:$0xff] }
 0x33f   : > { %v2696_v32 = vadd.f32 %v2695_v44, %v2655_v16  ;;  %v664_v44 = vld [vmem:[%s9372_s6 + $0x70] sm:$0xff] }
 0x340   : > { %v680_v16 = vld [vmem:[%s9372_s6 + $0xf0] sm:$0xff] }
 0x341   : > { %v2737_v61 = vadd.f32 %v2736_v22, %v2696_v32  ;;  %v665_v22 = vld [vmem:[%s9372_s6 + $0x78] sm:$0xff] }
 0x342   : > { %3087 = vmatpush.msra.mxu0 %v665_v22  ;;  %v706_v22 = vld [vmem:[%s9372_s6 + $0x1c0] sm:$0xff] }
 0x343   : > { %v7368_v50 = vmax.f32 %v2737_v61, 0.0  ;;  %v660_v61 = vld [vmem:[%s9372_s6 + $0x50] sm:$0xff] }
 0x344   : > { %v2657_v17 = vpop.f32.mrf.mxu3  ;;  %v2698_v53 = vpop.f32.mrf.mxu2  ;;  %3088 = vmatpush.msra.mxu0 %v664_v44  ;;  %v704_v44 = vld [vmem:[%s9372_s6 + $0x1b0] sm:$0xff] }
 0x345   : > { %v2658_v3 = vadd.f32 %v5461_v39, %v2657_v17  ;;  %v4913_v39 = vld [vmem:[%s9502_s25 + $0x40] sm:$0xff] }
 0x346   : > { %v694_v17 = vld [vmem:[%s9372_s6 + $0x160] sm:$0xff]  ;;  %3089 = vmatpush.msra.mxu0 %v663_v13  ;;  %v701_v13 = vld [vmem:[%s9372_s6 + $0x198] sm:$0xff] }
 0x347   : > { %v2699_v9 = vadd.f32 %v2698_v53, %v2658_v3  ;;  %v679_v3 = vld [vmem:[%s9372_s6 + $0xe8] sm:$0xff]  ;;  %v693_v53 = vld [vmem:[%s9372_s6 + $0x158] sm:$0xff] }
 0x349   : > { %v2740_v29 = vadd.f32 %v2739_v49, %v2699_v9  ;;  %v662_v49 = vld [vmem:[%s9372_s6 + $0x60] sm:$0xff]  ;;  %v661_v9 = vld [vmem:[%s9372_s6 + $0x58] sm:$0xff] }
 0x34a   : > { %3090 = vmatpush.msra.mxu0 %v662_v49  ;;  %v700_v49 = vld [vmem:[%s9372_s6 + $0x190] sm:$0xff] }
 0x34b   : > { %v7366_v40 = vmax.f32 %v2740_v29, 0.0  ;;  %v676_v29 = vld [vmem:[%s9372_s6 + $0xd0] sm:$0xff] }
 0x34c   : > { %3091 = vmatpush.msra.mxu0 %v661_v9  ;;  %v698_v9 = vld [vmem:[%s9372_s6 + $0x180] sm:$0xff] }
 0x34d   : > { %2766 = vmatpush.msrb.mxu1 %v7366_v40  ;;  %2798 = vmatpush.msrb.mxu3 %v7366_v40 }
 0x34e   : > { %2958 = vmatpush.msra.mxu2 %v7366_v40  ;;  %3092 = vmatpush.msra.mxu0 %v660_v61  ;;  %v716_v61 = vld [vmem:[%s9372_s6 + $0x210] sm:$0xff] }
 0x34f   : > { %2767 = vmatpush.msrb.mxu1 %v7368_v50  ;;  %2799 = vmatpush.msrb.mxu3 %v7368_v50 }
 0x350   : > { %2959 = vmatpush.msra.mxu2 %v7368_v50 }
 0x351   : > { %2768 = vmatpush.msrb.mxu1 %v7373_v30  ;;  %2800 = vmatpush.msrb.mxu3 %v7373_v30 }
 0x352   : > { %2960 = vmatpush.msra.mxu2 %v7373_v30 }
 0x353   : > { %2769 = vmatpush.msrb.mxu1 %v7378_v41  ;;  %2801 = vmatpush.msrb.mxu3 %v7378_v41 }
 0x354   : > { %2961 = vmatpush.msra.mxu2 %v7378_v41 }
 0x355   : > { %2770 = vmatpush.msrb.mxu1 %v7383_v31  ;;  %2802 = vmatpush.msrb.mxu3 %v7383_v31 }
 0x356   : > { %2962 = vmatpush.msra.mxu2 %v7383_v31 }
 0x357   : > { %2771 = vmatpush.msrb.mxu1 %v7388_v24  ;;  %2803 = vmatpush.msrb.mxu3 %v7388_v24 }
 0x358   : > { %2963 = vmatpush.msra.mxu2 %v7388_v24 }
 0x359   : > { %2772 = vmatpush.msrb.mxu1 %v7393_v34  ;;  %2804 = vmatpush.msrb.mxu3 %v7393_v34 }
 0x35a   : > { %2964 = vmatpush.msra.mxu2 %v7393_v34 }
 0x35b   : > { %2773 = vmatpush.msrb.mxu1 %v7399_v52  ;;  %2805 = vmatpush.msrb.mxu3 %v7399_v52 }
 0x35c   : > { %2965 = vmatpush.msra.mxu2 %v7399_v52  ;;  %4899 = vmatmul.msk.f32.vlgmr.msrb.gmra.mxu1 %vm2549_vm3, %v2750_v21  ;;  %v684_v21 = vld [vmem:[%s9372_s6 + $0x110] sm:$0xff] }
 0x35d   : > { %4903 = vmatmul.msk.f32.vlgmr.msrb.gmra.mxu3 %vm2549_vm3, %v4901_v46  ;;  %2830 = vmatpush.msra.mxu1 %v7366_v40  ;;  %v683_v46 = vld [vmem:[%s9372_s6 + $0x108] sm:$0xff] }
 0x35e   : > { %2862 = vmatpush.msra.mxu3 %v7366_v40  ;;  %4923 = vmatmul.msk.f32.vlgmr.msra.gmra.mxu2 %vm2549_vm3, %v4921_v20  ;;  %v668_v20 = vld [vmem:[%s9372_s6 + $0x90] sm:$0xff] }
 0x35f   : > { %2831 = vmatpush.msra.mxu1 %v7368_v50  ;;  %3110 = vmatpush.msrb.mxu2 %v681_v42  ;;  %v705_v42 = vld [vmem:[%s9372_s6 + $0x1b8] sm:$0xff] }
 0x360   : > { %2863 = vmatpush.msra.mxu3 %v7368_v50 }
 0x361   : > { %2832 = vmatpush.msra.mxu1 %v7373_v30  ;;  %3111 = vmatpush.msrb.mxu2 %v680_v16  ;;  %v703_v16 = vld [vmem:[%s9372_s6 + $0x1a8] sm:$0xff] }
 0x362   : > { %2864 = vmatpush.msra.mxu3 %v7373_v30 }
 0x363   : > { %2833 = vmatpush.msra.mxu1 %v7378_v41  ;;  %3112 = vmatpush.msrb.mxu2 %v679_v3  ;;  %v721_v3 = vld [vmem:[%s9372_s6 + $0x238] sm:$0xff] }
 0x364   : > { %2865 = vmatpush.msra.mxu3 %v7378_v41  ;;  %4900 = vmatmul.msk.f32.gmra.mxu1 %vm2549_vm3, %v2751_v62 }
 0x365   : > { %4904 = vmatmul.msk.f32.gmra.mxu3 %vm2549_vm3, %v4902_v8  ;;  %2834 = vmatpush.msra.mxu1 %v7383_v31  ;;  %v656_v8 = vld [vmem:[%s9372_s6 + $0x30] sm:$0xff] }
 0x366   : > { %2866 = vmatpush.msra.mxu3 %v7383_v31  ;;  %4924 = vmatmul.msk.f32.gmra.mxu2 %vm2549_vm3, %v4922_v27  ;;  %v650_v27 = vld [vmem:[%s9372_s6] sm:$0xff] }
 0x367   : > { %2835 = vmatpush.msra.mxu1 %v7388_v24  ;;  %3113 = vmatpush.msrb.mxu2 %v678_v38  ;;  %v720_v38 = vld [vmem:[%s9372_s6 + $0x230] sm:$0xff] }
 0x368   : > { %2867 = vmatpush.msra.mxu3 %v7388_v24 }
 0x369   : > { %2836 = vmatpush.msra.mxu1 %v7393_v34  ;;  %3114 = vmatpush.msrb.mxu2 %v677_v43  ;;  %v718_v43 = vld [vmem:[%s9372_s6 + $0x220] sm:$0xff] }
 0x36a   : > { %2868 = vmatpush.msra.mxu3 %v7393_v34 }
 0x36b   : > { %2837 = vmatpush.msra.mxu1 %v7399_v52  ;;  %3115 = vmatpush.msrb.mxu2 %v676_v29 }
 0x36c   : > { %2869 = vmatpush.msra.mxu3 %v7399_v52  ;;  %4907 = vmatmul.msk.f32.vlgmr.msra.gmra.mxu1 %vm2549_vm3, %v4905_v35  ;;  %v672_v35 = vld [vmem:[%s9372_s6 + $0xb0] sm:$0xff] }
 0x36d   : > { %2894 = vmatpush.msrb.mxu1 %v7366_v40  ;;  %4911 = vmatmul.msk.f32.vlgmr.msra.gmra.mxu3 %vm2549_vm3, %v4909_v5  ;;  %v682_v5 = vld [vmem:[%s9372_s6 + $0x100] sm:$0xff] }
 0x36e   : > { %2926 = vmatpush.msrb.mxu3 %v7366_v40  ;;  %3116 = vmatpush.msrb.mxu2 %v675_v2 }
 0x36f   : > { %2895 = vmatpush.msrb.mxu1 %v7368_v50 }
 0x370   : > { %2927 = vmatpush.msrb.mxu3 %v7368_v50  ;;  %3117 = vmatpush.msrb.mxu2 %v674_v57  ;;  %v3235_v57 = vld [vmem:[%s9374_s8 + $0xf0] sm:$0xff] }
 0x371   : > { %2896 = vmatpush.msrb.mxu1 %v7373_v30 }
 0x372   : > { %2928 = vmatpush.msrb.mxu3 %v7373_v30  ;;  %3118 = vmatpush.msrb.mxu2 %v673_v51  ;;  %v4966_v51 = vld [vmem:[%s9374_s8 + $0x1f8] sm:$0xff] }
 0x373   : > { %2897 = vmatpush.msrb.mxu1 %v7378_v41 }
 0x374   : > { %2929 = vmatpush.msrb.mxu3 %v7378_v41  ;;  %4908 = vmatmul.msk.f32.gmra.mxu1 %vm2549_vm3, %v4906_v33  ;;  %v655_v33 = vld [vmem:[%s9372_s6 + $0x28] sm:$0xff] }
 0x375   : > { %2898 = vmatpush.msrb.mxu1 %v7383_v31  ;;  %4912 = vmatmul.msk.f32.gmra.mxu3 %vm2549_vm3, %v4910_v19  ;;  %v671_v19 = vld [vmem:[%s9372_s6 + $0xa8] sm:$0xff] }
 0x376   : > { %2930 = vmatpush.msrb.mxu3 %v7383_v31  ;;  %3119 = vmatpush.msrb.mxu2 %v672_v35  ;;  %v3227_v35 = vld [vmem:[%s9374_s8 + $0xb0] sm:$0xff] }
 0x377   : > { %2899 = vmatpush.msrb.mxu1 %v7388_v24 }
 0x378   : > { %2931 = vmatpush.msrb.mxu3 %v7388_v24  ;;  %3120 = vmatpush.msrb.mxu2 %v671_v19  ;;  %v4958_v19 = vld [vmem:[%s9374_s8 + $0x1b8] sm:$0xff] }
 0x379   : > { %2900 = vmatpush.msrb.mxu1 %v7393_v34 }
 0x37a   : > { %2932 = vmatpush.msrb.mxu3 %v7393_v34 }
 0x37b   : > { %2901 = vmatpush.msrb.mxu1 %v7399_v52 }
 0x37c   : > { %2933 = vmatpush.msrb.mxu3 %v7399_v52  ;;  %4915 = vmatmul.msk.f32.vlgmr.msrb.gmra.mxu1 %vm2549_vm3, %v4913_v39  ;;  %v654_v39 = vld [vmem:[%s9372_s6 + $0x20] sm:$0xff] }
 0x37d   : > { %2990 = vmatpush.msra.mxu1 %v7366_v40  ;;  %4919 = vmatmul.msk.f32.vlgmr.msrb.gmra.mxu3 %vm2549_vm3, %v4917_v0  ;;  %v670_v0 = vld [vmem:[%s9372_s6 + $0xa0] sm:$0xff] }
 0x37e   : > { %3022 = vmatpush.msra.mxu3 %v7366_v40  ;;  %v659_v40 = vld [vmem:[%s9372_s6 + $0x48] sm:$0xff]  ;;  %3121 = vmatpush.msrb.mxu2 %v670_v0 }
 0x37f   : > { %2991 = vmatpush.msra.mxu1 %v7368_v50  ;;  %3093 = vmatpush.msra.mxu0 %v659_v40  ;;  %v715_v40 = vld [vmem:[%s9372_s6 + $0x208] sm:$0xff] }
 0x380   : > { %3023 = vmatpush.msra.mxu3 %v7368_v50  ;;  %v658_v50 = vld [vmem:[%s9372_s6 + $0x40] sm:$0xff] }
 0x381   : > { %2992 = vmatpush.msra.mxu1 %v7373_v30  ;;  %3094 = vmatpush.msra.mxu0 %v658_v50  ;;  %v714_v50 = vld [vmem:[%s9372_s6 + $0x200] sm:$0xff] }
 0x382   : > { %3024 = vmatpush.msra.mxu3 %v7373_v30  ;;  %v657_v30 = vld [vmem:[%s9372_s6 + $0x38] sm:$0xff] }
 0x383   : > { %2993 = vmatpush.msra.mxu1 %v7378_v41  ;;  %3095 = vmatpush.msra.mxu0 %v657_v30  ;;  %v4965_v30 = vld [vmem:[%s9374_s8 + $0x1f0] sm:$0xff] }
 0x384   : > { %3025 = vmatpush.msra.mxu3 %v7378_v41  ;;  %4916 = vmatmul.msk.f32.gmra.mxu1 %vm2549_vm3, %v4914_v63  ;;  %v687_v41 = vld [vmem:[%s9372_s6 + $0x128] sm:$0xff]  ;;  %v713_v63 = vld [vmem:[%s9372_s6 + $0x1f8] sm:$0xff] }
 0x385   : > { %2994 = vmatpush.msra.mxu1 %v7383_v31  ;;  %4920 = vmatmul.msk.f32.gmra.mxu3 %vm2549_vm3, %v4918_v55  ;;  %v653_v55 = vld [vmem:[%s9372_s6 + $0x18] sm:$0xff] }
 0x386   : > { %3026 = vmatpush.msra.mxu3 %v7383_v31  ;;  %v686_v31 = vld [vmem:[%s9372_s6 + $0x120] sm:$0xff]  ;;  %3096 = vmatpush.msra.mxu0 %v656_v8  ;;  %v4960_v8 = vld [vmem:[%s9374_s8 + $0x1c8] sm:$0xff] }
 0x387   : > { %2995 = vmatpush.msra.mxu1 %v7388_v24 }
 0x388   : > { %3027 = vmatpush.msra.mxu3 %v7388_v24  ;;  %3097 = vmatpush.msra.mxu0 %v655_v33  ;;  %v4957_v33 = vld [vmem:[%s9374_s8 + $0x1b0] sm:$0xff] }
 0x389   : > { %2996 = vmatpush.msra.mxu1 %v7393_v34 }
 0x38a   : > { %3028 = vmatpush.msra.mxu3 %v7393_v34  ;;  %3098 = vmatpush.msra.mxu0 %v654_v39  ;;  %v3225_v39 = vld [vmem:[%s9374_s8 + $0xa0] sm:$0xff] }
 0x38b   : > { %2997 = vmatpush.msra.mxu1 %v7399_v52 }
 0x38c   : > { %3029 = vmatpush.msra.mxu3 %v7399_v52  ;;  %4927 = vmatmul.msk.f32.vlgmr.msra.gmra.mxu1 %vm2549_vm3, %v4925_v1  ;;  %v685_v52 = vld [vmem:[%s9372_s6 + $0x118] sm:$0xff] }
 0x38d   : > { %4931 = vmatmul.msk.f32.vlgmr.msra.gmra.mxu3 %vm2549_vm3, %v4929_v10  ;;  %3133 = vmatpush.msrb.mxu1 %v697_v12  ;;  %v669_v1 = vld [vmem:[%s9372_s6 + $0x98] sm:$0xff]  ;;  %v667_v10 = vld [vmem:[%s9372_s6 + $0x88] sm:$0xff] }
 0x38e   : > { %3156 = vmatpush.msrb.mxu3 %v713_v63  ;;  %3099 = vmatpush.msra.mxu0 %v653_v55  ;;  %v709_v12 = vld [vmem:[%s9372_s6 + $0x1d8] sm:$0xff]  ;;  %v3226_v63 = vld [vmem:[%s9374_s8 + $0xa8] sm:$0xff] }
 0x38f   : > { %3134 = vmatpush.msrb.mxu1 %v696_v15  ;;  %3122 = vmatpush.msrb.mxu2 %v669_v1  ;;  %v708_v15 = vld [vmem:[%s9372_s6 + $0x1d0] sm:$0xff] }
 0x391   : > { %3135 = vmatpush.msrb.mxu1 %v695_v18  ;;  %3123 = vmatpush.msrb.mxu2 %v668_v20  ;;  %v707_v18 = vld [vmem:[%s9372_s6 + $0x1c8] sm:$0xff] }
 0x393   : > { %3136 = vmatpush.msrb.mxu1 %v694_v17  ;;  %3124 = vmatpush.msrb.mxu2 %v667_v10 }
 0x394   : > { %4928 = vmatmul.msk.f32.gmra.mxu1 %vm2549_vm3, %v4926_v59  ;;  %v652_v59 = vld [vmem:[%s9372_s6 + $0x10] sm:$0xff] }
 0x395   : > { %4932 = vmatmul.msk.f32.gmra.mxu3 %vm2549_vm3, %v4930_v28  ;;  %3137 = vmatpush.msrb.mxu1 %v693_v53  ;;  %v666_v28 = vld [vmem:[%s9372_s6 + $0x80] sm:$0xff] }
 0x396   : > { %3100 = vmatpush.msra.mxu0 %v652_v59  ;;  %3125 = vmatpush.msrb.mxu2 %v666_v28 }
 0x397   : > { %3138 = vmatpush.msrb.mxu1 %v692_v58  ;;  %v699_v58 = vld [vmem:[%s9372_s6 + $0x188] sm:$0xff] }
 0x398   : > { %3237 = vmatpush.msra.mxu2 %v3235_v57  ;;  %v4944_v57 = vld [vmem:[%s9374_s8 + $0x148] sm:$0xff] }
 0x399   : > { %3139 = vmatpush.msrb.mxu1 %v691_v23  ;;  %v717_v23 = vld [vmem:[%s9372_s6 + $0x218] sm:$0xff] }
 0x39b   : > { %3140 = vmatpush.msrb.mxu1 %v690_v4 }
 0x39d   : > { %3141 = vmatpush.msrb.mxu1 %v689_v48 }
 0x39f   : > { %3142 = vmatpush.msrb.mxu1 %v688_v45  ;;  %v3236_v45 = vld [vmem:[%s9374_s8 + $0xf8] sm:$0xff] }
 0x3a1   : > { %3143 = vmatpush.msrb.mxu1 %v687_v41  ;;  %v3231_v41 = vld [vmem:[%s9374_s8 + $0xd0] sm:$0xff] }
 0x3a3   : > { %3144 = vmatpush.msrb.mxu1 %v686_v31  ;;  %v4963_v31 = vld [vmem:[%s9374_s8 + $0x1e0] sm:$0xff] }
 0x3a5   : > { %3145 = vmatpush.msrb.mxu1 %v685_v52  ;;  %v3230_v52 = vld [vmem:[%s9374_s8 + $0xc8] sm:$0xff] }
 0x3a7   : > { %3146 = vmatpush.msrb.mxu1 %v684_v21  ;;  %v4961_v21 = vld [vmem:[%s9374_s8 + $0x1d0] sm:$0xff] }
 0x3a9   : > { %3147 = vmatpush.msrb.mxu1 %v683_v46  ;;  %v4962_v46 = vld [vmem:[%s9374_s8 + $0x1d8] sm:$0xff] }
 0x3ab   : > { %3148 = vmatpush.msrb.mxu1 %v682_v5  ;;  %v3228_v5 = vld [vmem:[%s9374_s8 + $0xb8] sm:$0xff] }
 0x3ad   : > { %3319 = vmatpush.msra.mxu1 %v4965_v30  ;;  %v4942_v30 = vld [vmem:[%s9374_s8 + $0x138] sm:$0xff] }
 0x3af   : > { %3320 = vmatpush.msra.mxu1 %v4963_v31  ;;  %v4940_v31 = vld [vmem:[%s9374_s8 + $0x128] sm:$0xff] }
 0x3b1   : > { %3321 = vmatpush.msra.mxu1 %v4961_v21  ;;  %v4938_v21 = vld [vmem:[%s9374_s8 + $0x118] sm:$0xff] }
 0x3d9   : > { %v7511_v60 = vpop.f32.mrf.mxu1 }
 0x3e0   : > { %v2807_v56 = vpop.f32.mrf.mxu3 }
 0x3e1   : > { %v7517_v11 = vpop.f32.mrf.mxu1  ;;  %v2967_v1 = vpop.f32.mrf.mxu2 }
 0x3e8   : > { %v7523_v14 = vpop.f32.mrf.mxu3 }
 0x3e9   : > { %v7528_v37 = vpop.f32.mrf.mxu1 }
 0x3f0   : > { %v2871_v36 = vpop.f32.mrf.mxu3 }
 0x3f1   : > { %v5451_v25 = vpack.i.bf16 %v2871_v36, %v2807_v56  ;;  %v7535_v6 = vpop.f32.mrf.mxu1  ;;  %v651_v56 = vld [vmem:[%s9372_s6 + $0x8] sm:$0xff] }
 0x3f2   : > { %3101 = vmatpush.msra.mxu0 %v651_v56  ;;  %v711_v36 = vld [vmem:[%s9372_s6 + $0x1e8] sm:$0xff] }
 0x3f3   : > { %5452 = vrot.lane.b32.xlu0 %v5451_v25, %s9458_s23  ;;  %v710_v25 = vld [vmem:[%s9372_s6 + $0x1e0] sm:$0xff] }
 0x3f4   : > { %3102 = vmatpush.msra.mxu0 %v650_v27  ;;  %v2970_v27 = vpop.f32.mrf.mxu2 }
 0x3f6   : > { %3187 = vmatpush.msrb.mxu0 %v721_v3  ;;  %v4951_v3 = vld [vmem:[%s9374_s8 + $0x180] sm:$0xff] }
 0x3f8   : > { %v7559_v47 = vpop.f32.mrf.mxu3  ;;  %3188 = vmatpush.msrb.mxu0 %v720_v38  ;;  %v3218_v38 = vld [vmem:[%s9374_s8 + $0x68] sm:$0xff] }
 0x3f9   : > { %v7567_v32 = vpop.f32.mrf.mxu1 }
 0x400   : > { %v2935_v54 = vpop.f32.mrf.mxu3 }
 0x401   : > { %3055 = vrot.lane.b32.xlu2 %v2935_v54, %s9458_s23  ;;  %v7603_v7 = vpop.f32.mrf.mxu1 }
 0x408   : > { %v2938_v26 = vpop.f32.mrf.mxu3 }
 0x409   : > { %3057 = vrot.lane.b32.xlu0 %v2938_v26, %s9458_s23  ;;  %v2999_v24 = vpop.f32.mrf.mxu1  ;;  %v3232_v26 = vld [vmem:[%s9374_s8 + $0xd8] sm:$0xff] }
 0x40a   : > { %v5456_v34 = vpack.i.bf16 %v2999_v24, %v7523_v14  ;;  %v712_v14 = vld [vmem:[%s9372_s6 + $0x1f0] sm:$0xff]  ;;  %v4964_v24 = vld [vmem:[%s9374_s8 + $0x1e8] sm:$0xff] }
 0x40b   : > { %3157 = vmatpush.msrb.mxu3 %v712_v14 }
 0x40c   : > { %5457 = vrot.lane.b32.xlu1 %v5456_v34, %s9458_s23  ;;  %v3229_v34 = vld [vmem:[%s9374_s8 + $0xc0] sm:$0xff] }
 0x40d   : > { %3158 = vmatpush.msrb.mxu3 %v711_v36 }
 0x40f   : > { %3159 = vmatpush.msrb.mxu3 %v710_v25 }
 0x410   : > { %v3031_v25 = vpop.f32.mrf.mxu3 }
 0x411   : > { %v3002_v62 = vpop.f32.mrf.mxu1  ;;  %3160 = vmatpush.msrb.mxu3 %v709_v12 }
 0x412   : > { %3065 = vrot.lane.b32.xlu2 %v3002_v62, %s9458_s23  ;;  %v4959_v62 = vld [vmem:[%s9374_s8 + $0x1c0] sm:$0xff] }
 0x413   : > { %3161 = vmatpush.msrb.mxu3 %v708_v15  ;;  %3322 = vmatpush.msra.mxu1 %v4959_v62  ;;  %v4998_v62 = vld [vmem:[%s9374_s8 + $0x2f8] sm:$0xff] }
 0x414   : > { %3049 = vrot.lane.b32.xlu1 %v7559_v47, %s9458_s23  ;;  %v702_v47 = vld [vmem:[%s9372_s6 + $0x1a0] sm:$0xff] }
 0x415   : > { %3162 = vmatpush.msrb.mxu3 %v707_v18  ;;  %3323 = vmatpush.msra.mxu1 %v4957_v33  ;;  %v3224_v18 = vld [vmem:[%s9374_s8 + $0x98] sm:$0xff]  ;;  %v4996_v33 = vld [vmem:[%s9374_s8 + $0x2e8] sm:$0xff] }
 0x417   : > { %3163 = vmatpush.msrb.mxu3 %v706_v22  ;;  %v4956_v22 = vld [vmem:[%s9374_s8 + $0x1a8] sm:$0xff] }
 0x418   : > { %v3034_v15 = vpop.f32.mrf.mxu3 }
 0x419   : > { %3164 = vmatpush.msrb.mxu3 %v705_v42  ;;  %v3221_v42 = vld [vmem:[%s9374_s8 + $0x80] sm:$0xff] }
 0x41b   : > { %3165 = vmatpush.msrb.mxu3 %v704_v44  ;;  %v3222_v44 = vld [vmem:[%s9374_s8 + $0x88] sm:$0xff] }
 0x41d   : > { %3166 = vmatpush.msrb.mxu3 %v703_v16  ;;  %v4953_v16 = vld [vmem:[%s9374_s8 + $0x190] sm:$0xff] }
 0x41f   : > { %3167 = vmatpush.msrb.mxu3 %v702_v47  ;;  %v4954_v47 = vld [vmem:[%s9374_s8 + $0x198] sm:$0xff] }
 0x421   : > { %3168 = vmatpush.msrb.mxu3 %v701_v13  ;;  %v3220_v13 = vld [vmem:[%s9374_s8 + $0x78] sm:$0xff] }
 0x423   : > { %3169 = vmatpush.msrb.mxu3 %v700_v49  ;;  %v3217_v49 = vld [vmem:[%s9374_s8 + $0x60] sm:$0xff] }
 0x425   : > { %3170 = vmatpush.msrb.mxu3 %v699_v58  ;;  %v4949_v58 = vld [vmem:[%s9374_s8 + $0x170] sm:$0xff] }
 0x427   : > { %3171 = vmatpush.msrb.mxu3 %v698_v9  ;;  %v3215_v9 = vld [vmem:[%s9374_s8 + $0x50] sm:$0xff] }
 0x429   : > { %3339 = vmatpush.msra.mxu3 %v4966_v51  ;;  %v3207_v51 = vld [vmem:[%s9374_s8 + $0x10] sm:$0xff] }
 0x42b   : > { %3340 = vmatpush.msra.mxu3 %v4964_v24  ;;  %v3205_v24 = vld [vmem:[%s9374_s8] sm:$0xff] }
 0x42d   : > { %3341 = vmatpush.msra.mxu3 %v4962_v46  ;;  %v4997_v46 = vld [vmem:[%s9374_s8 + $0x2f0] sm:$0xff] }
 0x42f   : > { %3342 = vmatpush.msra.mxu3 %v4960_v8  ;;  %v4935_v8 = vld [vmem:[%s9374_s8 + $0x100] sm:$0xff] }
 0x431   : > { %3343 = vmatpush.msra.mxu3 %v4958_v19  ;;  %v5029_v19 = vld [vmem:[%s9374_s8 + $0x3f0] sm:$0xff] }
 0x433   : > { %3344 = vmatpush.msra.mxu3 %v4956_v22  ;;  %v5020_v22 = vld [vmem:[%s9374_s8 + $0x3a8] sm:$0xff] }
 0x435   : > { %3345 = vmatpush.msra.mxu3 %v4954_v47  ;;  %v5018_v47 = vld [vmem:[%s9374_s8 + $0x398] sm:$0xff] }
 0x45b   : > { %v3056_v17 = vpop.permute.xlu2 %3055 }
 0x45c   : > { %v3073_v53 = vsel %vm2549_vm3, %v7567_v32, %v3056_v17  ;;  %v719_v32 = vld [vmem:[%s9372_s6 + $0x228] sm:$0xff]  ;;  %v3219_v17 = vld [vmem:[%s9374_s8 + $0x70] sm:$0xff] }
 0x45d   : > { %3149 = vmatmul.f32.vlgmr.msrb.gmra.mxu1 %v3073_v53  ;;  %3189 = vmatpush.msrb.mxu0 %v719_v32  ;;  %v4952_v53 = vld [vmem:[%s9374_s8 + $0x188] sm:$0xff]  ;;  %v4950_v32 = vld [vmem:[%s9374_s8 + $0x178] sm:$0xff] }
 0x45e   : > { %3346 = vmatpush.msra.mxu3 %v4952_v53  ;;  %v5016_v53 = vld [vmem:[%s9374_s8 + $0x388] sm:$0xff] }
 0x45f   : > { %3190 = vmatpush.msrb.mxu0 %v718_v43  ;;  %v3216_v43 = vld [vmem:[%s9374_s8 + $0x58] sm:$0xff] }
 0x460   : > { %3347 = vmatpush.msra.mxu3 %v4950_v32  ;;  %v5014_v32 = vld [vmem:[%s9374_s8 + $0x378] sm:$0xff] }
 0x461   : > { %3191 = vmatpush.msrb.mxu0 %v717_v23  ;;  %v4947_v23 = vld [vmem:[%s9374_s8 + $0x160] sm:$0xff] }
 0x463   : > { %3192 = vmatpush.msrb.mxu0 %v716_v61  ;;  %v4948_v61 = vld [vmem:[%s9374_s8 + $0x168] sm:$0xff] }
 0x464   : > { %3348 = vmatpush.msra.mxu3 %v4948_v61  ;;  %v5012_v61 = vld [vmem:[%s9374_s8 + $0x368] sm:$0xff] }
 0x465   : > { %v5453_v29 = vpop.permute.xlu0 %5452  ;;  %3193 = vmatpush.msrb.mxu0 %v715_v40  ;;  %v4946_v40 = vld [vmem:[%s9374_s8 + $0x158] sm:$0xff] }
 0x466   : > { %v5455_v54 = vunpack.i.h.bf16 %v5453_v29  ;;  %v5454_v4 = vunpack.i.l.bf16 %v5453_v29  ;;  %v3213_v29 = vld [vmem:[%s9374_s8 + $0x40] sm:$0xff]  ;;  %3349 = vmatpush.msra.mxu3 %v4946_v40  ;;  %v5010_v40 = vld [vmem:[%s9374_s8 + $0x358] sm:$0xff] }
 0x467   : > { %3194 = vmatpush.msrb.mxu0 %v714_v50  ;;  %v4943_v50 = vld [vmem:[%s9374_s8 + $0x140] sm:$0xff] }
 0x468   : > { %v3069_v2 = vsel %vm2549_vm3, %v7511_v60, %v5454_v4  ;;  %v3071_v48 = vsel %vm2549_vm3, %v7528_v37, %v5455_v54  ;;  %v3233_v60 = vld [vmem:[%s9374_s8 + $0xe0] sm:$0xff]  ;;  %v3234_v37 = vld [vmem:[%s9374_s8 + $0xe8] sm:$0xff]  ;;  %v4945_v4 = vld [vmem:[%s9374_s8 + $0x150] sm:$0xff]  ;;  %3350 = vmatpush.msra.mxu3 %v4944_v57 }
 0x469   : > { %3103 = vmatmul.f32.vlgmr.msra.gmra.mxu0 %v3069_v2  ;;  %3126 = vmatmul.f32.vlgmr.msrb.gmra.mxu2 %v3071_v48  ;;  %v3214_v54 = vld [vmem:[%s9374_s8 + $0x48] sm:$0xff]  ;;  %v3211_v2 = vld [vmem:[%s9374_s8 + $0x30] sm:$0xff]  ;;  %v3212_v48 = vld [vmem:[%s9374_s8 + $0x38] sm:$0xff] }
 0x46a   : > { %3257 = vmatpush.msra.mxu0 %v3236_v45  ;;  %3238 = vmatpush.msra.mxu2 %v3233_v60  ;;  %v3209_v45 = vld [vmem:[%s9374_s8 + $0x20] sm:$0xff]  ;;  %v3210_v60 = vld [vmem:[%s9374_s8 + $0x28] sm:$0xff] }
 0x46b   : > { %3351 = vmatpush.msra.mxu3 %v4942_v30  ;;  %v5008_v57 = vld [vmem:[%s9374_s8 + $0x348] sm:$0xff]  ;;  %v5006_v30 = vld [vmem:[%s9374_s8 + $0x338] sm:$0xff] }
 0x46c   : > { %3258 = vmatpush.msra.mxu0 %v3234_v37  ;;  %3239 = vmatpush.msra.mxu2 %v3231_v41  ;;  %v3066_v28 = vpop.permute.xlu2 %3065  ;;  %v4941_v37 = vld [vmem:[%s9374_s8 + $0x130] sm:$0xff]  ;;  %v3208_v41 = vld [vmem:[%s9374_s8 + $0x18] sm:$0xff] }
 0x46d   : > { %v3076_v12 = vsel %vm2549_vm3, %v2970_v27, %v3066_v28  ;;  %3352 = vmatpush.msra.mxu3 %v4940_v31  ;;  %v4990_v27 = vld [vmem:[%s9374_s8 + $0x2b8] sm:$0xff]  ;;  %v5023_v28 = vld [vmem:[%s9374_s8 + $0x3c0] sm:$0xff]  ;;  %v5004_v31 = vld [vmem:[%s9374_s8 + $0x328] sm:$0xff] }
 0x46e   : > { %3259 = vmatpush.msra.mxu0 %v3232_v26  ;;  %3240 = vmatpush.msra.mxu2 %v3229_v34  ;;  %v4939_v26 = vld [vmem:[%s9374_s8 + $0x120] sm:$0xff]  ;;  %v3206_v34 = vld [vmem:[%s9374_s8 + $0x8] sm:$0xff] }
 0x46f   : > { %3353 = vmatpush.msra.mxu3 %v4938_v21  ;;  %v5002_v21 = vld [vmem:[%s9374_s8 + $0x318] sm:$0xff] }
 0x470   : > { %3260 = vmatpush.msra.mxu0 %v3230_v52  ;;  %3241 = vmatpush.msra.mxu2 %v3227_v35  ;;  %v4937_v52 = vld [vmem:[%s9374_s8 + $0x110] sm:$0xff]  ;;  %v4936_v35 = vld [vmem:[%s9374_s8 + $0x108] sm:$0xff] }
 0x471   : > { %3354 = vmatpush.msra.mxu3 %v4936_v35  ;;  %v5462_v35 = vld [vmem:[%s9373_s7] ss:$0 sm:$0xff] }
 0x472   : > { %3261 = vmatpush.msra.mxu0 %v3228_v5  ;;  %3242 = vmatpush.msra.mxu2 %v3225_v39  ;;  %v4995_v5 = vld [vmem:[%s9374_s8 + $0x2e0] sm:$0xff]  ;;  %v5030_v39 = vld [vmem:[%s9374_s8 + $0x3f8] sm:$0xff] }
 0x474   : > { %3262 = vmatpush.msra.mxu0 %v3226_v63  ;;  %v4994_v63 = vld [vmem:[%s9374_s8 + $0x2d8] sm:$0xff] }
 0x476   : > { %3263 = vmatpush.msra.mxu0 %v3224_v18  ;;  %v4986_v18 = vld [vmem:[%s9374_s8 + $0x298] sm:$0xff] }
 0x478   : > { %3264 = vmatpush.msra.mxu0 %v3222_v44  ;;  %v4984_v44 = vld [vmem:[%s9374_s8 + $0x288] sm:$0xff] }
 0x47a   : > { %3265 = vmatpush.msra.mxu0 %v3220_v13  ;;  %v4982_v13 = vld [vmem:[%s9374_s8 + $0x278] sm:$0xff] }
 0x47b   : > { %v3058_v0 = vpop.permute.xlu0 %3057 }
 0x47c   : > { %v3074_v55 = vsel %vm2549_vm3, %v7603_v7, %v3058_v0  ;;  %3266 = vmatpush.msra.mxu0 %v3218_v38  ;;  %v4993_v0 = vld [vmem:[%s9374_s8 + $0x2d0] sm:$0xff]  ;;  %v4980_v38 = vld [vmem:[%s9374_s8 + $0x268] sm:$0xff] }
 0x47d   : > { %3152 = vmatmul.f32.gmra.mxu1 %v3074_v55  ;;  %v5027_v55 = vld [vmem:[%s9374_s8 + $0x3e0] sm:$0xff] }
 0x47e   : > { %v5458_v59 = vpop.permute.xlu1 %5457  ;;  %3267 = vmatpush.msra.mxu0 %v3216_v43  ;;  %v4978_v43 = vld [vmem:[%s9374_s8 + $0x258] sm:$0xff] }
 0x47f   : > { %v5460_v20 = vunpack.i.h.bf16 %v5458_v59  ;;  %v5459_v56 = vunpack.i.l.bf16 %v5458_v59  ;;  %v4991_v59 = vld [vmem:[%s9374_s8 + $0x2c0] sm:$0xff] }
 0x480   : > { %3268 = vmatpush.msra.mxu0 %v3214_v54  ;;  %v4976_v54 = vld [vmem:[%s9374_s8 + $0x248] sm:$0xff] }
 0x481   : > { %v3075_v10 = vsel %vm2549_vm3, %v2967_v1, %v5460_v20  ;;  %v3070_v14 = vsel %vm2549_vm3, %v7517_v11, %v5459_v56  ;;  %v3223_v11 = vld [vmem:[%s9374_s8 + $0x90] sm:$0xff]  ;;  %v5028_v1 = vld [vmem:[%s9374_s8 + $0x3e8] sm:$0xff] }
 0x482   : > { %3106 = vmatmul.f32.gmra.mxu0 %v3070_v14  ;;  %3172 = vmatmul.f32.vlgmr.msrb.gmra.mxu3 %v3075_v10  ;;  %v4992_v20 = vld [vmem:[%s9374_s8 + $0x2c8] sm:$0xff]  ;;  %v5025_v56 = vld [vmem:[%s9374_s8 + $0x3d0] sm:$0xff]  ;;  %v5026_v10 = vld [vmem:[%s9374_s8 + $0x3d8] sm:$0xff] }
 0x483   : > { %3243 = vmatpush.msra.mxu2 %v3223_v11  ;;  %3269 = vmatpush.msra.mxu0 %v3212_v48  ;;  %v4989_v14 = vld [vmem:[%s9374_s8 + $0x2b0] sm:$0xff]  ;;  %v4974_v48 = vld [vmem:[%s9374_s8 + $0x238] sm:$0xff] }
 0x484   : > { %3501 = vmatpush.msrb.mxu3 %v5030_v39  ;;  %v4985_v11 = vld [vmem:[%s9374_s8 + $0x290] sm:$0xff] }
 0x485   : > { %3244 = vmatpush.msra.mxu2 %v3221_v42  ;;  %3270 = vmatpush.msra.mxu0 %v3210_v60  ;;  %v4983_v42 = vld [vmem:[%s9374_s8 + $0x280] sm:$0xff]  ;;  %v4972_v60 = vld [vmem:[%s9374_s8 + $0x228] sm:$0xff] }
 0x486   : > { %v3050_v36 = vpop.permute.xlu1 %3049  ;;  %3502 = vmatpush.msrb.mxu3 %v5028_v1 }
 0x487   : > { %v3072_v7 = vsel %vm2549_vm3, %v7535_v6, %v3050_v36  ;;  %v4955_v6 = vld [vmem:[%s9374_s8 + $0x1a0] sm:$0xff]  ;;  %3245 = vmatpush.msra.mxu2 %v3219_v17  ;;  %3271 = vmatpush.msra.mxu0 %v3208_v41  ;;  %v5024_v36 = vld [vmem:[%s9374_s8 + $0x3c8] sm:$0xff]  ;;  %v4981_v17 = vld [vmem:[%s9374_s8 + $0x270] sm:$0xff] }
 0x488   : > { %3129 = vmatmul.f32.gmra.mxu2 %v3072_v7  ;;  %3324 = vmatpush.msra.mxu1 %v4955_v6  ;;  %v4987_v7 = vld [vmem:[%s9374_s8 + $0x2a0] sm:$0xff]  ;;  %v4970_v41 = vld [vmem:[%s9374_s8 + $0x218] sm:$0xff] }
 0x489   : > { %3246 = vmatpush.msra.mxu2 %v3217_v49  ;;  %3272 = vmatpush.msra.mxu0 %v3206_v34  ;;  %v5019_v6 = vld [vmem:[%s9374_s8 + $0x3a0] sm:$0xff]  ;;  %v4968_v34 = vld [vmem:[%s9374_s8 + $0x208] sm:$0xff] }
 0x48a   : > { %4933 = vmatmul.msk.f32.vlgmr.msrb.gmra.mxu0 %vm2549_vm3, %v3031_v25  ;;  %3175 = vmatmul.f32.gmra.mxu3 %v3076_v12  ;;  %v4988_v25 = vld [vmem:[%s9374_s8 + $0x2a8] sm:$0xff]  ;;  %v5021_v12 = vld [vmem:[%s9374_s8 + $0x3b0] sm:$0xff]  ;;  %v4979_v49 = vld [vmem:[%s9374_s8 + $0x260] sm:$0xff] }
 0x48b   : > { %3325 = vmatpush.msra.mxu1 %v4953_v16  ;;  %3247 = vmatpush.msra.mxu2 %v3215_v9  ;;  %v5017_v16 = vld [vmem:[%s9374_s8 + $0x390] sm:$0xff] }
 0x48c   : > { %3420 = vmatpush.msrb.mxu0 %v4998_v62  ;;  %3503 = vmatpush.msrb.mxu3 %v5026_v10  ;;  %v4977_v9 = vld [vmem:[%s9374_s8 + $0x250] sm:$0xff]  ;;  %v5000_v62 = vld [vmem:[%s9374_s8 + $0x308] sm:$0xff] }
 0x48d   : > { %3326 = vmatpush.msra.mxu1 %v4951_v3  ;;  %3248 = vmatpush.msra.mxu2 %v3213_v29  ;;  %v5015_v3 = vld [vmem:[%s9374_s8 + $0x380] sm:$0xff] }
 0x48e   : > { %3421 = vmatpush.msrb.mxu0 %v4996_v33  ;;  %3504 = vmatpush.msrb.mxu3 %v5024_v36  ;;  %v4975_v29 = vld [vmem:[%s9374_s8 + $0x240] sm:$0xff] }
 0x48f   : > { %3327 = vmatpush.msra.mxu1 %v4949_v58  ;;  %3249 = vmatpush.msra.mxu2 %v3211_v2  ;;  %v5013_v58 = vld [vmem:[%s9374_s8 + $0x370] sm:$0xff]  ;;  %v5059_v36 = vld [vmem:[%s9374_s8 + $0x4e0] sm:$0xff] }
 0x490   : > { %3422 = vmatpush.msrb.mxu0 %v4994_v63  ;;  %v4973_v2 = vld [vmem:[%s9374_s8 + $0x230] sm:$0xff] }
 0x491   : > { %3328 = vmatpush.msra.mxu1 %v4947_v23  ;;  %3250 = vmatpush.msra.mxu2 %v3209_v45  ;;  %v5011_v23 = vld [vmem:[%s9374_s8 + $0x360] sm:$0xff] }
 0x492   : > { %4934 = vmatmul.msk.f32.gmra.mxu0 %vm2549_vm3, %v3034_v15  ;;  %v5022_v15 = vld [vmem:[%s9374_s8 + $0x3b8] sm:$0xff]  ;;  %v4971_v45 = vld [vmem:[%s9374_s8 + $0x220] sm:$0xff] }
 0x493   : > { %3329 = vmatpush.msra.mxu1 %v4945_v4  ;;  %3251 = vmatpush.msra.mxu2 %v3207_v51  ;;  %v5009_v4 = vld [vmem:[%s9374_s8 + $0x350] sm:$0xff] }
 0x494   : > { %3423 = vmatpush.msrb.mxu0 %v4992_v20  ;;  %3505 = vmatpush.msrb.mxu3 %v5022_v15  ;;  %v4969_v51 = vld [vmem:[%s9374_s8 + $0x210] sm:$0xff] }
 0x495   : > { %3330 = vmatpush.msra.mxu1 %v4943_v50  ;;  %3252 = vmatpush.msra.mxu2 %v3205_v24  ;;  %v5007_v50 = vld [vmem:[%s9374_s8 + $0x340] sm:$0xff]  ;;  %v5057_v15 = vld [vmem:[%s9374_s8 + $0x4d0] sm:$0xff] }
 0x496   : > { %3424 = vmatpush.msrb.mxu0 %v4990_v27  ;;  %3506 = vmatpush.msrb.mxu3 %v5020_v22  ;;  %v4967_v24 = vld [vmem:[%s9374_s8 + $0x200] sm:$0xff]  ;;  %v5062_v27 = vld [vmem:[%s9374_s8 + $0x4f8] sm:$0xff] }
 0x497   : > { %3331 = vmatpush.msra.mxu1 %v4941_v37  ;;  %3400 = vmatpush.msrb.mxu2 %v4997_v46  ;;  %v5005_v37 = vld [vmem:[%s9374_s8 + $0x330] sm:$0xff]  ;;  %v4999_v46 = vld [vmem:[%s9374_s8 + $0x300] sm:$0xff] }
 0x498   : > { %3425 = vmatpush.msrb.mxu0 %v4988_v25  ;;  %3507 = vmatpush.msrb.mxu3 %v5018_v47  ;;  %v5093_v25 = vld [vmem:[%s9374_s8 + $0x5f0] sm:$0xff]  ;;  %v5055_v22 = vld [vmem:[%s9374_s8 + $0x4c0] sm:$0xff] }
 0x499   : > { %3332 = vmatpush.msra.mxu1 %v4939_v26  ;;  %3401 = vmatpush.msrb.mxu2 %v4995_v5  ;;  %v5003_v26 = vld [vmem:[%s9374_s8 + $0x320] sm:$0xff] }
 0x49a   : > { %3426 = vmatpush.msrb.mxu0 %v4986_v18  ;;  %3508 = vmatpush.msrb.mxu3 %v5016_v53  ;;  %v5091_v18 = vld [vmem:[%s9374_s8 + $0x5e0] sm:$0xff]  ;;  %v5088_v53 = vld [vmem:[%s9374_s8 + $0x5c8] sm:$0xff] }
 0x49b   : > { %3333 = vmatpush.msra.mxu1 %v4937_v52  ;;  %3402 = vmatpush.msrb.mxu2 %v4993_v0  ;;  %v5001_v52 = vld [vmem:[%s9374_s8 + $0x310] sm:$0xff] }
 0x49c   : > { %3427 = vmatpush.msrb.mxu0 %v4984_v44  ;;  %3509 = vmatpush.msrb.mxu3 %v5014_v32  ;;  %v5089_v44 = vld [vmem:[%s9374_s8 + $0x5d0] sm:$0xff] }
 0x49d   : > { %3334 = vmatpush.msra.mxu1 %v4935_v8  ;;  %3403 = vmatpush.msrb.mxu2 %v4991_v59  ;;  %v5085_v32 = vld [vmem:[%s9374_s8 + $0x5b0] sm:$0xff] }
 0x49e   : > { %3428 = vmatpush.msrb.mxu0 %v4982_v13  ;;  %3510 = vmatpush.msrb.mxu3 %v5012_v61  ;;  %v5054_v13 = vld [vmem:[%s9374_s8 + $0x4b8] sm:$0xff]  ;;  %v5083_v61 = vld [vmem:[%s9374_s8 + $0x5a0] sm:$0xff] }
 0x49f   : > { %3481 = vmatpush.msrb.mxu1 %v5029_v19  ;;  %3404 = vmatpush.msrb.mxu2 %v4989_v14  ;;  %v5061_v14 = vld [vmem:[%s9374_s8 + $0x4f0] sm:$0xff] }
 0x4a0   : > { %3429 = vmatpush.msrb.mxu0 %v4980_v38  ;;  %3511 = vmatpush.msrb.mxu3 %v5010_v40  ;;  %v5051_v38 = vld [vmem:[%s9374_s8 + $0x4a0] sm:$0xff]  ;;  %v5081_v40 = vld [vmem:[%s9374_s8 + $0x590] sm:$0xff] }
 0x4a1   : > { %3482 = vmatpush.msrb.mxu1 %v5027_v55  ;;  %3405 = vmatpush.msrb.mxu2 %v4987_v7  ;;  %v5060_v7 = vld [vmem:[%s9374_s8 + $0x4e8] sm:$0xff] }
 0x4a2   : > { %3430 = vmatpush.msrb.mxu0 %v4978_v43  ;;  %3512 = vmatpush.msrb.mxu3 %v5008_v57  ;;  %v5049_v43 = vld [vmem:[%s9374_s8 + $0x490] sm:$0xff]  ;;  %v5079_v57 = vld [vmem:[%s9374_s8 + $0x580] sm:$0xff] }
 0x4a3   : > { %3483 = vmatpush.msrb.mxu1 %v5025_v56  ;;  %3406 = vmatpush.msrb.mxu2 %v4985_v11  ;;  %v5058_v11 = vld [vmem:[%s9374_s8 + $0x4d8] sm:$0xff] }
 0x4a4   : > { %3431 = vmatpush.msrb.mxu0 %v4976_v54  ;;  %3513 = vmatpush.msrb.mxu3 %v5006_v30  ;;  %v5047_v54 = vld [vmem:[%s9374_s8 + $0x480] sm:$0xff]  ;;  %v5077_v30 = vld [vmem:[%s9374_s8 + $0x570] sm:$0xff] }
 0x4a5   : > { %3484 = vmatpush.msrb.mxu1 %v5023_v28  ;;  %3407 = vmatpush.msrb.mxu2 %v4983_v42  ;;  %v5056_v42 = vld [vmem:[%s9374_s8 + $0x4c8] sm:$0xff] }
 0x4a6   : > { %3432 = vmatpush.msrb.mxu0 %v4974_v48  ;;  %3514 = vmatpush.msrb.mxu3 %v5004_v31  ;;  %v5045_v48 = vld [vmem:[%s9374_s8 + $0x470] sm:$0xff]  ;;  %v5075_v31 = vld [vmem:[%s9374_s8 + $0x560] sm:$0xff] }
 0x4a7   : > { %3485 = vmatpush.msrb.mxu1 %v5021_v12  ;;  %3408 = vmatpush.msrb.mxu2 %v4981_v17  ;;  %v5094_v12 = vld [vmem:[%s9374_s8 + $0x5f8] sm:$0xff]  ;;  %v5053_v17 = vld [vmem:[%s9374_s8 + $0x4b0] sm:$0xff] }
 0x4a8   : > { %3433 = vmatpush.msrb.mxu0 %v4972_v60  ;;  %3515 = vmatpush.msrb.mxu3 %v5002_v21  ;;  %v5043_v60 = vld [vmem:[%s9374_s8 + $0x460] sm:$0xff]  ;;  %v5073_v21 = vld [vmem:[%s9374_s8 + $0x550] sm:$0xff] }
 0x4a9   : > { %3486 = vmatpush.msrb.mxu1 %v5019_v6  ;;  %3409 = vmatpush.msrb.mxu2 %v4979_v49  ;;  %v5092_v6 = vld [vmem:[%s9374_s8 + $0x5e8] sm:$0xff] }
 0x4aa   : > { %3434 = vmatpush.msrb.mxu0 %v4970_v41  ;;  %3516 = vmatpush.msrb.mxu3 %v5000_v62  ;;  %v5041_v41 = vld [vmem:[%s9374_s8 + $0x450] sm:$0xff] }
 0x4ab   : > { %3487 = vmatpush.msrb.mxu1 %v5017_v16  ;;  %3410 = vmatpush.msrb.mxu2 %v4977_v9  ;;  %v5090_v16 = vld [vmem:[%s9374_s8 + $0x5d8] sm:$0xff]  ;;  %v5037_v62 = vld [vmem:[%s9374_s8 + $0x430] sm:$0xff] }
 0x4ac   : > { %3435 = vmatpush.msrb.mxu0 %v4968_v34  ;;  %v5086_v9 = vld [vmem:[%s9374_s8 + $0x5b8] sm:$0xff]  ;;  %v5039_v34 = vld [vmem:[%s9374_s8 + $0x440] sm:$0xff] }
 0x4ad   : > { %3488 = vmatpush.msrb.mxu1 %v5015_v3  ;;  %3411 = vmatpush.msrb.mxu2 %v4975_v29  ;;  %v5087_v3 = vld [vmem:[%s9374_s8 + $0x5c0] sm:$0xff]  ;;  %v5084_v29 = vld [vmem:[%s9374_s8 + $0x5a8] sm:$0xff] }
 0x4af   : > { %3489 = vmatpush.msrb.mxu1 %v5013_v58  ;;  %3412 = vmatpush.msrb.mxu2 %v4973_v2  ;;  %v5052_v58 = vld [vmem:[%s9374_s8 + $0x4a8] sm:$0xff]  ;;  %v5082_v2 = vld [vmem:[%s9374_s8 + $0x598] sm:$0xff] }
 0x4b1   : > { %3490 = vmatpush.msrb.mxu1 %v5011_v23  ;;  %3413 = vmatpush.msrb.mxu2 %v4971_v45  ;;  %v5050_v23 = vld [vmem:[%s9374_s8 + $0x498] sm:$0xff]  ;;  %v5080_v45 = vld [vmem:[%s9374_s8 + $0x588] sm:$0xff] }
 0x4b3   : > { %3491 = vmatpush.msrb.mxu1 %v5009_v4  ;;  %3414 = vmatpush.msrb.mxu2 %v4969_v51  ;;  %v5048_v4 = vld [vmem:[%s9374_s8 + $0x488] sm:$0xff]  ;;  %v5078_v51 = vld [vmem:[%s9374_s8 + $0x578] sm:$0xff] }
 0x4b5   : > { %3492 = vmatpush.msrb.mxu1 %v5007_v50  ;;  %3415 = vmatpush.msrb.mxu2 %v4967_v24  ;;  %v5046_v50 = vld [vmem:[%s9374_s8 + $0x478] sm:$0xff]  ;;  %v5076_v24 = vld [vmem:[%s9374_s8 + $0x568] sm:$0xff] }
 0x4b7   : > { %3493 = vmatpush.msrb.mxu1 %v5005_v37  ;;  %v5044_v37 = vld [vmem:[%s9374_s8 + $0x468] sm:$0xff] }
 0x4b9   : > { %3494 = vmatpush.msrb.mxu1 %v5003_v26  ;;  %v5042_v26 = vld [vmem:[%s9374_s8 + $0x458] sm:$0xff] }
 0x4bb   : > { %3495 = vmatpush.msrb.mxu1 %v5001_v52  ;;  %v5040_v52 = vld [vmem:[%s9374_s8 + $0x448] sm:$0xff] }
 0x4bd   : > { %3496 = vmatpush.msrb.mxu1 %v4999_v46  ;;  %v5074_v46 = vld [vmem:[%s9374_s8 + $0x558] sm:$0xff] }
 0x4da   : > { %v3150_v63 = vpop.f32.mrf.mxu1 }
 0x4e6   : > { %v3104_v8 = vpop.f32.mrf.mxu0 }
 0x4e7   : > { %v3105_v33 = vadd.f32 %v5462_v35, %v3104_v8  ;;  %v5038_v8 = vld [vmem:[%s9374_s8 + $0x438] sm:$0xff] }
 0x4ec   : > { %v3127_v5 = vpop.f32.mrf.mxu2 }
 0x4ed   : > { %v3128_v39 = vadd.f32 %v3127_v5, %v3105_v33  ;;  %v5072_v5 = vld [vmem:[%s9374_s8 + $0x548] sm:$0xff]  ;;  %v5035_v33 = vld [vmem:[%s9374_s8 + $0x420] sm:$0xff] }
 0x4ef   : > { %v3151_v55 = vadd.f32 %v3150_v63, %v3128_v39  ;;  %v5069_v39 = vld [vmem:[%s9374_s8 + $0x530] sm:$0xff]  ;;  %v5070_v63 = vld [vmem:[%s9374_s8 + $0x538] sm:$0xff] }
 0x4ff   : > { %v3107_v19 = vpop.f32.mrf.mxu0 }
 0x500   : > { %v8170_v0 = vadd.f32 %v5462_v35, %v3107_v19  ;;  %v5071_v35 = vld [vmem:[%s9374_s8 + $0x540] sm:$0xff]  ;;  %v5036_v19 = vld [vmem:[%s9374_s8 + $0x428] sm:$0xff] }
 0x505   : > { %v3173_v1 = vpop.f32.mrf.mxu3 }
 0x506   : > { %v3174_v59 = vadd.f32 %v3173_v1, %v3151_v55  ;;  %v5033_v55 = vld [vmem:[%s9374_s8 + $0x410] sm:$0xff]  ;;  %v5034_v1 = vld [vmem:[%s9374_s8 + $0x418] sm:$0xff] }
 0x507   : > { %v3196_v20 = vpop.f32.mrf.mxu0 }
 0x508   : > { %v3197_v56 = vadd.f32 %v3196_v20, %v3174_v59  ;;  %v5067_v59 = vld [vmem:[%s9374_s8 + $0x520] sm:$0xff]  ;;  %v5068_v20 = vld [vmem:[%s9374_s8 + $0x528] sm:$0xff] }
 0x50a   : > { %v8172_v10 = vmax.f32 %v3197_v56, 0.0  ;;  %v5031_v56 = vld [vmem:[%s9374_s8 + $0x400] sm:$0xff] }
 0x50c   : > { %3253 = vmatmul.f32.vlgmr.msra.gmra.mxu2 %v8172_v10  ;;  %3273 = vmatmul.f32.vlgmr.msra.gmra.mxu0 %v8172_v10  ;;  %v3317_v28 = vrot.slane %v8172_v10, 1  ;;  %v3398_v47 = vrot.slane %v8172_v10, 2  ;;  %v3479_v49 = vrot.slane %v8172_v10, 3 }
 0x50d   : > { %3562 = vmatpush.msra.mxu2 %v5061_v14  ;;  %3582 = vmatpush.msra.mxu0 %v5062_v27  ;;  %v5032_v14 = vld [vmem:[%s9374_s8 + $0x408] sm:$0xff]  ;;  %v5065_v27 = vld [vmem:[%s9374_s8 + $0x510] sm:$0xff] }
 0x50e   : > { %3335 = vmatmul.f32.vlgmr.msra.gmra.mxu1 %v3317_v28  ;;  %3355 = vmatmul.f32.vlgmr.msra.gmra.mxu3 %v3317_v28  ;;  %v5066_v28 = vld [vmem:[%s9374_s8 + $0x518] sm:$0xff] }
 0x50f   : > { %3563 = vmatpush.msra.mxu2 %v5059_v36  ;;  %3583 = vmatpush.msra.mxu0 %v5060_v7  ;;  %v3560_v36 = vrot.slane %v8172_v10, 4  ;;  %v5125_v7 = vld [vmem:[%s9374_s8 + $0x6f0] sm:$0xff] }
 0x510   : > { %3643 = vmatpush.msra.mxu1 %v5093_v25  ;;  %3663 = vmatpush.msra.mxu3 %v5094_v12  ;;  %v5126_v25 = vld [vmem:[%s9374_s8 + $0x6f8] sm:$0xff]  ;;  %v5063_v12 = vld [vmem:[%s9374_s8 + $0x500] sm:$0xff] }
 0x511   : > { %3564 = vmatpush.msra.mxu2 %v5057_v15  ;;  %3584 = vmatpush.msra.mxu0 %v5058_v11  ;;  %v5064_v15 = vld [vmem:[%s9374_s8 + $0x508] sm:$0xff]  ;;  %v3641_v11 = vrot.slane %v8172_v10, 5 }
 0x512   : > { %3644 = vmatpush.msra.mxu1 %v5091_v18  ;;  %3664 = vmatpush.msra.mxu3 %v5092_v6  ;;  %v5123_v18 = vld [vmem:[%s9374_s8 + $0x6e0] sm:$0xff]  ;;  %v5124_v6 = vld [vmem:[%s9374_s8 + $0x6e8] sm:$0xff] }
 0x513   : > { %3565 = vmatpush.msra.mxu2 %v5055_v22  ;;  %3585 = vmatpush.msra.mxu0 %v5056_v42  ;;  %v5157_v22 = vld [vmem:[%s9374_s8 + $0x7f0] sm:$0xff]  ;;  %v5158_v42 = vld [vmem:[%s9374_s8 + $0x7f8] sm:$0xff] }
 0x514   : > { %3645 = vmatpush.msra.mxu1 %v5089_v44  ;;  %3665 = vmatpush.msra.mxu3 %v5090_v16  ;;  %v5121_v44 = vld [vmem:[%s9374_s8 + $0x6d0] sm:$0xff]  ;;  %v5122_v16 = vld [vmem:[%s9374_s8 + $0x6d8] sm:$0xff] }
 0x515   : > { %3416 = vmatmul.f32.vlgmr.msrb.gmra.mxu2 %v3398_v47  ;;  %3436 = vmatmul.f32.vlgmr.msrb.gmra.mxu0 %v3398_v47  ;;  %v5155_v47 = vld [vmem:[%s9374_s8 + $0x7e0] sm:$0xff] }
 0x516   : > { %3566 = vmatpush.msra.mxu2 %v5053_v17  ;;  %3586 = vmatpush.msra.mxu0 %v5054_v13  ;;  %v5156_v17 = vld [vmem:[%s9374_s8 + $0x7e8] sm:$0xff]  ;;  %v5119_v13 = vld [vmem:[%s9374_s8 + $0x6c0] sm:$0xff] }
 0x517   : > { %3646 = vmatpush.msra.mxu1 %v5087_v3  ;;  %3666 = vmatpush.msra.mxu3 %v5088_v53  ;;  %v5120_v3 = vld [vmem:[%s9374_s8 + $0x6c8] sm:$0xff]  ;;  %v5153_v53 = vld [vmem:[%s9374_s8 + $0x7d0] sm:$0xff] }
 0x518   : > { %3497 = vmatmul.f32.vlgmr.msrb.gmra.mxu1 %v3479_v49  ;;  %3517 = vmatmul.f32.vlgmr.msrb.gmra.mxu3 %v3479_v49  ;;  %v5154_v49 = vld [vmem:[%s9374_s8 + $0x7d8] sm:$0xff] }
 0x519   : > { %3567 = vmatpush.msra.mxu2 %v5051_v38  ;;  %3587 = vmatpush.msra.mxu0 %v5052_v58  ;;  %v5117_v38 = vld [vmem:[%s9374_s8 + $0x6b0] sm:$0xff]  ;;  %v5118_v58 = vld [vmem:[%s9374_s8 + $0x6b8] sm:$0xff] }
 0x51a   : > { %3647 = vmatpush.msra.mxu1 %v5085_v32  ;;  %3667 = vmatpush.msra.mxu3 %v5086_v9  ;;  %v5151_v32 = vld [vmem:[%s9374_s8 + $0x7c0] sm:$0xff]  ;;  %v5152_v9 = vld [vmem:[%s9374_s8 + $0x7c8] sm:$0xff] }
 0x51b   : > { %3568 = vmatpush.msra.mxu2 %v5049_v43  ;;  %3588 = vmatpush.msra.mxu0 %v5050_v23  ;;  %v5115_v43 = vld [vmem:[%s9374_s8 + $0x6a0] sm:$0xff]  ;;  %v5116_v23 = vld [vmem:[%s9374_s8 + $0x6a8] sm:$0xff] }
 0x51c   : > { %3648 = vmatpush.msra.mxu1 %v5083_v61  ;;  %3668 = vmatpush.msra.mxu3 %v5084_v29  ;;  %v5149_v61 = vld [vmem:[%s9374_s8 + $0x7b0] sm:$0xff]  ;;  %v5150_v29 = vld [vmem:[%s9374_s8 + $0x7b8] sm:$0xff] }
 0x51d   : > { %3569 = vmatpush.msra.mxu2 %v5047_v54  ;;  %3589 = vmatpush.msra.mxu0 %v5048_v4  ;;  %v5113_v54 = vld [vmem:[%s9374_s8 + $0x690] sm:$0xff]  ;;  %v5114_v4 = vld [vmem:[%s9374_s8 + $0x698] sm:$0xff] }
 0x51e   : > { %3649 = vmatpush.msra.mxu1 %v5081_v40  ;;  %3669 = vmatpush.msra.mxu3 %v5082_v2  ;;  %v5147_v40 = vld [vmem:[%s9374_s8 + $0x7a0] sm:$0xff]  ;;  %v5148_v2 = vld [vmem:[%s9374_s8 + $0x7a8] sm:$0xff] }
 0x51f   : > { %3570 = vmatpush.msra.mxu2 %v5045_v48  ;;  %3590 = vmatpush.msra.mxu0 %v5046_v50  ;;  %v5111_v48 = vld [vmem:[%s9374_s8 + $0x680] sm:$0xff]  ;;  %v5112_v50 = vld [vmem:[%s9374_s8 + $0x688] sm:$0xff] }
 0x520   : > { %3650 = vmatpush.msra.mxu1 %v5079_v57  ;;  %3670 = vmatpush.msra.mxu3 %v5080_v45  ;;  %v5145_v57 = vld [vmem:[%s9374_s8 + $0x790] sm:$0xff]  ;;  %v5146_v45 = vld [vmem:[%s9374_s8 + $0x798] sm:$0xff] }
 0x521   : > { %3571 = vmatpush.msra.mxu2 %v5043_v60  ;;  %3591 = vmatpush.msra.mxu0 %v5044_v37  ;;  %v5109_v60 = vld [vmem:[%s9374_s8 + $0x670] sm:$0xff]  ;;  %v5110_v37 = vld [vmem:[%s9374_s8 + $0x678] sm:$0xff] }
 0x522   : > { %3651 = vmatpush.msra.mxu1 %v5077_v30  ;;  %3671 = vmatpush.msra.mxu3 %v5078_v51  ;;  %v5143_v30 = vld [vmem:[%s9374_s8 + $0x780] sm:$0xff]  ;;  %v5144_v51 = vld [vmem:[%s9374_s8 + $0x788] sm:$0xff] }
 0x523   : > { %3572 = vmatpush.msra.mxu2 %v5041_v41  ;;  %3592 = vmatpush.msra.mxu0 %v5042_v26  ;;  %v5107_v41 = vld [vmem:[%s9374_s8 + $0x660] sm:$0xff]  ;;  %v5108_v26 = vld [vmem:[%s9374_s8 + $0x668] sm:$0xff] }
 0x524   : > { %3652 = vmatpush.msra.mxu1 %v5075_v31  ;;  %3672 = vmatpush.msra.mxu3 %v5076_v24  ;;  %v5141_v31 = vld [vmem:[%s9374_s8 + $0x770] sm:$0xff]  ;;  %v5142_v24 = vld [vmem:[%s9374_s8 + $0x778] sm:$0xff] }
 0x525   : > { %3573 = vmatpush.msra.mxu2 %v5039_v34  ;;  %3593 = vmatpush.msra.mxu0 %v5040_v52  ;;  %v5105_v34 = vld [vmem:[%s9374_s8 + $0x650] sm:$0xff]  ;;  %v5106_v52 = vld [vmem:[%s9374_s8 + $0x658] sm:$0xff] }
 0x526   : > { %3653 = vmatpush.msra.mxu1 %v5073_v21  ;;  %3673 = vmatpush.msra.mxu3 %v5074_v46  ;;  %v5139_v21 = vld [vmem:[%s9374_s8 + $0x760] sm:$0xff]  ;;  %v5140_v46 = vld [vmem:[%s9374_s8 + $0x768] sm:$0xff] }
 0x527   : > { %3574 = vmatpush.msra.mxu2 %v5037_v62  ;;  %3594 = vmatpush.msra.mxu0 %v5038_v8  ;;  %v5103_v62 = vld [vmem:[%s9374_s8 + $0x640] sm:$0xff]  ;;  %v5104_v8 = vld [vmem:[%s9374_s8 + $0x648] sm:$0xff] }
 0x528   : > { %3654 = vmatpush.msra.mxu1 %v5071_v35  ;;  %3674 = vmatpush.msra.mxu3 %v5072_v5  ;;  %v5137_v35 = vld [vmem:[%s9374_s8 + $0x750] sm:$0xff]  ;;  %v5138_v5 = vld [vmem:[%s9374_s8 + $0x758] sm:$0xff] }
 0x529   : > { %3575 = vmatpush.msra.mxu2 %v5035_v33  ;;  %3595 = vmatpush.msra.mxu0 %v5036_v19  ;;  %v5101_v33 = vld [vmem:[%s9374_s8 + $0x630] sm:$0xff]  ;;  %v5102_v19 = vld [vmem:[%s9374_s8 + $0x638] sm:$0xff] }
 0x52a   : > { %3655 = vmatpush.msra.mxu1 %v5069_v39  ;;  %3675 = vmatpush.msra.mxu3 %v5070_v63  ;;  %v5135_v39 = vld [vmem:[%s9374_s8 + $0x740] sm:$0xff]  ;;  %v5136_v63 = vld [vmem:[%s9374_s8 + $0x748] sm:$0xff] }
 0x52b   : > { %3576 = vmatpush.msra.mxu2 %v5033_v55  ;;  %3596 = vmatpush.msra.mxu0 %v5034_v1  ;;  %v5099_v55 = vld [vmem:[%s9374_s8 + $0x620] sm:$0xff]  ;;  %v5100_v1 = vld [vmem:[%s9374_s8 + $0x628] sm:$0xff] }
 0x52c   : > { %3656 = vmatpush.msra.mxu1 %v5067_v59  ;;  %3676 = vmatpush.msra.mxu3 %v5068_v20  ;;  %v5133_v59 = vld [vmem:[%s9374_s8 + $0x730] sm:$0xff]  ;;  %v5134_v20 = vld [vmem:[%s9374_s8 + $0x738] sm:$0xff] }
 0x52d   : > { %3577 = vmatpush.msra.mxu2 %v5031_v56  ;;  %3597 = vmatpush.msra.mxu0 %v5032_v14  ;;  %v5097_v56 = vld [vmem:[%s9374_s8 + $0x610] sm:$0xff]  ;;  %v5098_v14 = vld [vmem:[%s9374_s8 + $0x618] sm:$0xff] }
 0x52e   : > { %3657 = vmatpush.msra.mxu1 %v5065_v27  ;;  %3677 = vmatpush.msra.mxu3 %v5066_v28  ;;  %v5131_v27 = vld [vmem:[%s9374_s8 + $0x720] sm:$0xff]  ;;  %v5132_v28 = vld [vmem:[%s9374_s8 + $0x728] sm:$0xff] }
 0x52f   : > { %3578 = vmatmul.f32.vlgmr.msra.gmra.mxu2 %v3560_v36  ;;  %3598 = vmatmul.f32.vlgmr.msra.gmra.mxu0 %v3560_v36  ;;  %v5095_v36 = vld [vmem:[%s9374_s8 + $0x600] sm:$0xff] }
 0x530   : > { %3724 = vmatpush.msrb.mxu2 %v5125_v7  ;;  %3744 = vmatpush.msrb.mxu0 %v5126_v25  ;;  %v5096_v7 = vld [vmem:[%s9374_s8 + $0x608] sm:$0xff]  ;;  %v5129_v25 = vld [vmem:[%s9374_s8 + $0x710] sm:$0xff] }
 0x531   : > { %3658 = vmatpush.msra.mxu1 %v5063_v12  ;;  %3678 = vmatpush.msra.mxu3 %v5064_v15  ;;  %v5130_v12 = vld [vmem:[%s9374_s8 + $0x718] sm:$0xff]  ;;  %v3722_v15 = vrot.slane %v8172_v10, 6 }
 0x532   : > { %3659 = vmatmul.f32.vlgmr.msra.gmra.mxu1 %v3641_v11  ;;  %3679 = vmatmul.f32.vlgmr.msra.gmra.mxu3 %v3641_v11  ;;  %v5189_v11 = vld [vmem:[%s9374_s8 + $0x8f0] sm:$0xff] }
 0x533   : > { %3725 = vmatpush.msrb.mxu2 %v5123_v18  ;;  %3745 = vmatpush.msrb.mxu0 %v5124_v6  ;;  %v5190_v18 = vld [vmem:[%s9374_s8 + $0x8f8] sm:$0xff]  ;;  %v5127_v6 = vld [vmem:[%s9374_s8 + $0x700] sm:$0xff] }
 0x534   : > { %3805 = vmatpush.msrb.mxu1 %v5157_v22  ;;  %3825 = vmatpush.msrb.mxu3 %v5158_v42  ;;  %v5128_v22 = vld [vmem:[%s9374_s8 + $0x708] sm:$0xff]  ;;  %v3803_v42 = vrot.slane %v8172_v10, 7  ;;  %v5185_v10 = vld [vmem:[%s9374_s8 + $0x8d0] sm:$0xff] }
 0x535   : > { %3726 = vmatpush.msrb.mxu2 %v5121_v44  ;;  %3746 = vmatpush.msrb.mxu0 %v5122_v16  ;;  %v5187_v44 = vld [vmem:[%s9374_s8 + $0x8e0] sm:$0xff]  ;;  %v5188_v16 = vld [vmem:[%s9374_s8 + $0x8e8] sm:$0xff] }
 0x536   : > { %3806 = vmatpush.msrb.mxu1 %v5155_v47  ;;  %3826 = vmatpush.msrb.mxu3 %v5156_v17  ;;  %v3932_v47 = vld [vmem:[%s9376_s10] sm:$0xff]  ;;  %v5186_v17 = vld [vmem:[%s9374_s8 + $0x8d8] sm:$0xff] }
 0x537   : > { %3727 = vmatpush.msrb.mxu2 %v5119_v13  ;;  %3747 = vmatpush.msrb.mxu0 %v5120_v3  ;;  %v5183_v13 = vld [vmem:[%s9374_s8 + $0x8c0] sm:$0xff]  ;;  %v5184_v3 = vld [vmem:[%s9374_s8 + $0x8c8] sm:$0xff] }
 0x538   : > { %3807 = vmatpush.msrb.mxu1 %v5153_v53  ;;  %3827 = vmatpush.msrb.mxu3 %v5154_v49  ;;  %v5181_v53 = vld [vmem:[%s9374_s8 + $0x8b0] sm:$0xff]  ;;  %v5182_v49 = vld [vmem:[%s9374_s8 + $0x8b8] sm:$0xff] }
 0x539   : > { %3728 = vmatpush.msrb.mxu2 %v5117_v38  ;;  %3748 = vmatpush.msrb.mxu0 %v5118_v58  ;;  %v3931_v38 = vld [vmem:[%s613_s21] sm:$0x1]  ;;  %s5477_s21 = sshra.s32 %s4550_s20, 4  ;;  %s5478_s21 = int_to_ptr.hbm [resolvable:$true] %s5477_s21 }
 0x53a   : > { %3808 = vmatpush.msrb.mxu1 %v5151_v32  ;;  %3828 = vmatpush.msrb.mxu3 %v5152_v9  ;;  %v5179_v58 = vld [vmem:[%s9374_s8 + $0x8a0] sm:$0xff]  ;;  %v5180_v32 = vld [vmem:[%s9374_s8 + $0x8a8] sm:$0xff]  ;;  %v5177_v9 = vld [vmem:[%s9374_s8 + $0x890] sm:$0xff]  ;;  %s5479_s23 = scalar_lea.hbm %s5478_s21, 1  ;;  %p5484_p0 = scmp.lt.s32.totalorder %s5478_s21, %s9385_s19 }
 0x53b   : > { %3729 = vmatpush.msrb.mxu2 %v5115_v43  ;;  %3749 = vmatpush.msrb.mxu0 %v5116_v23  ;;  %v5178_v43 = vld [vmem:[%s9374_s8 + $0x898] sm:$0xff]  ;;  %v3130_v23 = vpop.f32.mrf.mxu2  ;;  %p5480_p11 = scmp.ne.s32.totalorder %s5478_s21, %s5479_s23  ;;  %p5485_p1 = scmp.lt.s32.totalorder %s5483_s22, %s5479_s23 }
 0x53c   : > { %3809 = vmatpush.msrb.mxu1 %v5149_v61  ;;  %3829 = vmatpush.msrb.mxu3 %v5150_v29  ;;  %v5175_v61 = vld [vmem:[%s9374_s8 + $0x880] sm:$0xff]  ;;  %v5176_v29 = vld [vmem:[%s9374_s8 + $0x888] sm:$0xff] }
 0x53d   : > { %3730 = vmatpush.msrb.mxu2 %v5113_v54  ;;  %3750 = vmatpush.msrb.mxu0 %v5114_v4  ;;  %v3131_v54 = vadd.f32 %v3130_v23, %v8170_v0  ;;  %v5173_v4 = vld [vmem:[%s9374_s8 + $0x870] sm:$0xff]  ;;  %v4044_v23 = vld [vmem:[%s9380_s14 + $0x1d8] sm:$0xff]  ;;  %p5481_p12 = pnand %p5480_p11, %p5668_p5  ;;  %p5486_p2 = por %p5485_p1, %p5484_p0 }
 0x53e   : > { %3810 = vmatpush.msrb.mxu1 %v5147_v40  ;;  %3830 = vmatpush.msrb.mxu3 %v5148_v2  ;;  %v5174_v40 = vld [vmem:[%s9374_s8 + $0x878] sm:$0xff]  ;;  %v5171_v2 = vld [vmem:[%s9374_s8 + $0x860] sm:$0xff] }
 0x53f   : > { %3731 = vmatpush.msrb.mxu2 %v5111_v48  ;;  %3751 = vmatpush.msrb.mxu0 %v5112_v50  ;;  %v5172_v48 = vld [vmem:[%s9374_s8 + $0x868] sm:$0xff]  ;;  %v3153_v50 = vpop.f32.mrf.mxu1  ;;  %p5482_p13 = pneg %p5481_p12 }
 0x540   : > { %3811 = vmatpush.msrb.mxu1 %v5145_v57  ;;  %3831 = vmatpush.msrb.mxu3 %v5146_v45  ;;  %v3154_v0 = vadd.f32 %v3153_v50, %v3131_v54  ;;  %v5169_v57 = vld [vmem:[%s9374_s8 + $0x850] sm:$0xff]  ;;  %v5170_v45 = vld [vmem:[%s9374_s8 + $0x858] sm:$0xff] }
 0x541   : > { %3732 = vmatpush.msrb.mxu2 %v5109_v60  ;;  %3752 = vmatpush.msrb.mxu0 %v5110_v37  ;;  %v3176_v60 = vpop.f32.mrf.mxu3  ;;  %v5167_v37 = vld [vmem:[%s9374_s8 + $0x840] sm:$0xff]  ;;  %v4104_v54 = vld [vmem:[%s9380_s14 + $0x3b8] sm:$0xff]  ;;  %p5487_p3 = pnand %p5486_p2, %p5482_p13 }
 0x542   : > { %3812 = vmatpush.msrb.mxu1 %v5143_v30  ;;  %3832 = vmatpush.msrb.mxu3 %v5144_v51  ;;  %v5168_v30 = vld [vmem:[%s9374_s8 + $0x848] sm:$0xff]  ;;  %v3177_v51 = vadd.f32 %v3176_v60, %v3154_v0  ;;  %v4096_v50 = vld [vmem:[%s9380_s14 + $0x378] sm:$0xff] }
 0x543   : > { %3733 = vmatpush.msrb.mxu2 %v5107_v41  ;;  %3753 = vmatpush.msrb.mxu0 %v5108_v26  ;;  %v5165_v41 = vld [vmem:[%s9374_s8 + $0x830] sm:$0xff]  ;;  %v5166_v26 = vld [vmem:[%s9374_s8 + $0x838] sm:$0xff] }
 0x544   : > { %3813 = vmatpush.msrb.mxu1 %v5141_v31  ;;  %3833 = vmatpush.msrb.mxu3 %v5142_v24  ;;  %v3199_v31 = vpop.f32.mrf.mxu0  ;;  %v5163_v24 = vld [vmem:[%s9374_s8 + $0x820] sm:$0xff]  ;;  %v4024_v60 = vld [vmem:[%s9380_s14 + $0x138] sm:$0xff] }
 0x545   : > { %3734 = vmatpush.msrb.mxu2 %v5105_v34  ;;  %3754 = vmatpush.msrb.mxu0 %v5106_v52  ;;  %v5164_v34 = vld [vmem:[%s9374_s8 + $0x828] sm:$0xff]  ;;  %v3200_v52 = vadd.f32 %v3199_v31, %v3177_v51 }
 0x546   : > { %3814 = vmatpush.msrb.mxu1 %v5139_v21  ;;  %3834 = vmatpush.msrb.mxu3 %v5140_v46  ;;  %v5161_v21 = vld [vmem:[%s9374_s8 + $0x810] sm:$0xff]  ;;  %v5162_v46 = vld [vmem:[%s9374_s8 + $0x818] sm:$0xff] }
 0x547   : > { %3735 = vmatpush.msrb.mxu2 %v5103_v62  ;;  %3755 = vmatpush.msrb.mxu0 %v5104_v8  ;;  %v5159_v62 = vld [vmem:[%s9374_s8 + $0x800] sm:$0xff]  ;;  %v5160_v8 = vld [vmem:[%s9374_s8 + $0x808] sm:$0xff] }
 0x548   : > { %3815 = vmatpush.msrb.mxu1 %v5137_v35  ;;  %3835 = vmatpush.msrb.mxu3 %v5138_v5  ;;  %v3203_v35 = vmax.f32 %v3200_v52, 0.0  ;;  %v4046_v5 = vld [vmem:[%s9380_s14 + $0x1e8] sm:$0xff]  ;;  %v3933_v52 = vld [vmem:[%s9377_s11] sm:$0x1] }
 0x549   : > { %3736 = vmatpush.msrb.mxu2 %v5101_v33  ;;  %3756 = vmatpush.msrb.mxu0 %v5102_v19  ;;  %v4110_v33 = vld [vmem:[%s9380_s14 + $0x3e8] sm:$0xff] }
 0x54a   : > { %3816 = vmatpush.msrb.mxu1 %v5135_v39  ;;  %3836 = vmatpush.msrb.mxu3 %v5136_v63  ;;  %v4042_v19 = vld [vmem:[%s9380_s14 + $0x1c8] sm:$0xff] }
 0x54b   : > { %3737 = vmatpush.msrb.mxu2 %v5099_v55  ;;  %3757 = vmatpush.msrb.mxu0 %v5100_v1  ;;  %v4106_v39 = vld [vmem:[%s9380_s14 + $0x3c8] sm:$0xff] }
 0x54c   : > { %3817 = vmatpush.msrb.mxu1 %v5133_v59  ;;  %3837 = vmatpush.msrb.mxu3 %v5134_v20  ;;  %v4038_v63 = vld [vmem:[%s9380_s14 + $0x1a8] sm:$0xff] }
 0x54d   : > { %3738 = vmatpush.msrb.mxu2 %v5097_v56  ;;  %3758 = vmatpush.msrb.mxu0 %v5098_v14  ;;  %v4102_v55 = vld [vmem:[%s9380_s14 + $0x3a8] sm:$0xff] }
 0x54e   : > { %3818 = vmatpush.msrb.mxu1 %v5131_v27  ;;  %3838 = vmatpush.msrb.mxu3 %v5132_v28  ;;  %v4034_v1 = vld [vmem:[%s9380_s14 + $0x188] sm:$0xff] }
 0x54f   : > { %3739 = vmatpush.msrb.mxu2 %v5095_v36  ;;  %3759 = vmatpush.msrb.mxu0 %v5096_v7  ;;  %v4098_v59 = vld [vmem:[%s9380_s14 + $0x388] sm:$0xff] }
 0x550   : > { %3819 = vmatpush.msrb.mxu1 %v5129_v25  ;;  %3839 = vmatpush.msrb.mxu3 %v5130_v12  ;;  %v4030_v20 = vld [vmem:[%s9380_s14 + $0x168] sm:$0xff] }
 0x551   : > { %3740 = vmatmul.f32.vlgmr.msrb.gmra.mxu2 %v3722_v15  ;;  %3760 = vmatmul.f32.vlgmr.msrb.gmra.mxu0 %v3722_v15  ;;  %v4094_v56 = vld [vmem:[%s9380_s14 + $0x368] sm:$0xff] }
 0x552   : > { %3884 = vmatpush.msra.mxu2 %v5189_v11  ;;  %3904 = vmatpush.msra.mxu0 %v5190_v18  ;;  %v4026_v14 = vld [vmem:[%s9380_s14 + $0x148] sm:$0xff] }
 0x553   : > { %3820 = vmatpush.msrb.mxu1 %v5127_v6  ;;  %3840 = vmatpush.msrb.mxu3 %v5128_v22  ;;  %v4090_v27 = vld [vmem:[%s9380_s14 + $0x348] sm:$0xff] }
 0x554   : > { %3821 = vmatmul.f32.vlgmr.msrb.gmra.mxu1 %v3803_v42  ;;  %3841 = vmatmul.f32.vlgmr.msrb.gmra.mxu3 %v3803_v42  ;;  %v4022_v28 = vld [vmem:[%s9380_s14 + $0x128] sm:$0xff] }
 0x555   : > { %3885 = vmatpush.msra.mxu2 %v5187_v44  ;;  %3905 = vmatpush.msra.mxu0 %v5188_v16  ;;  %v4086_v36 = vld [vmem:[%s9380_s14 + $0x328] sm:$0xff] }
 0x556   : > { %3953 = vmatpush.msra.mxu1 %v3932_v47  ;;  %v4018_v7 = vld [vmem:[%s9380_s14 + $0x108] sm:$0xff]  ;;  %v3959_v47 = vld [vmem:[%s9378_s12] sm:$0xff] }
 0x557   : > { %3886 = vmatpush.msra.mxu2 %v5185_v10  ;;  %3906 = vmatpush.msra.mxu0 %v5186_v17  ;;  %v4082_v25 = vld [vmem:[%s9380_s14 + $0x308] sm:$0xff] }
 0x558   : > { %v4014_v12 = vld [vmem:[%s9380_s14 + $0xe8] sm:$0xff]  ;;  %3979 = vmatpush.msra.mxu3 %v3959_v47 }
 0x559   : > { %3887 = vmatpush.msra.mxu2 %v5183_v13  ;;  %3907 = vmatpush.msra.mxu0 %v5184_v3  ;;  %v4078_v15 = vld [vmem:[%s9380_s14 + $0x2e8] sm:$0xff] }
 0x55a   : > { %v4010_v18 = vld [vmem:[%s9380_s14 + $0xc8] sm:$0xff] }
 0x55b   : > { %3888 = vmatpush.msra.mxu2 %v5181_v53  ;;  %3908 = vmatpush.msra.mxu0 %v5182_v49  ;;  %v4074_v6 = vld [vmem:[%s9380_s14 + $0x2c8] sm:$0xff] }
 0x55c   : > { %5191 = vmatmul.msk.f32.vlgmr.msra.gmra.mxu1 %vm3934_vm5, %v3931_v38  ;;  %v4006_v22 = vld [vmem:[%s9380_s14 + $0xa8] sm:$0xff] }
 0x55d   : > { %3889 = vmatpush.msra.mxu2 %v5179_v58  ;;  %3909 = vmatpush.msra.mxu0 %v5180_v32  ;;  %v4070_v42 = vld [vmem:[%s9380_s14 + $0x2a8] sm:$0xff] }
 0x55e   : > { %v4002_v44 = vld [vmem:[%s9380_s14 + $0x88] sm:$0xff] }
 0x55f   : > { %3890 = vmatpush.msra.mxu2 %v5177_v9  ;;  %3910 = vmatpush.msra.mxu0 %v5178_v43  ;;  %v4066_v16 = vld [vmem:[%s9380_s14 + $0x288] sm:$0xff]  ;;  %v4048_v9 = vld [vmem:[%s9380_s14 + $0x1f8] sm:$0xff] }
 0x560   : > { %v3998_v10 = vld [vmem:[%s9380_s14 + $0x68] sm:$0xff]  ;;  %v4112_v43 = vld [vmem:[%s9380_s14 + $0x3f8] sm:$0xff] }
 0x561   : > { %3891 = vmatpush.msra.mxu2 %v5175_v61  ;;  %3911 = vmatpush.msra.mxu0 %v5176_v29  ;;  %v4062_v17 = vld [vmem:[%s9380_s14 + $0x268] sm:$0xff]  ;;  %v4108_v61 = vld [vmem:[%s9380_s14 + $0x3d8] sm:$0xff] }
 0x562   : > { %v3994_v13 = vld [vmem:[%s9380_s14 + $0x48] sm:$0xff]  ;;  %v4040_v29 = vld [vmem:[%s9380_s14 + $0x1b8] sm:$0xff] }
 0x563   : > { %3892 = vmatpush.msra.mxu2 %v5173_v4  ;;  %3912 = vmatpush.msra.mxu0 %v5174_v40  ;;  %v4058_v3 = vld [vmem:[%s9380_s14 + $0x248] sm:$0xff]  ;;  %v4036_v40 = vld [vmem:[%s9380_s14 + $0x198] sm:$0xff] }
 0x564   : > { %v3990_v53 = vld [vmem:[%s9380_s14 + $0x28] sm:$0xff] }
 0x565   : > { %3893 = vmatpush.msra.mxu2 %v5171_v2  ;;  %3913 = vmatpush.msra.mxu0 %v5172_v48  ;;  %v4054_v49 = vld [vmem:[%s9380_s14 + $0x228] sm:$0xff]  ;;  %v4100_v2 = vld [vmem:[%s9380_s14 + $0x398] sm:$0xff] }
 0x566   : > { %v3986_v58 = vld [vmem:[%s9380_s14 + $0x8] sm:$0xff]  ;;  %v4032_v48 = vld [vmem:[%s9380_s14 + $0x178] sm:$0xff] }
 0x567   : > { %3894 = vmatpush.msra.mxu2 %v5169_v57  ;;  %3914 = vmatpush.msra.mxu0 %v5170_v45  ;;  %v4050_v32 = vld [vmem:[%s9380_s14 + $0x208] sm:$0xff]  ;;  %v4028_v57 = vld [vmem:[%s9380_s14 + $0x158] sm:$0xff] }
 0x568   : > { %v4092_v45 = vld [vmem:[%s9380_s14 + $0x358] sm:$0xff] }
 0x569   : > { %3895 = vmatpush.msra.mxu2 %v5167_v37  ;;  %3915 = vmatpush.msra.mxu0 %v5168_v30  ;;  %v4088_v37 = vld [vmem:[%s9380_s14 + $0x338] sm:$0xff] }
 0x56b   : > { %3896 = vmatpush.msra.mxu2 %v5165_v41  ;;  %3916 = vmatpush.msra.mxu0 %v5166_v26  ;;  %v4020_v41 = vld [vmem:[%s9380_s14 + $0x118] sm:$0xff] }
 0x56c   : > { %v4084_v26 = vld [vmem:[%s9380_s14 + $0x318] sm:$0xff] }
 0x56d   : > { %3897 = vmatpush.msra.mxu2 %v5163_v24  ;;  %3917 = vmatpush.msra.mxu0 %v5164_v34  ;;  %v4016_v24 = vld [vmem:[%s9380_s14 + $0xf8] sm:$0xff] }
 0x56e   : > { %v4080_v34 = vld [vmem:[%s9380_s14 + $0x2f8] sm:$0xff] }
 0x56f   : > { %3898 = vmatpush.msra.mxu2 %v5161_v21  ;;  %3918 = vmatpush.msra.mxu0 %v5162_v46  ;;  %v4012_v21 = vld [vmem:[%s9380_s14 + $0xd8] sm:$0xff] }
 0x570   : > { %v4076_v46 = vld [vmem:[%s9380_s14 + $0x2d8] sm:$0xff] }
 0x571   : > { %3899 = vmatpush.msra.mxu2 %v5159_v62  ;;  %3919 = vmatpush.msra.mxu0 %v5160_v8 }
 0x572   : > { %3900 = vmatmul.f32.vlgmr.msra.gmra.mxu2 %v3203_v35  ;;  %3920 = vmatmul.f32.vlgmr.msra.gmra.mxu0 %v3203_v35  ;;  %v4008_v35 = vld [vmem:[%s9380_s14 + $0xb8] sm:$0xff] }
 0x573   : > { %4250 = vmatpush.msrb.mxu2 %v4046_v5  ;;  %4270 = vmatpush.msrb.mxu0 %v4110_v33  ;;  %v4072_v5 = vld [vmem:[%s9380_s14 + $0x2b8] sm:$0xff] }
 0x575   : > { %4251 = vmatpush.msrb.mxu2 %v4042_v19  ;;  %4271 = vmatpush.msrb.mxu0 %v4106_v39  ;;  %v4004_v39 = vld [vmem:[%s9380_s14 + $0x98] sm:$0xff] }
 0x577   : > { %4252 = vmatpush.msrb.mxu2 %v4038_v63  ;;  %4272 = vmatpush.msrb.mxu0 %v4102_v55  ;;  %v4068_v63 = vld [vmem:[%s9380_s14 + $0x298] sm:$0xff] }
 0x579   : > { %4253 = vmatpush.msrb.mxu2 %v4034_v1  ;;  %4273 = vmatpush.msrb.mxu0 %v4098_v59  ;;  %v4000_v59 = vld [vmem:[%s9380_s14 + $0x78] sm:$0xff] }
 0x57b   : > { %4254 = vmatpush.msrb.mxu2 %v4030_v20  ;;  %4274 = vmatpush.msrb.mxu0 %v4094_v56  ;;  %v4064_v20 = vld [vmem:[%s9380_s14 + $0x278] sm:$0xff] }
 0x57c   : > { %v3996_v56 = vld [vmem:[%s9380_s14 + $0x58] sm:$0xff] }
 0x57d   : > { %4255 = vmatpush.msrb.mxu2 %v4026_v14  ;;  %4275 = vmatpush.msrb.mxu0 %v4090_v27  ;;  %v4060_v14 = vld [vmem:[%s9380_s14 + $0x258] sm:$0xff] }
 0x57e   : > { %v3992_v27 = vld [vmem:[%s9380_s14 + $0x38] sm:$0xff] }
 0x57f   : > { %4256 = vmatpush.msrb.mxu2 %v4022_v28  ;;  %4276 = vmatpush.msrb.mxu0 %v4086_v36  ;;  %v4056_v28 = vld [vmem:[%s9380_s14 + $0x238] sm:$0xff] }
 0x581   : > { %4257 = vmatpush.msrb.mxu2 %v4018_v7  ;;  %4277 = vmatpush.msrb.mxu0 %v4082_v25  ;;  %v3988_v7 = vld [vmem:[%s9380_s14 + $0x18] sm:$0xff] }
 0x583   : > { %4258 = vmatpush.msrb.mxu2 %v4014_v12  ;;  %4278 = vmatpush.msrb.mxu0 %v4078_v15  ;;  %v4052_v15 = vld [vmem:[%s9380_s14 + $0x218] sm:$0xff] }
 0x585   : > { %4259 = vmatpush.msrb.mxu2 %v4010_v18  ;;  %4279 = vmatpush.msrb.mxu0 %v4074_v6  ;;  %v3204_v6 = vld [vmem:[%s9375_s9] sm:$0x3] }
 0x587   : > { %4260 = vmatpush.msrb.mxu2 %v4006_v22  ;;  %4280 = vmatpush.msrb.mxu0 %v4070_v42 }
 0x589   : > { %4261 = vmatpush.msrb.mxu2 %v4002_v44  ;;  %4281 = vmatpush.msrb.mxu0 %v4066_v16  ;;  %v3274_v0 = vpop.f32.mrf.mxu0  ;;  %v4117_v44 = vld [vmem:[%s9381_s15 + $0x20] sm:$0xff]  ;;  %v4118_v16 = vld [vmem:[%s9381_s15 + $0x28] sm:$0xff] }
 0x58a   : > { %v3279_v25 = vrot.slane %v3274_v0, 7  ;;  %4139 = vmatpush.msrb.mxu1 %v4117_v44  ;;  %4159 = vmatpush.msrb.mxu3 %v4118_v16  ;;  %v4005_v44 = vld [vmem:[%s9380_s14 + $0xa0] sm:$0xff] }
 0x58b   : > { %v8726_v11 = vpop.f32.mrf.mxu1  ;;  %4262 = vmatpush.msrb.mxu2 %v3998_v10  ;;  %4282 = vmatpush.msrb.mxu0 %v4062_v17  ;;  %v4069_v16 = vld [vmem:[%s9380_s14 + $0x2a0] sm:$0xff] }
 0x58d   : > { %4263 = vmatpush.msrb.mxu2 %v3994_v13  ;;  %4283 = vmatpush.msrb.mxu0 %v4058_v3 }
 0x58f   : > { %4264 = vmatpush.msrb.mxu2 %v3990_v53  ;;  %4284 = vmatpush.msrb.mxu0 %v4054_v49  ;;  %v3254_v31 = vpop.f32.mrf.mxu2 }
 0x590   : > { %v3280_v22 = vsel %vm845_vm0, %v3254_v31, %v3279_v25  ;;  %v4085_v25 = vld [vmem:[%s9380_s14 + $0x320] sm:$0xff] }
 0x591   : > { %4265 = vmatpush.msrb.mxu2 %v3986_v58  ;;  %4285 = vmatpush.msrb.mxu0 %v4050_v32  ;;  %v3356_v30 = vpop.f32.mrf.mxu3  ;;  %v3282_v13 = vadd.f32 %v3280_v22, %v3204_v6  ;;  %v4077_v6 = vld [vmem:[%s9380_s14 + $0x2e0] sm:$0xff] }
 0x592   : > { %v3437_v62 = vpop.f32.mrf.mxu0  ;;  %v3361_v12 = vrot.slane %v3356_v30, 7  ;;  %v4009_v22 = vld [vmem:[%s9380_s14 + $0xc0] sm:$0xff] }
 0x593   : > { %4330 = vmatpush.msra.mxu2 %v4048_v9  ;;  %4350 = vmatpush.msra.mxu0 %v4112_v43  ;;  %v3442_v10 = vrot.slane %v3437_v62, 7  ;;  %v4116_v62 = vld [vmem:[%s9381_s15 + $0x18] sm:$0xff] }
 0x594   : > { %v3362_v47 = vsel %vm845_vm0, %v8726_v11, %v3361_v12  ;;  %v4017_v12 = vld [vmem:[%s9380_s14 + $0x100] sm:$0xff] }
 0x595   : > { %v8767_v38 = vpop.f32.mrf.mxu1  ;;  %4331 = vmatpush.msra.mxu2 %v4044_v23  ;;  %4351 = vmatpush.msra.mxu0 %v4108_v61  ;;  %v3364_v53 = vadd.f32 %v3362_v47, %v3282_v13  ;;  %v4001_v47 = vld [vmem:[%s9380_s14 + $0x80] sm:$0xff] }
 0x596   : > { %v4061_v13 = vld [vmem:[%s9380_s14 + $0x260] sm:$0xff] }
 0x597   : > { %4332 = vmatpush.msra.mxu2 %v4040_v29  ;;  %4352 = vmatpush.msra.mxu0 %v4104_v54 }
 0x598   : > { %v3417_v1 = vpop.f32.mrf.mxu2 }
 0x599   : > { %4333 = vmatpush.msra.mxu2 %v4036_v40  ;;  %4353 = vmatpush.msra.mxu0 %v4100_v2  ;;  %v3443_v3 = vsel %vm845_vm0, %v3417_v1, %v3442_v10  ;;  %v4037_v1 = vld [vmem:[%s9380_s14 + $0x1a0] sm:$0xff] }
 0x59a   : > { %v3445_v43 = vadd.f32 %v3443_v3, %v3364_v53  ;;  %v4065_v10 = vld [vmem:[%s9380_s14 + $0x280] sm:$0xff] }
 0x59b   : > { %4334 = vmatpush.msra.mxu2 %v4032_v48  ;;  %4354 = vmatpush.msra.mxu0 %v4096_v50  ;;  %v3518_v19 = vpop.f32.mrf.mxu3  ;;  %v3993_v3 = vld [vmem:[%s9380_s14 + $0x40] sm:$0xff] }
 0x59c   : > { %v3523_v17 = vrot.slane %v3518_v19, 7  ;;  %v4045_v19 = vld [vmem:[%s9380_s14 + $0x1e0] sm:$0xff] }
 0x59d   : > { %4335 = vmatpush.msra.mxu2 %v4028_v57  ;;  %4355 = vmatpush.msra.mxu0 %v4092_v45  ;;  %v4057_v53 = vld [vmem:[%s9380_s14 + $0x240] sm:$0xff] }
 0x59e   : > { %v3524_v58 = vsel %vm845_vm0, %v8767_v38, %v3523_v17  ;;  %v3997_v17 = vld [vmem:[%s9380_s14 + $0x60] sm:$0xff] }
 0x59f   : > { %4336 = vmatpush.msra.mxu2 %v4024_v60  ;;  %4356 = vmatpush.msra.mxu0 %v4088_v37  ;;  %v3526_v29 = vadd.f32 %v3524_v58, %v3445_v43  ;;  %v4053_v58 = vld [vmem:[%s9380_s14 + $0x220] sm:$0xff]  ;;  %v4047_v43 = vld [vmem:[%s9380_s14 + $0x1f0] sm:$0xff] }
 0x5a1   : > { %4337 = vmatpush.msra.mxu2 %v4020_v41  ;;  %4357 = vmatpush.msra.mxu0 %v4084_v26 }
 0x5a3   : > { %4338 = vmatpush.msra.mxu2 %v4016_v24  ;;  %4358 = vmatpush.msra.mxu0 %v4080_v34  ;;  %v4114_v34 = vld [vmem:[%s9381_s15 + $0x8] sm:$0xff] }
 0x5a4   : > { %4160 = vmatpush.msrb.mxu3 %v4114_v34  ;;  %v4448_v34 = vld [vmem:[%s9383_s17 + $0x1e0] sm:$0xff] }
 0x5a5   : > { %4339 = vmatpush.msra.mxu2 %v4012_v21  ;;  %4359 = vmatpush.msra.mxu0 %v4076_v46  ;;  %v4120_v21 = vld [vmem:[%s9381_s15 + $0x38] sm:$0xff]  ;;  %v4115_v46 = vld [vmem:[%s9381_s15 + $0x10] sm:$0xff] }
 0x5a7   : > { %4340 = vmatpush.msra.mxu2 %v4008_v35  ;;  %4360 = vmatpush.msra.mxu0 %v4072_v5 }
 0x5a9   : > { %4341 = vmatpush.msra.mxu2 %v4004_v39  ;;  %4361 = vmatpush.msra.mxu0 %v4068_v63  ;;  %v4109_v39 = vld [vmem:[%s9380_s14 + $0x3e0] sm:$0xff] }
 0x5aa   : > { %v4041_v63 = vld [vmem:[%s9380_s14 + $0x1c0] sm:$0xff] }
 0x5ab   : > { %4342 = vmatpush.msra.mxu2 %v4000_v59  ;;  %4362 = vmatpush.msra.mxu0 %v4064_v20  ;;  %v4101_v59 = vld [vmem:[%s9380_s14 + $0x3a0] sm:$0xff] }
 0x5ac   : > { %v3599_v36 = vpop.f32.mrf.mxu0  ;;  %v4033_v20 = vld [vmem:[%s9380_s14 + $0x180] sm:$0xff] }
 0x5ad   : > { %4343 = vmatpush.msra.mxu2 %v3996_v56  ;;  %4363 = vmatpush.msra.mxu0 %v4060_v14  ;;  %v3604_v32 = vrot.slane %v3599_v36, 7  ;;  %v4097_v56 = vld [vmem:[%s9380_s14 + $0x380] sm:$0xff] }
 0x5ae   : > { %v4029_v14 = vld [vmem:[%s9380_s14 + $0x160] sm:$0xff] }
 0x5af   : > { %v8793_v4 = vpop.f32.mrf.mxu1  ;;  %4344 = vmatpush.msra.mxu2 %v3992_v27  ;;  %4364 = vmatpush.msra.mxu0 %v4056_v28  ;;  %v4093_v27 = vld [vmem:[%s9380_s14 + $0x360] sm:$0xff] }
 0x5b0   : > { %v4025_v28 = vld [vmem:[%s9380_s14 + $0x140] sm:$0xff] }
 0x5b1   : > { %4345 = vmatpush.msra.mxu2 %v3988_v7  ;;  %4365 = vmatpush.msra.mxu0 %v4052_v15  ;;  %v4089_v36 = vld [vmem:[%s9380_s14 + $0x340] sm:$0xff] }
 0x5b2   : > { %v3579_v42 = vpop.f32.mrf.mxu2  ;;  %v4021_v7 = vld [vmem:[%s9380_s14 + $0x120] sm:$0xff] }
 0x5b3   : > { %v3605_v61 = vsel %vm845_vm0, %v3579_v42, %v3604_v32  ;;  %v4081_v15 = vld [vmem:[%s9380_s14 + $0x300] sm:$0xff] }
 0x5b4   : > { %v3607_v48 = vadd.f32 %v3605_v61, %v3526_v29  ;;  %v4073_v42 = vld [vmem:[%s9380_s14 + $0x2c0] sm:$0xff]  ;;  %v4043_v61 = vld [vmem:[%s9380_s14 + $0x1d0] sm:$0xff] }
 0x5b5   : > { %v3680_v18 = vpop.f32.mrf.mxu3  ;;  %v3985_v32 = vld [vmem:[%s9380_s14] sm:$0xff]  ;;  %v4107_v29 = vld [vmem:[%s9380_s14 + $0x3d0] sm:$0xff] }
 0x5b6   : > { %v3685_v9 = vrot.slane %v3680_v18, 7  ;;  %v4013_v18 = vld [vmem:[%s9380_s14 + $0xe0] sm:$0xff] }
 0x5b8   : > { %v3686_v54 = vsel %vm845_vm0, %v8793_v4, %v3685_v9  ;;  %v4049_v9 = vld [vmem:[%s9380_s14 + $0x200] sm:$0xff] }
 0x5b9   : > { %v3688_v0 = vadd.f32 %v3686_v54, %v3607_v48  ;;  %v4103_v54 = vld [vmem:[%s9380_s14 + $0x3b0] sm:$0xff] }
 0x5ba   : > { %v4031_v48 = vld [vmem:[%s9380_s14 + $0x170] sm:$0xff] }
 0x5ce   : > { %v3761_v49 = vpop.f32.mrf.mxu0 }
 0x5cf   : > { %v3766_v40 = vrot.slane %v3761_v49, 7  ;;  %v3989_v49 = vld [vmem:[%s9380_s14 + $0x20] sm:$0xff] }
 0x5d1   : > { %v8819_v51 = vpop.f32.mrf.mxu1 }
 0x5d4   : > { %v3741_v11 = vpop.f32.mrf.mxu2 }
 0x5d5   : > { %v3767_v50 = vsel %vm845_vm0, %v3741_v11, %v3766_v40  ;;  %v4039_v11 = vld [vmem:[%s9380_s14 + $0x1b0] sm:$0xff] }
 0x5d6   : > { %v3769_v45 = vadd.f32 %v3767_v50, %v3688_v0  ;;  %v4035_v40 = vld [vmem:[%s9380_s14 + $0x190] sm:$0xff] }
 0x5d7   : > { %v3842_v23 = vpop.f32.mrf.mxu3  ;;  %v4095_v50 = vld [vmem:[%s9380_s14 + $0x370] sm:$0xff] }
 0x5d8   : > { %v3847_v2 = vrot.slane %v3842_v23, 7  ;;  %v4111_v23 = vld [vmem:[%s9380_s14 + $0x3f0] sm:$0xff] }
 0x5d9   : > { %v3955_v8 = vpop.f32.mrf.mxu1  ;;  %v4027_v0 = vld [vmem:[%s9380_s14 + $0x150] sm:$0xff] }
 0x5da   : > { %v3956_v33 = vadd.f32 %v3955_v8, %v3933_v52  ;;  %v3848_v38 = vsel %vm845_vm0, %v8819_v51, %v3847_v2  ;;  %v4113_v51 = vld [vmem:[%s9381_s15] sm:$0xff]  ;;  %v4119_v52 = vld [vmem:[%s9381_s15 + $0x30] sm:$0xff] }
 0x5db   : > { %v3850_v37 = vadd.f32 %v3848_v38, %v3769_v45  ;;  %4140 = vmatpush.msrb.mxu1 %v4113_v51  ;;  %v3960_v8 = vld [vmem:[%s9379_s13] sm:$0x1]  ;;  %v4099_v2 = vld [vmem:[%s9380_s14 + $0x390] sm:$0xff]  ;;  %v4451_v38 = vld [vmem:[%s9383_s17 + $0x1f8] sm:$0xff] }
 0x5dc   : > { %v3958_v55 = vmax.f32 %v3956_v33, 0.0  ;;  %v4023_v45 = vld [vmem:[%s9380_s14 + $0x130] sm:$0xff] }
 0x5dd   : > { %4179 = vmatpush.msra.mxu1 %v4119_v52  ;;  %v4079_v51 = vld [vmem:[%s9380_s14 + $0x2f0] sm:$0xff] }
 0x5de   : > { %5192 = vmatmul.msk.f32.vlgmr.msra.gmra.mxu3 %vm3934_vm5, %v3958_v55  ;;  %v4105_v55 = vld [vmem:[%s9380_s14 + $0x3c0] sm:$0xff]  ;;  %v4011_v52 = vld [vmem:[%s9380_s14 + $0xd0] sm:$0xff] }
 0x5df   : > { %4199 = vmatpush.msra.mxu3 %v4120_v21  ;;  %4180 = vmatpush.msra.mxu1 %v4115_v46  ;;  %v4075_v21 = vld [vmem:[%s9380_s14 + $0x2d0] sm:$0xff] }
 0x5e0   : > { %v4007_v46 = vld [vmem:[%s9380_s14 + $0xb0] sm:$0xff] }
 0x5e1   : > { %4200 = vmatpush.msra.mxu3 %v4116_v62  ;;  %v4071_v62 = vld [vmem:[%s9380_s14 + $0x2b0] sm:$0xff] }
 0x5ef   : > { %v3921_v57 = vpop.f32.mrf.mxu0 }
 0x5f0   : > { %v3926_v60 = vrot.slane %v3921_v57, 7  ;;  %v4091_v57 = vld [vmem:[%s9380_s14 + $0x350] sm:$0xff] }
 0x5f5   : > { %v3901_v30 = vpop.f32.mrf.mxu2 }
 0x5f6   : > { %v3927_v41 = vsel %vm845_vm0, %v3901_v30, %v3926_v60  ;;  %v4087_v60 = vld [vmem:[%s9380_s14 + $0x330] sm:$0xff] }
 0x5f7   : > { %v3929_v26 = vadd.f32 %v3927_v41, %v3850_v37  ;;  %v4450_v37 = vld [vmem:[%s9383_s17 + $0x1f0] sm:$0xff] }
 0x5f8   : > { %v4019_v30 = vld [vmem:[%s9380_s14 + $0x110] sm:$0xff] }
 0x5f9   : > { %v3930_v31 = vmax.f32 %v3929_v26, 0.0  ;;  %v4083_v41 = vld [vmem:[%s9380_s14 + $0x310] sm:$0xff]  ;;  %v4449_v26 = vld [vmem:[%s9383_s17 + $0x1e8] sm:$0xff] }
 0x5fb   : > { %v8901_v24 = vperm.slane %v3930_v31, 0  ;;  %v8903_v4 = vperm.slane %v3930_v31, 1  ;;  %v4015_v31 = vld [vmem:[%s9380_s14 + $0xf0] sm:$0xff] }
 0x5fd   : > { %4266 = vmatmul.f32.vlgmr.msrb.gmra.mxu2 %v8901_v24  ;;  %4286 = vmatmul.f32.vlgmr.msrb.gmra.mxu0 %v8903_v4 }
 0x5fe   : > { %4513 = vmatpush.msrb.mxu0 %v4451_v38 }
 0x600   : > { %4514 = vmatpush.msrb.mxu0 %v4450_v37 }
 0x602   : > { %4515 = vmatpush.msrb.mxu0 %v4449_v26 }
 0x604   : > { %4516 = vmatpush.msrb.mxu0 %v4448_v34  ;;  %v4389_v34 = vld [vmem:[%s9383_s17 + $0x8] sm:$0xff] }
 0x605   : > { %4346 = vmatmul.f32.vlgmr.msra.gmra.mxu2 %v8901_v24  ;;  %4366 = vmatmul.f32.vlgmr.msra.gmra.mxu0 %v8903_v4 }
 0x661   : > { %v3981_v35 = vpop.f32.mrf.mxu3 }
 0x662   : > { %v3982_v5 = vadd.f32 %v3981_v35, %v3960_v8  ;;  %v4003_v8 = vld [vmem:[%s9380_s14 + $0x90] sm:$0xff] }
 0x663   : > { %v4067_v35 = vld [vmem:[%s9380_s14 + $0x290] sm:$0xff] }
 0x664   : > { %v3984_v33 = vmax.f32 %v3982_v5, 0.0  ;;  %v3999_v5 = vld [vmem:[%s9380_s14 + $0x70] sm:$0xff] }
 0x666   : > { %5193 = vmatmul.msk.f32.vlgmr.msrb.gmra.mxu1 %vm4121_vm6, %v3984_v33  ;;  %5194 = vmatmul.msk.f32.vlgmr.msrb.gmra.mxu3 %vm4121_vm6, %v3984_v33 }
 0x667   : > { %4210 = vmatpush.msrb.mxu1 %v4045_v19  ;;  %4230 = vmatpush.msrb.mxu3 %v4109_v39  ;;  %v3995_v19 = vld [vmem:[%s9380_s14 + $0x50] sm:$0xff] }
 0x668   : > { %v4059_v39 = vld [vmem:[%s9380_s14 + $0x250] sm:$0xff] }
 0x669   : > { %4211 = vmatpush.msrb.mxu1 %v4041_v63  ;;  %4231 = vmatpush.msrb.mxu3 %v4105_v55  ;;  %v3991_v63 = vld [vmem:[%s9380_s14 + $0x30] sm:$0xff] }
 0x66a   : > { %v4055_v55 = vld [vmem:[%s9380_s14 + $0x230] sm:$0xff] }
 0x66b   : > { %4212 = vmatpush.msrb.mxu1 %v4037_v1  ;;  %4232 = vmatpush.msrb.mxu3 %v4101_v59  ;;  %v3987_v1 = vld [vmem:[%s9380_s14 + $0x10] sm:$0xff] }
 0x66c   : > { %v4051_v59 = vld [vmem:[%s9380_s14 + $0x210] sm:$0xff] }
 0x66d   : > { %4213 = vmatpush.msrb.mxu1 %v4033_v20  ;;  %4233 = vmatpush.msrb.mxu3 %v4097_v56  ;;  %v4419_v20 = vld [vmem:[%s9383_s17 + $0xf8] sm:$0xff]  ;;  %v4418_v56 = vld [vmem:[%s9383_s17 + $0xf0] sm:$0xff] }
 0x66e   : > { %5195 = vmatmul.msk.f32.vlgmr.msra.gmra.mxu1 %vm4121_vm6, %v3984_v33  ;;  %5196 = vmatmul.msk.f32.vlgmr.msra.gmra.mxu3 %vm4121_vm6, %v3984_v33  ;;  %v4063_v33 = vld [vmem:[%s9380_s14 + $0x270] sm:$0xff] }
 0x66f   : > { %4214 = vmatpush.msrb.mxu1 %v4029_v14  ;;  %4234 = vmatpush.msrb.mxu3 %v4093_v27  ;;  %v4417_v14 = vld [vmem:[%s9383_s17 + $0xe8] sm:$0xff]  ;;  %v4416_v27 = vld [vmem:[%s9383_s17 + $0xe0] sm:$0xff] }
 0x671   : > { %4215 = vmatpush.msrb.mxu1 %v4025_v28  ;;  %4235 = vmatpush.msrb.mxu3 %v4089_v36  ;;  %v4413_v28 = vld [vmem:[%s9383_s17 + $0xc8] sm:$0xff]  ;;  %v4412_v36 = vld [vmem:[%s9383_s17 + $0xc0] sm:$0xff] }
 0x673   : > { %4216 = vmatpush.msrb.mxu1 %v4021_v7  ;;  %4236 = vmatpush.msrb.mxu3 %v4085_v25  ;;  %v4411_v7 = vld [vmem:[%s9383_s17 + $0xb8] sm:$0xff] }
 0x674   : > { %v4447_v25 = vld [vmem:[%s9383_s17 + $0x1d8] sm:$0xff] }
 0x675   : > { %4217 = vmatpush.msrb.mxu1 %v4017_v12  ;;  %4237 = vmatpush.msrb.mxu3 %v4081_v15  ;;  %v4410_v12 = vld [vmem:[%s9383_s17 + $0xb0] sm:$0xff] }
 0x676   : > { %4517 = vmatpush.msrb.mxu0 %v4447_v25  ;;  %v4446_v15 = vld [vmem:[%s9383_s17 + $0x1d0] sm:$0xff]  ;;  %v4425_v25 = vld [vmem:[%s9383_s17 + $0x128] sm:$0xff] }
 0x677   : > { %4218 = vmatpush.msrb.mxu1 %v4013_v18  ;;  %4238 = vmatpush.msrb.mxu3 %v4077_v6  ;;  %v4409_v18 = vld [vmem:[%s9383_s17 + $0xa8] sm:$0xff] }
 0x678   : > { %v4445_v6 = vld [vmem:[%s9383_s17 + $0x1c8] sm:$0xff]  ;;  %4518 = vmatpush.msrb.mxu0 %v4446_v15 }
 0x679   : > { %4219 = vmatpush.msrb.mxu1 %v4009_v22  ;;  %4239 = vmatpush.msrb.mxu3 %v4073_v42  ;;  %v4408_v22 = vld [vmem:[%s9383_s17 + $0xa0] sm:$0xff] }
 0x67a   : > { %4519 = vmatpush.msrb.mxu0 %v4445_v6  ;;  %v4444_v42 = vld [vmem:[%s9383_s17 + $0x1c0] sm:$0xff] }
 0x67b   : > { %4220 = vmatpush.msrb.mxu1 %v4005_v44  ;;  %4240 = vmatpush.msrb.mxu3 %v4069_v16  ;;  %v4407_v44 = vld [vmem:[%s9383_s17 + $0x98] sm:$0xff] }
 0x67c   : > { %4520 = vmatpush.msrb.mxu0 %v4444_v42  ;;  %v4443_v16 = vld [vmem:[%s9383_s17 + $0x1b8] sm:$0xff] }
 0x67d   : > { %4221 = vmatpush.msrb.mxu1 %v4001_v47  ;;  %4241 = vmatpush.msrb.mxu3 %v4065_v10  ;;  %v4406_v47 = vld [vmem:[%s9383_s17 + $0x90] sm:$0xff] }
 0x67e   : > { %4521 = vmatpush.msrb.mxu0 %v4443_v16  ;;  %v4442_v10 = vld [vmem:[%s9383_s17 + $0x1b0] sm:$0xff] }
 0x67f   : > { %4222 = vmatpush.msrb.mxu1 %v3997_v17  ;;  %4242 = vmatpush.msrb.mxu3 %v4061_v13  ;;  %v4405_v17 = vld [vmem:[%s9383_s17 + $0x88] sm:$0xff]  ;;  %v4422_v16 = vld [vmem:[%s9383_s17 + $0x110] sm:$0xff] }
 0x680   : > { %4522 = vmatpush.msrb.mxu0 %v4442_v10  ;;  %v4441_v13 = vld [vmem:[%s9383_s17 + $0x1a8] sm:$0xff]  ;;  %v4267_v38 = vpop.f32.mrf.mxu2 }
 0x681   : > { %4223 = vmatpush.msrb.mxu1 %v3993_v3  ;;  %4243 = vmatpush.msrb.mxu3 %v4057_v53  ;;  %v4403_v3 = vld [vmem:[%s9383_s17 + $0x78] sm:$0xff]  ;;  %v4404_v53 = vld [vmem:[%s9383_s17 + $0x80] sm:$0xff]  ;;  %v4421_v10 = vld [vmem:[%s9383_s17 + $0x108] sm:$0xff] }
 0x682   : > { %4523 = vmatpush.msrb.mxu0 %v4441_v13  ;;  %v4420_v13 = vld [vmem:[%s9383_s17 + $0x100] sm:$0xff] }
 0x683   : > { %4224 = vmatpush.msrb.mxu1 %v3989_v49  ;;  %4244 = vmatpush.msrb.mxu3 %v4053_v58  ;;  %v4440_v49 = vld [vmem:[%s9383_s17 + $0x1a0] sm:$0xff]  ;;  %v4402_v58 = vld [vmem:[%s9383_s17 + $0x70] sm:$0xff] }
 0x684   : > { %4524 = vmatpush.msrb.mxu0 %v4440_v49 }
 0x685   : > { %4225 = vmatpush.msrb.mxu1 %v3985_v32  ;;  %4245 = vmatpush.msrb.mxu3 %v4049_v9  ;;  %v4439_v32 = vld [vmem:[%s9383_s17 + $0x198] sm:$0xff]  ;;  %v4401_v9 = vld [vmem:[%s9383_s17 + $0x68] sm:$0xff] }
 0x686   : > { %4226 = vmatmul.f32.vlgmr.msrb.gmra.mxu1 %v8901_v24  ;;  %4246 = vmatmul.f32.vlgmr.msrb.gmra.mxu3 %v8903_v4 }
 0x687   : > { %4290 = vmatpush.msra.mxu1 %v4047_v43  ;;  %4310 = vmatpush.msra.mxu3 %v4111_v23  ;;  %v4438_v43 = vld [vmem:[%s9383_s17 + $0x190] sm:$0xff]  ;;  %v4400_v23 = vld [vmem:[%s9383_s17 + $0x60] sm:$0xff] }
 0x688   : > { %4525 = vmatpush.msrb.mxu0 %v4439_v32 }
 0x689   : > { %4291 = vmatpush.msra.mxu1 %v4043_v61  ;;  %4311 = vmatpush.msra.mxu3 %v4107_v29  ;;  %v4437_v61 = vld [vmem:[%s9383_s17 + $0x188] sm:$0xff]  ;;  %v4399_v29 = vld [vmem:[%s9383_s17 + $0x58] sm:$0xff] }
 0x68a   : > { %4526 = vmatpush.msrb.mxu0 %v4438_v43 }
 0x68b   : > { %4292 = vmatpush.msra.mxu1 %v4039_v11  ;;  %4312 = vmatpush.msra.mxu3 %v4103_v54  ;;  %v4436_v11 = vld [vmem:[%s9383_s17 + $0x180] sm:$0xff]  ;;  %v4398_v54 = vld [vmem:[%s9383_s17 + $0x50] sm:$0xff] }
 0x68c   : > { %4527 = vmatpush.msrb.mxu0 %v4437_v61 }
 0x68d   : > { %4293 = vmatpush.msra.mxu1 %v4035_v40  ;;  %4313 = vmatpush.msra.mxu3 %v4099_v2  ;;  %v4397_v40 = vld [vmem:[%s9383_s17 + $0x48] sm:$0xff]  ;;  %v4396_v2 = vld [vmem:[%s9383_s17 + $0x40] sm:$0xff] }
 0x68e   : > { %4528 = vmatpush.msrb.mxu0 %v4436_v11 }
 0x68f   : > { %4294 = vmatpush.msra.mxu1 %v4031_v48  ;;  %4314 = vmatpush.msra.mxu3 %v4095_v50  ;;  %v4395_v48 = vld [vmem:[%s9383_s17 + $0x38] sm:$0xff]  ;;  %v4394_v50 = vld [vmem:[%s9383_s17 + $0x30] sm:$0xff] }
 0x691   : > { %4295 = vmatpush.msra.mxu1 %v4027_v0  ;;  %4315 = vmatpush.msra.mxu3 %v4091_v57  ;;  %v4393_v0 = vld [vmem:[%s9383_s17 + $0x28] sm:$0xff]  ;;  %v4392_v57 = vld [vmem:[%s9383_s17 + $0x20] sm:$0xff] }
 0x693   : > { %4296 = vmatpush.msra.mxu1 %v4023_v45  ;;  %4316 = vmatpush.msra.mxu3 %v4087_v60  ;;  %v9265_v45 = vld [vmem:[%s9382_s16] sm:$0xf]  ;;  %v4287_v60 = vpop.f32.mrf.mxu0 }
 0x694   : > { %v4373_v26 = vperm.slane %v9265_v45, 1  ;;  %v4372_v6 = vperm.slane %v9265_v45, 0  ;;  %v4374_v49 = vperm.slane %v9265_v45, 2 }
 0x695   : > { %4297 = vmatpush.msra.mxu1 %v4019_v30  ;;  %4317 = vmatpush.msra.mxu3 %v4083_v41  ;;  %v4391_v30 = vld [vmem:[%s9383_s17 + $0x18] sm:$0xff] }
 0x697   : > { %4298 = vmatpush.msra.mxu1 %v4015_v31  ;;  %4318 = vmatpush.msra.mxu3 %v4079_v51  ;;  %v4390_v31 = vld [vmem:[%s9383_s17 + $0x10] sm:$0xff] }
 0x699   : > { %4299 = vmatpush.msra.mxu1 %v4011_v52  ;;  %4319 = vmatpush.msra.mxu3 %v4075_v21  ;;  %v4388_v21 = vld [vmem:[%s9383_s17] sm:$0xff] }
 0x69b   : > { %4300 = vmatpush.msra.mxu1 %v4007_v46  ;;  %4320 = vmatpush.msra.mxu3 %v4071_v62  ;;  %v4435_v62 = vld [vmem:[%s9383_s17 + $0x178] sm:$0xff] }
 0x69c   : > { %4493 = vmatpush.msrb.mxu2 %v4435_v62 }
 0x69d   : > { %4301 = vmatpush.msra.mxu1 %v4003_v8  ;;  %4321 = vmatpush.msra.mxu3 %v4067_v35  ;;  %v4434_v8 = vld [vmem:[%s9383_s17 + $0x170] sm:$0xff]  ;;  %v4347_v35 = vpop.f32.mrf.mxu2 }
 0x69e   : > { %4494 = vmatpush.msrb.mxu2 %v4434_v8 }
 0x69f   : > { %4302 = vmatpush.msra.mxu1 %v3999_v5  ;;  %4322 = vmatpush.msra.mxu3 %v4063_v33 }
 0x6a1   : > { %4303 = vmatpush.msra.mxu1 %v3995_v19  ;;  %4323 = vmatpush.msra.mxu3 %v4059_v39  ;;  %v4375_v19 = vperm.slane %v9265_v45, 3  ;;  %v4433_v39 = vld [vmem:[%s9383_s17 + $0x168] sm:$0xff] }
 0x6a2   : > { %4495 = vmatpush.msrb.mxu2 %v4433_v39 }
 0x6a3   : > { %4304 = vmatpush.msra.mxu1 %v3991_v63  ;;  %4324 = vmatpush.msra.mxu3 %v4055_v55  ;;  %v4367_v63 = vpop.f32.mrf.mxu0 }
 0x6a5   : > { %4305 = vmatpush.msra.mxu1 %v3987_v1  ;;  %4325 = vmatpush.msra.mxu3 %v4051_v59  ;;  %v4432_v59 = vld [vmem:[%s9383_s17 + $0x160] sm:$0xff] }
 0x6a6   : > { %4306 = vmatmul.f32.vlgmr.msra.gmra.mxu1 %v8901_v24  ;;  %4326 = vmatmul.f32.vlgmr.msra.gmra.mxu3 %v8903_v4  ;;  %v4415_v24 = vld [vmem:[%s9383_s17 + $0xd8] sm:$0xff]  ;;  %v4414_v4 = vld [vmem:[%s9383_s17 + $0xd0] sm:$0xff] }
 0x6a7   : > { %4473 = vmatpush.msrb.mxu3 %v4419_v20  ;;  %4453 = vmatpush.msrb.mxu1 %v4403_v3 }
 0x6a8   : > { %4496 = vmatpush.msrb.mxu2 %v4432_v59 }
 0x6a9   : > { %4474 = vmatpush.msrb.mxu3 %v4418_v56  ;;  %4454 = vmatpush.msrb.mxu1 %v4402_v58  ;;  %v4431_v56 = vld [vmem:[%s9383_s17 + $0x158] sm:$0xff] }
 0x6aa   : > { %4497 = vmatpush.msrb.mxu2 %v4431_v56 }
 0x6ab   : > { %4475 = vmatpush.msrb.mxu3 %v4417_v14  ;;  %4455 = vmatpush.msrb.mxu1 %v4401_v9 }
 0x6ad   : > { %4476 = vmatpush.msrb.mxu3 %v4416_v27  ;;  %4456 = vmatpush.msrb.mxu1 %v4400_v23  ;;  %v4430_v27 = vld [vmem:[%s9383_s17 + $0x150] sm:$0xff]  ;;  %v4452_v23 = vld [vmem:[%s9384_s18] sm:$0x1] }
 0x6ae   : > { %4498 = vmatpush.msrb.mxu2 %v4430_v27 }
 0x6af   : > { %4477 = vmatpush.msrb.mxu3 %v4415_v24  ;;  %4457 = vmatpush.msrb.mxu1 %v4399_v29  ;;  %v4429_v24 = vld [vmem:[%s9383_s17 + $0x148] sm:$0xff] }
 0x6b0   : > { %4499 = vmatpush.msrb.mxu2 %v4429_v24 }
 0x6b1   : > { %4478 = vmatpush.msrb.mxu3 %v4414_v4  ;;  %4458 = vmatpush.msrb.mxu1 %v4398_v54  ;;  %v4428_v4 = vld [vmem:[%s9383_s17 + $0x140] sm:$0xff] }
 0x6b2   : > { %4500 = vmatpush.msrb.mxu2 %v4428_v4 }
 0x6b3   : > { %4479 = vmatpush.msrb.mxu3 %v4413_v28  ;;  %4459 = vmatpush.msrb.mxu1 %v4397_v40 }
 0x6b5   : > { %4480 = vmatpush.msrb.mxu3 %v4412_v36  ;;  %4460 = vmatpush.msrb.mxu1 %v4396_v2  ;;  %v4427_v36 = vld [vmem:[%s9383_s17 + $0x138] sm:$0xff] }
 0x6b6   : > { %4501 = vmatpush.msrb.mxu2 %v4427_v36 }
 0x6b7   : > { %4481 = vmatpush.msrb.mxu3 %v4411_v7  ;;  %4461 = vmatpush.msrb.mxu1 %v4395_v48  ;;  %v4426_v7 = vld [vmem:[%s9383_s17 + $0x130] sm:$0xff] }
 0x6b8   : > { %4502 = vmatpush.msrb.mxu2 %v4426_v7 }
 0x6b9   : > { %4482 = vmatpush.msrb.mxu3 %v4410_v12  ;;  %4462 = vmatpush.msrb.mxu1 %v4394_v50  ;;  %v4424_v12 = vld [vmem:[%s9383_s17 + $0x120] sm:$0xff] }
 0x6ba   : > { %4503 = vmatpush.msrb.mxu2 %v4425_v25 }
 0x6bb   : > { %4483 = vmatpush.msrb.mxu3 %v4409_v18  ;;  %4463 = vmatpush.msrb.mxu1 %v4393_v0 }
 0x6bc   : > { %4504 = vmatpush.msrb.mxu2 %v4424_v12 }
 0x6bd   : > { %4484 = vmatpush.msrb.mxu3 %v4408_v22  ;;  %4464 = vmatpush.msrb.mxu1 %v4392_v57  ;;  %v4423_v22 = vld [vmem:[%s9383_s17 + $0x118] sm:$0xff] }
 0x6be   : > { %4505 = vmatpush.msrb.mxu2 %v4423_v22 }
 0x6bf   : > { %4485 = vmatpush.msrb.mxu3 %v4407_v44  ;;  %4465 = vmatpush.msrb.mxu1 %v4391_v30 }
 0x6c0   : > { %4506 = vmatpush.msrb.mxu2 %v4422_v16 }
 0x6c1   : > { %4486 = vmatpush.msrb.mxu3 %v4406_v47  ;;  %4466 = vmatpush.msrb.mxu1 %v4390_v31 }
 0x6c2   : > { %4507 = vmatpush.msrb.mxu2 %v4421_v10 }
 0x6c3   : > { %4487 = vmatpush.msrb.mxu3 %v4405_v17  ;;  %4467 = vmatpush.msrb.mxu1 %v4389_v34 }
 0x6c4   : > { %4508 = vmatpush.msrb.mxu2 %v4420_v13 }
 0x6c5   : > { %4488 = vmatpush.msrb.mxu3 %v4404_v53  ;;  %4468 = vmatpush.msrb.mxu1 %v4388_v21 }
 0x6e3   : > { %v4142_v55 = vpop.f32.mrf.mxu1 }
 0x6e9   : > { %v4162_v37 = vpop.f32.mrf.mxu3 }
 0x6ea   : > { %v4268_v41 = vadd.f32 %v4267_v38, %v4162_v37 }
 0x6eb   : > { %v4182_v28 = vpop.f32.mrf.mxu1 }
 0x6ec   : > { %v4288_v51 = vadd.f32 %v4287_v60, %v4268_v41 }
 0x6ee   : > { %v4381_v52 = vadd.f32 %v4373_v26, %v4288_v51 }
 0x6f0   : > { %v4385_v46 = vmax.f32 %v4381_v52, 0.0 }
 0x6f1   : > { %v4202_v5 = vpop.f32.mrf.mxu3 }
 0x6f2   : > { %v4348_v33 = vadd.f32 %v4347_v35, %v4202_v5  ;;  %4489 = vmatmul.f32.vlgmr.msrb.gmra.mxu3 %v4385_v46 }
 0x6f4   : > { %v4368_v1 = vadd.f32 %v4367_v63, %v4348_v33 }
 0x6f6   : > { %v4383_v20 = vadd.f32 %v4375_v19, %v4368_v1 }
 0x6f8   : > { %v4387_v14 = vmax.f32 %v4383_v20, 0.0 }
 0x6fa   : > { %4529 = vmatmul.f32.vlgmr.msrb.gmra.mxu0 %v4387_v14 }
 0x703   : > { %v4227_v15 = vpop.f32.mrf.mxu1 }
 0x704   : > { %v4228_v18 = vadd.f32 %v4227_v15, %v4142_v55 }
 0x709   : > { %v4247_v42 = vpop.f32.mrf.mxu3 }
 0x70a   : > { %v4248_v44 = vadd.f32 %v4247_v42, %v4228_v18 }
 0x70c   : > { %v4380_v47 = vadd.f32 %v4372_v6, %v4248_v44 }
 0x70e   : > { %v4384_v17 = vmax.f32 %v4380_v47, 0.0 }
 0x710   : > { %4469 = vmatmul.f32.vlgmr.msrb.gmra.mxu1 %v4384_v17 }
 0x723   : > { %v4307_v3 = vpop.f32.mrf.mxu1 }
 0x724   : > { %v4308_v53 = vadd.f32 %v4307_v3, %v4182_v28 }
 0x729   : > { %v4327_v58 = vpop.f32.mrf.mxu3 }
 0x72a   : > { %v4328_v32 = vadd.f32 %v4327_v58, %v4308_v53 }
 0x72c   : > { %v4382_v9 = vadd.f32 %v4374_v49, %v4328_v32 }
 0x72e   : > { %v4386_v43 = vmax.f32 %v4382_v9, 0.0 }
 0x730   : > { %4509 = vmatmul.f32.vlgmr.msrb.gmra.mxu2 %v4386_v43 }
 0x775   : > { %v4490_v11 = vpop.f32.mrf.mxu3 }
 0x777   : > { %v4530_v48 = vpop.f32.mrf.mxu0 }
 0x78d   : > { %v4470_v61 = vpop.f32.mrf.mxu1 }
 0x78e   : > { %v4471_v29 = vadd.f32 %v4470_v61, %v4452_v23 }
 0x790   : > { %v4491_v54 = vadd.f32 %v4490_v11, %v4471_v29 }
 0x7b3   : > { %v4510_v40 = vpop.f32.mrf.mxu2 }
 0x7b4   : > { %v4511_v2 = vadd.f32 %v4510_v40, %v4491_v54 }
 0x7b6   : > { %v4531_v50 = vadd.f32 %v4530_v48, %v4511_v2 }
 0x7b8   : > { %v4533_v0 = vmax.f32 %v4531_v50, 0.0 }
 0x7ba   : > { %4535 = vst.msk [vmem:[%s605_s26] sm:$0x1] %vm4534_vm7, %v4533_v0 }
 0x7bb   : > { %5490 = shalt.err (!%p5487_p3)
}
 0x7bc   : > { %5289 = dma.vmem_to_hbm [thread:$0]  (%p5668_p5), %s4548_s5, 16, %s4550_s20, %s4537_s0  }
 0x7bd PF: > { %s9504_s24 = sld [smem:[#allocation7_spill]] }
 0x7be   : > { %s9505_s27 = sld [smem:[#allocation5_spill]] }
 0x7c3   : > { %p5295_p4 = scmp.ge.s32.totalorder %s9504_s24, 2 }
 0x7c4   : > { %s4561_s26 = sand.u32 1, %s9505_s27  }
 0x7c5   : > { %p5292_p7 = pnand %p5295_p4, %p5672_p6  ;;  %s4562_s1 = scalar_lea.sflag [#allocation3], %s4561_s26 }
 0x7c7   : > { %p5293_p8 = pneg %p5292_p7 }
 0x7c9   : > { %5508 = dma.done.wait (%p5293_p8), %s4562_s1, 16  }
 0x7ca   : > { %5510 = vsyncadd (%p5293_p8), %s4562_s1, 4294967280  ;;  %s9507_s21 = sld [smem:[#allocation8_spill]]  ;;  %s9510_s0 = smov %s5517_s30 }
 0x7cb   : > { %s9508_s23 = sld [smem:[#allocation6_spill]] }
 0x7cc   : > { %s9509_s20 = sld [smem:[#allocation9_spill]] }
 0x7d0   : > { %p29_p9 = scmp.ge.s32.totalorder %s9507_s21, 4  }
 0x7d1   : > { %s9511_s30 = smov %s9508_s23 }
 0x7d2   :  { %31 = sbr.rel (!%p29_p9) target bundleno = 10 (0xa), region = 158 }
 0x7d7   :  { %4567 = vsyncpa [#allocation3], 1 }
 0x7d8   :  { %4569 = vsyncpa [#allocation3 + $0x1], 1 }

</bundles_post_ra>
